<compile_context>
chip_gen: v6e
topology: v6e:2x2x1
jax: 0.10.0
libtpu: 0.0.40
codegen_flags: <defaults>
</compile_context>

<pallas_src>
import functools

import numpy as np
import jax
import jax.numpy as jnp
from jax.experimental import pallas as pl
from jax.experimental.pallas import tpu as pltpu


def _upsample_kernel(x_ref, w_ref, b_ref, csel_ref, rsel_ref, o_ref,
                     xp_ref, xsh_ref, p_ref, *, ci, co, h, w, nb):
    # x_ref   : (Ci, H, L)       folded input block, L = nb*W (batch on lanes)
    # w_ref   : (Ci*Co*16,)      SMEM: ConvTranspose2d weights, flat (ci,co,ky,kx)
    # b_ref   : (Co,)            SMEM: bias
    # csel_ref: (2L, 2L)         0/1 column interleave selector
    # rsel_ref: (Co*2H, Co*2H)   0/1 block-diagonal row interleave selector
    # o_ref   : (Co, 2H, 2L)     folded output block
    # xp_ref  : (Ci, H+2, L)     VMEM: row-padded input (zero halo rows only)
    # xsh_ref : (2*Ci, H+2, L)   VMEM: column-shifted slabs (sx=0 / sx=2)
    # p_ref   : (Co*2H, 2L)      VMEM: stacked phase accumulators P_all
    l = nb * w
    l2 = 2 * l
    h2 = 2 * h

    # ---- row-padded input: halo-only zeroing + lane-aligned interior store ----
    xp_ref[:, 1:h + 1, :] = x_ref[...].astype(jnp.float32)
    zrow = jnp.zeros((ci, 1, l), jnp.float32)
    xp_ref[:, 0:1, :] = zrow
    xp_ref[:, h + 1:h + 2, :] = zrow

    # ---- column-shifted slabs (built once per step, reused by every c_out) ----
    # Per batch segment, shift by +-1 column with a zero boundary column so the
    # segments folded along the lane axis never leak into each other.
    zcol = jnp.zeros((h + 2, 1), jnp.float32)
    for c_in in range(ci):
        ch = xp_ref[c_in]                              # (H+2, L)
        left_pieces = []
        right_pieces = []
        for b in range(nb):
            seg = ch[:, b * w:(b + 1) * w]             # (H+2, W)
            left_pieces += [zcol, seg[:, :w - 1]]      # col j <- col j-1, zero at seg start
            right_pieces += [seg[:, 1:], zcol]         # col j <- col j+1, zero at seg end
        xsh_ref[2 * c_in + 0] = jnp.concatenate(left_pieces, axis=1)
        xsh_ref[2 * c_in + 1] = jnp.concatenate(right_pieces, axis=1)

    # ---- VPU tap accumulation, c_out outermost (only 4 accumulators live) ----
    for c_out in range(co):
        bias_v = b_ref[c_out]
        # Bias folded into the init: the interleave below is an exact 0/1
        # selection, so each output pixel picks the bias up exactly once.
        accs = [jnp.full((h, l), bias_v, jnp.float32) for _ in range(4)]
        for c_in in range(ci):
            for sy in range(3):
                for sx in range(3):
                    if sx == 1:
                        slab = xp_ref[c_in, sy:sy + h, :]
                    elif sx == 0:
                        slab = xsh_ref[2 * c_in + 0, sy:sy + h, :]
                    else:
                        slab = xsh_ref[2 * c_in + 1, sy:sy + h, :]
                    for dy in range(2):
                        py = sy - dy
                        if py < 0 or py > 1:
                            continue
                        for dx in range(2):
                            px = sx - dx
                            if px < 0 or px > 1:
                                continue
                            ky = 3 - py - 2 * dy
                            kx = 3 - px - 2 * dx
                            wv = w_ref[((c_in * co + c_out) * 4 + ky) * 4 + kx]
                            p = 2 * py + px
                            accs[p] = accs[p] + wv * slab
        base = c_out * h2
        p_ref[base:base + h, 0:l] = accs[0]            # (py=0, px=0)
        p_ref[base:base + h, l:l2] = accs[1]           # (py=0, px=1)
        p_ref[base + h:base + h2, 0:l] = accs[2]       # (py=1, px=0)
        p_ref[base + h:base + h2, l:l2] = accs[3]      # (py=1, px=1)

    # ---- consolidated phase->pixel interleave: 2 MXU matmuls for all channels ----
    tmp = jnp.dot(p_ref[...], csel_ref[...], preferred_element_type=jnp.float32)
    res = jnp.dot(rsel_ref[...], tmp, preferred_element_type=jnp.float32)
    o_ref[...] = res.reshape(co, h2, l2).astype(o_ref.dtype)


def _pick_batch_fold(n, wd):
    """Largest nb dividing n that keeps >=2 grid steps (v7x has two TCs) and a
    sane folded lane width.  On v5e/v6e (1 TC) this simply maximizes folding."""
    best = 1
    for cand in range(1, min(n, 8) + 1):
        if n % cand != 0:
            continue
        if n >= 2 and (n // cand) < 2:
            continue
        if cand * wd > 1024:
            continue
        best = cand
    return best


def upsample2d_conv_transpose(x_nchw, weight, bias):
    """ConvTranspose2d(k=4, s=2, p=1, bias): x (N,Ci,H,W), weight (Ci,Co,4,4), bias (Co,)."""
    n, ci, h, wd = x_nchw.shape
    co = weight.shape[1]
    nb = _pick_batch_fold(n, wd)
    steps = n // nb
    l = nb * wd
    l2 = 2 * l
    h2 = 2 * h
    r_dim = co * h2

    # Fold nb batch elements into the lane axis (few-KiB transpose, negligible).
    x_folded = (x_nchw.reshape(steps, nb, ci, h, wd)
                .transpose(0, 2, 3, 1, 4)
                .reshape(steps, ci, h, l))

    # Flat weights / bias for SMEM scalar access.
    w_flat = weight.astype(jnp.float32).reshape(ci * co * 16)
    b_vec = bias.astype(jnp.float32).reshape(co)

    # Consolidated 0/1 selection matrices (shape-only -> plain numpy).
    #   csel[px*L + b*W + r, b*2W + 2r + px] = 1    (column interleave / segment split)
    #   rsel[c*2H + 2q + py, c*2H + py*H + q] = 1   (row interleave, block-diag over c)
    csel = np.zeros((l2, l2), np.float32)
    for px in range(2):
        for b in range(nb):
            for r in range(wd):
                csel[px * l + b * wd + r, b * 2 * wd + 2 * r + px] = 1.0
    rsel = np.zeros((r_dim, r_dim), np.float32)
    for c in range(co):
        for py in range(2):
            for q in range(h):
                rsel[c * h2 + 2 * q + py, c * h2 + py * h + q] = 1.0
    # TODO(synk): for the large-H/W / large-Co extension, generate the selectors
    # in-kernel (iota compares), apply the row interleave per channel instead of
    # block-diagonally, and add an H-tile grid axis sized for v7x's 64 MiB VMEM.

    kernel = functools.partial(_upsample_kernel, ci=ci, co=co, h=h, w=wd, nb=nb)

    out_folded = pl.pallas_call(
        kernel,
        out_shape=jax.ShapeDtypeStruct((steps, co, h2, l2), x_nchw.dtype),
        grid=(steps,),
        in_specs=[
            pl.BlockSpec((None, ci, h, l), lambda s: (s, 0, 0, 0)),
            pl.BlockSpec(memory_space=pltpu.MemorySpace.SMEM),
            pl.BlockSpec(memory_space=pltpu.MemorySpace.SMEM),
            pl.BlockSpec((l2, l2), lambda s: (0, 0)),
            pl.BlockSpec((r_dim, r_dim), lambda s: (0, 0)),
        ],
        out_specs=pl.BlockSpec((None, co, h2, l2), lambda s: (s, 0, 0, 0)),
        scratch_shapes=[
            pltpu.VMEM((ci, h + 2, l), jnp.float32),
            pltpu.VMEM((2 * ci, h + 2, l), jnp.float32),
            pltpu.VMEM((r_dim, l2), jnp.float32),
        ],
        compiler_params=pltpu.CompilerParams(dimension_semantics=("parallel",)),
    )(x_folded, w_flat, b_vec, jnp.asarray(csel), jnp.asarray(rsel))

    # Unfold the lane-packed batch back to NCHW.
    out = (out_folded.reshape(steps, co, h2, nb, 2 * wd)
           .transpose(0, 3, 1, 2, 4)
           .reshape(n, co, h2, 2 * wd))
    return out


def _reference_conv_transpose(x, w, b):
    """Direct numpy reference of ConvTranspose2d(k=4, stride=2, pad=1)."""
    x = np.asarray(x, np.float64)
    w = np.asarray(w, np.float64)
    b = np.asarray(b, np.float64)
    n, ci, h, wd = x.shape
    co = w.shape[1]
    oh, ow = 2 * h, 2 * wd
    out = np.zeros((n, co, oh, ow), np.float64)
    for bi in range(n):
        for c in range(ci):
            for iy in range(h):
                for ix in range(wd):
                    v = x[bi, c, iy, ix]
                    for ky in range(4):
                        oy = 2 * iy - 1 + ky
                        if oy < 0 or oy >= oh:
                            continue
                        for kx in range(4):
                            ox = 2 * ix - 1 + kx
                            if ox < 0 or ox >= ow:
                                continue
                            out[bi, :, oy, ox] += v * w[c, :, ky, kx]
    out += b[None, :, None, None]
    return out


if __name__ == "__main__":
    # Small shapes consistent with Upsample2D(channels=4); N=4 exercises the
    # batch-folding path (nb=2 -> 2 grid steps, one per v7x TensorCore).
    N, C_IN, C_OUT, H, W = 4, 4, 4, 16, 16

    key = jax.random.PRNGKey(0)
    kx, kw, kb = jax.random.split(key, 3)
    x = jax.random.normal(kx, (N, C_IN, H, W), jnp.float32)
    # ConvTranspose2d weight layout in PyTorch: (in_channels, out_channels, kH, kW)
    weight = jax.random.normal(kw, (C_IN, C_OUT, 4, 4), jnp.float32) * 0.1
    bias = jax.random.normal(kb, (C_OUT,), jnp.float32) * 0.1

    out = jax.jit(upsample2d_conv_transpose)(x, weight, bias)
    out = jax.block_until_ready(out)

    assert out.shape == (N, C_OUT, 2 * H, 2 * W), out.shape

    ref = _reference_conv_transpose(np.asarray(x), np.asarray(weight), np.asarray(bias))
    np.testing.assert_allclose(np.asarray(out), ref, rtol=1e-4, atol=1e-4)

    print("KERNEL_OK")
</pallas_src>

<mosaic_0001>
module attributes {stable_mosaic.version = 11 : i64} {
  func.func @_upsample_kernel(%arg0: i32, %arg1: memref<1x4x16x32xf32, #tpu.memory_space<vmem>>, %arg2: memref<256xf32, #tpu.memory_space<smem>>, %arg3: memref<4xf32, #tpu.memory_space<smem>>, %arg4: memref<64x64xf32, #tpu.memory_space<vmem>>, %arg5: memref<128x128xf32, #tpu.memory_space<vmem>>, %arg6: memref<1x4x32x64xf32, #tpu.memory_space<vmem>>, %arg7: memref<4x18x32xf32, #tpu.memory_space<vmem>>, %arg8: memref<8x18x32xf32, #tpu.memory_space<vmem>>, %arg9: memref<128x64xf32, #tpu.memory_space<vmem>>) attributes {dimension_semantics = [#tpu.dimension_semantics<parallel>], iteration_bounds = array<i64: 2>, scalar_prefetch = 0 : i64, scratch_operands = 3 : i64, tpu.core_type = #tpu.core_type<tc>, window_params = [{transform_indices = @transform_0, window_bounds = array<i64: 1, 4, 16, 32>}, {transform_indices = @transform_1, window_bounds = array<i64: 256>}, {transform_indices = @transform_2, window_bounds = array<i64: 4>}, {pipeline_mode = #tpu.pipeline_mode<synchronous>, transform_indices = @transform_3, window_bounds = array<i64: 64, 64>}, {pipeline_mode = #tpu.pipeline_mode<synchronous>, transform_indices = @transform_4, window_bounds = array<i64: 128, 128>}, {transform_indices = @transform_5, window_bounds = array<i64: 1, 4, 32, 64>}]} {
    %c0 = arith.constant 0 : index
    %c0_0 = arith.constant 0 : index
    %c0_1 = arith.constant 0 : index
    %c0_2 = arith.constant 0 : index
    %0 = vector.load %arg1[%c0, %c0_0, %c0_1, %c0_2] : memref<1x4x16x32xf32, #tpu.memory_space<vmem>>, vector<1x4x16x32xf32>
    %1 = vector.shape_cast %0 : vector<1x4x16x32xf32> to vector<4x16x32xf32>
    %c0_3 = arith.constant 0 : index
    %c1 = arith.constant 1 : index
    %c0_4 = arith.constant 0 : index
    %2 = vector.load %arg7[%c0_3, %c1, %c0_4] : memref<4x18x32xf32, #tpu.memory_space<vmem>>, vector<4x16x32xf32>
    tpu.vector_store %arg7[%c0_3, %c1, %c0_4], %1 {strides = array<i32>} : memref<4x18x32xf32, #tpu.memory_space<vmem>>, vector<4x16x32xf32>,
    %cst = arith.constant 0.000000e+00 : f32
    %3 = vector.broadcast %cst : f32 to vector<4x1x32xf32>
    %c0_5 = arith.constant 0 : index
    %c0_6 = arith.constant 0 : index
    %c0_7 = arith.constant 0 : index
    %4 = vector.load %arg7[%c0_5, %c0_6, %c0_7] : memref<4x18x32xf32, #tpu.memory_space<vmem>>, vector<4x1x32xf32>
    tpu.vector_store %arg7[%c0_5, %c0_6, %c0_7], %3 {strides = array<i32>} : memref<4x18x32xf32, #tpu.memory_space<vmem>>, vector<4x1x32xf32>,
    %c0_8 = arith.constant 0 : index
    %c17 = arith.constant 17 : index
    %c0_9 = arith.constant 0 : index
    %5 = vector.load %arg7[%c0_8, %c17, %c0_9] : memref<4x18x32xf32, #tpu.memory_space<vmem>>, vector<4x1x32xf32>
    tpu.vector_store %arg7[%c0_8, %c17, %c0_9], %3 {strides = array<i32>} : memref<4x18x32xf32, #tpu.memory_space<vmem>>, vector<4x1x32xf32>,
    %cst_10 = arith.constant 0.000000e+00 : f32
    %6 = vector.broadcast %cst_10 : f32 to vector<18x1xf32>
    %c0_11 = arith.constant 0 : index
    %c0_12 = arith.constant 0 : index
    %c0_13 = arith.constant 0 : index
    %7 = vector.load %arg7[%c0_11, %c0_12, %c0_13] : memref<4x18x32xf32, #tpu.memory_space<vmem>>, vector<1x18x32xf32>
    %8 = vector.shape_cast %7 : vector<1x18x32xf32> to vector<18x32xf32>
    %9 = vector.extract_strided_slice %8 {offsets = [0, 0], sizes = [18, 16], strides = [1, 1]} : vector<18x32xf32> to vector<18x16xf32>
    %10 = vector.extract_strided_slice %9 {offsets = [0, 0], sizes = [18, 15], strides = [1, 1]} : vector<18x16xf32> to vector<18x15xf32>
    %11 = vector.extract_strided_slice %9 {offsets = [0, 1], sizes = [18, 15], strides = [1, 1]} : vector<18x16xf32> to vector<18x15xf32>
    %12 = vector.extract_strided_slice %8 {offsets = [0, 16], sizes = [18, 16], strides = [1, 1]} : vector<18x32xf32> to vector<18x16xf32>
    %13 = vector.extract_strided_slice %12 {offsets = [0, 0], sizes = [18, 15], strides = [1, 1]} : vector<18x16xf32> to vector<18x15xf32>
    %14 = vector.extract_strided_slice %12 {offsets = [0, 1], sizes = [18, 15], strides = [1, 1]} : vector<18x16xf32> to vector<18x15xf32>
    %15 = tpu.concatenate %6, %10, %6, %13 in 1 : vector<18x1xf32>, vector<18x15xf32>, vector<18x1xf32>, vector<18x15xf32> -> vector<18x32xf32>
    %c0_14 = arith.constant 0 : index
    %c0_15 = arith.constant 0 : index
    %c0_16 = arith.constant 0 : index
    %16 = vector.load %arg8[%c0_14, %c0_15, %c0_16] : memref<8x18x32xf32, #tpu.memory_space<vmem>>, vector<1x18x32xf32>
    %17 = vector.shape_cast %16 : vector<1x18x32xf32> to vector<18x32xf32>
    %18 = vector.shape_cast %15 : vector<18x32xf32> to vector<1x18x32xf32>
    tpu.vector_store %arg8[%c0_14, %c0_15, %c0_16], %18 {strides = array<i32>} : memref<8x18x32xf32, #tpu.memory_space<vmem>>, vector<1x18x32xf32>,
    %19 = tpu.concatenate %11, %6, %14, %6 in 1 : vector<18x15xf32>, vector<18x1xf32>, vector<18x15xf32>, vector<18x1xf32> -> vector<18x32xf32>
    %c1_17 = arith.constant 1 : index
    %c0_18 = arith.constant 0 : index
    %c0_19 = arith.constant 0 : index
    %20 = vector.load %arg8[%c1_17, %c0_18, %c0_19] : memref<8x18x32xf32, #tpu.memory_space<vmem>>, vector<1x18x32xf32>
    %21 = vector.shape_cast %20 : vector<1x18x32xf32> to vector<18x32xf32>
    %22 = vector.shape_cast %19 : vector<18x32xf32> to vector<1x18x32xf32>
    tpu.vector_store %arg8[%c1_17, %c0_18, %c0_19], %22 {strides = array<i32>} : memref<8x18x32xf32, #tpu.memory_space<vmem>>, vector<1x18x32xf32>,
    %c1_20 = arith.constant 1 : index
    %c0_21 = arith.constant 0 : index
    %c0_22 = arith.constant 0 : index
    %23 = vector.load %arg7[%c1_20, %c0_21, %c0_22] : memref<4x18x32xf32, #tpu.memory_space<vmem>>, vector<1x18x32xf32>
    %24 = vector.shape_cast %23 : vector<1x18x32xf32> to vector<18x32xf32>
    %25 = vector.extract_strided_slice %24 {offsets = [0, 0], sizes = [18, 16], strides = [1, 1]} : vector<18x32xf32> to vector<18x16xf32>
    %26 = vector.extract_strided_slice %25 {offsets = [0, 0], sizes = [18, 15], strides = [1, 1]} : vector<18x16xf32> to vector<18x15xf32>
    %27 = vector.extract_strided_slice %25 {offsets = [0, 1], sizes = [18, 15], strides = [1, 1]} : vector<18x16xf32> to vector<18x15xf32>
    %28 = vector.extract_strided_slice %24 {offsets = [0, 16], sizes = [18, 16], strides = [1, 1]} : vector<18x32xf32> to vector<18x16xf32>
    %29 = vector.extract_strided_slice %28 {offsets = [0, 0], sizes = [18, 15], strides = [1, 1]} : vector<18x16xf32> to vector<18x15xf32>
    %30 = vector.extract_strided_slice %28 {offsets = [0, 1], sizes = [18, 15], strides = [1, 1]} : vector<18x16xf32> to vector<18x15xf32>
    %31 = tpu.concatenate %6, %26, %6, %29 in 1 : vector<18x1xf32>, vector<18x15xf32>, vector<18x1xf32>, vector<18x15xf32> -> vector<18x32xf32>
    %c2 = arith.constant 2 : index
    %c0_23 = arith.constant 0 : index
    %c0_24 = arith.constant 0 : index
    %32 = vector.load %arg8[%c2, %c0_23, %c0_24] : memref<8x18x32xf32, #tpu.memory_space<vmem>>, vector<1x18x32xf32>
    %33 = vector.shape_cast %32 : vector<1x18x32xf32> to vector<18x32xf32>
    %34 = vector.shape_cast %31 : vector<18x32xf32> to vector<1x18x32xf32>
    tpu.vector_store %arg8[%c2, %c0_23, %c0_24], %34 {strides = array<i32>} : memref<8x18x32xf32, #tpu.memory_space<vmem>>, vector<1x18x32xf32>,
    %35 = tpu.concatenate %27, %6, %30, %6 in 1 : vector<18x15xf32>, vector<18x1xf32>, vector<18x15xf32>, vector<18x1xf32> -> vector<18x32xf32>
    %c3 = arith.constant 3 : index
    %c0_25 = arith.constant 0 : index
    %c0_26 = arith.constant 0 : index
    %36 = vector.load %arg8[%c3, %c0_25, %c0_26] : memref<8x18x32xf32, #tpu.memory_space<vmem>>, vector<1x18x32xf32>
    %37 = vector.shape_cast %36 : vector<1x18x32xf32> to vector<18x32xf32>
    %38 = vector.shape_cast %35 : vector<18x32xf32> to vector<1x18x32xf32>
    tpu.vector_store %arg8[%c3, %c0_25, %c0_26], %38 {strides = array<i32>} : memref<8x18x32xf32, #tpu.memory_space<vmem>>, vector<1x18x32xf32>,
    %c2_27 = arith.constant 2 : index
    %c0_28 = arith.constant 0 : index
    %c0_29 = arith.constant 0 : index
    %39 = vector.load %arg7[%c2_27, %c0_28, %c0_29] : memref<4x18x32xf32, #tpu.memory_space<vmem>>, vector<1x18x32xf32>
    %40 = vector.shape_cast %39 : vector<1x18x32xf32> to vector<18x32xf32>
    %41 = vector.extract_strided_slice %40 {offsets = [0, 0], sizes = [18, 16], strides = [1, 1]} : vector<18x32xf32> to vector<18x16xf32>
    %42 = vector.extract_strided_slice %41 {offsets = [0, 0], sizes = [18, 15], strides = [1, 1]} : vector<18x16xf32> to vector<18x15xf32>
    %43 = vector.extract_strided_slice %41 {offsets = [0, 1], sizes = [18, 15], strides = [1, 1]} : vector<18x16xf32> to vector<18x15xf32>
    %44 = vector.extract_strided_slice %40 {offsets = [0, 16], sizes = [18, 16], strides = [1, 1]} : vector<18x32xf32> to vector<18x16xf32>
    %45 = vector.extract_strided_slice %44 {offsets = [0, 0], sizes = [18, 15], strides = [1, 1]} : vector<18x16xf32> to vector<18x15xf32>
    %46 = vector.extract_strided_slice %44 {offsets = [0, 1], sizes = [18, 15], strides = [1, 1]} : vector<18x16xf32> to vector<18x15xf32>
    %47 = tpu.concatenate %6, %42, %6, %45 in 1 : vector<18x1xf32>, vector<18x15xf32>, vector<18x1xf32>, vector<18x15xf32> -> vector<18x32xf32>
    %c4 = arith.constant 4 : index
    %c0_30 = arith.constant 0 : index
    %c0_31 = arith.constant 0 : index
    %48 = vector.load %arg8[%c4, %c0_30, %c0_31] : memref<8x18x32xf32, #tpu.memory_space<vmem>>, vector<1x18x32xf32>
    %49 = vector.shape_cast %48 : vector<1x18x32xf32> to vector<18x32xf32>
    %50 = vector.shape_cast %47 : vector<18x32xf32> to vector<1x18x32xf32>
    tpu.vector_store %arg8[%c4, %c0_30, %c0_31], %50 {strides = array<i32>} : memref<8x18x32xf32, #tpu.memory_space<vmem>>, vector<1x18x32xf32>,
    %51 = tpu.concatenate %43, %6, %46, %6 in 1 : vector<18x15xf32>, vector<18x1xf32>, vector<18x15xf32>, vector<18x1xf32> -> vector<18x32xf32>
    %c5 = arith.constant 5 : index
    %c0_32 = arith.constant 0 : index
    %c0_33 = arith.constant 0 : index
    %52 = vector.load %arg8[%c5, %c0_32, %c0_33] : memref<8x18x32xf32, #tpu.memory_space<vmem>>, vector<1x18x32xf32>
    %53 = vector.shape_cast %52 : vector<1x18x32xf32> to vector<18x32xf32>
    %54 = vector.shape_cast %51 : vector<18x32xf32> to vector<1x18x32xf32>
    tpu.vector_store %arg8[%c5, %c0_32, %c0_33], %54 {strides = array<i32>} : memref<8x18x32xf32, #tpu.memory_space<vmem>>, vector<1x18x32xf32>,
    %c3_34 = arith.constant 3 : index
    %c0_35 = arith.constant 0 : index
    %c0_36 = arith.constant 0 : index
    %55 = vector.load %arg7[%c3_34, %c0_35, %c0_36] : memref<4x18x32xf32, #tpu.memory_space<vmem>>, vector<1x18x32xf32>
    %56 = vector.shape_cast %55 : vector<1x18x32xf32> to vector<18x32xf32>
    %57 = vector.extract_strided_slice %56 {offsets = [0, 0], sizes = [18, 16], strides = [1, 1]} : vector<18x32xf32> to vector<18x16xf32>
    %58 = vector.extract_strided_slice %57 {offsets = [0, 0], sizes = [18, 15], strides = [1, 1]} : vector<18x16xf32> to vector<18x15xf32>
    %59 = vector.extract_strided_slice %57 {offsets = [0, 1], sizes = [18, 15], strides = [1, 1]} : vector<18x16xf32> to vector<18x15xf32>
    %60 = vector.extract_strided_slice %56 {offsets = [0, 16], sizes = [18, 16], strides = [1, 1]} : vector<18x32xf32> to vector<18x16xf32>
    %61 = vector.extract_strided_slice %60 {offsets = [0, 0], sizes = [18, 15], strides = [1, 1]} : vector<18x16xf32> to vector<18x15xf32>
    %62 = vector.extract_strided_slice %60 {offsets = [0, 1], sizes = [18, 15], strides = [1, 1]} : vector<18x16xf32> to vector<18x15xf32>
    %63 = tpu.concatenate %6, %58, %6, %61 in 1 : vector<18x1xf32>, vector<18x15xf32>, vector<18x1xf32>, vector<18x15xf32> -> vector<18x32xf32>
    %c6 = arith.constant 6 : index
    %c0_37 = arith.constant 0 : index
    %c0_38 = arith.constant 0 : index
    %64 = vector.load %arg8[%c6, %c0_37, %c0_38] : memref<8x18x32xf32, #tpu.memory_space<vmem>>, vector<1x18x32xf32>
    %65 = vector.shape_cast %64 : vector<1x18x32xf32> to vector<18x32xf32>
    %66 = vector.shape_cast %63 : vector<18x32xf32> to vector<1x18x32xf32>
    tpu.vector_store %arg8[%c6, %c0_37, %c0_38], %66 {strides = array<i32>} : memref<8x18x32xf32, #tpu.memory_space<vmem>>, vector<1x18x32xf32>,
    %67 = tpu.concatenate %59, %6, %62, %6 in 1 : vector<18x15xf32>, vector<18x1xf32>, vector<18x15xf32>, vector<18x1xf32> -> vector<18x32xf32>
    %c7 = arith.constant 7 : index
    %c0_39 = arith.constant 0 : index
    %c0_40 = arith.constant 0 : index
    %68 = vector.load %arg8[%c7, %c0_39, %c0_40] : memref<8x18x32xf32, #tpu.memory_space<vmem>>, vector<1x18x32xf32>
    %69 = vector.shape_cast %68 : vector<1x18x32xf32> to vector<18x32xf32>
    %70 = vector.shape_cast %67 : vector<18x32xf32> to vector<1x18x32xf32>
    tpu.vector_store %arg8[%c7, %c0_39, %c0_40], %70 {strides = array<i32>} : memref<8x18x32xf32, #tpu.memory_space<vmem>>, vector<1x18x32xf32>,
    %c0_41 = arith.constant 0 : index
    %71 = memref.load %arg3[%c0_41] : memref<4xf32, #tpu.memory_space<smem>>
    %72 = vector.broadcast %71 : f32 to vector<16x32xf32>
    %73 = vector.broadcast %71 : f32 to vector<16x32xf32>
    %74 = vector.broadcast %71 : f32 to vector<16x32xf32>
    %75 = vector.broadcast %71 : f32 to vector<16x32xf32>
    %c0_42 = arith.constant 0 : index
    %c0_43 = arith.constant 0 : index
    %c0_44 = arith.constant 0 : index
    %76 = vector.load %arg8[%c0_42, %c0_43, %c0_44] : memref<8x18x32xf32, #tpu.memory_space<vmem>>, vector<1x16x32xf32>
    %77 = vector.shape_cast %76 : vector<1x16x32xf32> to vector<16x32xf32>
    %c15 = arith.constant 15 : index
    %78 = memref.load %arg2[%c15] : memref<256xf32, #tpu.memory_space<smem>>
    %79 = vector.broadcast %78 : f32 to vector<16x32xf32>
    %80 = arith.mulf %79, %77 : vector<16x32xf32>
    %81 = arith.addf %72, %80 : vector<16x32xf32>
    %c0_45 = arith.constant 0 : index
    %c0_46 = arith.constant 0 : index
    %c0_47 = arith.constant 0 : index
    %82 = vector.load %arg7[%c0_45, %c0_46, %c0_47] : memref<4x18x32xf32, #tpu.memory_space<vmem>>, vector<1x16x32xf32>
    %83 = vector.shape_cast %82 : vector<1x16x32xf32> to vector<16x32xf32>
    %c14 = arith.constant 14 : index
    %84 = memref.load %arg2[%c14] : memref<256xf32, #tpu.memory_space<smem>>
    %85 = vector.broadcast %84 : f32 to vector<16x32xf32>
    %86 = arith.mulf %85, %83 : vector<16x32xf32>
    %87 = arith.addf %73, %86 : vector<16x32xf32>
    %c13 = arith.constant 13 : index
    %88 = memref.load %arg2[%c13] : memref<256xf32, #tpu.memory_space<smem>>
    %89 = vector.broadcast %88 : f32 to vector<16x32xf32>
    %90 = arith.mulf %89, %83 : vector<16x32xf32>
    %91 = arith.addf %81, %90 : vector<16x32xf32>
    %c1_48 = arith.constant 1 : index
    %c0_49 = arith.constant 0 : index
    %c0_50 = arith.constant 0 : index
    %92 = vector.load %arg8[%c1_48, %c0_49, %c0_50] : memref<8x18x32xf32, #tpu.memory_space<vmem>>, vector<1x16x32xf32>
    %93 = vector.shape_cast %92 : vector<1x16x32xf32> to vector<16x32xf32>
    %c12 = arith.constant 12 : index
    %94 = memref.load %arg2[%c12] : memref<256xf32, #tpu.memory_space<smem>>
    %95 = vector.broadcast %94 : f32 to vector<16x32xf32>
    %96 = arith.mulf %95, %93 : vector<16x32xf32>
    %97 = arith.addf %87, %96 : vector<16x32xf32>
    %c0_51 = arith.constant 0 : index
    %c1_52 = arith.constant 1 : index
    %c0_53 = arith.constant 0 : index
    %98 = vector.load %arg8[%c0_51, %c1_52, %c0_53] : memref<8x18x32xf32, #tpu.memory_space<vmem>>, vector<1x16x32xf32>
    %99 = vector.shape_cast %98 : vector<1x16x32xf32> to vector<16x32xf32>
    %c11 = arith.constant 11 : index
    %100 = memref.load %arg2[%c11] : memref<256xf32, #tpu.memory_space<smem>>
    %101 = vector.broadcast %100 : f32 to vector<16x32xf32>
    %102 = arith.mulf %101, %99 : vector<16x32xf32>
    %103 = arith.addf %74, %102 : vector<16x32xf32>
    %c7_54 = arith.constant 7 : index
    %104 = memref.load %arg2[%c7_54] : memref<256xf32, #tpu.memory_space<smem>>
    %105 = vector.broadcast %104 : f32 to vector<16x32xf32>
    %106 = arith.mulf %105, %99 : vector<16x32xf32>
    %107 = arith.addf %91, %106 : vector<16x32xf32>
    %c0_55 = arith.constant 0 : index
    %c1_56 = arith.constant 1 : index
    %c0_57 = arith.constant 0 : index
    %108 = vector.load %arg7[%c0_55, %c1_56, %c0_57] : memref<4x18x32xf32, #tpu.memory_space<vmem>>, vector<1x16x32xf32>
    %109 = vector.shape_cast %108 : vector<1x16x32xf32> to vector<16x32xf32>
    %c10 = arith.constant 10 : index
    %110 = memref.load %arg2[%c10] : memref<256xf32, #tpu.memory_space<smem>>
    %111 = vector.broadcast %110 : f32 to vector<16x32xf32>
    %112 = arith.mulf %111, %109 : vector<16x32xf32>
    %113 = arith.addf %75, %112 : vector<16x32xf32>
    %c9 = arith.constant 9 : index
    %114 = memref.load %arg2[%c9] : memref<256xf32, #tpu.memory_space<smem>>
    %115 = vector.broadcast %114 : f32 to vector<16x32xf32>
    %116 = arith.mulf %115, %109 : vector<16x32xf32>
    %117 = arith.addf %103, %116 : vector<16x32xf32>
    %c6_58 = arith.constant 6 : index
    %118 = memref.load %arg2[%c6_58] : memref<256xf32, #tpu.memory_space<smem>>
    %119 = vector.broadcast %118 : f32 to vector<16x32xf32>
    %120 = arith.mulf %119, %109 : vector<16x32xf32>
    %121 = arith.addf %97, %120 : vector<16x32xf32>
    %c5_59 = arith.constant 5 : index
    %122 = memref.load %arg2[%c5_59] : memref<256xf32, #tpu.memory_space<smem>>
    %123 = vector.broadcast %122 : f32 to vector<16x32xf32>
    %124 = arith.mulf %123, %109 : vector<16x32xf32>
    %125 = arith.addf %107, %124 : vector<16x32xf32>
    %c1_60 = arith.constant 1 : index
    %c1_61 = arith.constant 1 : index
    %c0_62 = arith.constant 0 : index
    %126 = vector.load %arg8[%c1_60, %c1_61, %c0_62] : memref<8x18x32xf32, #tpu.memory_space<vmem>>, vector<1x16x32xf32>
    %127 = vector.shape_cast %126 : vector<1x16x32xf32> to vector<16x32xf32>
    %c8 = arith.constant 8 : index
    %128 = memref.load %arg2[%c8] : memref<256xf32, #tpu.memory_space<smem>>
    %129 = vector.broadcast %128 : f32 to vector<16x32xf32>
    %130 = arith.mulf %129, %127 : vector<16x32xf32>
    %131 = arith.addf %113, %130 : vector<16x32xf32>
    %c4_63 = arith.constant 4 : index
    %132 = memref.load %arg2[%c4_63] : memref<256xf32, #tpu.memory_space<smem>>
    %133 = vector.broadcast %132 : f32 to vector<16x32xf32>
    %134 = arith.mulf %133, %127 : vector<16x32xf32>
    %135 = arith.addf %121, %134 : vector<16x32xf32>
    %c0_64 = arith.constant 0 : index
    %c2_65 = arith.constant 2 : index
    %c0_66 = arith.constant 0 : index
    %136 = vector.load %arg8[%c0_64, %c2_65, %c0_66] : memref<8x18x32xf32, #tpu.memory_space<vmem>>, vector<1x16x32xf32>
    %137 = vector.shape_cast %136 : vector<1x16x32xf32> to vector<16x32xf32>
    %c3_67 = arith.constant 3 : index
    %138 = memref.load %arg2[%c3_67] : memref<256xf32, #tpu.memory_space<smem>>
    %139 = vector.broadcast %138 : f32 to vector<16x32xf32>
    %140 = arith.mulf %139, %137 : vector<16x32xf32>
    %141 = arith.addf %117, %140 : vector<16x32xf32>
    %c0_68 = arith.constant 0 : index
    %c2_69 = arith.constant 2 : index
    %c0_70 = arith.constant 0 : index
    %142 = vector.load %arg7[%c0_68, %c2_69, %c0_70] : memref<4x18x32xf32, #tpu.memory_space<vmem>>, vector<1x16x32xf32>
    %143 = vector.shape_cast %142 : vector<1x16x32xf32> to vector<16x32xf32>
    %c2_71 = arith.constant 2 : index
    %144 = memref.load %arg2[%c2_71] : memref<256xf32, #tpu.memory_space<smem>>
    %145 = vector.broadcast %144 : f32 to vector<16x32xf32>
    %146 = arith.mulf %145, %143 : vector<16x32xf32>
    %147 = arith.addf %131, %146 : vector<16x32xf32>
    %c1_72 = arith.constant 1 : index
    %148 = memref.load %arg2[%c1_72] : memref<256xf32, #tpu.memory_space<smem>>
    %149 = vector.broadcast %148 : f32 to vector<16x32xf32>
    %150 = arith.mulf %149, %143 : vector<16x32xf32>
    %151 = arith.addf %141, %150 : vector<16x32xf32>
    %c1_73 = arith.constant 1 : index
    %c2_74 = arith.constant 2 : index
    %c0_75 = arith.constant 0 : index
    %152 = vector.load %arg8[%c1_73, %c2_74, %c0_75] : memref<8x18x32xf32, #tpu.memory_space<vmem>>, vector<1x16x32xf32>
    %153 = vector.shape_cast %152 : vector<1x16x32xf32> to vector<16x32xf32>
    %c0_76 = arith.constant 0 : index
    %154 = memref.load %arg2[%c0_76] : memref<256xf32, #tpu.memory_space<smem>>
    %155 = vector.broadcast %154 : f32 to vector<16x32xf32>
    %156 = arith.mulf %155, %153 : vector<16x32xf32>
    %157 = arith.addf %147, %156 : vector<16x32xf32>
    %c2_77 = arith.constant 2 : index
    %c0_78 = arith.constant 0 : index
    %c0_79 = arith.constant 0 : index
    %158 = vector.load %arg8[%c2_77, %c0_78, %c0_79] : memref<8x18x32xf32, #tpu.memory_space<vmem>>, vector<1x16x32xf32>
    %159 = vector.shape_cast %158 : vector<1x16x32xf32> to vector<16x32xf32>
    %c79 = arith.constant 79 : index
    %160 = memref.load %arg2[%c79] : memref<256xf32, #tpu.memory_space<smem>>
    %161 = vector.broadcast %160 : f32 to vector<16x32xf32>
    %162 = arith.mulf %161, %159 : vector<16x32xf32>
    %163 = arith.addf %125, %162 : vector<16x32xf32>
    %c1_80 = arith.constant 1 : index
    %c0_81 = arith.constant 0 : index
    %c0_82 = arith.constant 0 : index
    %164 = vector.load %arg7[%c1_80, %c0_81, %c0_82] : memref<4x18x32xf32, #tpu.memory_space<vmem>>, vector<1x16x32xf32>
    %165 = vector.shape_cast %164 : vector<1x16x32xf32> to vector<16x32xf32>
    %c78 = arith.constant 78 : index
    %166 = memref.load %arg2[%c78] : memref<256xf32, #tpu.memory_space<smem>>
    %167 = vector.broadcast %166 : f32 to vector<16x32xf32>
    %168 = arith.mulf %167, %165 : vector<16x32xf32>
    %169 = arith.addf %135, %168 : vector<16x32xf32>
    %c77 = arith.constant 77 : index
    %170 = memref.load %arg2[%c77] : memref<256xf32, #tpu.memory_space<smem>>
    %171 = vector.broadcast %170 : f32 to vector<16x32xf32>
    %172 = arith.mulf %171, %165 : vector<16x32xf32>
    %173 = arith.addf %163, %172 : vector<16x32xf32>
    %c3_83 = arith.constant 3 : index
    %c0_84 = arith.constant 0 : index
    %c0_85 = arith.constant 0 : index
    %174 = vector.load %arg8[%c3_83, %c0_84, %c0_85] : memref<8x18x32xf32, #tpu.memory_space<vmem>>, vector<1x16x32xf32>
    %175 = vector.shape_cast %174 : vector<1x16x32xf32> to vector<16x32xf32>
    %c76 = arith.constant 76 : index
    %176 = memref.load %arg2[%c76] : memref<256xf32, #tpu.memory_space<smem>>
    %177 = vector.broadcast %176 : f32 to vector<16x32xf32>
    %178 = arith.mulf %177, %175 : vector<16x32xf32>
    %179 = arith.addf %169, %178 : vector<16x32xf32>
    %c2_86 = arith.constant 2 : index
    %c1_87 = arith.constant 1 : index
    %c0_88 = arith.constant 0 : index
    %180 = vector.load %arg8[%c2_86, %c1_87, %c0_88] : memref<8x18x32xf32, #tpu.memory_space<vmem>>, vector<1x16x32xf32>
    %181 = vector.shape_cast %180 : vector<1x16x32xf32> to vector<16x32xf32>
    %c75 = arith.constant 75 : index
    %182 = memref.load %arg2[%c75] : memref<256xf32, #tpu.memory_space<smem>>
    %183 = vector.broadcast %182 : f32 to vector<16x32xf32>
    %184 = arith.mulf %183, %181 : vector<16x32xf32>
    %185 = arith.addf %151, %184 : vector<16x32xf32>
    %c71 = arith.constant 71 : index
    %186 = memref.load %arg2[%c71] : memref<256xf32, #tpu.memory_space<smem>>
    %187 = vector.broadcast %186 : f32 to vector<16x32xf32>
    %188 = arith.mulf %187, %181 : vector<16x32xf32>
    %189 = arith.addf %173, %188 : vector<16x32xf32>
    %c1_89 = arith.constant 1 : index
    %c1_90 = arith.constant 1 : index
    %c0_91 = arith.constant 0 : index
    %190 = vector.load %arg7[%c1_89, %c1_90, %c0_91] : memref<4x18x32xf32, #tpu.memory_space<vmem>>, vector<1x16x32xf32>
    %191 = vector.shape_cast %190 : vector<1x16x32xf32> to vector<16x32xf32>
    %c74 = arith.constant 74 : index
    %192 = memref.load %arg2[%c74] : memref<256xf32, #tpu.memory_space<smem>>
    %193 = vector.broadcast %192 : f32 to vector<16x32xf32>
    %194 = arith.mulf %193, %191 : vector<16x32xf32>
    %195 = arith.addf %157, %194 : vector<16x32xf32>
    %c73 = arith.constant 73 : index
    %196 = memref.load %arg2[%c73] : memref<256xf32, #tpu.memory_space<smem>>
    %197 = vector.broadcast %196 : f32 to vector<16x32xf32>
    %198 = arith.mulf %197, %191 : vector<16x32xf32>
    %199 = arith.addf %185, %198 : vector<16x32xf32>
    %c70 = arith.constant 70 : index
    %200 = memref.load %arg2[%c70] : memref<256xf32, #tpu.memory_space<smem>>
    %201 = vector.broadcast %200 : f32 to vector<16x32xf32>
    %202 = arith.mulf %201, %191 : vector<16x32xf32>
    %203 = arith.addf %179, %202 : vector<16x32xf32>
    %c69 = arith.constant 69 : index
    %204 = memref.load %arg2[%c69] : memref<256xf32, #tpu.memory_space<smem>>
    %205 = vector.broadcast %204 : f32 to vector<16x32xf32>
    %206 = arith.mulf %205, %191 : vector<16x32xf32>
    %207 = arith.addf %189, %206 : vector<16x32xf32>
    %c3_92 = arith.constant 3 : index
    %c1_93 = arith.constant 1 : index
    %c0_94 = arith.constant 0 : index
    %208 = vector.load %arg8[%c3_92, %c1_93, %c0_94] : memref<8x18x32xf32, #tpu.memory_space<vmem>>, vector<1x16x32xf32>
    %209 = vector.shape_cast %208 : vector<1x16x32xf32> to vector<16x32xf32>
    %c72 = arith.constant 72 : index
    %210 = memref.load %arg2[%c72] : memref<256xf32, #tpu.memory_space<smem>>
    %211 = vector.broadcast %210 : f32 to vector<16x32xf32>
    %212 = arith.mulf %211, %209 : vector<16x32xf32>
    %213 = arith.addf %195, %212 : vector<16x32xf32>
    %c68 = arith.constant 68 : index
    %214 = memref.load %arg2[%c68] : memref<256xf32, #tpu.memory_space<smem>>
    %215 = vector.broadcast %214 : f32 to vector<16x32xf32>
    %216 = arith.mulf %215, %209 : vector<16x32xf32>
    %217 = arith.addf %203, %216 : vector<16x32xf32>
    %c2_95 = arith.constant 2 : index
    %c2_96 = arith.constant 2 : index
    %c0_97 = arith.constant 0 : index
    %218 = vector.load %arg8[%c2_95, %c2_96, %c0_97] : memref<8x18x32xf32, #tpu.memory_space<vmem>>, vector<1x16x32xf32>
    %219 = vector.shape_cast %218 : vector<1x16x32xf32> to vector<16x32xf32>
    %c67 = arith.constant 67 : index
    %220 = memref.load %arg2[%c67] : memref<256xf32, #tpu.memory_space<smem>>
    %221 = vector.broadcast %220 : f32 to vector<16x32xf32>
    %222 = arith.mulf %221, %219 : vector<16x32xf32>
    %223 = arith.addf %199, %222 : vector<16x32xf32>
    %c1_98 = arith.constant 1 : index
    %c2_99 = arith.constant 2 : index
    %c0_100 = arith.constant 0 : index
    %224 = vector.load %arg7[%c1_98, %c2_99, %c0_100] : memref<4x18x32xf32, #tpu.memory_space<vmem>>, vector<1x16x32xf32>
    %225 = vector.shape_cast %224 : vector<1x16x32xf32> to vector<16x32xf32>
    %c66 = arith.constant 66 : index
    %226 = memref.load %arg2[%c66] : memref<256xf32, #tpu.memory_space<smem>>
    %227 = vector.broadcast %226 : f32 to vector<16x32xf32>
    %228 = arith.mulf %227, %225 : vector<16x32xf32>
    %229 = arith.addf %213, %228 : vector<16x32xf32>
    %c65 = arith.constant 65 : index
    %230 = memref.load %arg2[%c65] : memref<256xf32, #tpu.memory_space<smem>>
    %231 = vector.broadcast %230 : f32 to vector<16x32xf32>
    %232 = arith.mulf %231, %225 : vector<16x32xf32>
    %233 = arith.addf %223, %232 : vector<16x32xf32>
    %c3_101 = arith.constant 3 : index
    %c2_102 = arith.constant 2 : index
    %c0_103 = arith.constant 0 : index
    %234 = vector.load %arg8[%c3_101, %c2_102, %c0_103] : memref<8x18x32xf32, #tpu.memory_space<vmem>>, vector<1x16x32xf32>
    %235 = vector.shape_cast %234 : vector<1x16x32xf32> to vector<16x32xf32>
    %c64 = arith.constant 64 : index
    %236 = memref.load %arg2[%c64] : memref<256xf32, #tpu.memory_space<smem>>
    %237 = vector.broadcast %236 : f32 to vector<16x32xf32>
    %238 = arith.mulf %237, %235 : vector<16x32xf32>
    %239 = arith.addf %229, %238 : vector<16x32xf32>
    %c4_104 = arith.constant 4 : index
    %c0_105 = arith.constant 0 : index
    %c0_106 = arith.constant 0 : index
    %240 = vector.load %arg8[%c4_104, %c0_105, %c0_106] : memref<8x18x32xf32, #tpu.memory_space<vmem>>, vector<1x16x32xf32>
    %241 = vector.shape_cast %240 : vector<1x16x32xf32> to vector<16x32xf32>
    %c143 = arith.constant 143 : index
    %242 = memref.load %arg2[%c143] : memref<256xf32, #tpu.memory_space<smem>>
    %243 = vector.broadcast %242 : f32 to vector<16x32xf32>
    %244 = arith.mulf %243, %241 : vector<16x32xf32>
    %245 = arith.addf %207, %244 : vector<16x32xf32>
    %c2_107 = arith.constant 2 : index
    %c0_108 = arith.constant 0 : index
    %c0_109 = arith.constant 0 : index
    %246 = vector.load %arg7[%c2_107, %c0_108, %c0_109] : memref<4x18x32xf32, #tpu.memory_space<vmem>>, vector<1x16x32xf32>
    %247 = vector.shape_cast %246 : vector<1x16x32xf32> to vector<16x32xf32>
    %c142 = arith.constant 142 : index
    %248 = memref.load %arg2[%c142] : memref<256xf32, #tpu.memory_space<smem>>
    %249 = vector.broadcast %248 : f32 to vector<16x32xf32>
    %250 = arith.mulf %249, %247 : vector<16x32xf32>
    %251 = arith.addf %217, %250 : vector<16x32xf32>
    %c141 = arith.constant 141 : index
    %252 = memref.load %arg2[%c141] : memref<256xf32, #tpu.memory_space<smem>>
    %253 = vector.broadcast %252 : f32 to vector<16x32xf32>
    %254 = arith.mulf %253, %247 : vector<16x32xf32>
    %255 = arith.addf %245, %254 : vector<16x32xf32>
    %c5_110 = arith.constant 5 : index
    %c0_111 = arith.constant 0 : index
    %c0_112 = arith.constant 0 : index
    %256 = vector.load %arg8[%c5_110, %c0_111, %c0_112] : memref<8x18x32xf32, #tpu.memory_space<vmem>>, vector<1x16x32xf32>
    %257 = vector.shape_cast %256 : vector<1x16x32xf32> to vector<16x32xf32>
    %c140 = arith.constant 140 : index
    %258 = memref.load %arg2[%c140] : memref<256xf32, #tpu.memory_space<smem>>
    %259 = vector.broadcast %258 : f32 to vector<16x32xf32>
    %260 = arith.mulf %259, %257 : vector<16x32xf32>
    %261 = arith.addf %251, %260 : vector<16x32xf32>
    %c4_113 = arith.constant 4 : index
    %c1_114 = arith.constant 1 : index
    %c0_115 = arith.constant 0 : index
    %262 = vector.load %arg8[%c4_113, %c1_114, %c0_115] : memref<8x18x32xf32, #tpu.memory_space<vmem>>, vector<1x16x32xf32>
    %263 = vector.shape_cast %262 : vector<1x16x32xf32> to vector<16x32xf32>
    %c139 = arith.constant 139 : index
    %264 = memref.load %arg2[%c139] : memref<256xf32, #tpu.memory_space<smem>>
    %265 = vector.broadcast %264 : f32 to vector<16x32xf32>
    %266 = arith.mulf %265, %263 : vector<16x32xf32>
    %267 = arith.addf %233, %266 : vector<16x32xf32>
    %c135 = arith.constant 135 : index
    %268 = memref.load %arg2[%c135] : memref<256xf32, #tpu.memory_space<smem>>
    %269 = vector.broadcast %268 : f32 to vector<16x32xf32>
    %270 = arith.mulf %269, %263 : vector<16x32xf32>
    %271 = arith.addf %255, %270 : vector<16x32xf32>
    %c2_116 = arith.constant 2 : index
    %c1_117 = arith.constant 1 : index
    %c0_118 = arith.constant 0 : index
    %272 = vector.load %arg7[%c2_116, %c1_117, %c0_118] : memref<4x18x32xf32, #tpu.memory_space<vmem>>, vector<1x16x32xf32>
    %273 = vector.shape_cast %272 : vector<1x16x32xf32> to vector<16x32xf32>
    %c138 = arith.constant 138 : index
    %274 = memref.load %arg2[%c138] : memref<256xf32, #tpu.memory_space<smem>>
    %275 = vector.broadcast %274 : f32 to vector<16x32xf32>
    %276 = arith.mulf %275, %273 : vector<16x32xf32>
    %277 = arith.addf %239, %276 : vector<16x32xf32>
    %c137 = arith.constant 137 : index
    %278 = memref.load %arg2[%c137] : memref<256xf32, #tpu.memory_space<smem>>
    %279 = vector.broadcast %278 : f32 to vector<16x32xf32>
    %280 = arith.mulf %279, %273 : vector<16x32xf32>
    %281 = arith.addf %267, %280 : vector<16x32xf32>
    %c134 = arith.constant 134 : index
    %282 = memref.load %arg2[%c134] : memref<256xf32, #tpu.memory_space<smem>>
    %283 = vector.broadcast %282 : f32 to vector<16x32xf32>
    %284 = arith.mulf %283, %273 : vector<16x32xf32>
    %285 = arith.addf %261, %284 : vector<16x32xf32>
    %c133 = arith.constant 133 : index
    %286 = memref.load %arg2[%c133] : memref<256xf32, #tpu.memory_space<smem>>
    %287 = vector.broadcast %286 : f32 to vector<16x32xf32>
    %288 = arith.mulf %287, %273 : vector<16x32xf32>
    %289 = arith.addf %271, %288 : vector<16x32xf32>
    %c5_119 = arith.constant 5 : index
    %c1_120 = arith.constant 1 : index
    %c0_121 = arith.constant 0 : index
    %290 = vector.load %arg8[%c5_119, %c1_120, %c0_121] : memref<8x18x32xf32, #tpu.memory_space<vmem>>, vector<1x16x32xf32>
    %291 = vector.shape_cast %290 : vector<1x16x32xf32> to vector<16x32xf32>
    %c136 = arith.constant 136 : index
    %292 = memref.load %arg2[%c136] : memref<256xf32, #tpu.memory_space<smem>>
    %293 = vector.broadcast %292 : f32 to vector<16x32xf32>
    %294 = arith.mulf %293, %291 : vector<16x32xf32>
    %295 = arith.addf %277, %294 : vector<16x32xf32>
    %c132 = arith.constant 132 : index
    %296 = memref.load %arg2[%c132] : memref<256xf32, #tpu.memory_space<smem>>
    %297 = vector.broadcast %296 : f32 to vector<16x32xf32>
    %298 = arith.mulf %297, %291 : vector<16x32xf32>
    %299 = arith.addf %285, %298 : vector<16x32xf32>
    %c4_122 = arith.constant 4 : index
    %c2_123 = arith.constant 2 : index
    %c0_124 = arith.constant 0 : index
    %300 = vector.load %arg8[%c4_122, %c2_123, %c0_124] : memref<8x18x32xf32, #tpu.memory_space<vmem>>, vector<1x16x32xf32>
    %301 = vector.shape_cast %300 : vector<1x16x32xf32> to vector<16x32xf32>
    %c131 = arith.constant 131 : index
    %302 = memref.load %arg2[%c131] : memref<256xf32, #tpu.memory_space<smem>>
    %303 = vector.broadcast %302 : f32 to vector<16x32xf32>
    %304 = arith.mulf %303, %301 : vector<16x32xf32>
    %305 = arith.addf %281, %304 : vector<16x32xf32>
    %c2_125 = arith.constant 2 : index
    %c2_126 = arith.constant 2 : index
    %c0_127 = arith.constant 0 : index
    %306 = vector.load %arg7[%c2_125, %c2_126, %c0_127] : memref<4x18x32xf32, #tpu.memory_space<vmem>>, vector<1x16x32xf32>
    %307 = vector.shape_cast %306 : vector<1x16x32xf32> to vector<16x32xf32>
    %c130 = arith.constant 130 : index
    %308 = memref.load %arg2[%c130] : memref<256xf32, #tpu.memory_space<smem>>
    %309 = vector.broadcast %308 : f32 to vector<16x32xf32>
    %310 = arith.mulf %309, %307 : vector<16x32xf32>
    %311 = arith.addf %295, %310 : vector<16x32xf32>
    %c129 = arith.constant 129 : index
    %312 = memref.load %arg2[%c129] : memref<256xf32, #tpu.memory_space<smem>>
    %313 = vector.broadcast %312 : f32 to vector<16x32xf32>
    %314 = arith.mulf %313, %307 : vector<16x32xf32>
    %315 = arith.addf %305, %314 : vector<16x32xf32>
    %c5_128 = arith.constant 5 : index
    %c2_129 = arith.constant 2 : index
    %c0_130 = arith.constant 0 : index
    %316 = vector.load %arg8[%c5_128, %c2_129, %c0_130] : memref<8x18x32xf32, #tpu.memory_space<vmem>>, vector<1x16x32xf32>
    %317 = vector.shape_cast %316 : vector<1x16x32xf32> to vector<16x32xf32>
    %c128 = arith.constant 128 : index
    %318 = memref.load %arg2[%c128] : memref<256xf32, #tpu.memory_space<smem>>
    %319 = vector.broadcast %318 : f32 to vector<16x32xf32>
    %320 = arith.mulf %319, %317 : vector<16x32xf32>
    %321 = arith.addf %311, %320 : vector<16x32xf32>
    %c6_131 = arith.constant 6 : index
    %c0_132 = arith.constant 0 : index
    %c0_133 = arith.constant 0 : index
    %322 = vector.load %arg8[%c6_131, %c0_132, %c0_133] : memref<8x18x32xf32, #tpu.memory_space<vmem>>, vector<1x16x32xf32>
    %323 = vector.shape_cast %322 : vector<1x16x32xf32> to vector<16x32xf32>
    %c207 = arith.constant 207 : index
    %324 = memref.load %arg2[%c207] : memref<256xf32, #tpu.memory_space<smem>>
    %325 = vector.broadcast %324 : f32 to vector<16x32xf32>
    %326 = arith.mulf %325, %323 : vector<16x32xf32>
    %327 = arith.addf %289, %326 : vector<16x32xf32>
    %c3_134 = arith.constant 3 : index
    %c0_135 = arith.constant 0 : index
    %c0_136 = arith.constant 0 : index
    %328 = vector.load %arg7[%c3_134, %c0_135, %c0_136] : memref<4x18x32xf32, #tpu.memory_space<vmem>>, vector<1x16x32xf32>
    %329 = vector.shape_cast %328 : vector<1x16x32xf32> to vector<16x32xf32>
    %c206 = arith.constant 206 : index
    %330 = memref.load %arg2[%c206] : memref<256xf32, #tpu.memory_space<smem>>
    %331 = vector.broadcast %330 : f32 to vector<16x32xf32>
    %332 = arith.mulf %331, %329 : vector<16x32xf32>
    %333 = arith.addf %299, %332 : vector<16x32xf32>
    %c205 = arith.constant 205 : index
    %334 = memref.load %arg2[%c205] : memref<256xf32, #tpu.memory_space<smem>>
    %335 = vector.broadcast %334 : f32 to vector<16x32xf32>
    %336 = arith.mulf %335, %329 : vector<16x32xf32>
    %337 = arith.addf %327, %336 : vector<16x32xf32>
    %c7_137 = arith.constant 7 : index
    %c0_138 = arith.constant 0 : index
    %c0_139 = arith.constant 0 : index
    %338 = vector.load %arg8[%c7_137, %c0_138, %c0_139] : memref<8x18x32xf32, #tpu.memory_space<vmem>>, vector<1x16x32xf32>
    %339 = vector.shape_cast %338 : vector<1x16x32xf32> to vector<16x32xf32>
    %c204 = arith.constant 204 : index
    %340 = memref.load %arg2[%c204] : memref<256xf32, #tpu.memory_space<smem>>
    %341 = vector.broadcast %340 : f32 to vector<16x32xf32>
    %342 = arith.mulf %341, %339 : vector<16x32xf32>
    %343 = arith.addf %333, %342 : vector<16x32xf32>
    %c6_140 = arith.constant 6 : index
    %c1_141 = arith.constant 1 : index
    %c0_142 = arith.constant 0 : index
    %344 = vector.load %arg8[%c6_140, %c1_141, %c0_142] : memref<8x18x32xf32, #tpu.memory_space<vmem>>, vector<1x16x32xf32>
    %345 = vector.shape_cast %344 : vector<1x16x32xf32> to vector<16x32xf32>
    %c203 = arith.constant 203 : index
    %346 = memref.load %arg2[%c203] : memref<256xf32, #tpu.memory_space<smem>>
    %347 = vector.broadcast %346 : f32 to vector<16x32xf32>
    %348 = arith.mulf %347, %345 : vector<16x32xf32>
    %349 = arith.addf %315, %348 : vector<16x32xf32>
    %c199 = arith.constant 199 : index
    %350 = memref.load %arg2[%c199] : memref<256xf32, #tpu.memory_space<smem>>
    %351 = vector.broadcast %350 : f32 to vector<16x32xf32>
    %352 = arith.mulf %351, %345 : vector<16x32xf32>
    %353 = arith.addf %337, %352 : vector<16x32xf32>
    %c3_143 = arith.constant 3 : index
    %c1_144 = arith.constant 1 : index
    %c0_145 = arith.constant 0 : index
    %354 = vector.load %arg7[%c3_143, %c1_144, %c0_145] : memref<4x18x32xf32, #tpu.memory_space<vmem>>, vector<1x16x32xf32>
    %355 = vector.shape_cast %354 : vector<1x16x32xf32> to vector<16x32xf32>
    %c202 = arith.constant 202 : index
    %356 = memref.load %arg2[%c202] : memref<256xf32, #tpu.memory_space<smem>>
    %357 = vector.broadcast %356 : f32 to vector<16x32xf32>
    %358 = arith.mulf %357, %355 : vector<16x32xf32>
    %359 = arith.addf %321, %358 : vector<16x32xf32>
    %c201 = arith.constant 201 : index
    %360 = memref.load %arg2[%c201] : memref<256xf32, #tpu.memory_space<smem>>
    %361 = vector.broadcast %360 : f32 to vector<16x32xf32>
    %362 = arith.mulf %361, %355 : vector<16x32xf32>
    %363 = arith.addf %349, %362 : vector<16x32xf32>
    %c198 = arith.constant 198 : index
    %364 = memref.load %arg2[%c198] : memref<256xf32, #tpu.memory_space<smem>>
    %365 = vector.broadcast %364 : f32 to vector<16x32xf32>
    %366 = arith.mulf %365, %355 : vector<16x32xf32>
    %367 = arith.addf %343, %366 : vector<16x32xf32>
    %c197 = arith.constant 197 : index
    %368 = memref.load %arg2[%c197] : memref<256xf32, #tpu.memory_space<smem>>
    %369 = vector.broadcast %368 : f32 to vector<16x32xf32>
    %370 = arith.mulf %369, %355 : vector<16x32xf32>
    %371 = arith.addf %353, %370 : vector<16x32xf32>
    %c7_146 = arith.constant 7 : index
    %c1_147 = arith.constant 1 : index
    %c0_148 = arith.constant 0 : index
    %372 = vector.load %arg8[%c7_146, %c1_147, %c0_148] : memref<8x18x32xf32, #tpu.memory_space<vmem>>, vector<1x16x32xf32>
    %373 = vector.shape_cast %372 : vector<1x16x32xf32> to vector<16x32xf32>
    %c200 = arith.constant 200 : index
    %374 = memref.load %arg2[%c200] : memref<256xf32, #tpu.memory_space<smem>>
    %375 = vector.broadcast %374 : f32 to vector<16x32xf32>
    %376 = arith.mulf %375, %373 : vector<16x32xf32>
    %377 = arith.addf %359, %376 : vector<16x32xf32>
    %c196 = arith.constant 196 : index
    %378 = memref.load %arg2[%c196] : memref<256xf32, #tpu.memory_space<smem>>
    %379 = vector.broadcast %378 : f32 to vector<16x32xf32>
    %380 = arith.mulf %379, %373 : vector<16x32xf32>
    %381 = arith.addf %367, %380 : vector<16x32xf32>
    %c6_149 = arith.constant 6 : index
    %c2_150 = arith.constant 2 : index
    %c0_151 = arith.constant 0 : index
    %382 = vector.load %arg8[%c6_149, %c2_150, %c0_151] : memref<8x18x32xf32, #tpu.memory_space<vmem>>, vector<1x16x32xf32>
    %383 = vector.shape_cast %382 : vector<1x16x32xf32> to vector<16x32xf32>
    %c195 = arith.constant 195 : index
    %384 = memref.load %arg2[%c195] : memref<256xf32, #tpu.memory_space<smem>>
    %385 = vector.broadcast %384 : f32 to vector<16x32xf32>
    %386 = arith.mulf %385, %383 : vector<16x32xf32>
    %387 = arith.addf %363, %386 : vector<16x32xf32>
    %c3_152 = arith.constant 3 : index
    %c2_153 = arith.constant 2 : index
    %c0_154 = arith.constant 0 : index
    %388 = vector.load %arg7[%c3_152, %c2_153, %c0_154] : memref<4x18x32xf32, #tpu.memory_space<vmem>>, vector<1x16x32xf32>
    %389 = vector.shape_cast %388 : vector<1x16x32xf32> to vector<16x32xf32>
    %c194 = arith.constant 194 : index
    %390 = memref.load %arg2[%c194] : memref<256xf32, #tpu.memory_space<smem>>
    %391 = vector.broadcast %390 : f32 to vector<16x32xf32>
    %392 = arith.mulf %391, %389 : vector<16x32xf32>
    %393 = arith.addf %377, %392 : vector<16x32xf32>
    %c193 = arith.constant 193 : index
    %394 = memref.load %arg2[%c193] : memref<256xf32, #tpu.memory_space<smem>>
    %395 = vector.broadcast %394 : f32 to vector<16x32xf32>
    %396 = arith.mulf %395, %389 : vector<16x32xf32>
    %397 = arith.addf %387, %396 : vector<16x32xf32>
    %c7_155 = arith.constant 7 : index
    %c2_156 = arith.constant 2 : index
    %c0_157 = arith.constant 0 : index
    %398 = vector.load %arg8[%c7_155, %c2_156, %c0_157] : memref<8x18x32xf32, #tpu.memory_space<vmem>>, vector<1x16x32xf32>
    %399 = vector.shape_cast %398 : vector<1x16x32xf32> to vector<16x32xf32>
    %c192 = arith.constant 192 : index
    %400 = memref.load %arg2[%c192] : memref<256xf32, #tpu.memory_space<smem>>
    %401 = vector.broadcast %400 : f32 to vector<16x32xf32>
    %402 = arith.mulf %401, %399 : vector<16x32xf32>
    %403 = arith.addf %393, %402 : vector<16x32xf32>
    %c0_158 = arith.constant 0 : index
    %c0_159 = arith.constant 0 : index
    %404 = vector.load %arg9[%c0_158, %c0_159] : memref<128x64xf32, #tpu.memory_space<vmem>>, vector<16x32xf32>
    tpu.vector_store %arg9[%c0_158, %c0_159], %371 {strides = array<i32>} : memref<128x64xf32, #tpu.memory_space<vmem>>, vector<16x32xf32>,
    %c0_160 = arith.constant 0 : index
    %c32 = arith.constant 32 : index
    %405 = vector.load %arg9[%c0_160, %c32] : memref<128x64xf32, #tpu.memory_space<vmem>>, vector<16x32xf32>
    tpu.vector_store %arg9[%c0_160, %c32], %381 {strides = array<i32>} : memref<128x64xf32, #tpu.memory_space<vmem>>, vector<16x32xf32>,
    %c16 = arith.constant 16 : index
    %c0_161 = arith.constant 0 : index
    %406 = vector.load %arg9[%c16, %c0_161] : memref<128x64xf32, #tpu.memory_space<vmem>>, vector<16x32xf32>
    tpu.vector_store %arg9[%c16, %c0_161], %397 {strides = array<i32>} : memref<128x64xf32, #tpu.memory_space<vmem>>, vector<16x32xf32>,
    %c16_162 = arith.constant 16 : index
    %c32_163 = arith.constant 32 : index
    %407 = vector.load %arg9[%c16_162, %c32_163] : memref<128x64xf32, #tpu.memory_space<vmem>>, vector<16x32xf32>
    tpu.vector_store %arg9[%c16_162, %c32_163], %403 {strides = array<i32>} : memref<128x64xf32, #tpu.memory_space<vmem>>, vector<16x32xf32>,
    %c1_164 = arith.constant 1 : index
    %408 = memref.load %arg3[%c1_164] : memref<4xf32, #tpu.memory_space<smem>>
    %409 = vector.broadcast %408 : f32 to vector<16x32xf32>
    %410 = vector.broadcast %408 : f32 to vector<16x32xf32>
    %411 = vector.broadcast %408 : f32 to vector<16x32xf32>
    %412 = vector.broadcast %408 : f32 to vector<16x32xf32>
    %c0_165 = arith.constant 0 : index
    %c0_166 = arith.constant 0 : index
    %c0_167 = arith.constant 0 : index
    %413 = vector.load %arg8[%c0_165, %c0_166, %c0_167] : memref<8x18x32xf32, #tpu.memory_space<vmem>>, vector<1x16x32xf32>
    %414 = vector.shape_cast %413 : vector<1x16x32xf32> to vector<16x32xf32>
    %c31 = arith.constant 31 : index
    %415 = memref.load %arg2[%c31] : memref<256xf32, #tpu.memory_space<smem>>
    %416 = vector.broadcast %415 : f32 to vector<16x32xf32>
    %417 = arith.mulf %416, %414 : vector<16x32xf32>
    %418 = arith.addf %409, %417 : vector<16x32xf32>
    %c0_168 = arith.constant 0 : index
    %c0_169 = arith.constant 0 : index
    %c0_170 = arith.constant 0 : index
    %419 = vector.load %arg7[%c0_168, %c0_169, %c0_170] : memref<4x18x32xf32, #tpu.memory_space<vmem>>, vector<1x16x32xf32>
    %420 = vector.shape_cast %419 : vector<1x16x32xf32> to vector<16x32xf32>
    %c30 = arith.constant 30 : index
    %421 = memref.load %arg2[%c30] : memref<256xf32, #tpu.memory_space<smem>>
    %422 = vector.broadcast %421 : f32 to vector<16x32xf32>
    %423 = arith.mulf %422, %420 : vector<16x32xf32>
    %424 = arith.addf %410, %423 : vector<16x32xf32>
    %c29 = arith.constant 29 : index
    %425 = memref.load %arg2[%c29] : memref<256xf32, #tpu.memory_space<smem>>
    %426 = vector.broadcast %425 : f32 to vector<16x32xf32>
    %427 = arith.mulf %426, %420 : vector<16x32xf32>
    %428 = arith.addf %418, %427 : vector<16x32xf32>
    %c1_171 = arith.constant 1 : index
    %c0_172 = arith.constant 0 : index
    %c0_173 = arith.constant 0 : index
    %429 = vector.load %arg8[%c1_171, %c0_172, %c0_173] : memref<8x18x32xf32, #tpu.memory_space<vmem>>, vector<1x16x32xf32>
    %430 = vector.shape_cast %429 : vector<1x16x32xf32> to vector<16x32xf32>
    %c28 = arith.constant 28 : index
    %431 = memref.load %arg2[%c28] : memref<256xf32, #tpu.memory_space<smem>>
    %432 = vector.broadcast %431 : f32 to vector<16x32xf32>
    %433 = arith.mulf %432, %430 : vector<16x32xf32>
    %434 = arith.addf %424, %433 : vector<16x32xf32>
    %c0_174 = arith.constant 0 : index
    %c1_175 = arith.constant 1 : index
    %c0_176 = arith.constant 0 : index
    %435 = vector.load %arg8[%c0_174, %c1_175, %c0_176] : memref<8x18x32xf32, #tpu.memory_space<vmem>>, vector<1x16x32xf32>
    %436 = vector.shape_cast %435 : vector<1x16x32xf32> to vector<16x32xf32>
    %c27 = arith.constant 27 : index
    %437 = memref.load %arg2[%c27] : memref<256xf32, #tpu.memory_space<smem>>
    %438 = vector.broadcast %437 : f32 to vector<16x32xf32>
    %439 = arith.mulf %438, %436 : vector<16x32xf32>
    %440 = arith.addf %411, %439 : vector<16x32xf32>
    %c23 = arith.constant 23 : index
    %441 = memref.load %arg2[%c23] : memref<256xf32, #tpu.memory_space<smem>>
    %442 = vector.broadcast %441 : f32 to vector<16x32xf32>
    %443 = arith.mulf %442, %436 : vector<16x32xf32>
    %444 = arith.addf %428, %443 : vector<16x32xf32>
    %c0_177 = arith.constant 0 : index
    %c1_178 = arith.constant 1 : index
    %c0_179 = arith.constant 0 : index
    %445 = vector.load %arg7[%c0_177, %c1_178, %c0_179] : memref<4x18x32xf32, #tpu.memory_space<vmem>>, vector<1x16x32xf32>
    %446 = vector.shape_cast %445 : vector<1x16x32xf32> to vector<16x32xf32>
    %c26 = arith.constant 26 : index
    %447 = memref.load %arg2[%c26] : memref<256xf32, #tpu.memory_space<smem>>
    %448 = vector.broadcast %447 : f32 to vector<16x32xf32>
    %449 = arith.mulf %448, %446 : vector<16x32xf32>
    %450 = arith.addf %412, %449 : vector<16x32xf32>
    %c25 = arith.constant 25 : index
    %451 = memref.load %arg2[%c25] : memref<256xf32, #tpu.memory_space<smem>>
    %452 = vector.broadcast %451 : f32 to vector<16x32xf32>
    %453 = arith.mulf %452, %446 : vector<16x32xf32>
    %454 = arith.addf %440, %453 : vector<16x32xf32>
    %c22 = arith.constant 22 : index
    %455 = memref.load %arg2[%c22] : memref<256xf32, #tpu.memory_space<smem>>
    %456 = vector.broadcast %455 : f32 to vector<16x32xf32>
    %457 = arith.mulf %456, %446 : vector<16x32xf32>
    %458 = arith.addf %434, %457 : vector<16x32xf32>
    %c21 = arith.constant 21 : index
    %459 = memref.load %arg2[%c21] : memref<256xf32, #tpu.memory_space<smem>>
    %460 = vector.broadcast %459 : f32 to vector<16x32xf32>
    %461 = arith.mulf %460, %446 : vector<16x32xf32>
    %462 = arith.addf %444, %461 : vector<16x32xf32>
    %c1_180 = arith.constant 1 : index
    %c1_181 = arith.constant 1 : index
    %c0_182 = arith.constant 0 : index
    %463 = vector.load %arg8[%c1_180, %c1_181, %c0_182] : memref<8x18x32xf32, #tpu.memory_space<vmem>>, vector<1x16x32xf32>
    %464 = vector.shape_cast %463 : vector<1x16x32xf32> to vector<16x32xf32>
    %c24 = arith.constant 24 : index
    %465 = memref.load %arg2[%c24] : memref<256xf32, #tpu.memory_space<smem>>
    %466 = vector.broadcast %465 : f32 to vector<16x32xf32>
    %467 = arith.mulf %466, %464 : vector<16x32xf32>
    %468 = arith.addf %450, %467 : vector<16x32xf32>
    %c20 = arith.constant 20 : index
    %469 = memref.load %arg2[%c20] : memref<256xf32, #tpu.memory_space<smem>>
    %470 = vector.broadcast %469 : f32 to vector<16x32xf32>
    %471 = arith.mulf %470, %464 : vector<16x32xf32>
    %472 = arith.addf %458, %471 : vector<16x32xf32>
    %c0_183 = arith.constant 0 : index
    %c2_184 = arith.constant 2 : index
    %c0_185 = arith.constant 0 : index
    %473 = vector.load %arg8[%c0_183, %c2_184, %c0_185] : memref<8x18x32xf32, #tpu.memory_space<vmem>>, vector<1x16x32xf32>
    %474 = vector.shape_cast %473 : vector<1x16x32xf32> to vector<16x32xf32>
    %c19 = arith.constant 19 : index
    %475 = memref.load %arg2[%c19] : memref<256xf32, #tpu.memory_space<smem>>
    %476 = vector.broadcast %475 : f32 to vector<16x32xf32>
    %477 = arith.mulf %476, %474 : vector<16x32xf32>
    %478 = arith.addf %454, %477 : vector<16x32xf32>
    %c0_186 = arith.constant 0 : index
    %c2_187 = arith.constant 2 : index
    %c0_188 = arith.constant 0 : index
    %479 = vector.load %arg7[%c0_186, %c2_187, %c0_188] : memref<4x18x32xf32, #tpu.memory_space<vmem>>, vector<1x16x32xf32>
    %480 = vector.shape_cast %479 : vector<1x16x32xf32> to vector<16x32xf32>
    %c18 = arith.constant 18 : index
    %481 = memref.load %arg2[%c18] : memref<256xf32, #tpu.memory_space<smem>>
    %482 = vector.broadcast %481 : f32 to vector<16x32xf32>
    %483 = arith.mulf %482, %480 : vector<16x32xf32>
    %484 = arith.addf %468, %483 : vector<16x32xf32>
    %c17_189 = arith.constant 17 : index
    %485 = memref.load %arg2[%c17_189] : memref<256xf32, #tpu.memory_space<smem>>
    %486 = vector.broadcast %485 : f32 to vector<16x32xf32>
    %487 = arith.mulf %486, %480 : vector<16x32xf32>
    %488 = arith.addf %478, %487 : vector<16x32xf32>
    %c1_190 = arith.constant 1 : index
    %c2_191 = arith.constant 2 : index
    %c0_192 = arith.constant 0 : index
    %489 = vector.load %arg8[%c1_190, %c2_191, %c0_192] : memref<8x18x32xf32, #tpu.memory_space<vmem>>, vector<1x16x32xf32>
    %490 = vector.shape_cast %489 : vector<1x16x32xf32> to vector<16x32xf32>
    %c16_193 = arith.constant 16 : index
    %491 = memref.load %arg2[%c16_193] : memref<256xf32, #tpu.memory_space<smem>>
    %492 = vector.broadcast %491 : f32 to vector<16x32xf32>
    %493 = arith.mulf %492, %490 : vector<16x32xf32>
    %494 = arith.addf %484, %493 : vector<16x32xf32>
    %c2_194 = arith.constant 2 : index
    %c0_195 = arith.constant 0 : index
    %c0_196 = arith.constant 0 : index
    %495 = vector.load %arg8[%c2_194, %c0_195, %c0_196] : memref<8x18x32xf32, #tpu.memory_space<vmem>>, vector<1x16x32xf32>
    %496 = vector.shape_cast %495 : vector<1x16x32xf32> to vector<16x32xf32>
    %c95 = arith.constant 95 : index
    %497 = memref.load %arg2[%c95] : memref<256xf32, #tpu.memory_space<smem>>
    %498 = vector.broadcast %497 : f32 to vector<16x32xf32>
    %499 = arith.mulf %498, %496 : vector<16x32xf32>
    %500 = arith.addf %462, %499 : vector<16x32xf32>
    %c1_197 = arith.constant 1 : index
    %c0_198 = arith.constant 0 : index
    %c0_199 = arith.constant 0 : index
    %501 = vector.load %arg7[%c1_197, %c0_198, %c0_199] : memref<4x18x32xf32, #tpu.memory_space<vmem>>, vector<1x16x32xf32>
    %502 = vector.shape_cast %501 : vector<1x16x32xf32> to vector<16x32xf32>
    %c94 = arith.constant 94 : index
    %503 = memref.load %arg2[%c94] : memref<256xf32, #tpu.memory_space<smem>>
    %504 = vector.broadcast %503 : f32 to vector<16x32xf32>
    %505 = arith.mulf %504, %502 : vector<16x32xf32>
    %506 = arith.addf %472, %505 : vector<16x32xf32>
    %c93 = arith.constant 93 : index
    %507 = memref.load %arg2[%c93] : memref<256xf32, #tpu.memory_space<smem>>
    %508 = vector.broadcast %507 : f32 to vector<16x32xf32>
    %509 = arith.mulf %508, %502 : vector<16x32xf32>
    %510 = arith.addf %500, %509 : vector<16x32xf32>
    %c3_200 = arith.constant 3 : index
    %c0_201 = arith.constant 0 : index
    %c0_202 = arith.constant 0 : index
    %511 = vector.load %arg8[%c3_200, %c0_201, %c0_202] : memref<8x18x32xf32, #tpu.memory_space<vmem>>, vector<1x16x32xf32>
    %512 = vector.shape_cast %511 : vector<1x16x32xf32> to vector<16x32xf32>
    %c92 = arith.constant 92 : index
    %513 = memref.load %arg2[%c92] : memref<256xf32, #tpu.memory_space<smem>>
    %514 = vector.broadcast %513 : f32 to vector<16x32xf32>
    %515 = arith.mulf %514, %512 : vector<16x32xf32>
    %516 = arith.addf %506, %515 : vector<16x32xf32>
    %c2_203 = arith.constant 2 : index
    %c1_204 = arith.constant 1 : index
    %c0_205 = arith.constant 0 : index
    %517 = vector.load %arg8[%c2_203, %c1_204, %c0_205] : memref<8x18x32xf32, #tpu.memory_space<vmem>>, vector<1x16x32xf32>
    %518 = vector.shape_cast %517 : vector<1x16x32xf32> to vector<16x32xf32>
    %c91 = arith.constant 91 : index
    %519 = memref.load %arg2[%c91] : memref<256xf32, #tpu.memory_space<smem>>
    %520 = vector.broadcast %519 : f32 to vector<16x32xf32>
    %521 = arith.mulf %520, %518 : vector<16x32xf32>
    %522 = arith.addf %488, %521 : vector<16x32xf32>
    %c87 = arith.constant 87 : index
    %523 = memref.load %arg2[%c87] : memref<256xf32, #tpu.memory_space<smem>>
    %524 = vector.broadcast %523 : f32 to vector<16x32xf32>
    %525 = arith.mulf %524, %518 : vector<16x32xf32>
    %526 = arith.addf %510, %525 : vector<16x32xf32>
    %c1_206 = arith.constant 1 : index
    %c1_207 = arith.constant 1 : index
    %c0_208 = arith.constant 0 : index
    %527 = vector.load %arg7[%c1_206, %c1_207, %c0_208] : memref<4x18x32xf32, #tpu.memory_space<vmem>>, vector<1x16x32xf32>
    %528 = vector.shape_cast %527 : vector<1x16x32xf32> to vector<16x32xf32>
    %c90 = arith.constant 90 : index
    %529 = memref.load %arg2[%c90] : memref<256xf32, #tpu.memory_space<smem>>
    %530 = vector.broadcast %529 : f32 to vector<16x32xf32>
    %531 = arith.mulf %530, %528 : vector<16x32xf32>
    %532 = arith.addf %494, %531 : vector<16x32xf32>
    %c89 = arith.constant 89 : index
    %533 = memref.load %arg2[%c89] : memref<256xf32, #tpu.memory_space<smem>>
    %534 = vector.broadcast %533 : f32 to vector<16x32xf32>
    %535 = arith.mulf %534, %528 : vector<16x32xf32>
    %536 = arith.addf %522, %535 : vector<16x32xf32>
    %c86 = arith.constant 86 : index
    %537 = memref.load %arg2[%c86] : memref<256xf32, #tpu.memory_space<smem>>
    %538 = vector.broadcast %537 : f32 to vector<16x32xf32>
    %539 = arith.mulf %538, %528 : vector<16x32xf32>
    %540 = arith.addf %516, %539 : vector<16x32xf32>
    %c85 = arith.constant 85 : index
    %541 = memref.load %arg2[%c85] : memref<256xf32, #tpu.memory_space<smem>>
    %542 = vector.broadcast %541 : f32 to vector<16x32xf32>
    %543 = arith.mulf %542, %528 : vector<16x32xf32>
    %544 = arith.addf %526, %543 : vector<16x32xf32>
    %c3_209 = arith.constant 3 : index
    %c1_210 = arith.constant 1 : index
    %c0_211 = arith.constant 0 : index
    %545 = vector.load %arg8[%c3_209, %c1_210, %c0_211] : memref<8x18x32xf32, #tpu.memory_space<vmem>>, vector<1x16x32xf32>
    %546 = vector.shape_cast %545 : vector<1x16x32xf32> to vector<16x32xf32>
    %c88 = arith.constant 88 : index
    %547 = memref.load %arg2[%c88] : memref<256xf32, #tpu.memory_space<smem>>
    %548 = vector.broadcast %547 : f32 to vector<16x32xf32>
    %549 = arith.mulf %548, %546 : vector<16x32xf32>
    %550 = arith.addf %532, %549 : vector<16x32xf32>
    %c84 = arith.constant 84 : index
    %551 = memref.load %arg2[%c84] : memref<256xf32, #tpu.memory_space<smem>>
    %552 = vector.broadcast %551 : f32 to vector<16x32xf32>
    %553 = arith.mulf %552, %546 : vector<16x32xf32>
    %554 = arith.addf %540, %553 : vector<16x32xf32>
    %c2_212 = arith.constant 2 : index
    %c2_213 = arith.constant 2 : index
    %c0_214 = arith.constant 0 : index
    %555 = vector.load %arg8[%c2_212, %c2_213, %c0_214] : memref<8x18x32xf32, #tpu.memory_space<vmem>>, vector<1x16x32xf32>
    %556 = vector.shape_cast %555 : vector<1x16x32xf32> to vector<16x32xf32>
    %c83 = arith.constant 83 : index
    %557 = memref.load %arg2[%c83] : memref<256xf32, #tpu.memory_space<smem>>
    %558 = vector.broadcast %557 : f32 to vector<16x32xf32>
    %559 = arith.mulf %558, %556 : vector<16x32xf32>
    %560 = arith.addf %536, %559 : vector<16x32xf32>
    %c1_215 = arith.constant 1 : index
    %c2_216 = arith.constant 2 : index
    %c0_217 = arith.constant 0 : index
    %561 = vector.load %arg7[%c1_215, %c2_216, %c0_217] : memref<4x18x32xf32, #tpu.memory_space<vmem>>, vector<1x16x32xf32>
    %562 = vector.shape_cast %561 : vector<1x16x32xf32> to vector<16x32xf32>
    %c82 = arith.constant 82 : index
    %563 = memref.load %arg2[%c82] : memref<256xf32, #tpu.memory_space<smem>>
    %564 = vector.broadcast %563 : f32 to vector<16x32xf32>
    %565 = arith.mulf %564, %562 : vector<16x32xf32>
    %566 = arith.addf %550, %565 : vector<16x32xf32>
    %c81 = arith.constant 81 : index
    %567 = memref.load %arg2[%c81] : memref<256xf32, #tpu.memory_space<smem>>
    %568 = vector.broadcast %567 : f32 to vector<16x32xf32>
    %569 = arith.mulf %568, %562 : vector<16x32xf32>
    %570 = arith.addf %560, %569 : vector<16x32xf32>
    %c3_218 = arith.constant 3 : index
    %c2_219 = arith.constant 2 : index
    %c0_220 = arith.constant 0 : index
    %571 = vector.load %arg8[%c3_218, %c2_219, %c0_220] : memref<8x18x32xf32, #tpu.memory_space<vmem>>, vector<1x16x32xf32>
    %572 = vector.shape_cast %571 : vector<1x16x32xf32> to vector<16x32xf32>
    %c80 = arith.constant 80 : index
    %573 = memref.load %arg2[%c80] : memref<256xf32, #tpu.memory_space<smem>>
    %574 = vector.broadcast %573 : f32 to vector<16x32xf32>
    %575 = arith.mulf %574, %572 : vector<16x32xf32>
    %576 = arith.addf %566, %575 : vector<16x32xf32>
    %c4_221 = arith.constant 4 : index
    %c0_222 = arith.constant 0 : index
    %c0_223 = arith.constant 0 : index
    %577 = vector.load %arg8[%c4_221, %c0_222, %c0_223] : memref<8x18x32xf32, #tpu.memory_space<vmem>>, vector<1x16x32xf32>
    %578 = vector.shape_cast %577 : vector<1x16x32xf32> to vector<16x32xf32>
    %c159 = arith.constant 159 : index
    %579 = memref.load %arg2[%c159] : memref<256xf32, #tpu.memory_space<smem>>
    %580 = vector.broadcast %579 : f32 to vector<16x32xf32>
    %581 = arith.mulf %580, %578 : vector<16x32xf32>
    %582 = arith.addf %544, %581 : vector<16x32xf32>
    %c2_224 = arith.constant 2 : index
    %c0_225 = arith.constant 0 : index
    %c0_226 = arith.constant 0 : index
    %583 = vector.load %arg7[%c2_224, %c0_225, %c0_226] : memref<4x18x32xf32, #tpu.memory_space<vmem>>, vector<1x16x32xf32>
    %584 = vector.shape_cast %583 : vector<1x16x32xf32> to vector<16x32xf32>
    %c158 = arith.constant 158 : index
    %585 = memref.load %arg2[%c158] : memref<256xf32, #tpu.memory_space<smem>>
    %586 = vector.broadcast %585 : f32 to vector<16x32xf32>
    %587 = arith.mulf %586, %584 : vector<16x32xf32>
    %588 = arith.addf %554, %587 : vector<16x32xf32>
    %c157 = arith.constant 157 : index
    %589 = memref.load %arg2[%c157] : memref<256xf32, #tpu.memory_space<smem>>
    %590 = vector.broadcast %589 : f32 to vector<16x32xf32>
    %591 = arith.mulf %590, %584 : vector<16x32xf32>
    %592 = arith.addf %582, %591 : vector<16x32xf32>
    %c5_227 = arith.constant 5 : index
    %c0_228 = arith.constant 0 : index
    %c0_229 = arith.constant 0 : index
    %593 = vector.load %arg8[%c5_227, %c0_228, %c0_229] : memref<8x18x32xf32, #tpu.memory_space<vmem>>, vector<1x16x32xf32>
    %594 = vector.shape_cast %593 : vector<1x16x32xf32> to vector<16x32xf32>
    %c156 = arith.constant 156 : index
    %595 = memref.load %arg2[%c156] : memref<256xf32, #tpu.memory_space<smem>>
    %596 = vector.broadcast %595 : f32 to vector<16x32xf32>
    %597 = arith.mulf %596, %594 : vector<16x32xf32>
    %598 = arith.addf %588, %597 : vector<16x32xf32>
    %c4_230 = arith.constant 4 : index
    %c1_231 = arith.constant 1 : index
    %c0_232 = arith.constant 0 : index
    %599 = vector.load %arg8[%c4_230, %c1_231, %c0_232] : memref<8x18x32xf32, #tpu.memory_space<vmem>>, vector<1x16x32xf32>
    %600 = vector.shape_cast %599 : vector<1x16x32xf32> to vector<16x32xf32>
    %c155 = arith.constant 155 : index
    %601 = memref.load %arg2[%c155] : memref<256xf32, #tpu.memory_space<smem>>
    %602 = vector.broadcast %601 : f32 to vector<16x32xf32>
    %603 = arith.mulf %602, %600 : vector<16x32xf32>
    %604 = arith.addf %570, %603 : vector<16x32xf32>
    %c151 = arith.constant 151 : index
    %605 = memref.load %arg2[%c151] : memref<256xf32, #tpu.memory_space<smem>>
    %606 = vector.broadcast %605 : f32 to vector<16x32xf32>
    %607 = arith.mulf %606, %600 : vector<16x32xf32>
    %608 = arith.addf %592, %607 : vector<16x32xf32>
    %c2_233 = arith.constant 2 : index
    %c1_234 = arith.constant 1 : index
    %c0_235 = arith.constant 0 : index
    %609 = vector.load %arg7[%c2_233, %c1_234, %c0_235] : memref<4x18x32xf32, #tpu.memory_space<vmem>>, vector<1x16x32xf32>
    %610 = vector.shape_cast %609 : vector<1x16x32xf32> to vector<16x32xf32>
    %c154 = arith.constant 154 : index
    %611 = memref.load %arg2[%c154] : memref<256xf32, #tpu.memory_space<smem>>
    %612 = vector.broadcast %611 : f32 to vector<16x32xf32>
    %613 = arith.mulf %612, %610 : vector<16x32xf32>
    %614 = arith.addf %576, %613 : vector<16x32xf32>
    %c153 = arith.constant 153 : index
    %615 = memref.load %arg2[%c153] : memref<256xf32, #tpu.memory_space<smem>>
    %616 = vector.broadcast %615 : f32 to vector<16x32xf32>
    %617 = arith.mulf %616, %610 : vector<16x32xf32>
    %618 = arith.addf %604, %617 : vector<16x32xf32>
    %c150 = arith.constant 150 : index
    %619 = memref.load %arg2[%c150] : memref<256xf32, #tpu.memory_space<smem>>
    %620 = vector.broadcast %619 : f32 to vector<16x32xf32>
    %621 = arith.mulf %620, %610 : vector<16x32xf32>
    %622 = arith.addf %598, %621 : vector<16x32xf32>
    %c149 = arith.constant 149 : index
    %623 = memref.load %arg2[%c149] : memref<256xf32, #tpu.memory_space<smem>>
    %624 = vector.broadcast %623 : f32 to vector<16x32xf32>
    %625 = arith.mulf %624, %610 : vector<16x32xf32>
    %626 = arith.addf %608, %625 : vector<16x32xf32>
    %c5_236 = arith.constant 5 : index
    %c1_237 = arith.constant 1 : index
    %c0_238 = arith.constant 0 : index
    %627 = vector.load %arg8[%c5_236, %c1_237, %c0_238] : memref<8x18x32xf32, #tpu.memory_space<vmem>>, vector<1x16x32xf32>
    %628 = vector.shape_cast %627 : vector<1x16x32xf32> to vector<16x32xf32>
    %c152 = arith.constant 152 : index
    %629 = memref.load %arg2[%c152] : memref<256xf32, #tpu.memory_space<smem>>
    %630 = vector.broadcast %629 : f32 to vector<16x32xf32>
    %631 = arith.mulf %630, %628 : vector<16x32xf32>
    %632 = arith.addf %614, %631 : vector<16x32xf32>
    %c148 = arith.constant 148 : index
    %633 = memref.load %arg2[%c148] : memref<256xf32, #tpu.memory_space<smem>>
    %634 = vector.broadcast %633 : f32 to vector<16x32xf32>
    %635 = arith.mulf %634, %628 : vector<16x32xf32>
    %636 = arith.addf %622, %635 : vector<16x32xf32>
    %c4_239 = arith.constant 4 : index
    %c2_240 = arith.constant 2 : index
    %c0_241 = arith.constant 0 : index
    %637 = vector.load %arg8[%c4_239, %c2_240, %c0_241] : memref<8x18x32xf32, #tpu.memory_space<vmem>>, vector<1x16x32xf32>
    %638 = vector.shape_cast %637 : vector<1x16x32xf32> to vector<16x32xf32>
    %c147 = arith.constant 147 : index
    %639 = memref.load %arg2[%c147] : memref<256xf32, #tpu.memory_space<smem>>
    %640 = vector.broadcast %639 : f32 to vector<16x32xf32>
    %641 = arith.mulf %640, %638 : vector<16x32xf32>
    %642 = arith.addf %618, %641 : vector<16x32xf32>
    %c2_242 = arith.constant 2 : index
    %c2_243 = arith.constant 2 : index
    %c0_244 = arith.constant 0 : index
    %643 = vector.load %arg7[%c2_242, %c2_243, %c0_244] : memref<4x18x32xf32, #tpu.memory_space<vmem>>, vector<1x16x32xf32>
    %644 = vector.shape_cast %643 : vector<1x16x32xf32> to vector<16x32xf32>
    %c146 = arith.constant 146 : index
    %645 = memref.load %arg2[%c146] : memref<256xf32, #tpu.memory_space<smem>>
    %646 = vector.broadcast %645 : f32 to vector<16x32xf32>
    %647 = arith.mulf %646, %644 : vector<16x32xf32>
    %648 = arith.addf %632, %647 : vector<16x32xf32>
    %c145 = arith.constant 145 : index
    %649 = memref.load %arg2[%c145] : memref<256xf32, #tpu.memory_space<smem>>
    %650 = vector.broadcast %649 : f32 to vector<16x32xf32>
    %651 = arith.mulf %650, %644 : vector<16x32xf32>
    %652 = arith.addf %642, %651 : vector<16x32xf32>
    %c5_245 = arith.constant 5 : index
    %c2_246 = arith.constant 2 : index
    %c0_247 = arith.constant 0 : index
    %653 = vector.load %arg8[%c5_245, %c2_246, %c0_247] : memref<8x18x32xf32, #tpu.memory_space<vmem>>, vector<1x16x32xf32>
    %654 = vector.shape_cast %653 : vector<1x16x32xf32> to vector<16x32xf32>
    %c144 = arith.constant 144 : index
    %655 = memref.load %arg2[%c144] : memref<256xf32, #tpu.memory_space<smem>>
    %656 = vector.broadcast %655 : f32 to vector<16x32xf32>
    %657 = arith.mulf %656, %654 : vector<16x32xf32>
    %658 = arith.addf %648, %657 : vector<16x32xf32>
    %c6_248 = arith.constant 6 : index
    %c0_249 = arith.constant 0 : index
    %c0_250 = arith.constant 0 : index
    %659 = vector.load %arg8[%c6_248, %c0_249, %c0_250] : memref<8x18x32xf32, #tpu.memory_space<vmem>>, vector<1x16x32xf32>
    %660 = vector.shape_cast %659 : vector<1x16x32xf32> to vector<16x32xf32>
    %c223 = arith.constant 223 : index
    %661 = memref.load %arg2[%c223] : memref<256xf32, #tpu.memory_space<smem>>
    %662 = vector.broadcast %661 : f32 to vector<16x32xf32>
    %663 = arith.mulf %662, %660 : vector<16x32xf32>
    %664 = arith.addf %626, %663 : vector<16x32xf32>
    %c3_251 = arith.constant 3 : index
    %c0_252 = arith.constant 0 : index
    %c0_253 = arith.constant 0 : index
    %665 = vector.load %arg7[%c3_251, %c0_252, %c0_253] : memref<4x18x32xf32, #tpu.memory_space<vmem>>, vector<1x16x32xf32>
    %666 = vector.shape_cast %665 : vector<1x16x32xf32> to vector<16x32xf32>
    %c222 = arith.constant 222 : index
    %667 = memref.load %arg2[%c222] : memref<256xf32, #tpu.memory_space<smem>>
    %668 = vector.broadcast %667 : f32 to vector<16x32xf32>
    %669 = arith.mulf %668, %666 : vector<16x32xf32>
    %670 = arith.addf %636, %669 : vector<16x32xf32>
    %c221 = arith.constant 221 : index
    %671 = memref.load %arg2[%c221] : memref<256xf32, #tpu.memory_space<smem>>
    %672 = vector.broadcast %671 : f32 to vector<16x32xf32>
    %673 = arith.mulf %672, %666 : vector<16x32xf32>
    %674 = arith.addf %664, %673 : vector<16x32xf32>
    %c7_254 = arith.constant 7 : index
    %c0_255 = arith.constant 0 : index
    %c0_256 = arith.constant 0 : index
    %675 = vector.load %arg8[%c7_254, %c0_255, %c0_256] : memref<8x18x32xf32, #tpu.memory_space<vmem>>, vector<1x16x32xf32>
    %676 = vector.shape_cast %675 : vector<1x16x32xf32> to vector<16x32xf32>
    %c220 = arith.constant 220 : index
    %677 = memref.load %arg2[%c220] : memref<256xf32, #tpu.memory_space<smem>>
    %678 = vector.broadcast %677 : f32 to vector<16x32xf32>
    %679 = arith.mulf %678, %676 : vector<16x32xf32>
    %680 = arith.addf %670, %679 : vector<16x32xf32>
    %c6_257 = arith.constant 6 : index
    %c1_258 = arith.constant 1 : index
    %c0_259 = arith.constant 0 : index
    %681 = vector.load %arg8[%c6_257, %c1_258, %c0_259] : memref<8x18x32xf32, #tpu.memory_space<vmem>>, vector<1x16x32xf32>
    %682 = vector.shape_cast %681 : vector<1x16x32xf32> to vector<16x32xf32>
    %c219 = arith.constant 219 : index
    %683 = memref.load %arg2[%c219] : memref<256xf32, #tpu.memory_space<smem>>
    %684 = vector.broadcast %683 : f32 to vector<16x32xf32>
    %685 = arith.mulf %684, %682 : vector<16x32xf32>
    %686 = arith.addf %652, %685 : vector<16x32xf32>
    %c215 = arith.constant 215 : index
    %687 = memref.load %arg2[%c215] : memref<256xf32, #tpu.memory_space<smem>>
    %688 = vector.broadcast %687 : f32 to vector<16x32xf32>
    %689 = arith.mulf %688, %682 : vector<16x32xf32>
    %690 = arith.addf %674, %689 : vector<16x32xf32>
    %c3_260 = arith.constant 3 : index
    %c1_261 = arith.constant 1 : index
    %c0_262 = arith.constant 0 : index
    %691 = vector.load %arg7[%c3_260, %c1_261, %c0_262] : memref<4x18x32xf32, #tpu.memory_space<vmem>>, vector<1x16x32xf32>
    %692 = vector.shape_cast %691 : vector<1x16x32xf32> to vector<16x32xf32>
    %c218 = arith.constant 218 : index
    %693 = memref.load %arg2[%c218] : memref<256xf32, #tpu.memory_space<smem>>
    %694 = vector.broadcast %693 : f32 to vector<16x32xf32>
    %695 = arith.mulf %694, %692 : vector<16x32xf32>
    %696 = arith.addf %658, %695 : vector<16x32xf32>
    %c217 = arith.constant 217 : index
    %697 = memref.load %arg2[%c217] : memref<256xf32, #tpu.memory_space<smem>>
    %698 = vector.broadcast %697 : f32 to vector<16x32xf32>
    %699 = arith.mulf %698, %692 : vector<16x32xf32>
    %700 = arith.addf %686, %699 : vector<16x32xf32>
    %c214 = arith.constant 214 : index
    %701 = memref.load %arg2[%c214] : memref<256xf32, #tpu.memory_space<smem>>
    %702 = vector.broadcast %701 : f32 to vector<16x32xf32>
    %703 = arith.mulf %702, %692 : vector<16x32xf32>
    %704 = arith.addf %680, %703 : vector<16x32xf32>
    %c213 = arith.constant 213 : index
    %705 = memref.load %arg2[%c213] : memref<256xf32, #tpu.memory_space<smem>>
    %706 = vector.broadcast %705 : f32 to vector<16x32xf32>
    %707 = arith.mulf %706, %692 : vector<16x32xf32>
    %708 = arith.addf %690, %707 : vector<16x32xf32>
    %c7_263 = arith.constant 7 : index
    %c1_264 = arith.constant 1 : index
    %c0_265 = arith.constant 0 : index
    %709 = vector.load %arg8[%c7_263, %c1_264, %c0_265] : memref<8x18x32xf32, #tpu.memory_space<vmem>>, vector<1x16x32xf32>
    %710 = vector.shape_cast %709 : vector<1x16x32xf32> to vector<16x32xf32>
    %c216 = arith.constant 216 : index
    %711 = memref.load %arg2[%c216] : memref<256xf32, #tpu.memory_space<smem>>
    %712 = vector.broadcast %711 : f32 to vector<16x32xf32>
    %713 = arith.mulf %712, %710 : vector<16x32xf32>
    %714 = arith.addf %696, %713 : vector<16x32xf32>
    %c212 = arith.constant 212 : index
    %715 = memref.load %arg2[%c212] : memref<256xf32, #tpu.memory_space<smem>>
    %716 = vector.broadcast %715 : f32 to vector<16x32xf32>
    %717 = arith.mulf %716, %710 : vector<16x32xf32>
    %718 = arith.addf %704, %717 : vector<16x32xf32>
    %c6_266 = arith.constant 6 : index
    %c2_267 = arith.constant 2 : index
    %c0_268 = arith.constant 0 : index
    %719 = vector.load %arg8[%c6_266, %c2_267, %c0_268] : memref<8x18x32xf32, #tpu.memory_space<vmem>>, vector<1x16x32xf32>
    %720 = vector.shape_cast %719 : vector<1x16x32xf32> to vector<16x32xf32>
    %c211 = arith.constant 211 : index
    %721 = memref.load %arg2[%c211] : memref<256xf32, #tpu.memory_space<smem>>
    %722 = vector.broadcast %721 : f32 to vector<16x32xf32>
    %723 = arith.mulf %722, %720 : vector<16x32xf32>
    %724 = arith.addf %700, %723 : vector<16x32xf32>
    %c3_269 = arith.constant 3 : index
    %c2_270 = arith.constant 2 : index
    %c0_271 = arith.constant 0 : index
    %725 = vector.load %arg7[%c3_269, %c2_270, %c0_271] : memref<4x18x32xf32, #tpu.memory_space<vmem>>, vector<1x16x32xf32>
    %726 = vector.shape_cast %725 : vector<1x16x32xf32> to vector<16x32xf32>
    %c210 = arith.constant 210 : index
    %727 = memref.load %arg2[%c210] : memref<256xf32, #tpu.memory_space<smem>>
    %728 = vector.broadcast %727 : f32 to vector<16x32xf32>
    %729 = arith.mulf %728, %726 : vector<16x32xf32>
    %730 = arith.addf %714, %729 : vector<16x32xf32>
    %c209 = arith.constant 209 : index
    %731 = memref.load %arg2[%c209] : memref<256xf32, #tpu.memory_space<smem>>
    %732 = vector.broadcast %731 : f32 to vector<16x32xf32>
    %733 = arith.mulf %732, %726 : vector<16x32xf32>
    %734 = arith.addf %724, %733 : vector<16x32xf32>
    %c7_272 = arith.constant 7 : index
    %c2_273 = arith.constant 2 : index
    %c0_274 = arith.constant 0 : index
    %735 = vector.load %arg8[%c7_272, %c2_273, %c0_274] : memref<8x18x32xf32, #tpu.memory_space<vmem>>, vector<1x16x32xf32>
    %736 = vector.shape_cast %735 : vector<1x16x32xf32> to vector<16x32xf32>
    %c208 = arith.constant 208 : index
    %737 = memref.load %arg2[%c208] : memref<256xf32, #tpu.memory_space<smem>>
    %738 = vector.broadcast %737 : f32 to vector<16x32xf32>
    %739 = arith.mulf %738, %736 : vector<16x32xf32>
    %740 = arith.addf %730, %739 : vector<16x32xf32>
    %c32_275 = arith.constant 32 : index
    %c0_276 = arith.constant 0 : index
    %741 = vector.load %arg9[%c32_275, %c0_276] : memref<128x64xf32, #tpu.memory_space<vmem>>, vector<16x32xf32>
    tpu.vector_store %arg9[%c32_275, %c0_276], %708 {strides = array<i32>} : memref<128x64xf32, #tpu.memory_space<vmem>>, vector<16x32xf32>,
    %c32_277 = arith.constant 32 : index
    %c32_278 = arith.constant 32 : index
    %742 = vector.load %arg9[%c32_277, %c32_278] : memref<128x64xf32, #tpu.memory_space<vmem>>, vector<16x32xf32>
    tpu.vector_store %arg9[%c32_277, %c32_278], %718 {strides = array<i32>} : memref<128x64xf32, #tpu.memory_space<vmem>>, vector<16x32xf32>,
    %c48 = arith.constant 48 : index
    %c0_279 = arith.constant 0 : index
    %743 = vector.load %arg9[%c48, %c0_279] : memref<128x64xf32, #tpu.memory_space<vmem>>, vector<16x32xf32>
    tpu.vector_store %arg9[%c48, %c0_279], %734 {strides = array<i32>} : memref<128x64xf32, #tpu.memory_space<vmem>>, vector<16x32xf32>,
    %c48_280 = arith.constant 48 : index
    %c32_281 = arith.constant 32 : index
    %744 = vector.load %arg9[%c48_280, %c32_281] : memref<128x64xf32, #tpu.memory_space<vmem>>, vector<16x32xf32>
    tpu.vector_store %arg9[%c48_280, %c32_281], %740 {strides = array<i32>} : memref<128x64xf32, #tpu.memory_space<vmem>>, vector<16x32xf32>,
    %c2_282 = arith.constant 2 : index
    %745 = memref.load %arg3[%c2_282] : memref<4xf32, #tpu.memory_space<smem>>
    %746 = vector.broadcast %745 : f32 to vector<16x32xf32>
    %747 = vector.broadcast %745 : f32 to vector<16x32xf32>
    %748 = vector.broadcast %745 : f32 to vector<16x32xf32>
    %749 = vector.broadcast %745 : f32 to vector<16x32xf32>
    %c0_283 = arith.constant 0 : index
    %c0_284 = arith.constant 0 : index
    %c0_285 = arith.constant 0 : index
    %750 = vector.load %arg8[%c0_283, %c0_284, %c0_285] : memref<8x18x32xf32, #tpu.memory_space<vmem>>, vector<1x16x32xf32>
    %751 = vector.shape_cast %750 : vector<1x16x32xf32> to vector<16x32xf32>
    %c47 = arith.constant 47 : index
    %752 = memref.load %arg2[%c47] : memref<256xf32, #tpu.memory_space<smem>>
    %753 = vector.broadcast %752 : f32 to vector<16x32xf32>
    %754 = arith.mulf %753, %751 : vector<16x32xf32>
    %755 = arith.addf %746, %754 : vector<16x32xf32>
    %c0_286 = arith.constant 0 : index
    %c0_287 = arith.constant 0 : index
    %c0_288 = arith.constant 0 : index
    %756 = vector.load %arg7[%c0_286, %c0_287, %c0_288] : memref<4x18x32xf32, #tpu.memory_space<vmem>>, vector<1x16x32xf32>
    %757 = vector.shape_cast %756 : vector<1x16x32xf32> to vector<16x32xf32>
    %c46 = arith.constant 46 : index
    %758 = memref.load %arg2[%c46] : memref<256xf32, #tpu.memory_space<smem>>
    %759 = vector.broadcast %758 : f32 to vector<16x32xf32>
    %760 = arith.mulf %759, %757 : vector<16x32xf32>
    %761 = arith.addf %747, %760 : vector<16x32xf32>
    %c45 = arith.constant 45 : index
    %762 = memref.load %arg2[%c45] : memref<256xf32, #tpu.memory_space<smem>>
    %763 = vector.broadcast %762 : f32 to vector<16x32xf32>
    %764 = arith.mulf %763, %757 : vector<16x32xf32>
    %765 = arith.addf %755, %764 : vector<16x32xf32>
    %c1_289 = arith.constant 1 : index
    %c0_290 = arith.constant 0 : index
    %c0_291 = arith.constant 0 : index
    %766 = vector.load %arg8[%c1_289, %c0_290, %c0_291] : memref<8x18x32xf32, #tpu.memory_space<vmem>>, vector<1x16x32xf32>
    %767 = vector.shape_cast %766 : vector<1x16x32xf32> to vector<16x32xf32>
    %c44 = arith.constant 44 : index
    %768 = memref.load %arg2[%c44] : memref<256xf32, #tpu.memory_space<smem>>
    %769 = vector.broadcast %768 : f32 to vector<16x32xf32>
    %770 = arith.mulf %769, %767 : vector<16x32xf32>
    %771 = arith.addf %761, %770 : vector<16x32xf32>
    %c0_292 = arith.constant 0 : index
    %c1_293 = arith.constant 1 : index
    %c0_294 = arith.constant 0 : index
    %772 = vector.load %arg8[%c0_292, %c1_293, %c0_294] : memref<8x18x32xf32, #tpu.memory_space<vmem>>, vector<1x16x32xf32>
    %773 = vector.shape_cast %772 : vector<1x16x32xf32> to vector<16x32xf32>
    %c43 = arith.constant 43 : index
    %774 = memref.load %arg2[%c43] : memref<256xf32, #tpu.memory_space<smem>>
    %775 = vector.broadcast %774 : f32 to vector<16x32xf32>
    %776 = arith.mulf %775, %773 : vector<16x32xf32>
    %777 = arith.addf %748, %776 : vector<16x32xf32>
    %c39 = arith.constant 39 : index
    %778 = memref.load %arg2[%c39] : memref<256xf32, #tpu.memory_space<smem>>
    %779 = vector.broadcast %778 : f32 to vector<16x32xf32>
    %780 = arith.mulf %779, %773 : vector<16x32xf32>
    %781 = arith.addf %765, %780 : vector<16x32xf32>
    %c0_295 = arith.constant 0 : index
    %c1_296 = arith.constant 1 : index
    %c0_297 = arith.constant 0 : index
    %782 = vector.load %arg7[%c0_295, %c1_296, %c0_297] : memref<4x18x32xf32, #tpu.memory_space<vmem>>, vector<1x16x32xf32>
    %783 = vector.shape_cast %782 : vector<1x16x32xf32> to vector<16x32xf32>
    %c42 = arith.constant 42 : index
    %784 = memref.load %arg2[%c42] : memref<256xf32, #tpu.memory_space<smem>>
    %785 = vector.broadcast %784 : f32 to vector<16x32xf32>
    %786 = arith.mulf %785, %783 : vector<16x32xf32>
    %787 = arith.addf %749, %786 : vector<16x32xf32>
    %c41 = arith.constant 41 : index
    %788 = memref.load %arg2[%c41] : memref<256xf32, #tpu.memory_space<smem>>
    %789 = vector.broadcast %788 : f32 to vector<16x32xf32>
    %790 = arith.mulf %789, %783 : vector<16x32xf32>
    %791 = arith.addf %777, %790 : vector<16x32xf32>
    %c38 = arith.constant 38 : index
    %792 = memref.load %arg2[%c38] : memref<256xf32, #tpu.memory_space<smem>>
    %793 = vector.broadcast %792 : f32 to vector<16x32xf32>
    %794 = arith.mulf %793, %783 : vector<16x32xf32>
    %795 = arith.addf %771, %794 : vector<16x32xf32>
    %c37 = arith.constant 37 : index
    %796 = memref.load %arg2[%c37] : memref<256xf32, #tpu.memory_space<smem>>
    %797 = vector.broadcast %796 : f32 to vector<16x32xf32>
    %798 = arith.mulf %797, %783 : vector<16x32xf32>
    %799 = arith.addf %781, %798 : vector<16x32xf32>
    %c1_298 = arith.constant 1 : index
    %c1_299 = arith.constant 1 : index
    %c0_300 = arith.constant 0 : index
    %800 = vector.load %arg8[%c1_298, %c1_299, %c0_300] : memref<8x18x32xf32, #tpu.memory_space<vmem>>, vector<1x16x32xf32>
    %801 = vector.shape_cast %800 : vector<1x16x32xf32> to vector<16x32xf32>
    %c40 = arith.constant 40 : index
    %802 = memref.load %arg2[%c40] : memref<256xf32, #tpu.memory_space<smem>>
    %803 = vector.broadcast %802 : f32 to vector<16x32xf32>
    %804 = arith.mulf %803, %801 : vector<16x32xf32>
    %805 = arith.addf %787, %804 : vector<16x32xf32>
    %c36 = arith.constant 36 : index
    %806 = memref.load %arg2[%c36] : memref<256xf32, #tpu.memory_space<smem>>
    %807 = vector.broadcast %806 : f32 to vector<16x32xf32>
    %808 = arith.mulf %807, %801 : vector<16x32xf32>
    %809 = arith.addf %795, %808 : vector<16x32xf32>
    %c0_301 = arith.constant 0 : index
    %c2_302 = arith.constant 2 : index
    %c0_303 = arith.constant 0 : index
    %810 = vector.load %arg8[%c0_301, %c2_302, %c0_303] : memref<8x18x32xf32, #tpu.memory_space<vmem>>, vector<1x16x32xf32>
    %811 = vector.shape_cast %810 : vector<1x16x32xf32> to vector<16x32xf32>
    %c35 = arith.constant 35 : index
    %812 = memref.load %arg2[%c35] : memref<256xf32, #tpu.memory_space<smem>>
    %813 = vector.broadcast %812 : f32 to vector<16x32xf32>
    %814 = arith.mulf %813, %811 : vector<16x32xf32>
    %815 = arith.addf %791, %814 : vector<16x32xf32>
    %c0_304 = arith.constant 0 : index
    %c2_305 = arith.constant 2 : index
    %c0_306 = arith.constant 0 : index
    %816 = vector.load %arg7[%c0_304, %c2_305, %c0_306] : memref<4x18x32xf32, #tpu.memory_space<vmem>>, vector<1x16x32xf32>
    %817 = vector.shape_cast %816 : vector<1x16x32xf32> to vector<16x32xf32>
    %c34 = arith.constant 34 : index
    %818 = memref.load %arg2[%c34] : memref<256xf32, #tpu.memory_space<smem>>
    %819 = vector.broadcast %818 : f32 to vector<16x32xf32>
    %820 = arith.mulf %819, %817 : vector<16x32xf32>
    %821 = arith.addf %805, %820 : vector<16x32xf32>
    %c33 = arith.constant 33 : index
    %822 = memref.load %arg2[%c33] : memref<256xf32, #tpu.memory_space<smem>>
    %823 = vector.broadcast %822 : f32 to vector<16x32xf32>
    %824 = arith.mulf %823, %817 : vector<16x32xf32>
    %825 = arith.addf %815, %824 : vector<16x32xf32>
    %c1_307 = arith.constant 1 : index
    %c2_308 = arith.constant 2 : index
    %c0_309 = arith.constant 0 : index
    %826 = vector.load %arg8[%c1_307, %c2_308, %c0_309] : memref<8x18x32xf32, #tpu.memory_space<vmem>>, vector<1x16x32xf32>
    %827 = vector.shape_cast %826 : vector<1x16x32xf32> to vector<16x32xf32>
    %c32_310 = arith.constant 32 : index
    %828 = memref.load %arg2[%c32_310] : memref<256xf32, #tpu.memory_space<smem>>
    %829 = vector.broadcast %828 : f32 to vector<16x32xf32>
    %830 = arith.mulf %829, %827 : vector<16x32xf32>
    %831 = arith.addf %821, %830 : vector<16x32xf32>
    %c2_311 = arith.constant 2 : index
    %c0_312 = arith.constant 0 : index
    %c0_313 = arith.constant 0 : index
    %832 = vector.load %arg8[%c2_311, %c0_312, %c0_313] : memref<8x18x32xf32, #tpu.memory_space<vmem>>, vector<1x16x32xf32>
    %833 = vector.shape_cast %832 : vector<1x16x32xf32> to vector<16x32xf32>
    %c111 = arith.constant 111 : index
    %834 = memref.load %arg2[%c111] : memref<256xf32, #tpu.memory_space<smem>>
    %835 = vector.broadcast %834 : f32 to vector<16x32xf32>
    %836 = arith.mulf %835, %833 : vector<16x32xf32>
    %837 = arith.addf %799, %836 : vector<16x32xf32>
    %c1_314 = arith.constant 1 : index
    %c0_315 = arith.constant 0 : index
    %c0_316 = arith.constant 0 : index
    %838 = vector.load %arg7[%c1_314, %c0_315, %c0_316] : memref<4x18x32xf32, #tpu.memory_space<vmem>>, vector<1x16x32xf32>
    %839 = vector.shape_cast %838 : vector<1x16x32xf32> to vector<16x32xf32>
    %c110 = arith.constant 110 : index
    %840 = memref.load %arg2[%c110] : memref<256xf32, #tpu.memory_space<smem>>
    %841 = vector.broadcast %840 : f32 to vector<16x32xf32>
    %842 = arith.mulf %841, %839 : vector<16x32xf32>
    %843 = arith.addf %809, %842 : vector<16x32xf32>
    %c109 = arith.constant 109 : index
    %844 = memref.load %arg2[%c109] : memref<256xf32, #tpu.memory_space<smem>>
    %845 = vector.broadcast %844 : f32 to vector<16x32xf32>
    %846 = arith.mulf %845, %839 : vector<16x32xf32>
    %847 = arith.addf %837, %846 : vector<16x32xf32>
    %c3_317 = arith.constant 3 : index
    %c0_318 = arith.constant 0 : index
    %c0_319 = arith.constant 0 : index
    %848 = vector.load %arg8[%c3_317, %c0_318, %c0_319] : memref<8x18x32xf32, #tpu.memory_space<vmem>>, vector<1x16x32xf32>
    %849 = vector.shape_cast %848 : vector<1x16x32xf32> to vector<16x32xf32>
    %c108 = arith.constant 108 : index
    %850 = memref.load %arg2[%c108] : memref<256xf32, #tpu.memory_space<smem>>
    %851 = vector.broadcast %850 : f32 to vector<16x32xf32>
    %852 = arith.mulf %851, %849 : vector<16x32xf32>
    %853 = arith.addf %843, %852 : vector<16x32xf32>
    %c2_320 = arith.constant 2 : index
    %c1_321 = arith.constant 1 : index
    %c0_322 = arith.constant 0 : index
    %854 = vector.load %arg8[%c2_320, %c1_321, %c0_322] : memref<8x18x32xf32, #tpu.memory_space<vmem>>, vector<1x16x32xf32>
    %855 = vector.shape_cast %854 : vector<1x16x32xf32> to vector<16x32xf32>
    %c107 = arith.constant 107 : index
    %856 = memref.load %arg2[%c107] : memref<256xf32, #tpu.memory_space<smem>>
    %857 = vector.broadcast %856 : f32 to vector<16x32xf32>
    %858 = arith.mulf %857, %855 : vector<16x32xf32>
    %859 = arith.addf %825, %858 : vector<16x32xf32>
    %c103 = arith.constant 103 : index
    %860 = memref.load %arg2[%c103] : memref<256xf32, #tpu.memory_space<smem>>
    %861 = vector.broadcast %860 : f32 to vector<16x32xf32>
    %862 = arith.mulf %861, %855 : vector<16x32xf32>
    %863 = arith.addf %847, %862 : vector<16x32xf32>
    %c1_323 = arith.constant 1 : index
    %c1_324 = arith.constant 1 : index
    %c0_325 = arith.constant 0 : index
    %864 = vector.load %arg7[%c1_323, %c1_324, %c0_325] : memref<4x18x32xf32, #tpu.memory_space<vmem>>, vector<1x16x32xf32>
    %865 = vector.shape_cast %864 : vector<1x16x32xf32> to vector<16x32xf32>
    %c106 = arith.constant 106 : index
    %866 = memref.load %arg2[%c106] : memref<256xf32, #tpu.memory_space<smem>>
    %867 = vector.broadcast %866 : f32 to vector<16x32xf32>
    %868 = arith.mulf %867, %865 : vector<16x32xf32>
    %869 = arith.addf %831, %868 : vector<16x32xf32>
    %c105 = arith.constant 105 : index
    %870 = memref.load %arg2[%c105] : memref<256xf32, #tpu.memory_space<smem>>
    %871 = vector.broadcast %870 : f32 to vector<16x32xf32>
    %872 = arith.mulf %871, %865 : vector<16x32xf32>
    %873 = arith.addf %859, %872 : vector<16x32xf32>
    %c102 = arith.constant 102 : index
    %874 = memref.load %arg2[%c102] : memref<256xf32, #tpu.memory_space<smem>>
    %875 = vector.broadcast %874 : f32 to vector<16x32xf32>
    %876 = arith.mulf %875, %865 : vector<16x32xf32>
    %877 = arith.addf %853, %876 : vector<16x32xf32>
    %c101 = arith.constant 101 : index
    %878 = memref.load %arg2[%c101] : memref<256xf32, #tpu.memory_space<smem>>
    %879 = vector.broadcast %878 : f32 to vector<16x32xf32>
    %880 = arith.mulf %879, %865 : vector<16x32xf32>
    %881 = arith.addf %863, %880 : vector<16x32xf32>
    %c3_326 = arith.constant 3 : index
    %c1_327 = arith.constant 1 : index
    %c0_328 = arith.constant 0 : index
    %882 = vector.load %arg8[%c3_326, %c1_327, %c0_328] : memref<8x18x32xf32, #tpu.memory_space<vmem>>, vector<1x16x32xf32>
    %883 = vector.shape_cast %882 : vector<1x16x32xf32> to vector<16x32xf32>
    %c104 = arith.constant 104 : index
    %884 = memref.load %arg2[%c104] : memref<256xf32, #tpu.memory_space<smem>>
    %885 = vector.broadcast %884 : f32 to vector<16x32xf32>
    %886 = arith.mulf %885, %883 : vector<16x32xf32>
    %887 = arith.addf %869, %886 : vector<16x32xf32>
    %c100 = arith.constant 100 : index
    %888 = memref.load %arg2[%c100] : memref<256xf32, #tpu.memory_space<smem>>
    %889 = vector.broadcast %888 : f32 to vector<16x32xf32>
    %890 = arith.mulf %889, %883 : vector<16x32xf32>
    %891 = arith.addf %877, %890 : vector<16x32xf32>
    %c2_329 = arith.constant 2 : index
    %c2_330 = arith.constant 2 : index
    %c0_331 = arith.constant 0 : index
    %892 = vector.load %arg8[%c2_329, %c2_330, %c0_331] : memref<8x18x32xf32, #tpu.memory_space<vmem>>, vector<1x16x32xf32>
    %893 = vector.shape_cast %892 : vector<1x16x32xf32> to vector<16x32xf32>
    %c99 = arith.constant 99 : index
    %894 = memref.load %arg2[%c99] : memref<256xf32, #tpu.memory_space<smem>>
    %895 = vector.broadcast %894 : f32 to vector<16x32xf32>
    %896 = arith.mulf %895, %893 : vector<16x32xf32>
    %897 = arith.addf %873, %896 : vector<16x32xf32>
    %c1_332 = arith.constant 1 : index
    %c2_333 = arith.constant 2 : index
    %c0_334 = arith.constant 0 : index
    %898 = vector.load %arg7[%c1_332, %c2_333, %c0_334] : memref<4x18x32xf32, #tpu.memory_space<vmem>>, vector<1x16x32xf32>
    %899 = vector.shape_cast %898 : vector<1x16x32xf32> to vector<16x32xf32>
    %c98 = arith.constant 98 : index
    %900 = memref.load %arg2[%c98] : memref<256xf32, #tpu.memory_space<smem>>
    %901 = vector.broadcast %900 : f32 to vector<16x32xf32>
    %902 = arith.mulf %901, %899 : vector<16x32xf32>
    %903 = arith.addf %887, %902 : vector<16x32xf32>
    %c97 = arith.constant 97 : index
    %904 = memref.load %arg2[%c97] : memref<256xf32, #tpu.memory_space<smem>>
    %905 = vector.broadcast %904 : f32 to vector<16x32xf32>
    %906 = arith.mulf %905, %899 : vector<16x32xf32>
    %907 = arith.addf %897, %906 : vector<16x32xf32>
    %c3_335 = arith.constant 3 : index
    %c2_336 = arith.constant 2 : index
    %c0_337 = arith.constant 0 : index
    %908 = vector.load %arg8[%c3_335, %c2_336, %c0_337] : memref<8x18x32xf32, #tpu.memory_space<vmem>>, vector<1x16x32xf32>
    %909 = vector.shape_cast %908 : vector<1x16x32xf32> to vector<16x32xf32>
    %c96 = arith.constant 96 : index
    %910 = memref.load %arg2[%c96] : memref<256xf32, #tpu.memory_space<smem>>
    %911 = vector.broadcast %910 : f32 to vector<16x32xf32>
    %912 = arith.mulf %911, %909 : vector<16x32xf32>
    %913 = arith.addf %903, %912 : vector<16x32xf32>
    %c4_338 = arith.constant 4 : index
    %c0_339 = arith.constant 0 : index
    %c0_340 = arith.constant 0 : index
    %914 = vector.load %arg8[%c4_338, %c0_339, %c0_340] : memref<8x18x32xf32, #tpu.memory_space<vmem>>, vector<1x16x32xf32>
    %915 = vector.shape_cast %914 : vector<1x16x32xf32> to vector<16x32xf32>
    %c175 = arith.constant 175 : index
    %916 = memref.load %arg2[%c175] : memref<256xf32, #tpu.memory_space<smem>>
    %917 = vector.broadcast %916 : f32 to vector<16x32xf32>
    %918 = arith.mulf %917, %915 : vector<16x32xf32>
    %919 = arith.addf %881, %918 : vector<16x32xf32>
    %c2_341 = arith.constant 2 : index
    %c0_342 = arith.constant 0 : index
    %c0_343 = arith.constant 0 : index
    %920 = vector.load %arg7[%c2_341, %c0_342, %c0_343] : memref<4x18x32xf32, #tpu.memory_space<vmem>>, vector<1x16x32xf32>
    %921 = vector.shape_cast %920 : vector<1x16x32xf32> to vector<16x32xf32>
    %c174 = arith.constant 174 : index
    %922 = memref.load %arg2[%c174] : memref<256xf32, #tpu.memory_space<smem>>
    %923 = vector.broadcast %922 : f32 to vector<16x32xf32>
    %924 = arith.mulf %923, %921 : vector<16x32xf32>
    %925 = arith.addf %891, %924 : vector<16x32xf32>
    %c173 = arith.constant 173 : index
    %926 = memref.load %arg2[%c173] : memref<256xf32, #tpu.memory_space<smem>>
    %927 = vector.broadcast %926 : f32 to vector<16x32xf32>
    %928 = arith.mulf %927, %921 : vector<16x32xf32>
    %929 = arith.addf %919, %928 : vector<16x32xf32>
    %c5_344 = arith.constant 5 : index
    %c0_345 = arith.constant 0 : index
    %c0_346 = arith.constant 0 : index
    %930 = vector.load %arg8[%c5_344, %c0_345, %c0_346] : memref<8x18x32xf32, #tpu.memory_space<vmem>>, vector<1x16x32xf32>
    %931 = vector.shape_cast %930 : vector<1x16x32xf32> to vector<16x32xf32>
    %c172 = arith.constant 172 : index
    %932 = memref.load %arg2[%c172] : memref<256xf32, #tpu.memory_space<smem>>
    %933 = vector.broadcast %932 : f32 to vector<16x32xf32>
    %934 = arith.mulf %933, %931 : vector<16x32xf32>
    %935 = arith.addf %925, %934 : vector<16x32xf32>
    %c4_347 = arith.constant 4 : index
    %c1_348 = arith.constant 1 : index
    %c0_349 = arith.constant 0 : index
    %936 = vector.load %arg8[%c4_347, %c1_348, %c0_349] : memref<8x18x32xf32, #tpu.memory_space<vmem>>, vector<1x16x32xf32>
    %937 = vector.shape_cast %936 : vector<1x16x32xf32> to vector<16x32xf32>
    %c171 = arith.constant 171 : index
    %938 = memref.load %arg2[%c171] : memref<256xf32, #tpu.memory_space<smem>>
    %939 = vector.broadcast %938 : f32 to vector<16x32xf32>
    %940 = arith.mulf %939, %937 : vector<16x32xf32>
    %941 = arith.addf %907, %940 : vector<16x32xf32>
    %c167 = arith.constant 167 : index
    %942 = memref.load %arg2[%c167] : memref<256xf32, #tpu.memory_space<smem>>
    %943 = vector.broadcast %942 : f32 to vector<16x32xf32>
    %944 = arith.mulf %943, %937 : vector<16x32xf32>
    %945 = arith.addf %929, %944 : vector<16x32xf32>
    %c2_350 = arith.constant 2 : index
    %c1_351 = arith.constant 1 : index
    %c0_352 = arith.constant 0 : index
    %946 = vector.load %arg7[%c2_350, %c1_351, %c0_352] : memref<4x18x32xf32, #tpu.memory_space<vmem>>, vector<1x16x32xf32>
    %947 = vector.shape_cast %946 : vector<1x16x32xf32> to vector<16x32xf32>
    %c170 = arith.constant 170 : index
    %948 = memref.load %arg2[%c170] : memref<256xf32, #tpu.memory_space<smem>>
    %949 = vector.broadcast %948 : f32 to vector<16x32xf32>
    %950 = arith.mulf %949, %947 : vector<16x32xf32>
    %951 = arith.addf %913, %950 : vector<16x32xf32>
    %c169 = arith.constant 169 : index
    %952 = memref.load %arg2[%c169] : memref<256xf32, #tpu.memory_space<smem>>
    %953 = vector.broadcast %952 : f32 to vector<16x32xf32>
    %954 = arith.mulf %953, %947 : vector<16x32xf32>
    %955 = arith.addf %941, %954 : vector<16x32xf32>
    %c166 = arith.constant 166 : index
    %956 = memref.load %arg2[%c166] : memref<256xf32, #tpu.memory_space<smem>>
    %957 = vector.broadcast %956 : f32 to vector<16x32xf32>
    %958 = arith.mulf %957, %947 : vector<16x32xf32>
    %959 = arith.addf %935, %958 : vector<16x32xf32>
    %c165 = arith.constant 165 : index
    %960 = memref.load %arg2[%c165] : memref<256xf32, #tpu.memory_space<smem>>
    %961 = vector.broadcast %960 : f32 to vector<16x32xf32>
    %962 = arith.mulf %961, %947 : vector<16x32xf32>
    %963 = arith.addf %945, %962 : vector<16x32xf32>
    %c5_353 = arith.constant 5 : index
    %c1_354 = arith.constant 1 : index
    %c0_355 = arith.constant 0 : index
    %964 = vector.load %arg8[%c5_353, %c1_354, %c0_355] : memref<8x18x32xf32, #tpu.memory_space<vmem>>, vector<1x16x32xf32>
    %965 = vector.shape_cast %964 : vector<1x16x32xf32> to vector<16x32xf32>
    %c168 = arith.constant 168 : index
    %966 = memref.load %arg2[%c168] : memref<256xf32, #tpu.memory_space<smem>>
    %967 = vector.broadcast %966 : f32 to vector<16x32xf32>
    %968 = arith.mulf %967, %965 : vector<16x32xf32>
    %969 = arith.addf %951, %968 : vector<16x32xf32>
    %c164 = arith.constant 164 : index
    %970 = memref.load %arg2[%c164] : memref<256xf32, #tpu.memory_space<smem>>
    %971 = vector.broadcast %970 : f32 to vector<16x32xf32>
    %972 = arith.mulf %971, %965 : vector<16x32xf32>
    %973 = arith.addf %959, %972 : vector<16x32xf32>
    %c4_356 = arith.constant 4 : index
    %c2_357 = arith.constant 2 : index
    %c0_358 = arith.constant 0 : index
    %974 = vector.load %arg8[%c4_356, %c2_357, %c0_358] : memref<8x18x32xf32, #tpu.memory_space<vmem>>, vector<1x16x32xf32>
    %975 = vector.shape_cast %974 : vector<1x16x32xf32> to vector<16x32xf32>
    %c163 = arith.constant 163 : index
    %976 = memref.load %arg2[%c163] : memref<256xf32, #tpu.memory_space<smem>>
    %977 = vector.broadcast %976 : f32 to vector<16x32xf32>
    %978 = arith.mulf %977, %975 : vector<16x32xf32>
    %979 = arith.addf %955, %978 : vector<16x32xf32>
    %c2_359 = arith.constant 2 : index
    %c2_360 = arith.constant 2 : index
    %c0_361 = arith.constant 0 : index
    %980 = vector.load %arg7[%c2_359, %c2_360, %c0_361] : memref<4x18x32xf32, #tpu.memory_space<vmem>>, vector<1x16x32xf32>
    %981 = vector.shape_cast %980 : vector<1x16x32xf32> to vector<16x32xf32>
    %c162 = arith.constant 162 : index
    %982 = memref.load %arg2[%c162] : memref<256xf32, #tpu.memory_space<smem>>
    %983 = vector.broadcast %982 : f32 to vector<16x32xf32>
    %984 = arith.mulf %983, %981 : vector<16x32xf32>
    %985 = arith.addf %969, %984 : vector<16x32xf32>
    %c161 = arith.constant 161 : index
    %986 = memref.load %arg2[%c161] : memref<256xf32, #tpu.memory_space<smem>>
    %987 = vector.broadcast %986 : f32 to vector<16x32xf32>
    %988 = arith.mulf %987, %981 : vector<16x32xf32>
    %989 = arith.addf %979, %988 : vector<16x32xf32>
    %c5_362 = arith.constant 5 : index
    %c2_363 = arith.constant 2 : index
    %c0_364 = arith.constant 0 : index
    %990 = vector.load %arg8[%c5_362, %c2_363, %c0_364] : memref<8x18x32xf32, #tpu.memory_space<vmem>>, vector<1x16x32xf32>
    %991 = vector.shape_cast %990 : vector<1x16x32xf32> to vector<16x32xf32>
    %c160 = arith.constant 160 : index
    %992 = memref.load %arg2[%c160] : memref<256xf32, #tpu.memory_space<smem>>
    %993 = vector.broadcast %992 : f32 to vector<16x32xf32>
    %994 = arith.mulf %993, %991 : vector<16x32xf32>
    %995 = arith.addf %985, %994 : vector<16x32xf32>
    %c6_365 = arith.constant 6 : index
    %c0_366 = arith.constant 0 : index
    %c0_367 = arith.constant 0 : index
    %996 = vector.load %arg8[%c6_365, %c0_366, %c0_367] : memref<8x18x32xf32, #tpu.memory_space<vmem>>, vector<1x16x32xf32>
    %997 = vector.shape_cast %996 : vector<1x16x32xf32> to vector<16x32xf32>
    %c239 = arith.constant 239 : index
    %998 = memref.load %arg2[%c239] : memref<256xf32, #tpu.memory_space<smem>>
    %999 = vector.broadcast %998 : f32 to vector<16x32xf32>
    %1000 = arith.mulf %999, %997 : vector<16x32xf32>
    %1001 = arith.addf %963, %1000 : vector<16x32xf32>
    %c3_368 = arith.constant 3 : index
    %c0_369 = arith.constant 0 : index
    %c0_370 = arith.constant 0 : index
    %1002 = vector.load %arg7[%c3_368, %c0_369, %c0_370] : memref<4x18x32xf32, #tpu.memory_space<vmem>>, vector<1x16x32xf32>
    %1003 = vector.shape_cast %1002 : vector<1x16x32xf32> to vector<16x32xf32>
    %c238 = arith.constant 238 : index
    %1004 = memref.load %arg2[%c238] : memref<256xf32, #tpu.memory_space<smem>>
    %1005 = vector.broadcast %1004 : f32 to vector<16x32xf32>
    %1006 = arith.mulf %1005, %1003 : vector<16x32xf32>
    %1007 = arith.addf %973, %1006 : vector<16x32xf32>
    %c237 = arith.constant 237 : index
    %1008 = memref.load %arg2[%c237] : memref<256xf32, #tpu.memory_space<smem>>
    %1009 = vector.broadcast %1008 : f32 to vector<16x32xf32>
    %1010 = arith.mulf %1009, %1003 : vector<16x32xf32>
    %1011 = arith.addf %1001, %1010 : vector<16x32xf32>
    %c7_371 = arith.constant 7 : index
    %c0_372 = arith.constant 0 : index
    %c0_373 = arith.constant 0 : index
    %1012 = vector.load %arg8[%c7_371, %c0_372, %c0_373] : memref<8x18x32xf32, #tpu.memory_space<vmem>>, vector<1x16x32xf32>
    %1013 = vector.shape_cast %1012 : vector<1x16x32xf32> to vector<16x32xf32>
    %c236 = arith.constant 236 : index
    %1014 = memref.load %arg2[%c236] : memref<256xf32, #tpu.memory_space<smem>>
    %1015 = vector.broadcast %1014 : f32 to vector<16x32xf32>
    %1016 = arith.mulf %1015, %1013 : vector<16x32xf32>
    %1017 = arith.addf %1007, %1016 : vector<16x32xf32>
    %c6_374 = arith.constant 6 : index
    %c1_375 = arith.constant 1 : index
    %c0_376 = arith.constant 0 : index
    %1018 = vector.load %arg8[%c6_374, %c1_375, %c0_376] : memref<8x18x32xf32, #tpu.memory_space<vmem>>, vector<1x16x32xf32>
    %1019 = vector.shape_cast %1018 : vector<1x16x32xf32> to vector<16x32xf32>
    %c235 = arith.constant 235 : index
    %1020 = memref.load %arg2[%c235] : memref<256xf32, #tpu.memory_space<smem>>
    %1021 = vector.broadcast %1020 : f32 to vector<16x32xf32>
    %1022 = arith.mulf %1021, %1019 : vector<16x32xf32>
    %1023 = arith.addf %989, %1022 : vector<16x32xf32>
    %c231 = arith.constant 231 : index
    %1024 = memref.load %arg2[%c231] : memref<256xf32, #tpu.memory_space<smem>>
    %1025 = vector.broadcast %1024 : f32 to vector<16x32xf32>
    %1026 = arith.mulf %1025, %1019 : vector<16x32xf32>
    %1027 = arith.addf %1011, %1026 : vector<16x32xf32>
    %c3_377 = arith.constant 3 : index
    %c1_378 = arith.constant 1 : index
    %c0_379 = arith.constant 0 : index
    %1028 = vector.load %arg7[%c3_377, %c1_378, %c0_379] : memref<4x18x32xf32, #tpu.memory_space<vmem>>, vector<1x16x32xf32>
    %1029 = vector.shape_cast %1028 : vector<1x16x32xf32> to vector<16x32xf32>
    %c234 = arith.constant 234 : index
    %1030 = memref.load %arg2[%c234] : memref<256xf32, #tpu.memory_space<smem>>
    %1031 = vector.broadcast %1030 : f32 to vector<16x32xf32>
    %1032 = arith.mulf %1031, %1029 : vector<16x32xf32>
    %1033 = arith.addf %995, %1032 : vector<16x32xf32>
    %c233 = arith.constant 233 : index
    %1034 = memref.load %arg2[%c233] : memref<256xf32, #tpu.memory_space<smem>>
    %1035 = vector.broadcast %1034 : f32 to vector<16x32xf32>
    %1036 = arith.mulf %1035, %1029 : vector<16x32xf32>
    %1037 = arith.addf %1023, %1036 : vector<16x32xf32>
    %c230 = arith.constant 230 : index
    %1038 = memref.load %arg2[%c230] : memref<256xf32, #tpu.memory_space<smem>>
    %1039 = vector.broadcast %1038 : f32 to vector<16x32xf32>
    %1040 = arith.mulf %1039, %1029 : vector<16x32xf32>
    %1041 = arith.addf %1017, %1040 : vector<16x32xf32>
    %c229 = arith.constant 229 : index
    %1042 = memref.load %arg2[%c229] : memref<256xf32, #tpu.memory_space<smem>>
    %1043 = vector.broadcast %1042 : f32 to vector<16x32xf32>
    %1044 = arith.mulf %1043, %1029 : vector<16x32xf32>
    %1045 = arith.addf %1027, %1044 : vector<16x32xf32>
    %c7_380 = arith.constant 7 : index
    %c1_381 = arith.constant 1 : index
    %c0_382 = arith.constant 0 : index
    %1046 = vector.load %arg8[%c7_380, %c1_381, %c0_382] : memref<8x18x32xf32, #tpu.memory_space<vmem>>, vector<1x16x32xf32>
    %1047 = vector.shape_cast %1046 : vector<1x16x32xf32> to vector<16x32xf32>
    %c232 = arith.constant 232 : index
    %1048 = memref.load %arg2[%c232] : memref<256xf32, #tpu.memory_space<smem>>
    %1049 = vector.broadcast %1048 : f32 to vector<16x32xf32>
    %1050 = arith.mulf %1049, %1047 : vector<16x32xf32>
    %1051 = arith.addf %1033, %1050 : vector<16x32xf32>
    %c228 = arith.constant 228 : index
    %1052 = memref.load %arg2[%c228] : memref<256xf32, #tpu.memory_space<smem>>
    %1053 = vector.broadcast %1052 : f32 to vector<16x32xf32>
    %1054 = arith.mulf %1053, %1047 : vector<16x32xf32>
    %1055 = arith.addf %1041, %1054 : vector<16x32xf32>
    %c6_383 = arith.constant 6 : index
    %c2_384 = arith.constant 2 : index
    %c0_385 = arith.constant 0 : index
    %1056 = vector.load %arg8[%c6_383, %c2_384, %c0_385] : memref<8x18x32xf32, #tpu.memory_space<vmem>>, vector<1x16x32xf32>
    %1057 = vector.shape_cast %1056 : vector<1x16x32xf32> to vector<16x32xf32>
    %c227 = arith.constant 227 : index
    %1058 = memref.load %arg2[%c227] : memref<256xf32, #tpu.memory_space<smem>>
    %1059 = vector.broadcast %1058 : f32 to vector<16x32xf32>
    %1060 = arith.mulf %1059, %1057 : vector<16x32xf32>
    %1061 = arith.addf %1037, %1060 : vector<16x32xf32>
    %c3_386 = arith.constant 3 : index
    %c2_387 = arith.constant 2 : index
    %c0_388 = arith.constant 0 : index
    %1062 = vector.load %arg7[%c3_386, %c2_387, %c0_388] : memref<4x18x32xf32, #tpu.memory_space<vmem>>, vector<1x16x32xf32>
    %1063 = vector.shape_cast %1062 : vector<1x16x32xf32> to vector<16x32xf32>
    %c226 = arith.constant 226 : index
    %1064 = memref.load %arg2[%c226] : memref<256xf32, #tpu.memory_space<smem>>
    %1065 = vector.broadcast %1064 : f32 to vector<16x32xf32>
    %1066 = arith.mulf %1065, %1063 : vector<16x32xf32>
    %1067 = arith.addf %1051, %1066 : vector<16x32xf32>
    %c225 = arith.constant 225 : index
    %1068 = memref.load %arg2[%c225] : memref<256xf32, #tpu.memory_space<smem>>
    %1069 = vector.broadcast %1068 : f32 to vector<16x32xf32>
    %1070 = arith.mulf %1069, %1063 : vector<16x32xf32>
    %1071 = arith.addf %1061, %1070 : vector<16x32xf32>
    %c7_389 = arith.constant 7 : index
    %c2_390 = arith.constant 2 : index
    %c0_391 = arith.constant 0 : index
    %1072 = vector.load %arg8[%c7_389, %c2_390, %c0_391] : memref<8x18x32xf32, #tpu.memory_space<vmem>>, vector<1x16x32xf32>
    %1073 = vector.shape_cast %1072 : vector<1x16x32xf32> to vector<16x32xf32>
    %c224 = arith.constant 224 : index
    %1074 = memref.load %arg2[%c224] : memref<256xf32, #tpu.memory_space<smem>>
    %1075 = vector.broadcast %1074 : f32 to vector<16x32xf32>
    %1076 = arith.mulf %1075, %1073 : vector<16x32xf32>
    %1077 = arith.addf %1067, %1076 : vector<16x32xf32>
    %c64_392 = arith.constant 64 : index
    %c0_393 = arith.constant 0 : index
    %1078 = vector.load %arg9[%c64_392, %c0_393] : memref<128x64xf32, #tpu.memory_space<vmem>>, vector<16x32xf32>
    tpu.vector_store %arg9[%c64_392, %c0_393], %1045 {strides = array<i32>} : memref<128x64xf32, #tpu.memory_space<vmem>>, vector<16x32xf32>,
    %c64_394 = arith.constant 64 : index
    %c32_395 = arith.constant 32 : index
    %1079 = vector.load %arg9[%c64_394, %c32_395] : memref<128x64xf32, #tpu.memory_space<vmem>>, vector<16x32xf32>
    tpu.vector_store %arg9[%c64_394, %c32_395], %1055 {strides = array<i32>} : memref<128x64xf32, #tpu.memory_space<vmem>>, vector<16x32xf32>,
    %c80_396 = arith.constant 80 : index
    %c0_397 = arith.constant 0 : index
    %1080 = vector.load %arg9[%c80_396, %c0_397] : memref<128x64xf32, #tpu.memory_space<vmem>>, vector<16x32xf32>
    tpu.vector_store %arg9[%c80_396, %c0_397], %1071 {strides = array<i32>} : memref<128x64xf32, #tpu.memory_space<vmem>>, vector<16x32xf32>,
    %c80_398 = arith.constant 80 : index
    %c32_399 = arith.constant 32 : index
    %1081 = vector.load %arg9[%c80_398, %c32_399] : memref<128x64xf32, #tpu.memory_space<vmem>>, vector<16x32xf32>
    tpu.vector_store %arg9[%c80_398, %c32_399], %1077 {strides = array<i32>} : memref<128x64xf32, #tpu.memory_space<vmem>>, vector<16x32xf32>,
    %c3_400 = arith.constant 3 : index
    %1082 = memref.load %arg3[%c3_400] : memref<4xf32, #tpu.memory_space<smem>>
    %1083 = vector.broadcast %1082 : f32 to vector<16x32xf32>
    %1084 = vector.broadcast %1082 : f32 to vector<16x32xf32>
    %1085 = vector.broadcast %1082 : f32 to vector<16x32xf32>
    %1086 = vector.broadcast %1082 : f32 to vector<16x32xf32>
    %c0_401 = arith.constant 0 : index
    %c0_402 = arith.constant 0 : index
    %c0_403 = arith.constant 0 : index
    %1087 = vector.load %arg8[%c0_401, %c0_402, %c0_403] : memref<8x18x32xf32, #tpu.memory_space<vmem>>, vector<1x16x32xf32>
    %1088 = vector.shape_cast %1087 : vector<1x16x32xf32> to vector<16x32xf32>
    %c63 = arith.constant 63 : index
    %1089 = memref.load %arg2[%c63] : memref<256xf32, #tpu.memory_space<smem>>
    %1090 = vector.broadcast %1089 : f32 to vector<16x32xf32>
    %1091 = arith.mulf %1090, %1088 : vector<16x32xf32>
    %1092 = arith.addf %1083, %1091 : vector<16x32xf32>
    %c0_404 = arith.constant 0 : index
    %c0_405 = arith.constant 0 : index
    %c0_406 = arith.constant 0 : index
    %1093 = vector.load %arg7[%c0_404, %c0_405, %c0_406] : memref<4x18x32xf32, #tpu.memory_space<vmem>>, vector<1x16x32xf32>
    %1094 = vector.shape_cast %1093 : vector<1x16x32xf32> to vector<16x32xf32>
    %c62 = arith.constant 62 : index
    %1095 = memref.load %arg2[%c62] : memref<256xf32, #tpu.memory_space<smem>>
    %1096 = vector.broadcast %1095 : f32 to vector<16x32xf32>
    %1097 = arith.mulf %1096, %1094 : vector<16x32xf32>
    %1098 = arith.addf %1084, %1097 : vector<16x32xf32>
    %c61 = arith.constant 61 : index
    %1099 = memref.load %arg2[%c61] : memref<256xf32, #tpu.memory_space<smem>>
    %1100 = vector.broadcast %1099 : f32 to vector<16x32xf32>
    %1101 = arith.mulf %1100, %1094 : vector<16x32xf32>
    %1102 = arith.addf %1092, %1101 : vector<16x32xf32>
    %c1_407 = arith.constant 1 : index
    %c0_408 = arith.constant 0 : index
    %c0_409 = arith.constant 0 : index
    %1103 = vector.load %arg8[%c1_407, %c0_408, %c0_409] : memref<8x18x32xf32, #tpu.memory_space<vmem>>, vector<1x16x32xf32>
    %1104 = vector.shape_cast %1103 : vector<1x16x32xf32> to vector<16x32xf32>
    %c60 = arith.constant 60 : index
    %1105 = memref.load %arg2[%c60] : memref<256xf32, #tpu.memory_space<smem>>
    %1106 = vector.broadcast %1105 : f32 to vector<16x32xf32>
    %1107 = arith.mulf %1106, %1104 : vector<16x32xf32>
    %1108 = arith.addf %1098, %1107 : vector<16x32xf32>
    %c0_410 = arith.constant 0 : index
    %c1_411 = arith.constant 1 : index
    %c0_412 = arith.constant 0 : index
    %1109 = vector.load %arg8[%c0_410, %c1_411, %c0_412] : memref<8x18x32xf32, #tpu.memory_space<vmem>>, vector<1x16x32xf32>
    %1110 = vector.shape_cast %1109 : vector<1x16x32xf32> to vector<16x32xf32>
    %c59 = arith.constant 59 : index
    %1111 = memref.load %arg2[%c59] : memref<256xf32, #tpu.memory_space<smem>>
    %1112 = vector.broadcast %1111 : f32 to vector<16x32xf32>
    %1113 = arith.mulf %1112, %1110 : vector<16x32xf32>
    %1114 = arith.addf %1085, %1113 : vector<16x32xf32>
    %c55 = arith.constant 55 : index
    %1115 = memref.load %arg2[%c55] : memref<256xf32, #tpu.memory_space<smem>>
    %1116 = vector.broadcast %1115 : f32 to vector<16x32xf32>
    %1117 = arith.mulf %1116, %1110 : vector<16x32xf32>
    %1118 = arith.addf %1102, %1117 : vector<16x32xf32>
    %c0_413 = arith.constant 0 : index
    %c1_414 = arith.constant 1 : index
    %c0_415 = arith.constant 0 : index
    %1119 = vector.load %arg7[%c0_413, %c1_414, %c0_415] : memref<4x18x32xf32, #tpu.memory_space<vmem>>, vector<1x16x32xf32>
    %1120 = vector.shape_cast %1119 : vector<1x16x32xf32> to vector<16x32xf32>
    %c58 = arith.constant 58 : index
    %1121 = memref.load %arg2[%c58] : memref<256xf32, #tpu.memory_space<smem>>
    %1122 = vector.broadcast %1121 : f32 to vector<16x32xf32>
    %1123 = arith.mulf %1122, %1120 : vector<16x32xf32>
    %1124 = arith.addf %1086, %1123 : vector<16x32xf32>
    %c57 = arith.constant 57 : index
    %1125 = memref.load %arg2[%c57] : memref<256xf32, #tpu.memory_space<smem>>
    %1126 = vector.broadcast %1125 : f32 to vector<16x32xf32>
    %1127 = arith.mulf %1126, %1120 : vector<16x32xf32>
    %1128 = arith.addf %1114, %1127 : vector<16x32xf32>
    %c54 = arith.constant 54 : index
    %1129 = memref.load %arg2[%c54] : memref<256xf32, #tpu.memory_space<smem>>
    %1130 = vector.broadcast %1129 : f32 to vector<16x32xf32>
    %1131 = arith.mulf %1130, %1120 : vector<16x32xf32>
    %1132 = arith.addf %1108, %1131 : vector<16x32xf32>
    %c53 = arith.constant 53 : index
    %1133 = memref.load %arg2[%c53] : memref<256xf32, #tpu.memory_space<smem>>
    %1134 = vector.broadcast %1133 : f32 to vector<16x32xf32>
    %1135 = arith.mulf %1134, %1120 : vector<16x32xf32>
    %1136 = arith.addf %1118, %1135 : vector<16x32xf32>
    %c1_416 = arith.constant 1 : index
    %c1_417 = arith.constant 1 : index
    %c0_418 = arith.constant 0 : index
    %1137 = vector.load %arg8[%c1_416, %c1_417, %c0_418] : memref<8x18x32xf32, #tpu.memory_space<vmem>>, vector<1x16x32xf32>
    %1138 = vector.shape_cast %1137 : vector<1x16x32xf32> to vector<16x32xf32>
    %c56 = arith.constant 56 : index
    %1139 = memref.load %arg2[%c56] : memref<256xf32, #tpu.memory_space<smem>>
    %1140 = vector.broadcast %1139 : f32 to vector<16x32xf32>
    %1141 = arith.mulf %1140, %1138 : vector<16x32xf32>
    %1142 = arith.addf %1124, %1141 : vector<16x32xf32>
    %c52 = arith.constant 52 : index
    %1143 = memref.load %arg2[%c52] : memref<256xf32, #tpu.memory_space<smem>>
    %1144 = vector.broadcast %1143 : f32 to vector<16x32xf32>
    %1145 = arith.mulf %1144, %1138 : vector<16x32xf32>
    %1146 = arith.addf %1132, %1145 : vector<16x32xf32>
    %c0_419 = arith.constant 0 : index
    %c2_420 = arith.constant 2 : index
    %c0_421 = arith.constant 0 : index
    %1147 = vector.load %arg8[%c0_419, %c2_420, %c0_421] : memref<8x18x32xf32, #tpu.memory_space<vmem>>, vector<1x16x32xf32>
    %1148 = vector.shape_cast %1147 : vector<1x16x32xf32> to vector<16x32xf32>
    %c51 = arith.constant 51 : index
    %1149 = memref.load %arg2[%c51] : memref<256xf32, #tpu.memory_space<smem>>
    %1150 = vector.broadcast %1149 : f32 to vector<16x32xf32>
    %1151 = arith.mulf %1150, %1148 : vector<16x32xf32>
    %1152 = arith.addf %1128, %1151 : vector<16x32xf32>
    %c0_422 = arith.constant 0 : index
    %c2_423 = arith.constant 2 : index
    %c0_424 = arith.constant 0 : index
    %1153 = vector.load %arg7[%c0_422, %c2_423, %c0_424] : memref<4x18x32xf32, #tpu.memory_space<vmem>>, vector<1x16x32xf32>
    %1154 = vector.shape_cast %1153 : vector<1x16x32xf32> to vector<16x32xf32>
    %c50 = arith.constant 50 : index
    %1155 = memref.load %arg2[%c50] : memref<256xf32, #tpu.memory_space<smem>>
    %1156 = vector.broadcast %1155 : f32 to vector<16x32xf32>
    %1157 = arith.mulf %1156, %1154 : vector<16x32xf32>
    %1158 = arith.addf %1142, %1157 : vector<16x32xf32>
    %c49 = arith.constant 49 : index
    %1159 = memref.load %arg2[%c49] : memref<256xf32, #tpu.memory_space<smem>>
    %1160 = vector.broadcast %1159 : f32 to vector<16x32xf32>
    %1161 = arith.mulf %1160, %1154 : vector<16x32xf32>
    %1162 = arith.addf %1152, %1161 : vector<16x32xf32>
    %c1_425 = arith.constant 1 : index
    %c2_426 = arith.constant 2 : index
    %c0_427 = arith.constant 0 : index
    %1163 = vector.load %arg8[%c1_425, %c2_426, %c0_427] : memref<8x18x32xf32, #tpu.memory_space<vmem>>, vector<1x16x32xf32>
    %1164 = vector.shape_cast %1163 : vector<1x16x32xf32> to vector<16x32xf32>
    %c48_428 = arith.constant 48 : index
    %1165 = memref.load %arg2[%c48_428] : memref<256xf32, #tpu.memory_space<smem>>
    %1166 = vector.broadcast %1165 : f32 to vector<16x32xf32>
    %1167 = arith.mulf %1166, %1164 : vector<16x32xf32>
    %1168 = arith.addf %1158, %1167 : vector<16x32xf32>
    %c2_429 = arith.constant 2 : index
    %c0_430 = arith.constant 0 : index
    %c0_431 = arith.constant 0 : index
    %1169 = vector.load %arg8[%c2_429, %c0_430, %c0_431] : memref<8x18x32xf32, #tpu.memory_space<vmem>>, vector<1x16x32xf32>
    %1170 = vector.shape_cast %1169 : vector<1x16x32xf32> to vector<16x32xf32>
    %c127 = arith.constant 127 : index
    %1171 = memref.load %arg2[%c127] : memref<256xf32, #tpu.memory_space<smem>>
    %1172 = vector.broadcast %1171 : f32 to vector<16x32xf32>
    %1173 = arith.mulf %1172, %1170 : vector<16x32xf32>
    %1174 = arith.addf %1136, %1173 : vector<16x32xf32>
    %c1_432 = arith.constant 1 : index
    %c0_433 = arith.constant 0 : index
    %c0_434 = arith.constant 0 : index
    %1175 = vector.load %arg7[%c1_432, %c0_433, %c0_434] : memref<4x18x32xf32, #tpu.memory_space<vmem>>, vector<1x16x32xf32>
    %1176 = vector.shape_cast %1175 : vector<1x16x32xf32> to vector<16x32xf32>
    %c126 = arith.constant 126 : index
    %1177 = memref.load %arg2[%c126] : memref<256xf32, #tpu.memory_space<smem>>
    %1178 = vector.broadcast %1177 : f32 to vector<16x32xf32>
    %1179 = arith.mulf %1178, %1176 : vector<16x32xf32>
    %1180 = arith.addf %1146, %1179 : vector<16x32xf32>
    %c125 = arith.constant 125 : index
    %1181 = memref.load %arg2[%c125] : memref<256xf32, #tpu.memory_space<smem>>
    %1182 = vector.broadcast %1181 : f32 to vector<16x32xf32>
    %1183 = arith.mulf %1182, %1176 : vector<16x32xf32>
    %1184 = arith.addf %1174, %1183 : vector<16x32xf32>
    %c3_435 = arith.constant 3 : index
    %c0_436 = arith.constant 0 : index
    %c0_437 = arith.constant 0 : index
    %1185 = vector.load %arg8[%c3_435, %c0_436, %c0_437] : memref<8x18x32xf32, #tpu.memory_space<vmem>>, vector<1x16x32xf32>
    %1186 = vector.shape_cast %1185 : vector<1x16x32xf32> to vector<16x32xf32>
    %c124 = arith.constant 124 : index
    %1187 = memref.load %arg2[%c124] : memref<256xf32, #tpu.memory_space<smem>>
    %1188 = vector.broadcast %1187 : f32 to vector<16x32xf32>
    %1189 = arith.mulf %1188, %1186 : vector<16x32xf32>
    %1190 = arith.addf %1180, %1189 : vector<16x32xf32>
    %c2_438 = arith.constant 2 : index
    %c1_439 = arith.constant 1 : index
    %c0_440 = arith.constant 0 : index
    %1191 = vector.load %arg8[%c2_438, %c1_439, %c0_440] : memref<8x18x32xf32, #tpu.memory_space<vmem>>, vector<1x16x32xf32>
    %1192 = vector.shape_cast %1191 : vector<1x16x32xf32> to vector<16x32xf32>
    %c123 = arith.constant 123 : index
    %1193 = memref.load %arg2[%c123] : memref<256xf32, #tpu.memory_space<smem>>
    %1194 = vector.broadcast %1193 : f32 to vector<16x32xf32>
    %1195 = arith.mulf %1194, %1192 : vector<16x32xf32>
    %1196 = arith.addf %1162, %1195 : vector<16x32xf32>
    %c119 = arith.constant 119 : index
    %1197 = memref.load %arg2[%c119] : memref<256xf32, #tpu.memory_space<smem>>
    %1198 = vector.broadcast %1197 : f32 to vector<16x32xf32>
    %1199 = arith.mulf %1198, %1192 : vector<16x32xf32>
    %1200 = arith.addf %1184, %1199 : vector<16x32xf32>
    %c1_441 = arith.constant 1 : index
    %c1_442 = arith.constant 1 : index
    %c0_443 = arith.constant 0 : index
    %1201 = vector.load %arg7[%c1_441, %c1_442, %c0_443] : memref<4x18x32xf32, #tpu.memory_space<vmem>>, vector<1x16x32xf32>
    %1202 = vector.shape_cast %1201 : vector<1x16x32xf32> to vector<16x32xf32>
    %c122 = arith.constant 122 : index
    %1203 = memref.load %arg2[%c122] : memref<256xf32, #tpu.memory_space<smem>>
    %1204 = vector.broadcast %1203 : f32 to vector<16x32xf32>
    %1205 = arith.mulf %1204, %1202 : vector<16x32xf32>
    %1206 = arith.addf %1168, %1205 : vector<16x32xf32>
    %c121 = arith.constant 121 : index
    %1207 = memref.load %arg2[%c121] : memref<256xf32, #tpu.memory_space<smem>>
    %1208 = vector.broadcast %1207 : f32 to vector<16x32xf32>
    %1209 = arith.mulf %1208, %1202 : vector<16x32xf32>
    %1210 = arith.addf %1196, %1209 : vector<16x32xf32>
    %c118 = arith.constant 118 : index
    %1211 = memref.load %arg2[%c118] : memref<256xf32, #tpu.memory_space<smem>>
    %1212 = vector.broadcast %1211 : f32 to vector<16x32xf32>
    %1213 = arith.mulf %1212, %1202 : vector<16x32xf32>
    %1214 = arith.addf %1190, %1213 : vector<16x32xf32>
    %c117 = arith.constant 117 : index
    %1215 = memref.load %arg2[%c117] : memref<256xf32, #tpu.memory_space<smem>>
    %1216 = vector.broadcast %1215 : f32 to vector<16x32xf32>
    %1217 = arith.mulf %1216, %1202 : vector<16x32xf32>
    %1218 = arith.addf %1200, %1217 : vector<16x32xf32>
    %c3_444 = arith.constant 3 : index
    %c1_445 = arith.constant 1 : index
    %c0_446 = arith.constant 0 : index
    %1219 = vector.load %arg8[%c3_444, %c1_445, %c0_446] : memref<8x18x32xf32, #tpu.memory_space<vmem>>, vector<1x16x32xf32>
    %1220 = vector.shape_cast %1219 : vector<1x16x32xf32> to vector<16x32xf32>
    %c120 = arith.constant 120 : index
    %1221 = memref.load %arg2[%c120] : memref<256xf32, #tpu.memory_space<smem>>
    %1222 = vector.broadcast %1221 : f32 to vector<16x32xf32>
    %1223 = arith.mulf %1222, %1220 : vector<16x32xf32>
    %1224 = arith.addf %1206, %1223 : vector<16x32xf32>
    %c116 = arith.constant 116 : index
    %1225 = memref.load %arg2[%c116] : memref<256xf32, #tpu.memory_space<smem>>
    %1226 = vector.broadcast %1225 : f32 to vector<16x32xf32>
    %1227 = arith.mulf %1226, %1220 : vector<16x32xf32>
    %1228 = arith.addf %1214, %1227 : vector<16x32xf32>
    %c2_447 = arith.constant 2 : index
    %c2_448 = arith.constant 2 : index
    %c0_449 = arith.constant 0 : index
    %1229 = vector.load %arg8[%c2_447, %c2_448, %c0_449] : memref<8x18x32xf32, #tpu.memory_space<vmem>>, vector<1x16x32xf32>
    %1230 = vector.shape_cast %1229 : vector<1x16x32xf32> to vector<16x32xf32>
    %c115 = arith.constant 115 : index
    %1231 = memref.load %arg2[%c115] : memref<256xf32, #tpu.memory_space<smem>>
    %1232 = vector.broadcast %1231 : f32 to vector<16x32xf32>
    %1233 = arith.mulf %1232, %1230 : vector<16x32xf32>
    %1234 = arith.addf %1210, %1233 : vector<16x32xf32>
    %c1_450 = arith.constant 1 : index
    %c2_451 = arith.constant 2 : index
    %c0_452 = arith.constant 0 : index
    %1235 = vector.load %arg7[%c1_450, %c2_451, %c0_452] : memref<4x18x32xf32, #tpu.memory_space<vmem>>, vector<1x16x32xf32>
    %1236 = vector.shape_cast %1235 : vector<1x16x32xf32> to vector<16x32xf32>
    %c114 = arith.constant 114 : index
    %1237 = memref.load %arg2[%c114] : memref<256xf32, #tpu.memory_space<smem>>
    %1238 = vector.broadcast %1237 : f32 to vector<16x32xf32>
    %1239 = arith.mulf %1238, %1236 : vector<16x32xf32>
    %1240 = arith.addf %1224, %1239 : vector<16x32xf32>
    %c113 = arith.constant 113 : index
    %1241 = memref.load %arg2[%c113] : memref<256xf32, #tpu.memory_space<smem>>
    %1242 = vector.broadcast %1241 : f32 to vector<16x32xf32>
    %1243 = arith.mulf %1242, %1236 : vector<16x32xf32>
    %1244 = arith.addf %1234, %1243 : vector<16x32xf32>
    %c3_453 = arith.constant 3 : index
    %c2_454 = arith.constant 2 : index
    %c0_455 = arith.constant 0 : index
    %1245 = vector.load %arg8[%c3_453, %c2_454, %c0_455] : memref<8x18x32xf32, #tpu.memory_space<vmem>>, vector<1x16x32xf32>
    %1246 = vector.shape_cast %1245 : vector<1x16x32xf32> to vector<16x32xf32>
    %c112 = arith.constant 112 : index
    %1247 = memref.load %arg2[%c112] : memref<256xf32, #tpu.memory_space<smem>>
    %1248 = vector.broadcast %1247 : f32 to vector<16x32xf32>
    %1249 = arith.mulf %1248, %1246 : vector<16x32xf32>
    %1250 = arith.addf %1240, %1249 : vector<16x32xf32>
    %c4_456 = arith.constant 4 : index
    %c0_457 = arith.constant 0 : index
    %c0_458 = arith.constant 0 : index
    %1251 = vector.load %arg8[%c4_456, %c0_457, %c0_458] : memref<8x18x32xf32, #tpu.memory_space<vmem>>, vector<1x16x32xf32>
    %1252 = vector.shape_cast %1251 : vector<1x16x32xf32> to vector<16x32xf32>
    %c191 = arith.constant 191 : index
    %1253 = memref.load %arg2[%c191] : memref<256xf32, #tpu.memory_space<smem>>
    %1254 = vector.broadcast %1253 : f32 to vector<16x32xf32>
    %1255 = arith.mulf %1254, %1252 : vector<16x32xf32>
    %1256 = arith.addf %1218, %1255 : vector<16x32xf32>
    %c2_459 = arith.constant 2 : index
    %c0_460 = arith.constant 0 : index
    %c0_461 = arith.constant 0 : index
    %1257 = vector.load %arg7[%c2_459, %c0_460, %c0_461] : memref<4x18x32xf32, #tpu.memory_space<vmem>>, vector<1x16x32xf32>
    %1258 = vector.shape_cast %1257 : vector<1x16x32xf32> to vector<16x32xf32>
    %c190 = arith.constant 190 : index
    %1259 = memref.load %arg2[%c190] : memref<256xf32, #tpu.memory_space<smem>>
    %1260 = vector.broadcast %1259 : f32 to vector<16x32xf32>
    %1261 = arith.mulf %1260, %1258 : vector<16x32xf32>
    %1262 = arith.addf %1228, %1261 : vector<16x32xf32>
    %c189 = arith.constant 189 : index
    %1263 = memref.load %arg2[%c189] : memref<256xf32, #tpu.memory_space<smem>>
    %1264 = vector.broadcast %1263 : f32 to vector<16x32xf32>
    %1265 = arith.mulf %1264, %1258 : vector<16x32xf32>
    %1266 = arith.addf %1256, %1265 : vector<16x32xf32>
    %c5_462 = arith.constant 5 : index
    %c0_463 = arith.constant 0 : index
    %c0_464 = arith.constant 0 : index
    %1267 = vector.load %arg8[%c5_462, %c0_463, %c0_464] : memref<8x18x32xf32, #tpu.memory_space<vmem>>, vector<1x16x32xf32>
    %1268 = vector.shape_cast %1267 : vector<1x16x32xf32> to vector<16x32xf32>
    %c188 = arith.constant 188 : index
    %1269 = memref.load %arg2[%c188] : memref<256xf32, #tpu.memory_space<smem>>
    %1270 = vector.broadcast %1269 : f32 to vector<16x32xf32>
    %1271 = arith.mulf %1270, %1268 : vector<16x32xf32>
    %1272 = arith.addf %1262, %1271 : vector<16x32xf32>
    %c4_465 = arith.constant 4 : index
    %c1_466 = arith.constant 1 : index
    %c0_467 = arith.constant 0 : index
    %1273 = vector.load %arg8[%c4_465, %c1_466, %c0_467] : memref<8x18x32xf32, #tpu.memory_space<vmem>>, vector<1x16x32xf32>
    %1274 = vector.shape_cast %1273 : vector<1x16x32xf32> to vector<16x32xf32>
    %c187 = arith.constant 187 : index
    %1275 = memref.load %arg2[%c187] : memref<256xf32, #tpu.memory_space<smem>>
    %1276 = vector.broadcast %1275 : f32 to vector<16x32xf32>
    %1277 = arith.mulf %1276, %1274 : vector<16x32xf32>
    %1278 = arith.addf %1244, %1277 : vector<16x32xf32>
    %c183 = arith.constant 183 : index
    %1279 = memref.load %arg2[%c183] : memref<256xf32, #tpu.memory_space<smem>>
    %1280 = vector.broadcast %1279 : f32 to vector<16x32xf32>
    %1281 = arith.mulf %1280, %1274 : vector<16x32xf32>
    %1282 = arith.addf %1266, %1281 : vector<16x32xf32>
    %c2_468 = arith.constant 2 : index
    %c1_469 = arith.constant 1 : index
    %c0_470 = arith.constant 0 : index
    %1283 = vector.load %arg7[%c2_468, %c1_469, %c0_470] : memref<4x18x32xf32, #tpu.memory_space<vmem>>, vector<1x16x32xf32>
    %1284 = vector.shape_cast %1283 : vector<1x16x32xf32> to vector<16x32xf32>
    %c186 = arith.constant 186 : index
    %1285 = memref.load %arg2[%c186] : memref<256xf32, #tpu.memory_space<smem>>
    %1286 = vector.broadcast %1285 : f32 to vector<16x32xf32>
    %1287 = arith.mulf %1286, %1284 : vector<16x32xf32>
    %1288 = arith.addf %1250, %1287 : vector<16x32xf32>
    %c185 = arith.constant 185 : index
    %1289 = memref.load %arg2[%c185] : memref<256xf32, #tpu.memory_space<smem>>
    %1290 = vector.broadcast %1289 : f32 to vector<16x32xf32>
    %1291 = arith.mulf %1290, %1284 : vector<16x32xf32>
    %1292 = arith.addf %1278, %1291 : vector<16x32xf32>
    %c182 = arith.constant 182 : index
    %1293 = memref.load %arg2[%c182] : memref<256xf32, #tpu.memory_space<smem>>
    %1294 = vector.broadcast %1293 : f32 to vector<16x32xf32>
    %1295 = arith.mulf %1294, %1284 : vector<16x32xf32>
    %1296 = arith.addf %1272, %1295 : vector<16x32xf32>
    %c181 = arith.constant 181 : index
    %1297 = memref.load %arg2[%c181] : memref<256xf32, #tpu.memory_space<smem>>
    %1298 = vector.broadcast %1297 : f32 to vector<16x32xf32>
    %1299 = arith.mulf %1298, %1284 : vector<16x32xf32>
    %1300 = arith.addf %1282, %1299 : vector<16x32xf32>
    %c5_471 = arith.constant 5 : index
    %c1_472 = arith.constant 1 : index
    %c0_473 = arith.constant 0 : index
    %1301 = vector.load %arg8[%c5_471, %c1_472, %c0_473] : memref<8x18x32xf32, #tpu.memory_space<vmem>>, vector<1x16x32xf32>
    %1302 = vector.shape_cast %1301 : vector<1x16x32xf32> to vector<16x32xf32>
    %c184 = arith.constant 184 : index
    %1303 = memref.load %arg2[%c184] : memref<256xf32, #tpu.memory_space<smem>>
    %1304 = vector.broadcast %1303 : f32 to vector<16x32xf32>
    %1305 = arith.mulf %1304, %1302 : vector<16x32xf32>
    %1306 = arith.addf %1288, %1305 : vector<16x32xf32>
    %c180 = arith.constant 180 : index
    %1307 = memref.load %arg2[%c180] : memref<256xf32, #tpu.memory_space<smem>>
    %1308 = vector.broadcast %1307 : f32 to vector<16x32xf32>
    %1309 = arith.mulf %1308, %1302 : vector<16x32xf32>
    %1310 = arith.addf %1296, %1309 : vector<16x32xf32>
    %c4_474 = arith.constant 4 : index
    %c2_475 = arith.constant 2 : index
    %c0_476 = arith.constant 0 : index
    %1311 = vector.load %arg8[%c4_474, %c2_475, %c0_476] : memref<8x18x32xf32, #tpu.memory_space<vmem>>, vector<1x16x32xf32>
    %1312 = vector.shape_cast %1311 : vector<1x16x32xf32> to vector<16x32xf32>
    %c179 = arith.constant 179 : index
    %1313 = memref.load %arg2[%c179] : memref<256xf32, #tpu.memory_space<smem>>
    %1314 = vector.broadcast %1313 : f32 to vector<16x32xf32>
    %1315 = arith.mulf %1314, %1312 : vector<16x32xf32>
    %1316 = arith.addf %1292, %1315 : vector<16x32xf32>
    %c2_477 = arith.constant 2 : index
    %c2_478 = arith.constant 2 : index
    %c0_479 = arith.constant 0 : index
    %1317 = vector.load %arg7[%c2_477, %c2_478, %c0_479] : memref<4x18x32xf32, #tpu.memory_space<vmem>>, vector<1x16x32xf32>
    %1318 = vector.shape_cast %1317 : vector<1x16x32xf32> to vector<16x32xf32>
    %c178 = arith.constant 178 : index
    %1319 = memref.load %arg2[%c178] : memref<256xf32, #tpu.memory_space<smem>>
    %1320 = vector.broadcast %1319 : f32 to vector<16x32xf32>
    %1321 = arith.mulf %1320, %1318 : vector<16x32xf32>
    %1322 = arith.addf %1306, %1321 : vector<16x32xf32>
    %c177 = arith.constant 177 : index
    %1323 = memref.load %arg2[%c177] : memref<256xf32, #tpu.memory_space<smem>>
    %1324 = vector.broadcast %1323 : f32 to vector<16x32xf32>
    %1325 = arith.mulf %1324, %1318 : vector<16x32xf32>
    %1326 = arith.addf %1316, %1325 : vector<16x32xf32>
    %c5_480 = arith.constant 5 : index
    %c2_481 = arith.constant 2 : index
    %c0_482 = arith.constant 0 : index
    %1327 = vector.load %arg8[%c5_480, %c2_481, %c0_482] : memref<8x18x32xf32, #tpu.memory_space<vmem>>, vector<1x16x32xf32>
    %1328 = vector.shape_cast %1327 : vector<1x16x32xf32> to vector<16x32xf32>
    %c176 = arith.constant 176 : index
    %1329 = memref.load %arg2[%c176] : memref<256xf32, #tpu.memory_space<smem>>
    %1330 = vector.broadcast %1329 : f32 to vector<16x32xf32>
    %1331 = arith.mulf %1330, %1328 : vector<16x32xf32>
    %1332 = arith.addf %1322, %1331 : vector<16x32xf32>
    %c6_483 = arith.constant 6 : index
    %c0_484 = arith.constant 0 : index
    %c0_485 = arith.constant 0 : index
    %1333 = vector.load %arg8[%c6_483, %c0_484, %c0_485] : memref<8x18x32xf32, #tpu.memory_space<vmem>>, vector<1x16x32xf32>
    %1334 = vector.shape_cast %1333 : vector<1x16x32xf32> to vector<16x32xf32>
    %c255 = arith.constant 255 : index
    %1335 = memref.load %arg2[%c255] : memref<256xf32, #tpu.memory_space<smem>>
    %1336 = vector.broadcast %1335 : f32 to vector<16x32xf32>
    %1337 = arith.mulf %1336, %1334 : vector<16x32xf32>
    %1338 = arith.addf %1300, %1337 : vector<16x32xf32>
    %c3_486 = arith.constant 3 : index
    %c0_487 = arith.constant 0 : index
    %c0_488 = arith.constant 0 : index
    %1339 = vector.load %arg7[%c3_486, %c0_487, %c0_488] : memref<4x18x32xf32, #tpu.memory_space<vmem>>, vector<1x16x32xf32>
    %1340 = vector.shape_cast %1339 : vector<1x16x32xf32> to vector<16x32xf32>
    %c254 = arith.constant 254 : index
    %1341 = memref.load %arg2[%c254] : memref<256xf32, #tpu.memory_space<smem>>
    %1342 = vector.broadcast %1341 : f32 to vector<16x32xf32>
    %1343 = arith.mulf %1342, %1340 : vector<16x32xf32>
    %1344 = arith.addf %1310, %1343 : vector<16x32xf32>
    %c253 = arith.constant 253 : index
    %1345 = memref.load %arg2[%c253] : memref<256xf32, #tpu.memory_space<smem>>
    %1346 = vector.broadcast %1345 : f32 to vector<16x32xf32>
    %1347 = arith.mulf %1346, %1340 : vector<16x32xf32>
    %1348 = arith.addf %1338, %1347 : vector<16x32xf32>
    %c7_489 = arith.constant 7 : index
    %c0_490 = arith.constant 0 : index
    %c0_491 = arith.constant 0 : index
    %1349 = vector.load %arg8[%c7_489, %c0_490, %c0_491] : memref<8x18x32xf32, #tpu.memory_space<vmem>>, vector<1x16x32xf32>
    %1350 = vector.shape_cast %1349 : vector<1x16x32xf32> to vector<16x32xf32>
    %c252 = arith.constant 252 : index
    %1351 = memref.load %arg2[%c252] : memref<256xf32, #tpu.memory_space<smem>>
    %1352 = vector.broadcast %1351 : f32 to vector<16x32xf32>
    %1353 = arith.mulf %1352, %1350 : vector<16x32xf32>
    %1354 = arith.addf %1344, %1353 : vector<16x32xf32>
    %c6_492 = arith.constant 6 : index
    %c1_493 = arith.constant 1 : index
    %c0_494 = arith.constant 0 : index
    %1355 = vector.load %arg8[%c6_492, %c1_493, %c0_494] : memref<8x18x32xf32, #tpu.memory_space<vmem>>, vector<1x16x32xf32>
    %1356 = vector.shape_cast %1355 : vector<1x16x32xf32> to vector<16x32xf32>
    %c251 = arith.constant 251 : index
    %1357 = memref.load %arg2[%c251] : memref<256xf32, #tpu.memory_space<smem>>
    %1358 = vector.broadcast %1357 : f32 to vector<16x32xf32>
    %1359 = arith.mulf %1358, %1356 : vector<16x32xf32>
    %1360 = arith.addf %1326, %1359 : vector<16x32xf32>
    %c247 = arith.constant 247 : index
    %1361 = memref.load %arg2[%c247] : memref<256xf32, #tpu.memory_space<smem>>
    %1362 = vector.broadcast %1361 : f32 to vector<16x32xf32>
    %1363 = arith.mulf %1362, %1356 : vector<16x32xf32>
    %1364 = arith.addf %1348, %1363 : vector<16x32xf32>
    %c3_495 = arith.constant 3 : index
    %c1_496 = arith.constant 1 : index
    %c0_497 = arith.constant 0 : index
    %1365 = vector.load %arg7[%c3_495, %c1_496, %c0_497] : memref<4x18x32xf32, #tpu.memory_space<vmem>>, vector<1x16x32xf32>
    %1366 = vector.shape_cast %1365 : vector<1x16x32xf32> to vector<16x32xf32>
    %c250 = arith.constant 250 : index
    %1367 = memref.load %arg2[%c250] : memref<256xf32, #tpu.memory_space<smem>>
    %1368 = vector.broadcast %1367 : f32 to vector<16x32xf32>
    %1369 = arith.mulf %1368, %1366 : vector<16x32xf32>
    %1370 = arith.addf %1332, %1369 : vector<16x32xf32>
    %c249 = arith.constant 249 : index
    %1371 = memref.load %arg2[%c249] : memref<256xf32, #tpu.memory_space<smem>>
    %1372 = vector.broadcast %1371 : f32 to vector<16x32xf32>
    %1373 = arith.mulf %1372, %1366 : vector<16x32xf32>
    %1374 = arith.addf %1360, %1373 : vector<16x32xf32>
    %c246 = arith.constant 246 : index
    %1375 = memref.load %arg2[%c246] : memref<256xf32, #tpu.memory_space<smem>>
    %1376 = vector.broadcast %1375 : f32 to vector<16x32xf32>
    %1377 = arith.mulf %1376, %1366 : vector<16x32xf32>
    %1378 = arith.addf %1354, %1377 : vector<16x32xf32>
    %c245 = arith.constant 245 : index
    %1379 = memref.load %arg2[%c245] : memref<256xf32, #tpu.memory_space<smem>>
    %1380 = vector.broadcast %1379 : f32 to vector<16x32xf32>
    %1381 = arith.mulf %1380, %1366 : vector<16x32xf32>
    %1382 = arith.addf %1364, %1381 : vector<16x32xf32>
    %c7_498 = arith.constant 7 : index
    %c1_499 = arith.constant 1 : index
    %c0_500 = arith.constant 0 : index
    %1383 = vector.load %arg8[%c7_498, %c1_499, %c0_500] : memref<8x18x32xf32, #tpu.memory_space<vmem>>, vector<1x16x32xf32>
    %1384 = vector.shape_cast %1383 : vector<1x16x32xf32> to vector<16x32xf32>
    %c248 = arith.constant 248 : index
    %1385 = memref.load %arg2[%c248] : memref<256xf32, #tpu.memory_space<smem>>
    %1386 = vector.broadcast %1385 : f32 to vector<16x32xf32>
    %1387 = arith.mulf %1386, %1384 : vector<16x32xf32>
    %1388 = arith.addf %1370, %1387 : vector<16x32xf32>
    %c244 = arith.constant 244 : index
    %1389 = memref.load %arg2[%c244] : memref<256xf32, #tpu.memory_space<smem>>
    %1390 = vector.broadcast %1389 : f32 to vector<16x32xf32>
    %1391 = arith.mulf %1390, %1384 : vector<16x32xf32>
    %1392 = arith.addf %1378, %1391 : vector<16x32xf32>
    %c6_501 = arith.constant 6 : index
    %c2_502 = arith.constant 2 : index
    %c0_503 = arith.constant 0 : index
    %1393 = vector.load %arg8[%c6_501, %c2_502, %c0_503] : memref<8x18x32xf32, #tpu.memory_space<vmem>>, vector<1x16x32xf32>
    %1394 = vector.shape_cast %1393 : vector<1x16x32xf32> to vector<16x32xf32>
    %c243 = arith.constant 243 : index
    %1395 = memref.load %arg2[%c243] : memref<256xf32, #tpu.memory_space<smem>>
    %1396 = vector.broadcast %1395 : f32 to vector<16x32xf32>
    %1397 = arith.mulf %1396, %1394 : vector<16x32xf32>
    %1398 = arith.addf %1374, %1397 : vector<16x32xf32>
    %c3_504 = arith.constant 3 : index
    %c2_505 = arith.constant 2 : index
    %c0_506 = arith.constant 0 : index
    %1399 = vector.load %arg7[%c3_504, %c2_505, %c0_506] : memref<4x18x32xf32, #tpu.memory_space<vmem>>, vector<1x16x32xf32>
    %1400 = vector.shape_cast %1399 : vector<1x16x32xf32> to vector<16x32xf32>
    %c242 = arith.constant 242 : index
    %1401 = memref.load %arg2[%c242] : memref<256xf32, #tpu.memory_space<smem>>
    %1402 = vector.broadcast %1401 : f32 to vector<16x32xf32>
    %1403 = arith.mulf %1402, %1400 : vector<16x32xf32>
    %1404 = arith.addf %1388, %1403 : vector<16x32xf32>
    %c241 = arith.constant 241 : index
    %1405 = memref.load %arg2[%c241] : memref<256xf32, #tpu.memory_space<smem>>
    %1406 = vector.broadcast %1405 : f32 to vector<16x32xf32>
    %1407 = arith.mulf %1406, %1400 : vector<16x32xf32>
    %1408 = arith.addf %1398, %1407 : vector<16x32xf32>
    %c7_507 = arith.constant 7 : index
    %c2_508 = arith.constant 2 : index
    %c0_509 = arith.constant 0 : index
    %1409 = vector.load %arg8[%c7_507, %c2_508, %c0_509] : memref<8x18x32xf32, #tpu.memory_space<vmem>>, vector<1x16x32xf32>
    %1410 = vector.shape_cast %1409 : vector<1x16x32xf32> to vector<16x32xf32>
    %c240 = arith.constant 240 : index
    %1411 = memref.load %arg2[%c240] : memref<256xf32, #tpu.memory_space<smem>>
    %1412 = vector.broadcast %1411 : f32 to vector<16x32xf32>
    %1413 = arith.mulf %1412, %1410 : vector<16x32xf32>
    %1414 = arith.addf %1404, %1413 : vector<16x32xf32>
    %c96_510 = arith.constant 96 : index
    %c0_511 = arith.constant 0 : index
    %1415 = vector.load %arg9[%c96_510, %c0_511] : memref<128x64xf32, #tpu.memory_space<vmem>>, vector<16x32xf32>
    tpu.vector_store %arg9[%c96_510, %c0_511], %1382 {strides = array<i32>} : memref<128x64xf32, #tpu.memory_space<vmem>>, vector<16x32xf32>,
    %c96_512 = arith.constant 96 : index
    %c32_513 = arith.constant 32 : index
    %1416 = vector.load %arg9[%c96_512, %c32_513] : memref<128x64xf32, #tpu.memory_space<vmem>>, vector<16x32xf32>
    tpu.vector_store %arg9[%c96_512, %c32_513], %1392 {strides = array<i32>} : memref<128x64xf32, #tpu.memory_space<vmem>>, vector<16x32xf32>,
    %c112_514 = arith.constant 112 : index
    %c0_515 = arith.constant 0 : index
    %1417 = vector.load %arg9[%c112_514, %c0_515] : memref<128x64xf32, #tpu.memory_space<vmem>>, vector<16x32xf32>
    tpu.vector_store %arg9[%c112_514, %c0_515], %1408 {strides = array<i32>} : memref<128x64xf32, #tpu.memory_space<vmem>>, vector<16x32xf32>,
    %c112_516 = arith.constant 112 : index
    %c32_517 = arith.constant 32 : index
    %1418 = vector.load %arg9[%c112_516, %c32_517] : memref<128x64xf32, #tpu.memory_space<vmem>>, vector<16x32xf32>
    tpu.vector_store %arg9[%c112_516, %c32_517], %1414 {strides = array<i32>} : memref<128x64xf32, #tpu.memory_space<vmem>>, vector<16x32xf32>,
    %c0_518 = arith.constant 0 : index
    %c0_519 = arith.constant 0 : index
    %1419 = vector.load %arg9[%c0_518, %c0_519] : memref<128x64xf32, #tpu.memory_space<vmem>>, vector<128x64xf32>
    %c0_520 = arith.constant 0 : index
    %c0_521 = arith.constant 0 : index
    %1420 = vector.load %arg4[%c0_520, %c0_521] : memref<64x64xf32, #tpu.memory_space<vmem>>, vector<64x64xf32>
    %cst_522 = arith.constant dense<0.000000e+00> : vector<128x64xf32>
    %1421 = tpu.matmul %1419, %1420, %cst_522 {dimension_numbers = #tpu.dot_dimension_numbers<[1], [0], [0], [1], [0, 0, 1, 1], [], []>} : vector<128x64xf32>, vector<64x64xf32>, vector<128x64xf32> -> vector<128x64xf32>
    %c0_523 = arith.constant 0 : index
    %c0_524 = arith.constant 0 : index
    %1422 = vector.load %arg5[%c0_523, %c0_524] : memref<128x128xf32, #tpu.memory_space<vmem>>, vector<128x128xf32>
    %cst_525 = arith.constant dense<0.000000e+00> : vector<128x64xf32>
    %1423 = tpu.matmul %1422, %1421, %cst_525 {dimension_numbers = #tpu.dot_dimension_numbers<[1], [0], [0], [1], [0, 0, 1, 1], [], []>} : vector<128x128xf32>, vector<128x64xf32>, vector<128x64xf32> -> vector<128x64xf32>
    %1424 = vector.shape_cast %1423 : vector<128x64xf32> to vector<4x32x64xf32>
    %c0_526 = arith.constant 0 : index
    %c0_527 = arith.constant 0 : index
    %c0_528 = arith.constant 0 : index
    %c0_529 = arith.constant 0 : index
    %1425 = vector.load %arg6[%c0_526, %c0_527, %c0_528, %c0_529] : memref<1x4x32x64xf32, #tpu.memory_space<vmem>>, vector<1x4x32x64xf32>
    %1426 = vector.shape_cast %1425 : vector<1x4x32x64xf32> to vector<4x32x64xf32>
    %1427 = vector.shape_cast %1424 : vector<4x32x64xf32> to vector<1x4x32x64xf32>
    tpu.vector_store %arg6[%c0_526, %c0_527, %c0_528, %c0_529], %1427 {strides = array<i32>} : memref<1x4x32x64xf32, #tpu.memory_space<vmem>>, vector<1x4x32x64xf32>,
    return
  }
  func.func @transform_0(%arg0: i32) -> (i32, i32, i32, i32) {
    %c0_i32 = arith.constant 0 : i32
    %c0_i32_0 = arith.constant 0 : i32
    %c0_i32_1 = arith.constant 0 : i32
    %c0_i32_2 = arith.constant 0 : i32
    return %arg0, %c0_i32, %c0_i32_0, %c0_i32_1 : i32, i32, i32, i32
  }
  func.func @transform_1(%arg0: i32) -> i32 {
    %c0_i32 = arith.constant 0 : i32
    %c0_i32_0 = arith.constant 0 : i32
    return %c0_i32 : i32
  }
  func.func @transform_2(%arg0: i32) -> i32 {
    %c0_i32 = arith.constant 0 : i32
    %c0_i32_0 = arith.constant 0 : i32
    return %c0_i32 : i32
  }
  func.func @transform_3(%arg0: i32) -> (i32, i32) {
    %c0_i32 = arith.constant 0 : i32
    %c0_i32_0 = arith.constant 0 : i32
    %c0_i32_1 = arith.constant 0 : i32
    return %c0_i32, %c0_i32_0 : i32, i32
  }
  func.func @transform_4(%arg0: i32) -> (i32, i32) {
    %c0_i32 = arith.constant 0 : i32
    %c0_i32_0 = arith.constant 0 : i32
    %c0_i32_1 = arith.constant 0 : i32
    return %c0_i32, %c0_i32_0 : i32, i32
  }
  func.func @transform_5(%arg0: i32) -> (i32, i32, i32, i32) {
    %c0_i32 = arith.constant 0 : i32
    %c0_i32_0 = arith.constant 0 : i32
    %c0_i32_1 = arith.constant 0 : i32
    %c0_i32_2 = arith.constant 0 : i32
    return %arg0, %c0_i32, %c0_i32_0, %c0_i32_1 : i32, i32, i32, i32
  }
}

</mosaic_0001>

<bundles_post_ra>
// kernel: upsample2d_conv_transpose.1
= control target key start
LH: loop header
LB: loop body
LE: loop exit
PB: predicated region body
PF: predicated region fallthrough
CT: control target
= control target key end

     0   :  { %s6708_s0 = inlined_call_operand.vmem [shape: f32[2,4,16,32], index: 0, kind: input, shape index: {}]   ;;  %s6709_s1 = inlined_call_operand.vmem [shape: f32[256], index: 1, kind: input, shape index: {}]   ;;  %s6710_s2 = inlined_call_operand.vmem [shape: f32[4], index: 2, kind: input, shape index: {}]   ;;  %s6711_s3 = inlined_call_operand.vmem [shape: f32[64,64], index: 3, kind: input, shape index: {}]   ;;  %s6712_s4 = inlined_call_operand.vmem [shape: f32[128,128], index: 4, kind: input, shape index: {}]   ;;  %s6713_s5 = inlined_call_operand.vmem [shape: f32[2,4,32,64], index: 5, kind: output, shape index: {}]  }
   0x1   :  { %6877 = sst [smem:[#allocation154_spill]] %s6708_s0 }
   0x2   :  { %6878 = sst [smem:[#allocation155_spill]] %s6709_s1 }
   0x3   :  { %6879 = sst [smem:[#allocation156_spill]] %s6710_s2 }
   0x4   :  { %6880 = sst [smem:[#allocation157_spill]] %s6711_s3 }
   0x5   :  { %6881 = sst [smem:[#allocation158_spill]] %s6712_s4 }
   0x6   :  { %6882 = sst [smem:[#allocation159_spill]] %s6713_s5 }
   0x7   :  { %10 = vsyncpa [#allocation6], 0 }
   0x8   :  { %11 = vsyncpa [#allocation8], 0  ;;  %s3535_s18 = smov 0  }
   0x9 LB: > { %6883 = sst [smem:[#allocation11_spill]] %s3497_s18  ;;  %s3541_s19 = sadd.s32 4294967295, %s3497_s18   ;;  %s3497_s18 = sphi %s3535_s18, %s17_s18  }
   0xa   : > { %p2889_p0 = scmp.ge.s32.totalorder %s3497_s18, 1  ;;  %p158_p1 = scmp.lt.s32.totalorder %s3497_s18, 3 }
   0xb   : > { %s6884_s1 = sld [smem:[#allocation155_spill]]  ;;  %p6714_p3 = scmp.eq.s32.totalorder %s3541_s19, 0 }
   0xc   : > { %p3548_p2 = pnand %p2889_p0, %p158_p1  ;;  %s6886_s2 = sld [smem:[#allocation156_spill]] }
   0xe   : > { %s6885_s23 = scalar_select %p3548_p2, 1, 0 }
   0xf   : > { %p3370_p4 = pneg %p3548_p2 }
  0x11   : > { %s171_s22 = sshll.u32 %s6884_s1, 4  ;;  %p3560_p5 = pnand %p6714_p3, %p3370_p4  ;;  %s172_s22 = int_to_ptr.vmem [resolvable:$true] %s171_s22 }
  0x12   : > { %s182_s26 = sshll.u32 %s6886_s2, 4  ;;  %s3453_s28 = scalar_lea.vmem %s172_s22, 32  ;;  %s183_s26 = int_to_ptr.vmem [resolvable:$true] %s182_s26 }
  0x13   : > { %p3454_p6 = scmp.ne.s32.totalorder %s172_s22, %s3453_s28  ;;  %p3455_p7 = pneg %p3560_p5 }
  0x14   : > { %p3461_p10 = scmp.lt.s32.totalorder %s172_s22, %s172_s22  ;;  %p3462_p11 = scmp.lt.s32.totalorder %s3453_s28, %s3453_s28 }
  0x15   : > { %p3456_p8 = pnand %p3455_p7, %p3454_p6 }
  0x16   : > { %p3463_p12 = por %p3462_p11, %p3461_p10 }
  0x17   : > { %p3457_p9 = pneg %p3456_p8 }
  0x19   : > { %p3464_p13 = pnand %p3463_p12, %p3457_p9 }
  0x1b   : > { %3467 = shalt.err (!%p3464_p13)
}
  0x1c   : > { %s3499_s29 = smov [#allocation5]   ;;  %s3468_s30 = scalar_lea.vmem %s183_s26, 16 }
  0x1d   : > { %3373 = dma.vmem_to_smem (!%p3560_p5), %s172_s22, 32, %s3499_s29, [#allocation6]  }
  0x1e   : > { %p3469_p0 = scmp.ne.s32.totalorder %s183_s26, %s3468_s30  ;;  %p3476_p3 = scmp.lt.s32.totalorder %s183_s26, %s183_s26 }
  0x1f   : > { %p3477_p2 = scmp.lt.s32.totalorder %s3468_s30, %s3468_s30 }
  0x20   : > { %p3471_p1 = pnand %p3469_p0, %p3455_p7 }
  0x21   : > { %p3478_p6 = por %p3477_p2, %p3476_p3 }
  0x22   : > { %p3472_p4 = pneg %p3471_p1 }
  0x24   : > { %p3479_p8 = pnand %p3478_p6, %p3472_p4 }
  0x26   : > { %3482 = shalt.err (!%p3479_p8)
}
  0x27   : > { %s3500_s6 = smov [#allocation7]   ;;  %p6888_p9 = scmp.ne.s32.totalorder %s6885_s23, 0 }
  0x28   : > { %3376 = dma.vmem_to_smem (!%p3560_p5), %s183_s26, 16, %s3500_s6, [#allocation8]  }
  0x29   : > { %209 = sbr.rel (%p6888_p9) target bundleno = 1070 (0x42e), region = 40 }
  0x2e   : > { %p6889_p10 = scmp.eq.s32.totalorder %s3541_s19, 0 }
  0x30   : > { %3488 = dma.done.wait (%p6889_p10), [#allocation6], 32   ;;  %p6890_p11 = pmov %p6889_p10 }
  0x31   : > { %p6891_p7 = pmov %p6889_p10 }
  0x32   : > { %3490 = vsyncadd (%p6890_p11), [#allocation6], 4294967264 }
  0x33   : > { %3492 = dma.done.wait (%p6891_p7), [#allocation8], 16   ;;  %p6892_p2 = pmov %p6891_p7 }
  0x35   : > { %3494 = vsyncadd (%p6892_p2), [#allocation8], 4294967280 }
  0x36   : > { %219 = sfence }
  0x37   : > { %p242_p3 = scmp.lt.s32.totalorder %s3541_s19, 1  ;;  %vm269_vm0 = vcmask 253952   ;;  %v3501_v0 = vmov 0.0   ;;  %vm260_vm1 = vcmask 261120   ;;  %s6894_s0 = sld [smem:[#allocation154_spill]]  ;;  %vm318_vm2 = vcmask 121856  }
  0x38   : > { %270 = vst.msk [vmem:[#allocation2] sm:$0x1] %vm269_vm0, %v3501_v0  ;;  %271 = vst.msk [vmem:[#allocation2 + $0x18] sm:$0x1] %vm269_vm0, %v3501_v0  ;;  %s3594_s11 = sld [smem:[#allocation7]]  ;;  %s3502_s20 = smov 127  }
  0x39   : > { %272 = vst.msk [vmem:[#allocation2 + $0x30] sm:$0x1] %vm269_vm0, %v3501_v0  ;;  %273 = vst.msk [vmem:[#allocation2 + $0x48] sm:$0x1] %vm269_vm0, %v3501_v0  ;;  %s7497_s19 = smov (!%p242_p3, %s3541_s19), 1  ;;  %s3598_s12 = sld [smem:[#allocation5 + $0xe]] }
  0x3a   : > { %274 = vst.msk [vmem:[#allocation2 + $0x11] sm:$0x1] %vm269_vm0, %v3501_v0  ;;  %275 = vst.msk [vmem:[#allocation2 + $0x29] sm:$0x1] %vm269_vm0, %v3501_v0  ;;  %6893 = sst [smem:[#allocation12_spill]] %s7497_s19  ;;  %s3176_s7 = sshll.u32 %s7497_s19, 6 }
  0x3b   : > { %276 = vst.msk [vmem:[#allocation2 + $0x41] sm:$0x1] %vm269_vm0, %v3501_v0  ;;  %277 = vst.msk [vmem:[#allocation2 + $0x59] sm:$0x1] %vm269_vm0, %v3501_v0  ;;  %s3600_s13 = sld [smem:[#allocation5 + $0xc]]  ;;  %vm297_vm3 = vcmask 130048  }
  0x3c   : > { %s3602_s14 = sld [smem:[#allocation5 + $0x6]]  ;;  %vm325_vm4 = vcmask 252928   ;;  %vm307_vm5 = vcmask 254976   ;;  %vm293_vm6 = vcmask 7168   ;;  %vm301_vm7 = vcmask 138240  }
  0x3d   : > { %s246_s10 = scalar_lea.vmem %s6894_s0, %s3176_s7  ;;  %s3604_s15 = sld [smem:[#allocation5 + $0x8]]  ;;  %vm954_vm8 = vcmask 523520   ;;  %vm2439_vm9 = vcmask 523264  }
  0x3e   : > { %v252_v1 = vld [vmem:[%s246_s10] sm:$0xff]  ;;  %v253_v2 = vld [vmem:[%s246_s10 + $0x8] sm:$0xff]  ;;  %v254_v3 = vld [vmem:[%s246_s10 + $0x10] sm:$0xff]  ;;  %s3606_s16 = sld [smem:[#allocation5 + $0x4]]  ;;  %v3786_v25 = vstv %s3594_s11 }
  0x3f   : > { %261 = vst.msk [vmem:[#allocation2 + $0x1] sm:$0xff] %vm260_vm1, %v252_v1  ;;  %262 = vst.msk [vmem:[#allocation2 + $0x9] sm:$0xff] %vm260_vm1, %v253_v2  ;;  %v255_v4 = vld [vmem:[%s246_s10 + $0x18] sm:$0xff]  ;;  %v256_v5 = vld [vmem:[%s246_s10 + $0x20] sm:$0xff]  ;;  %s3610_s17 = sld [smem:[#allocation5 + $0x4e]]  ;;  %v499_v21 = vstv %s3598_s12 }
  0x40   : > { %263 = vst.msk [vmem:[#allocation2 + $0x19] sm:$0xff] %vm260_vm1, %v254_v3  ;;  %v257_v6 = vld [vmem:[%s246_s10 + $0x28] sm:$0xff]  ;;  %264 = vst.msk [vmem:[#allocation2 + $0x21] sm:$0xff] %vm260_vm1, %v255_v4  ;;  %v258_v7 = vld [vmem:[%s246_s10 + $0x30] sm:$0xff]  ;;  %s3615_s21 = sld [smem:[#allocation5 + $0xa]] }
  0x41   : > { %265 = vst.msk [vmem:[#allocation2 + $0x31] sm:$0xff] %vm260_vm1, %v256_v5  ;;  %266 = vst.msk [vmem:[#allocation2 + $0x39] sm:$0xff] %vm260_vm1, %v257_v6  ;;  %v259_v8 = vld [vmem:[%s246_s10 + $0x38] sm:$0xff]  ;;  %6895 = sst [smem:[#allocation13_spill]] %s3600_s13 }
  0x42   : > { %267 = vst.msk [vmem:[#allocation2 + $0x49] sm:$0xff] %vm260_vm1, %v258_v7  ;;  %268 = vst.msk [vmem:[#allocation2 + $0x51] sm:$0xff] %vm260_vm1, %v259_v8  ;;  %s3621_s22 = sld [smem:[#allocation5 + $0x4c]]  ;;  %v547_v27 = vstv %s3602_s14 }
  0x43   : > { %6896 = sst [smem:[#allocation14_spill]] %s3604_s15  ;;  %6938 = vst [vmem:[#allocation56_spill] sm:$0xff] %v3786_v25 }
  0x44   : > { %6897 = sst [smem:[#allocation15_spill]] %s3606_s16 }
  0x45   : > { %s3623_s23 = sld [smem:[#allocation5 + $0x2]]  ;;  %v613_v28 = vstv %s3610_s17 }
  0x46   : > { %v3608_v9 = vld [vmem:[#allocation2] sm:$0xff]  ;;  %v280_v10 = vld [vmem:[#allocation2 + $0x10] sm:$0x3]  ;;  %v3617_v11 = vld [vmem:[#allocation2 + $0x8] sm:$0xff]  ;;  %s3625_s24 = sld [smem:[#allocation5 + $0x46]]  ;;  %v535_v24 = vstv %s3615_s21 }
  0x47   : > { %309 = vrot.lane.b32.xlu0 %v3608_v9, %s3502_s20  ;;  %313 = vrot.lane.b32.xlu1 %v280_v10, %s3502_s20  ;;  %v3619_v12 = vld [vmem:[#allocation2 + $0x18] sm:$0xff]  ;;  %s3631_s25 = sld [smem:[#allocation5 + $0x48]]  ;;  %v3633_v13 = vld [vmem:[#allocation2 + $0x20] sm:$0xff]  ;;  %v336_v14 = vld [vmem:[#allocation2 + $0x28] sm:$0x3]  ;;  %v500_v22 = vmul.f32 %v499_v21, %v3608_v9  ;;  %v501_v26 = vmul.f32 %v499_v21, %v3617_v11 }
  0x48   : > { %6898 = sst [smem:[#allocation16_spill]] %s3621_s22  ;;  %v3646_v15 = vld [vmem:[#allocation2 + $0x30] sm:$0xff]  ;;  %v3648_v16 = vld [vmem:[#allocation2 + $0x38] sm:$0xff]  ;;  %v387_v17 = vld [vmem:[#allocation2 + $0x40] sm:$0x3]  ;;  %v3823_v41 = vmul.f32 %v613_v28, %v3619_v12  ;;  %v3883_v2 = vmul.f32 %v613_v28, %v3633_v13 }
  0x49   : > { %s3635_s26 = sld [smem:[#allocation5 + $0x44]]  ;;  %v3662_v18 = vld [vmem:[#allocation2 + $0x48] sm:$0xff]  ;;  %v3675_v19 = vld [vmem:[#allocation2 + $0x50] sm:$0xff]  ;;  %v438_v20 = vld [vmem:[#allocation2 + $0x58] sm:$0x3]  ;;  %v3801_v31 = vadd.f32 %v500_v22, %v3786_v25  ;;  %v3815_v39 = vadd.f32 %v501_v26, %v3786_v25 }
  0x4a   : > { %s3637_s27 = sld [smem:[#allocation5]]  ;;  %v3780_v23 = vld [vmem:[#allocation2 + $0x1] sm:$0xff]  ;;  %v3796_v30 = vld [vmem:[#allocation2 + $0x9] sm:$0xff]  ;;  %v3808_v35 = vld [vmem:[#allocation2 + $0x19] sm:$0xff] }
  0x4b   : > { %311 = vrot.lane.b32.xlu0 %v3617_v11, %s3502_s20  ;;  %362 = vrot.lane.b32.xlu1 %v3619_v12, %s3502_s20  ;;  %s3639_s28 = sld [smem:[#allocation5 + $0x8e]]  ;;  %v536_v29 = vmul.f32 %v535_v24, %v3780_v23  ;;  %v3811_v37 = vld [vmem:[#allocation2 + $0x2] sm:$0xff]  ;;  %v583_v38 = vstv %s3623_s23  ;;  %v3820_v40 = vmul.f32 %v547_v27, %v3780_v23  ;;  %v537_v43 = vmul.f32 %v535_v24, %v3796_v30  ;;  %v3846_v51 = vld [vmem:[#allocation2 + $0x1a] sm:$0xff]  ;;  %v3855_v55 = vld [vmem:[#allocation2 + $0x31] sm:$0xff] }
  0x4c   : > { %s3644_s29 = sld [smem:[#allocation5 + $0x4a]]  ;;  %v661_v36 = vstv %s3625_s24  ;;  %v3835_v47 = vmul.f32 %v547_v27, %v3796_v30  ;;  %v3844_v50 = vmul.f32 %v583_v38, %v3811_v37  ;;  %v3879_v0 = vld [vmem:[#allocation2 + $0x32] sm:$0xff]  ;;  %v3885_v3 = vld [vmem:[#allocation2 + $0xa] sm:$0xff]  ;;  %v3945_v58 = vld [vmem:[#allocation2 + $0x22] sm:$0xff] }
  0x4d   : > { %6899 = sst [smem:[#allocation17_spill]] %s3631_s25  ;;  %v3831_v45 = vadd.f32 %v536_v29, %v3786_v25  ;;  %v3840_v48 = vmul.f32 %v661_v36, %v3808_v35  ;;  %v3869_v61 = vadd.f32 %v537_v43, %v3786_v25  ;;  %v3894_v7 = vld [vmem:[#allocation2 + $0x49] sm:$0xff]  ;;  %v3923_v26 = vmul.f32 %v583_v38, %v3885_v3  ;;  %v3942_v5 = vld [vmem:[#allocation2 + $0x39] sm:$0xff]  ;;  %v3989_v6 = vld [vmem:[#allocation2 + $0x51] sm:$0xff] }
  0x4e   : > { %s3650_s30 = sld [smem:[#allocation5 + $0x8c]]  ;;  %v3931_v29 = vld [vmem:[#allocation2 + $0x4a] sm:$0xff]  ;;  %v4007_v33 = vld [vmem:[#allocation2 + $0x3a] sm:$0xff] }
  0x4f   : > { %6900 = sst [smem:[#allocation18_spill]] %s3635_s26  ;;  %364 = vrot.lane.b32.xlu0 %v3633_v13, %s3502_s20  ;;  %366 = vrot.lane.b32.xlu1 %v336_v14, %s3502_s20 }
  0x50   : > { %6901 = sst [smem:[#allocation19_spill]] %s3637_s27 }
  0x51   : > { %s3652_s6 = sld [smem:[#allocation5 + $0x42]]  ;;  %v727_v42 = vstv %s3639_s28 }
  0x52   : > { %s3654_s7 = sld [smem:[#allocation5 + $0x86]]  ;;  %v649_v46 = vstv %s3644_s29  ;;  %v3853_v54 = vmul.f32 %v727_v42, %v3646_v15  ;;  %v3935_v43 = vmul.f32 %v727_v42, %v3648_v16 }
  0x53   : > { %413 = vrot.lane.b32.xlu0 %v3646_v15, %s3502_s20  ;;  %415 = vrot.lane.b32.xlu1 %v3648_v16, %s3502_s20  ;;  %s3660_s8 = sld [smem:[#allocation5 + $0x88]]  ;;  %v3866_v60 = vmul.f32 %v649_v46, %v3808_v35 }
  0x54   : > { %6902 = sst [smem:[#allocation20_spill]] %s3650_s30 }
  0x55   : > { %s3664_s9 = sld [smem:[#allocation5 + $0x84]] }
  0x56   : > { %s3666_s10 = sld [smem:[#allocation5 + $0x40]] }
  0x57   : > { %s3668_s0 = sld [smem:[#allocation5 + $0xce]]  ;;  %417 = vrot.lane.b32.xlu0 %v387_v17, %s3502_s20  ;;  %464 = vrot.lane.b32.xlu1 %v3662_v18, %s3502_s20  ;;  %v697_v52 = vstv %s3652_s6 }
  0x58   : > { %s3673_s1 = sld [smem:[#allocation5 + $0x8a]]  ;;  %v775_v56 = vstv %s3654_s7  ;;  %v3876_v62 = vmul.f32 %v697_v52, %v3846_v51  ;;  %v3985_v57 = vmul.f32 %v697_v52, %v3945_v58 }
  0x59   : > { %6903 = sst [smem:[#allocation21_spill]] %s3660_s8  ;;  %v3890_v4 = vmul.f32 %v775_v56, %v3855_v55 }
  0x5a   : > { %s3677_s2 = sld [smem:[#allocation5 + $0xcc]]  ;;  %6975 = vst [vmem:[#allocation66_spill] sm:$0xff] %v3985_v57 }
  0x5b   : > { %6904 = sst [smem:[#allocation22_spill]] %s3664_s9  ;;  %466 = vrot.lane.b32.xlu0 %v3675_v19, %s3502_s20  ;;  %468 = vrot.lane.b32.xlu1 %v438_v20, %s3502_s20  ;;  %s3503_s9 = smov 1  }
  0x5c   : > { %6905 = sst [smem:[#allocation23_spill]] %s3666_s10 }
  0x5d   : > { %s3679_s18 = sld [smem:[#allocation5 + $0x82]]  ;;  %v841_v59 = vstv %s3668_s0 }
  0x5e   : > { %s3681_s5 = sld [smem:[#allocation5 + $0xc6]]  ;;  %v763_v63 = vstv %s3673_s1 }
  0x5f   : > { %s3686_s19 = sld [smem:[#allocation5 + $0xc8]]  ;;  %284 = vrot.lane.b32.xlu0 %v3608_v9, %s3503_s9  ;;  %286 = vrot.lane.b32.xlu1 %v3617_v11, %s3503_s9  ;;  %v3915_v22 = vmul.f32 %v763_v63, %v3855_v55  ;;  %v4025_v34 = vmul.f32 %v763_v63, %v3942_v5 }
  0x60   : > { %6906 = sst [smem:[#allocation24_spill]] %s3677_s2 }
  0x61   : > { %s3688_s4 = sld [smem:[#allocation5 + $0xc4]]  ;;  %6990 = vst [vmem:[#allocation71_spill] sm:$0xff] %v4025_v34 }
  0x62   : > { %s3690_s3 = sld [smem:[#allocation5 + $0x80]] }
  0x63   : > { %s3692_s10 = sld [smem:[#allocation5 + $0xca]]  ;;  %288 = vrot.lane.b32.xlu0 %v280_v10, %s3503_s9  ;;  %340 = vrot.lane.b32.xlu1 %v3619_v12, %s3503_s9  ;;  %v6771_v1 = vstv %s3679_s18  ;;  %v3897_v10 = vld [vmem:[#allocation2 + $0x21] sm:$0xff]  ;;  %v6995_v63 = vstv %s3679_s18 }
  0x64   : > { %6907 = sst [smem:[#allocation25_spill]] %s3681_s5  ;;  %v3920_v24 = vmul.f32 %v6771_v1, %v3879_v0  ;;  %v4044_v25 = vmul.f32 %v6995_v63, %v4007_v33 }
  0x65   : > { %6908 = sst [smem:[#allocation26_spill]] %s3686_s19 }
  0x66   : > { %s3698_s2 = sld [smem:[#allocation5 + $0xc2]]  ;;  %6996 = vst [vmem:[#allocation73_spill] sm:$0xff] %v4044_v25  ;;  %v4083_v25 = vld [vmem:[#allocation2 + $0x50] sm:$0xff] }
  0x67   : > { %6909 = sst [smem:[#allocation27_spill]] %s3688_s4  ;;  %342 = vrot.lane.b32.xlu0 %v3633_v13, %s3503_s9  ;;  %344 = vrot.lane.b32.xlu1 %v336_v14, %s3503_s9  ;;  %v3902_v13 = vmul.f32 %v841_v59, %v3662_v18 }
  0x68   : > { %6910 = sst [smem:[#allocation28_spill]] %s3690_s3 }
  0x69   : > { %6911 = sst [smem:[#allocation29_spill]] %s3692_s10 }
  0x6a   : > { %s3700_s5 = sld [smem:[#allocation5 + $0xc0]] }
  0x6b   : > { %s3702_s20 = sld [smem:[#allocation7 + $0x1]]  ;;  %391 = vrot.lane.b32.xlu0 %v3646_v15, %s3503_s9  ;;  %393 = vrot.lane.b32.xlu1 %v3648_v16, %s3503_s9  ;;  %v3950_v16 = vmul.f32 %v775_v56, %v3942_v5  ;;  %v3973_v56 = vmul.f32 %v649_v46, %v3897_v10 }
  0x6c   : > { %6912 = sst [smem:[#allocation30_spill]] %s3698_s2 }
  0x6d   : > { %s3704_s19 = sld [smem:[#allocation5 + $0x1e]]  ;;  %6972 = vst [vmem:[#allocation64_spill] sm:$0xff] %v3973_v56  ;;  %v4141_v56 = vld [vmem:[#allocation2 + $0x8] sm:$0xff] }
  0x6e   : > { %s3709_s3 = sld [smem:[#allocation5 + $0x1c]] }
  0x6f   : > { %s3711_s4 = sld [smem:[#allocation5 + $0x16]]  ;;  %395 = vrot.lane.b32.xlu0 %v387_v17, %s3503_s9  ;;  %442 = vrot.lane.b32.xlu1 %v3662_v18, %s3503_s9  ;;  %v3906_v17 = vmul.f32 %v661_v36, %v3897_v10 }
  0x70   : > { %6913 = sst [smem:[#allocation31_spill]] %s3700_s5 }
  0x71   : > { %6914 = sst [smem:[#allocation32_spill]] %s3702_s20 }
  0x72   : > { %s3713_s10 = sld [smem:[#allocation5 + $0x18]] }
  0x73   : > { %6915 = sst [smem:[#allocation33_spill]] %s3704_s19  ;;  %444 = vrot.lane.b32.xlu0 %v3675_v19, %s3503_s9  ;;  %446 = vrot.lane.b32.xlu1 %v438_v20, %s3503_s9 }
  0x74   : > { %6916 = sst [smem:[#allocation34_spill]] %s3709_s3 }
  0x75   : > { %6917 = sst [smem:[#allocation35_spill]] %s3711_s4 }
  0x76   : > { %s3715_s8 = sld [smem:[#allocation5 + $0x14]] }
  0x77   : > { %s3720_s5 = sld [smem:[#allocation5 + $0x5e]] }
  0x78   : > { %6918 = sst [smem:[#allocation36_spill]] %s3713_s10 }
  0x79   : > { %s3722_s20 = sld [smem:[#allocation5 + $0x5c]] }
  0x7a   : > { %s3724_s2 = sld [smem:[#allocation5 + $0x56]] }
  0x7b   : > { %s3726_s19 = sld [smem:[#allocation5 + $0x58]] }
  0x7c   : > { %6919 = sst [smem:[#allocation37_spill]] %s3715_s8 }
  0x7d   : > { %6920 = sst [smem:[#allocation38_spill]] %s3720_s5 }
  0x7e   : > { %s3732_s8 = sld [smem:[#allocation5 + $0x54]] }
  0x7f   : > { %6921 = sst [smem:[#allocation39_spill]] %s3722_s20 }
  0x80   : > { %6922 = sst [smem:[#allocation40_spill]] %s3724_s2 }
  0x81   : > { %6923 = sst [smem:[#allocation41_spill]] %s3726_s19 }
  0x82   : > { %s3734_s10 = sld [smem:[#allocation5 + $0x9e]] }
  0x83   : > { %s3736_s3 = sld [smem:[#allocation5 + $0x9c]] }
  0x84   : > { %6924 = sst [smem:[#allocation42_spill]] %s3732_s8 }
  0x85   : > { %s3738_s4 = sld [smem:[#allocation5 + $0x96]] }
  0x86   : > { %s3743_s19 = sld [smem:[#allocation5 + $0x98]] }
  0x87   : > { %s3745_s20 = sld [smem:[#allocation5 + $0x94]] }
  0x88   : > { %6925 = sst [smem:[#allocation43_spill]] %s3734_s10 }
  0x89   : > { %6926 = sst [smem:[#allocation44_spill]] %s3736_s3 }
  0x8a   : > { %s3747_s2 = sld [smem:[#allocation5 + $0xde]] }
  0x8b   : > { %6927 = sst [smem:[#allocation45_spill]] %s3738_s4 }
  0x8c   : > { %6928 = sst [smem:[#allocation46_spill]] %s3743_s19 }
  0x8d   : > { %6929 = sst [smem:[#allocation47_spill]] %s3745_s20 }
  0x8e   : > { %s3749_s5 = sld [smem:[#allocation5 + $0xdc]] }
  0x8f   : > { %s3754_s3 = sld [smem:[#allocation5 + $0xd6]] }
  0x90   : > { %6930 = sst [smem:[#allocation48_spill]] %s3747_s2 }
  0x91   : > { %s3756_s8 = sld [smem:[#allocation5 + $0xd8]] }
  0x92   : > { %s3758_s4 = sld [smem:[#allocation5 + $0xd4]] }
  0x93   : > { %s3760_s19 = sld [smem:[#allocation5 + $0x1a]] }
  0x94   : > { %6931 = sst [smem:[#allocation49_spill]] %s3749_s5 }
  0x95   : > { %6932 = sst [smem:[#allocation50_spill]] %s3754_s3 }
  0x96   : > { %s3762_s20 = sld [smem:[#allocation5 + $0x12]] }
  0x97   : > { %6933 = sst [smem:[#allocation51_spill]] %s3756_s8 }
  0x98   : > { %6934 = sst [smem:[#allocation52_spill]] %s3758_s4 }
  0x99   : > { %s3764_s2 = sld [smem:[#allocation5 + $0x10]]  ;;  %v1018_v34 = vstv %s3760_s19 }
  0x9a   : > { %s3766_s5 = sld [smem:[#allocation5 + $0x5a]] }
  0x9b   : > { %s3768_s10 = sld [smem:[#allocation5 + $0x52]] }
  0x9c   : > { %s3770_s9 = sld [smem:[#allocation5 + $0x50]] }
  0x9d   : > { %s3773_s3 = sld [smem:[#allocation5 + $0x9a]] }
  0x9e   : > { %s3775_s8 = sld [smem:[#allocation5 + $0x92]] }
  0x9f   : > { %6935 = sst [smem:[#allocation53_spill]] %s3764_s2 }
  0xa0   : > { %s3777_s4 = sld [smem:[#allocation5 + $0x90]] }
  0xa1   : > { %s3783_s2 = sld [smem:[#allocation5 + $0xda]] }
  0xa2   : > { %6936 = sst [smem:[#allocation54_spill]] %s3770_s9 }
  0xa3   : > { %s3789_s12 = sld [smem:[#allocation5 + $0xd2]] }
  0xa4   : > { %s3791_s9 = sld [smem:[#allocation5 + $0xd0]] }
  0xa5   : > { %s3798_s21 = sld [smem:[#allocation7 + $0x2]] }
  0xa6   : > { %6937 = sst [smem:[#allocation55_spill]] %s3777_s4 }
  0xa7   : > { %s3805_s11 = sld [smem:[#allocation5 + $0x2e]] }
  0xa8   : > { %s3817_s14 = sld [smem:[#allocation5 + $0x2c]] }
  0xa9   : > { %s3827_s17 = sld [smem:[#allocation5 + $0x26]] }
  0xaa   : > { %6939 = sst [smem:[#allocation57_spill]] %s3791_s9 }
  0xab   : > { %s3837_s23 = sld [smem:[#allocation5 + $0x28]] }
  0xac   : > { %s3849_s24 = sld [smem:[#allocation5 + $0x24]] }
  0xad   : > { %s3859_s22 = sld [smem:[#allocation5 + $0x6e]] }
  0xae   : > { %s6944_s16 = sld [smem:[#allocation25_spill]] }
  0xaf   : > { %s3871_s26 = sld [smem:[#allocation5 + $0x6c]] }
  0xb0   : > { %s6947_s27 = sld [smem:[#allocation33_spill]] }
  0xb1   : > { %6940 = sst [smem:[#allocation58_spill]] %s3837_s23 }
  0xb2   : > { %6941 = sst [smem:[#allocation59_spill]] %s3849_s24 }
  0xb3   : > { %s3887_s30 = sld [smem:[#allocation5 + $0x66]] }
  0xb4   : > { %s6950_s15 = sld [smem:[#allocation29_spill]]  ;;  %v889_v8 = vstv %s6944_s16 }
  0xb5   : > { %6945 = sst [smem:[#allocation25_spill]] %s3871_s26  ;;  %v3928_v27 = vmul.f32 %v889_v8, %v3894_v7  ;;  %v4004_v52 = vmul.f32 %v889_v8, %v3989_v6 }
  0xb6   : > { %s6951_s13 = sld [smem:[#allocation30_spill]]  ;;  %v982_v20 = vstv %s6947_s27 }
  0xb7   : > { %s3899_s26 = sld [smem:[#allocation5 + $0x68]]  ;;  %6960 = vst [vmem:[#allocation60_spill] sm:$0xff] %v3928_v27  ;;  %v983_v14 = vmul.f32 %v982_v20, %v3608_v9  ;;  %v984_v38 = vmul.f32 %v982_v20, %v3617_v11  ;;  %v3978_v11 = vmul.f32 %v841_v59, %v3675_v19  ;;  %v3999_v20 = vld [vmem:[#allocation2 + $0x20] sm:$0xff]  ;;  %6982 = vst [vmem:[#allocation68_spill] sm:$0xff] %v4004_v52  ;;  %v4056_v52 = vld [vmem:[#allocation2 + $0x52] sm:$0xff]  ;;  %v1578_v27 = vstv %s3859_s22 }
  0xb8   : > { %s3909_s25 = sld [smem:[#allocation5 + $0x64]] }
  0xb9   : > { %6949 = sst [smem:[#allocation33_spill]] %s3887_s30  ;;  %6974 = vst [vmem:[#allocation65_spill] sm:$0xff] %v3978_v11 }
  0xba   : > { %s6957_s16 = sld [smem:[#allocation32_spill]]  ;;  %v6770_v28 = vstv %s6950_s15 }
  0xbb   : > { %s3925_s7 = sld [smem:[#allocation5 + $0xae]]  ;;  %v3962_v9 = vmul.f32 %v6770_v28, %v3894_v7 }
  0xbc   : > { %v6768_v36 = vstv %s6951_s13  ;;  %s3937_s0 = sld [smem:[#allocation5 + $0xac]] }
  0xbd   : > { %6952 = sst [smem:[#allocation29_spill]] %s3899_s26  ;;  %6969 = vst [vmem:[#allocation62_spill] sm:$0xff] %v3962_v9  ;;  %v3967_v21 = vmul.f32 %v6768_v36, %v3931_v29 }
  0xbe   : > { %6956 = sst [smem:[#allocation30_spill]] %s3909_s25 }
  0xbf   : > { %s6959_s26 = sld [smem:[#allocation35_spill]]  ;;  %6970 = vst [vmem:[#allocation63_spill] sm:$0xff] %v3967_v21 }
  0xc0   : > { %s3947_s23 = sld [smem:[#allocation5 + $0xa6]]  ;;  %v3953_v42 = vstv %s6957_s16 }
  0xc1   : > { %6958 = sst [smem:[#allocation32_spill]] %s3925_s7  ;;  %6965 = vst [vmem:[#allocation61_spill] sm:$0xff] %v3953_v42  ;;  %v3992_v46 = vadd.f32 %v983_v14, %v3953_v42  ;;  %v4010_v14 = vadd.f32 %v984_v38, %v3953_v42 }
  0xc2   : > { %6962 = sst [smem:[#allocation35_spill]] %s3937_s0 }
  0xc3   : > { %s6964_s7 = sld [smem:[#allocation38_spill]]  ;;  %6985 = vst [vmem:[#allocation69_spill] sm:$0xff] %v4010_v14 }
  0xc4   : > { %s6967_s30 = sld [smem:[#allocation40_spill]] }
  0xc5   : > { %v1030_v49 = vstv %s6959_s26  ;;  %s3957_s28 = sld [smem:[#allocation5 + $0xa8]] }
  0xc6   : > { %s3975_s26 = sld [smem:[#allocation5 + $0xa4]]  ;;  %v3995_v44 = vmul.f32 %v1030_v49, %v3780_v23  ;;  %v4013_v19 = vmul.f32 %v1030_v49, %v3796_v30 }
  0xc7   : > { %s3987_s0 = sld [smem:[#allocation5 + $0xee]] }
  0xc8   : > { %s6978_s27 = sld [smem:[#allocation43_spill]]  ;;  %6986 = vst [vmem:[#allocation70_spill] sm:$0xff] %v4013_v19  ;;  %v4047_v19 = vld [vmem:[#allocation2 + $0x38] sm:$0xff] }
  0xc9   : > { %v1096_v53 = vstv %s6964_s7  ;;  %s6980_s7 = sld [smem:[#allocation45_spill]] }
  0xca   : > { %v1144_v59 = vstv %s6967_s30  ;;  %s4001_s6 = sld [smem:[#allocation5 + $0xec]]  ;;  %v4018_v32 = vmul.f32 %v1096_v53, %v3619_v12  ;;  %v4035_v1 = vmul.f32 %v1096_v53, %v3999_v20 }
  0xcb   : > { %6968 = sst [smem:[#allocation38_spill]] %s3957_s28  ;;  %v4030_v38 = vmul.f32 %v1144_v59, %v3808_v35  ;;  %v4059_v12 = vmul.f32 %v1144_v59, %v3897_v10  ;;  %v1019_v59 = vmul.f32 %v1018_v34, %v3780_v23 }
  0xcc   : > { %6973 = sst [smem:[#allocation40_spill]] %s3975_s26  ;;  %6993 = vst [vmem:[#allocation72_spill] sm:$0xff] %v4035_v1 }
  0xcd   : > { %6977 = sst [smem:[#allocation67_spill]] %s3987_s0  ;;  %6999 = vst [vmem:[#allocation75_spill] sm:$0xff] %v4059_v12  ;;  %v1066_v12 = vstv %s3762_s20 }
  0xce   : > { %s6983_s25 = sld [smem:[#allocation42_spill]]  ;;  %v1210_v36 = vstv %s6978_s27  ;;  %v4108_v14 = vmul.f32 %v1066_v12, %v3811_v37 }
  0xcf   : > { %s6984_s26 = sld [smem:[#allocation48_spill]]  ;;  %v1258_v28 = vstv %s6980_s7  ;;  %v4052_v49 = vmul.f32 %v1210_v36, %v3646_v15  ;;  %v7003_v15 = vstv %s6950_s15  ;;  %v4081_v21 = vmul.f32 %v1210_v36, %v4047_v19 }
  0xd0   : > { %6981 = sst [smem:[#allocation43_spill]] %s4001_s6  ;;  %v4064_v63 = vmul.f32 %v1258_v28, %v3855_v55  ;;  %v4071_v53 = vmul.f32 %v7003_v15, %v3989_v6  ;;  %v4103_v11 = vmul.f32 %v1258_v28, %v3942_v5  ;;  %7012 = vst [vmem:[#allocation83_spill] sm:$0xff] %v4108_v14  ;;  %v1246_v28 = vstv %s3773_s3 }
  0xd1   : > { %s4015_s30 = sld [smem:[#allocation5 + $0xe6]]  ;;  %6997 = vst [vmem:[#allocation74_spill] sm:$0xff] %v4052_v49  ;;  %7007 = vst [vmem:[#allocation79_spill] sm:$0xff] %v4081_v21  ;;  %v4121_v21 = vld [vmem:[#allocation2] sm:$0xff]  ;;  %v1464_v36 = vstv %s3805_s11  ;;  %v1360_v14 = vstv %s3783_s2  ;;  %v4187_v49 = vld [vmem:[#allocation2 + $0x18] sm:$0xff] }
  0xd2   : > { %s6989_s16 = sld [smem:[#allocation50_spill]]  ;;  %7000 = vst [vmem:[#allocation76_spill] sm:$0xff] %v4064_v63  ;;  %7004 = vst [vmem:[#allocation77_spill] sm:$0xff] %v4071_v53  ;;  %v1132_v63 = vstv %s3766_s5 }
  0xd3   : > { %s4027_s6 = sld [smem:[#allocation5 + $0xe8]]  ;;  %7011 = vst [vmem:[#allocation82_spill] sm:$0xff] %v4103_v11  ;;  %v4125_v11 = vmul.f32 %v1066_v12, %v3885_v3 }
  0xd4   : > { %s4037_s28 = sld [smem:[#allocation5 + $0xe4]] }
  0xd5   : > { %v1324_v8 = vstv %s6984_s26  ;;  %s4049_s1 = sld [smem:[#allocation5 + $0x2a]]  ;;  %7016 = vst [vmem:[#allocation86_spill] sm:$0xff] %v4125_v11 }
  0xd6   : > { %s4061_s18 = sld [smem:[#allocation5 + $0x22]]  ;;  %v4076_v57 = vmul.f32 %v1324_v8, %v3662_v18  ;;  %v7009_v18 = vstv %s6951_s13 }
  0xd7   : > { %6987 = sst [smem:[#allocation45_spill]] %s4015_s30  ;;  %v4094_v53 = vmul.f32 %v7009_v18, %v4056_v52  ;;  %v1180_v18 = vstv %s3768_s10 }
  0xd8   : > { %v1372_v1 = vstv %s6989_s16  ;;  %s4073_s16 = sld [smem:[#allocation5 + $0x20]]  ;;  %7005 = vst [vmem:[#allocation78_spill] sm:$0xff] %v4076_v57  ;;  %v1020_v57 = vmul.f32 %v1018_v34, %v3796_v30  ;;  %v4118_v34 = vadd.f32 %v1019_v59, %v3953_v42  ;;  %v4137_v59 = vmul.f32 %v1132_v63, %v3897_v10 }
  0xd9   : > { %6991 = sst [smem:[#allocation42_spill]] %s4027_s6  ;;  %v4089_v15 = vmul.f32 %v1372_v1, %v3894_v7  ;;  %7010 = vst [vmem:[#allocation81_spill] sm:$0xff] %v4094_v53  ;;  %v4113_v53 = vmul.f32 %v1324_v8, %v4083_v25  ;;  %v1294_v8 = vstv %s3775_s8  ;;  %v4144_v12 = vmul.f32 %v1180_v18, %v3846_v51 }
  0xda   : > { %s4085_s30 = sld [smem:[#allocation5 + $0x6a]]  ;;  %7015 = vst [vmem:[#allocation85_spill] sm:$0xff] %v4118_v34  ;;  %7019 = vst [vmem:[#allocation89_spill] sm:$0xff] %v4137_v59  ;;  %v4159_v59 = vmul.f32 %v1180_v18, %v3945_v58  ;;  %v4164_v11 = vmul.f32 %v1294_v8, %v3879_v0 }
  0xdb   : > { %7008 = vst [vmem:[#allocation80_spill] sm:$0xff] %v4089_v15  ;;  %s4097_s15 = sld [smem:[#allocation5 + $0x62]]  ;;  %7014 = vst [vmem:[#allocation84_spill] sm:$0xff] %v4113_v53  ;;  %v4130_v15 = vmul.f32 %v1132_v63, %v3808_v35  ;;  %v4134_v53 = vadd.f32 %v1020_v57, %v3953_v42  ;;  %v4152_v57 = vmul.f32 %v1246_v28, %v3855_v55 }
  0xdc   : > { %s4105_s20 = sld [smem:[#allocation5 + $0x60]]  ;;  %7021 = vst [vmem:[#allocation90_spill] sm:$0xff] %v4144_v12  ;;  %v4155_v63 = vmul.f32 %v1372_v1, %v3989_v6  ;;  %v1465_v42 = vmul.f32 %v1464_v36, %v4121_v21  ;;  %7024 = vst [vmem:[#allocation93_spill] sm:$0xff] %v4159_v59  ;;  %v1512_v12 = vstv %s3827_s17  ;;  %v1466_v1 = vmul.f32 %v1464_v36, %v4141_v56 }
  0xdd   : > { %s4115_s27 = sld [smem:[#allocation5 + $0xaa]]  ;;  %7017 = vst [vmem:[#allocation87_spill] sm:$0xff] %v4130_v15  ;;  %7018 = vst [vmem:[#allocation88_spill] sm:$0xff] %v4134_v53  ;;  %v1408_v15 = vstv %s3789_s12  ;;  %v4167_v53 = vstv %s3798_s21  ;;  %v4181_v59 = vmul.f32 %v1246_v28, %v3942_v5  ;;  %v4191_v36 = vmul.f32 %v1294_v8, %v4007_v33 }
  0xde   : > { %s4127_s5 = sld [smem:[#allocation5 + $0xa2]]  ;;  %7022 = vst [vmem:[#allocation91_spill] sm:$0xff] %v4152_v57  ;;  %7023 = vst [vmem:[#allocation92_spill] sm:$0xff] %v4155_v63  ;;  %v4175_v57 = vmul.f32 %v1360_v14, %v3894_v7  ;;  %v4178_v18 = vmul.f32 %v1408_v15, %v3931_v29  ;;  %v4196_v63 = vadd.f32 %v1465_v42, %v4167_v53 }
  0xdf   : > { %s4139_s3 = sld [smem:[#allocation5 + $0xa0]]  ;;  %7025 = vst [vmem:[#allocation94_spill] sm:$0xff] %v4164_v11  ;;  %7026 = vst [vmem:[#allocation95_spill] sm:$0xff] %v4167_v53  ;;  %v4199_v28 = vmul.f32 %v1512_v12, %v3780_v23  ;;  %v4210_v8 = vmul.f32 %v1408_v15, %v4056_v52  ;;  %v4213_v42 = vadd.f32 %v1466_v1, %v4167_v53 }
  0xe0   : > { %s4149_s8 = sld [smem:[#allocation5 + $0xea]]  ;;  %7031 = vst [vmem:[#allocation96_spill] sm:$0xff] %v4175_v57  ;;  %7032 = vst [vmem:[#allocation97_spill] sm:$0xff] %v4178_v18  ;;  %v4207_v18 = vmul.f32 %v1360_v14, %v3989_v6  ;;  %v4221_v57 = vld [vmem:[#allocation2 + $0x30] sm:$0xff]  ;;  %v4225_v14 = vmul.f32 %v1512_v12, %v3796_v30  ;;  %v1500_v12 = vstv %s4049_s1 }
  0xe1   : > { %s4161_s10 = sld [smem:[#allocation5 + $0xe2]]  ;;  %7033 = vst [vmem:[#allocation98_spill] sm:$0xff] %v4181_v59  ;;  %7036 = vst [vmem:[#allocation99_spill] sm:$0xff] %v4191_v36  ;;  %v4218_v59 = vmul.f32 %v1578_v27, %v4187_v49 }
  0xe2   : > { %s4170_s12 = sld [smem:[#allocation5 + $0xe0]]  ;;  %7037 = vst [vmem:[#allocation100_spill] sm:$0xff] %v4199_v28  ;;  %7041 = vst [vmem:[#allocation101_spill] sm:$0xff] %v4207_v18  ;;  %v4235_v18 = vmul.f32 %v1578_v27, %v3999_v20 }
  0xe3   : > { %s7029_s11 = sld [smem:[#allocation33_spill]]  ;;  %7042 = vst [vmem:[#allocation102_spill] sm:$0xff] %v4210_v8  ;;  %7044 = vst [vmem:[#allocation103_spill] sm:$0xff] %v4213_v42  ;;  %v1740_v8 = vstv %s3947_s23  ;;  %v4240_v42 = vld [vmem:[#allocation2 + $0x48] sm:$0xff] }
  0xe4   : > { %s4183_s21 = sld [smem:[#allocation7 + $0x3]]  ;;  %7045 = vst [vmem:[#allocation104_spill] sm:$0xff] %v4218_v59  ;;  %7048 = vst [vmem:[#allocation105_spill] sm:$0xff] %v4225_v14  ;;  %v4260_v36 = vmul.f32 %v1740_v8, %v3855_v55  ;;  %v4265_v28 = vmul.f32 %v1740_v8, %v3942_v5  ;;  %v1728_v8 = vstv %s4115_s27 }
  0xe5   : > { %7020 = sst [smem:[#allocation48_spill]] %s4139_s3  ;;  %7053 = vst [vmem:[#allocation107_spill] sm:$0xff] %v4235_v18 }
  0xe6   : > { %s7035_s4 = sld [smem:[#allocation32_spill]]  ;;  %7060 = vst [vmem:[#allocation111_spill] sm:$0xff] %v4260_v36  ;;  %7061 = vst [vmem:[#allocation112_spill] sm:$0xff] %v4265_v28  ;;  %v1502_v36 = vmul.f32 %v1500_v12, %v3796_v30 }
  0xe7   : > { %s4193_s19 = sld [smem:[#allocation5 + $0x3e]] }
  0xe8   : > { %7028 = sst [smem:[#allocation50_spill]] %s4170_s12 }
  0xe9   : > { %v1626_v11 = vstv %s7029_s11  ;;  %s4203_s9 = sld [smem:[#allocation5 + $0x3c]] }
  0xea   : > { %s7040_s22 = sld [smem:[#allocation30_spill]]  ;;  %v4230_v15 = vmul.f32 %v1626_v11, %v3808_v35  ;;  %v4245_v14 = vmul.f32 %v1626_v11, %v3897_v10 }
  0xeb   : > { %s7043_s0 = sld [smem:[#allocation67_spill]] }
  0xec   : > { %s4215_s29 = sld [smem:[#allocation5 + $0x36]]  ;;  %v1692_v9 = vstv %s7035_s4  ;;  %7050 = vst [vmem:[#allocation106_spill] sm:$0xff] %v4230_v15  ;;  %7055 = vst [vmem:[#allocation108_spill] sm:$0xff] %v4245_v14 }
  0xed   : > { %s7046_s11 = sld [smem:[#allocation35_spill]]  ;;  %v4250_v1 = vmul.f32 %v1692_v9, %v4221_v57  ;;  %v4255_v18 = vmul.f32 %v1692_v9, %v4047_v19  ;;  %v1501_v9 = vmul.f32 %v1500_v12, %v3780_v23  ;;  %v1776_v23 = vstv %s4127_s5 }
  0xee   : > { %s7047_s2 = sld [smem:[#allocation45_spill]]  ;;  %v1946_v11 = vstv %s4193_s19 }
  0xef   : > { %7039 = sst [smem:[#allocation33_spill]] %s4203_s9  ;;  %7057 = vst [vmem:[#allocation109_spill] sm:$0xff] %v4250_v1  ;;  %7058 = vst [vmem:[#allocation110_spill] sm:$0xff] %v4255_v18  ;;  %v1548_v18 = vstv %s4061_s18  ;;  %v1662_v1 = vstv %s4097_s15 }
  0xf0   : > { %s4227_s26 = sld [smem:[#allocation5 + $0x38]]  ;;  %v4296_v30 = vmul.f32 %v1548_v18, %v3811_v37  ;;  %v4313_v37 = vadd.f32 %v1502_v36, %v4167_v53  ;;  %v4328_v36 = vmul.f32 %v1728_v8, %v3855_v55  ;;  %v4344_v55 = vmul.f32 %v1728_v8, %v3942_v5  ;;  %v4393_v8 = vld [vmem:[#allocation2 + $0x9] sm:$0xff] }
  0xf1   : > { %s7051_s7 = sld [smem:[#allocation38_spill]]  ;;  %v1806_v59 = vstv %s7043_s0 }
  0xf2   : > { %s7052_s24 = sld [smem:[#allocation40_spill]]  ;;  %v4270_v15 = vmul.f32 %v1806_v59, %v4240_v42  ;;  %v4283_v28 = vmul.f32 %v1806_v59, %v4083_v25  ;;  %v4303_v59 = vmul.f32 %v1548_v18, %v3885_v3  ;;  %v4319_v3 = vmul.f32 %v1662_v1, %v3846_v51  ;;  %7073 = vst [vmem:[#allocation119_spill] sm:$0xff] %v4344_v55  ;;  %v4373_v55 = vld [vmem:[#allocation2 + $0x19] sm:$0xff] }
  0xf3   : > { %s4237_s17 = sld [smem:[#allocation5 + $0x34]]  ;;  %v4338_v51 = vmul.f32 %v1776_v23, %v3879_v0  ;;  %v1947_v18 = vmul.f32 %v1946_v11, %v4121_v21  ;;  %v4357_v0 = vmul.f32 %v1776_v23, %v4007_v33 }
  0xf4   : > { %s4247_s4 = sld [smem:[#allocation5 + $0x7e]]  ;;  %v1854_v27 = vstv %s7047_s2  ;;  %7062 = vst [vmem:[#allocation113_spill] sm:$0xff] %v4270_v15  ;;  %7064 = vst [vmem:[#allocation114_spill] sm:$0xff] %v4283_v28  ;;  %v1614_v15 = vstv %s4085_s30  ;;  %v4349_v28 = vstv %s4183_s21 }
  0xf5   : > { %s7056_s13 = sld [smem:[#allocation43_spill]]  ;;  %v4279_v14 = vmul.f32 %v1854_v27, %v3894_v7  ;;  %v4291_v34 = vmul.f32 %v1854_v27, %v3989_v6  ;;  %7068 = vst [vmem:[#allocation116_spill] sm:$0xff] %v4303_v59  ;;  %v4306_v27 = vadd.f32 %v1501_v9, %v4167_v53  ;;  %v4316_v12 = vmul.f32 %v1614_v15, %v3808_v35 }
  0xf6   : > { %7049 = sst [smem:[#allocation32_spill]] %s4227_s26  ;;  %v4325_v9 = vmul.f32 %v1614_v15, %v3897_v10  ;;  %v1842_v53 = vstv %s4149_s8  ;;  %v4335_v35 = vmul.f32 %v1662_v1, %v3945_v58  ;;  %v1948_v10 = vmul.f32 %v1946_v11, %v4141_v56  ;;  %7074 = vst [vmem:[#allocation120_spill] sm:$0xff] %v4349_v28  ;;  %v4351_v58 = vld [vmem:[#allocation2 + $0x1] sm:$0xff]  ;;  %7076 = vst [vmem:[#allocation122_spill] sm:$0xff] %v4357_v0 }
  0xf7   : > { %s4257_s23 = sld [smem:[#allocation5 + $0x7c]]  ;;  %7066 = vst [vmem:[#allocation115_spill] sm:$0xff] %v4291_v34  ;;  %v1890_v34 = vstv %s4161_s10  ;;  %v1994_v1 = vstv %s4215_s29  ;;  %v4360_v21 = vmul.f32 %v1842_v53, %v3894_v7  ;;  %v4369_v11 = vmul.f32 %v1842_v53, %v3989_v6  ;;  %v314_v6 = vpop.permute.xlu1 %313  ;;  %v4415_v15 = vld [vmem:[#allocation2 + $0x21] sm:$0xff] }
  0xf8   : > { %s4267_s0 = sld [smem:[#allocation5 + $0x76]]  ;;  %7070 = vst [vmem:[#allocation117_spill] sm:$0xff] %v4325_v9  ;;  %7072 = vst [vmem:[#allocation118_spill] sm:$0xff] %v4335_v35  ;;  %v4363_v5 = vmul.f32 %v1890_v34, %v3931_v29  ;;  %v4377_v7 = vmul.f32 %v1890_v34, %v4056_v52  ;;  %v4382_v29 = vadd.f32 %v1947_v18, %v4349_v28 }
  0xf9   : > { %7054 = sst [smem:[#allocation30_spill]] %s4237_s17  ;;  %7077 = vst [vmem:[#allocation123_spill] sm:$0xff] %v4360_v21  ;;  %7079 = vst [vmem:[#allocation125_spill] sm:$0xff] %v4369_v11  ;;  %v4385_v23 = vmul.f32 %v1994_v1, %v4351_v58  ;;  %v4391_v53 = vadd.f32 %v1948_v10, %v4349_v28  ;;  %v4403_v18 = vmul.f32 %v1994_v1, %v4393_v8  ;;  %v321_v10 = vsel %vm318_vm2, %v314_v6, 0.0 }
  0xfa   : > { %s4274_s1 = sld [smem:[#allocation5 + $0x78]]  ;;  %7078 = vst [vmem:[#allocation124_spill] sm:$0xff] %v4363_v5  ;;  %v2060_v56 = vstv %s4247_s4  ;;  %7080 = vst [vmem:[#allocation126_spill] sm:$0xff] %v4377_v7  ;;  %v310_v7 = vpop.permute.xlu0 %309  ;;  %v324_v35 = vsel %vm297_vm3, %v321_v10, %v314_v6 }
  0xfb   : > { %s4285_s2 = sld [smem:[#allocation5 + $0x74]]  ;;  %7082 = vst [vmem:[#allocation128_spill] sm:$0xff] %v4391_v53  ;;  %v4397_v52 = vmul.f32 %v2060_v56, %v4187_v49  ;;  %7084 = vst [vmem:[#allocation130_spill] sm:$0xff] %v4403_v18  ;;  %v4413_v49 = vmul.f32 %v2060_v56, %v3999_v20  ;;  %v319_v18 = vsel %vm318_vm2, %v310_v7, 0.0  ;;  %v4425_v53 = vld [vmem:[#allocation2 + $0x31] sm:$0xff] }
  0xfc   : > { %s4293_s18 = sld [smem:[#allocation5 + $0xbe]] }
  0xfd   : > { %7059 = sst [smem:[#allocation67_spill]] %s4257_s23  ;;  %7086 = vst [vmem:[#allocation132_spill] sm:$0xff] %v4413_v49  ;;  %v322_v49 = vsel %vm297_vm3, %v319_v18, %v310_v7 }
  0xfe   : > { %s4300_s6 = sld [smem:[#allocation5 + $0xbc]]  ;;  %v2108_v33 = vstv %s4267_s0  ;;  %v326_v59 = vsel %vm325_vm4, %v322_v49, 0.0  ;;  %v312_v7 = vpop.permute.xlu0 %311  ;;  %v4460_v49 = vld [vmem:[#allocation2 + $0x49] sm:$0xff] }
  0xff   : > { %s4310_s30 = sld [smem:[#allocation5 + $0xb6]]  ;;  %v4407_v0 = vmul.f32 %v2108_v33, %v4373_v55  ;;  %v4431_v56 = vmul.f32 %v2108_v33, %v4415_v15  ;;  %330 = vst.msk [vmem:[#allocation3 + $0x18] sm:$0xff] %vm260_vm1, %v326_v59  ;;  %v320_v59 = vsel %vm318_vm2, %v312_v7, 0.0  ;;  %7095 = vst [vmem:[#allocation140_spill] sm:$0xff] %v4460_v49 }
 0x100   : > { %7063 = sst [smem:[#allocation35_spill]] %s4274_s1  ;;  %v323_v18 = vsel %vm297_vm3, %v320_v59, %v312_v7  ;;  %v2027_v59 = vld [vmem:[#allocation2 + $0x2] sm:$0xff] }
 0x101   : > { %7065 = sst [smem:[#allocation45_spill]] %s4285_s2  ;;  %7085 = vst [vmem:[#allocation131_spill] sm:$0xff] %v4407_v0  ;;  %7088 = vst [vmem:[#allocation133_spill] sm:$0xff] %v4431_v56  ;;  %v328_v0 = vsel %vm325_vm4, %v324_v35, 0.0  ;;  %v2208_v56 = vld [vmem:[#allocation2 + $0x39] sm:$0xff] }
 0x102   : > { %s4322_s27 = sld [smem:[#allocation5 + $0xb8]]  ;;  %v2174_v34 = vstv %s4293_s18  ;;  %332 = vst.msk [vmem:[#allocation3 + $0x28] sm:$0x3] %vm307_vm5, %v328_v0  ;;  %v365_v7 = vpop.permute.xlu0 %364 }
 0x103   : > { %s4332_s19 = sld [smem:[#allocation5 + $0xb4]]  ;;  %v4437_v5 = vmul.f32 %v2174_v34, %v4221_v57  ;;  %v363_v57 = vpop.permute.xlu1 %362  ;;  %v4454_v35 = vmul.f32 %v2174_v34, %v4047_v19 }
 0x104   : > { %7067 = sst [smem:[#allocation38_spill]] %s4300_s6  ;;  %v371_v0 = vsel %vm318_vm2, %v363_v57, 0.0 }
 0x105   : > { %s4341_s15 = sld [smem:[#allocation5 + $0xfe]]  ;;  %v2222_v20 = vstv %s4310_s30  ;;  %7089 = vst [vmem:[#allocation134_spill] sm:$0xff] %v4437_v5  ;;  %7093 = vst [vmem:[#allocation138_spill] sm:$0xff] %v4454_v35  ;;  %v374_v9 = vsel %vm297_vm3, %v371_v0, %v363_v57 }
 0x106   : > { %s4354_s5 = sld [smem:[#allocation5 + $0xfc]]  ;;  %v4448_v6 = vmul.f32 %v2222_v20, %v4425_v53  ;;  %v4456_v10 = vmul.f32 %v2222_v20, %v2208_v56  ;;  %v377_v20 = vsel %vm325_vm4, %v374_v9, 0.0  ;;  %v372_v56 = vsel %vm318_vm2, %v365_v7, 0.0 }
 0x107   : > { %s4366_s8 = sld [smem:[#allocation5 + $0xf6]]  ;;  %381 = vst.msk [vmem:[#allocation3 + $0x48] sm:$0xff] %vm260_vm1, %v377_v20 }
 0x108   : > { %7069 = sst [smem:[#allocation40_spill]] %s4322_s27  ;;  %7091 = vst [vmem:[#allocation136_spill] sm:$0xff] %v4448_v6  ;;  %7094 = vst [vmem:[#allocation139_spill] sm:$0xff] %v4456_v10 }
 0x109   : > { %7071 = sst [smem:[#allocation43_spill]] %s4332_s19 }
 0x10a   : > { %s4379_s29 = sld [smem:[#allocation5 + $0x3a]] }
 0x10b   : > { %s4388_s10 = sld [smem:[#allocation5 + $0xf8]]  ;;  %v2288_v33 = vstv %s4341_s15 }
 0x10c   : > { %7075 = sst [smem:[#allocation121_spill]] %s4354_s5  ;;  %v4470_v34 = vmul.f32 %v2288_v33, %v4240_v42  ;;  %v4478_v10 = vmul.f32 %v2288_v33, %v4083_v25  ;;  %v367_v42 = vpop.permute.xlu1 %366 }
 0x10d   : > { %s4400_s21 = sld [smem:[#allocation5 + $0xf4]]  ;;  %v373_v25 = vsel %vm318_vm2, %v367_v42, 0.0 }
 0x10e   : > { %s4410_s4 = sld [smem:[#allocation5 + $0x32]]  ;;  %7097 = vst [vmem:[#allocation142_spill] sm:$0xff] %v4470_v34  ;;  %7099 = vst [vmem:[#allocation144_spill] sm:$0xff] %v4478_v10  ;;  %v376_v20 = vsel %vm297_vm3, %v373_v25, %v367_v42  ;;  %v2141_v10 = vld [vmem:[#allocation2 + $0x1a] sm:$0xff] }
 0x10f   : > { %s7087_s26 = sld [smem:[#allocation157_spill]]  ;;  %v4498_v34 = vld [vmem:[#allocation3 + $0x18] sm:$0xff] }
 0x110   : > { %s4428_s1 = sld [smem:[#allocation5 + $0x7a]]  ;;  %v1982_v21 = vstv %s4379_s29 }
 0x111   : > { %7081 = sst [smem:[#allocation127_spill]] %s4388_s10  ;;  %v1983_v9 = vmul.f32 %v1982_v21, %v4351_v58 }
 0x112   : > { %s4439_s3 = sld [smem:[#allocation5 + $0x72]] }
 0x113   : > { %7083 = sst [smem:[#allocation129_spill]] %s4400_s21  ;;  %v4510_v42 = vadd.f32 %v1983_v9, %v4349_v28 }
 0x114   : > { %s4451_s12 = sld [smem:[#allocation5 + $0x30]]  ;;  %v2030_v0 = vstv %s4410_s4 }
 0x115   : > { %v2438_v1 = vld [vmem:[%s7087_s26 + $0x38] sm:$0xff]  ;;  %v2437_v11 = vld [vmem:[%s7087_s26 + $0x30] sm:$0xff]  ;;  %s4464_s30 = sld [smem:[#allocation5 + $0x70]]  ;;  %v4500_v33 = vmul.f32 %v2030_v0, %v2027_v59 }
 0x116   : > { %3234 = vmatprep.subr.mxu0 %v2438_v1  ;;  %s4475_s15 = sld [smem:[#allocation5 + $0xba]]  ;;  %v2096_v19 = vstv %s4428_s1 }
 0x117   : > { %3235 = vmatpush3.msra.mxu0 %v2438_v1  ;;  %v2336_v1 = vstv %s4366_s8  ;;  %s7101_s8 = sld [smem:[#allocation13_spill]] }
 0x118   : > { %7090 = sst [smem:[#allocation135_spill]] %s4439_s3  ;;  %3236 = vmatprep.subr.mxu0 %v2437_v11  ;;  %v4483_v57 = vmul.f32 %v2336_v1, %v4460_v49  ;;  %v6793_v35 = vstv %s4439_s3  ;;  %v2322_v49 = vld [vmem:[#allocation2 + $0x51] sm:$0xff] }
 0x119   : > { %3237 = vmatpush3.msra.mxu0 %v2437_v11  ;;  %v327_v11 = vsel %vm325_vm4, %v323_v18, 0.0  ;;  %v1984_v18 = vmul.f32 %v1982_v21, %v4393_v8  ;;  %v4502_v6 = vmul.f32 %v2336_v1, %v2322_v49  ;;  %s4516_s1 = sld [smem:[#allocation5 + $0xb2]]  ;;  %v2028_v49 = vld [vmem:[#allocation2 + $0xa] sm:$0xff]  ;;  %v4522_v59 = vmul.f32 %v6793_v35, %v2141_v10 }
 0x11a   : > { %7092 = sst [smem:[#allocation137_spill]] %s4451_s12  ;;  %331 = vst.msk [vmem:[#allocation3 + $0x20] sm:$0xff] %vm260_vm1, %v327_v11  ;;  %7100 = vst [vmem:[#allocation145_spill] sm:$0xff] %v4483_v57  ;;  %v375_v11 = vsel %vm297_vm3, %v372_v56, %v365_v7  ;;  %v379_v57 = vsel %vm325_vm4, %v376_v20, 0.0  ;;  %v414_v56 = vpop.permute.xlu0 %413  ;;  %v416_v7 = vpop.permute.xlu1 %415  ;;  %v4535_v35 = vld [vmem:[#allocation3 + $0x48] sm:$0xff] }
 0x11b   : > { %7096 = sst [smem:[#allocation141_spill]] %s4464_s30  ;;  %v378_v58 = vsel %vm325_vm4, %v375_v11, 0.0  ;;  %7102 = vst [vmem:[#allocation146_spill] sm:$0xff] %v4502_v6  ;;  %383 = vst.msk [vmem:[#allocation3 + $0x58] sm:$0x3] %vm307_vm5, %v379_v57  ;;  %v4514_v11 = vmul.f32 %v2096_v19, %v4373_v55  ;;  %v422_v1 = vsel %vm318_vm2, %v414_v56, 0.0 }
 0x11c   : > { %7098 = sst [smem:[#allocation143_spill]] %s4475_s15  ;;  %382 = vst.msk [vmem:[#allocation3 + $0x50] sm:$0xff] %vm260_vm1, %v378_v58  ;;  %v423_v57 = vsel %vm318_vm2, %v416_v7, 0.0  ;;  %7106 = vst [vmem:[#allocation148_spill] sm:$0xff] %v4522_v59  ;;  %v425_v9 = vsel %vm297_vm3, %v422_v1, %v414_v56  ;;  %v4538_v1 = vmul.f32 %v2030_v0, %v2028_v49 }
 0x11d   : > { %v7103_v21 = vstv %s7101_s8  ;;  %7104 = vst [vmem:[#allocation147_spill] sm:$0xff] %v4514_v11  ;;  %s7107_s29 = sld [smem:[#allocation14_spill]]  ;;  %v426_v58 = vsel %vm297_vm3, %v423_v57, %v416_v7  ;;  %v428_v25 = vsel %vm325_vm4, %v425_v9, 0.0 }
 0x11e   : > { %v514_v8 = vmul.f32 %v7103_v21, %v4498_v34  ;;  %s7108_s4 = sld [smem:[#allocation15_spill]]  ;;  %v4529_v21 = vadd.f32 %v1984_v18, %v4349_v28  ;;  %v429_v6 = vsel %vm325_vm4, %v426_v58, 0.0  ;;  %7112 = vst [vmem:[#allocation150_spill] sm:$0xff] %v4538_v1  ;;  %432 = vst.msk [vmem:[#allocation3 + $0x78] sm:$0xff] %vm260_vm1, %v428_v25  ;;  %v465_v18 = vpop.permute.xlu1 %464 }
 0x11f   : > { %7105 = sst [smem:[#allocation13_spill]] %s4516_s1  ;;  %433 = vst.msk [vmem:[#allocation3 + $0x80] sm:$0xff] %vm260_vm1, %v429_v6  ;;  %v473_v25 = vsel %vm318_vm2, %v465_v18, 0.0 }
 0x120   : > { %v516_v55 = vadd.f32 %v514_v8, %v3801_v31  ;;  %s7109_s0 = sld [smem:[#allocation34_spill]]  ;;  %7110 = vst [vmem:[#allocation149_spill] sm:$0xff] %v4529_v21  ;;  %v418_v31 = vpop.permute.xlu0 %417 }
 0x121   : > { %s7111_s18 = sld [smem:[#allocation16_spill]]  ;;  %v4533_v10 = vld [vmem:[#allocation3 + $0x19] sm:$0xff]  ;;  %v424_v49 = vsel %vm318_vm2, %v418_v31, 0.0 }
 0x122   : > { %v550_v7 = vadd.f32 %v3820_v40, %v516_v55  ;;  %v4549_v20 = vld [vmem:[#allocation3 + $0x20] sm:$0xff]  ;;  %v7117_v40 = vstv %s7101_s8  ;;  %s7118_s3 = sld [smem:[#allocation19_spill]] }
 0x123   : > { %v7113_v8 = vstv %s7107_s29  ;;  %v4559_v1 = vld [vmem:[#allocation3 + $0x1a] sm:$0xff]  ;;  %v515_v55 = vmul.f32 %v7117_v40, %v4549_v20  ;;  %s4567_s21 = sld [smem:[#allocation5 + $0xb0]]  ;;  %v4575_v40 = vmul.f32 %v2096_v19, %v4415_v15 }
 0x124   : > { %v562_v57 = vmul.f32 %v7113_v8, %v4533_v10  ;;  %v7114_v9 = vstv %s7108_s4  ;;  %v427_v8 = vsel %vm297_vm3, %v424_v49, %v418_v31  ;;  %s4572_s10 = sld [smem:[#allocation5 + $0xfa]]  ;;  %v467_v31 = vpop.permute.xlu0 %466  ;;  %v4584_v49 = vld [vmem:[#allocation3 + $0x21] sm:$0xff] }
 0x125   : > { %v568_v58 = vmul.f32 %v7114_v9, %v4533_v10  ;;  %v476_v9 = vsel %vm297_vm3, %v473_v25, %v465_v18  ;;  %v430_v59 = vsel %vm325_vm4, %v427_v8, 0.0  ;;  %v517_v11 = vadd.f32 %v515_v55, %v3815_v39  ;;  %7121 = vst [vmem:[#allocation151_spill] sm:$0xff] %v4575_v40  ;;  %v469_v18 = vpop.permute.xlu1 %468  ;;  %s4587_s8 = sld [smem:[#allocation5 + $0xf2]] }
 0x126   : > { %v7115_v56 = vstv %s7109_s0  ;;  %434 = vst.msk [vmem:[#allocation3 + $0x88] sm:$0x3] %vm307_vm5, %v430_v59  ;;  %v6815_v39 = vstv %s4516_s1  ;;  %v474_v15 = vsel %vm318_vm2, %v467_v31, 0.0  ;;  %v475_v19 = vsel %vm318_vm2, %v469_v18, 0.0  ;;  %v4591_v59 = vld [vmem:[#allocation3 + $0x49] sm:$0xff]  ;;  %s7124_s30 = sld [smem:[#allocation18_spill]] }
 0x127   : > { %v997_v0 = vmul.f32 %v7115_v56, %v4498_v34  ;;  %v7116_v6 = vstv %s7111_s18  ;;  %v570_v21 = vadd.f32 %v568_v58, %v550_v7  ;;  %v564_v56 = vadd.f32 %v562_v57, %v3831_v45  ;;  %s7125_s5 = sld [smem:[#allocation17_spill]] }
 0x128   : > { %v628_v28 = vmul.f32 %v7116_v6, %v4535_v35  ;;  %v479_v6 = vsel %vm325_vm4, %v476_v9, 0.0  ;;  %v7122_v57 = vstv %s7118_s3  ;;  %v477_v25 = vsel %vm297_vm3, %v474_v15, %v467_v31  ;;  %s7126_s19 = sld [smem:[#allocation20_spill]]  ;;  %v1957_v31 = vld [vmem:[#allocation3 + $0x18] sm:$0xff] }
 0x129   : > { %7119 = sst [smem:[#allocation14_spill]] %s4567_s21  ;;  %483 = vst.msk [vmem:[#allocation3 + $0xa8] sm:$0xff] %vm260_vm1, %v479_v6  ;;  %v616_v45 = vadd.f32 %v3823_v41, %v570_v21  ;;  %v586_v7 = vadd.f32 %v3844_v50, %v564_v56  ;;  %v598_v58 = vmul.f32 %v7122_v57, %v4559_v1  ;;  %v551_v41 = vadd.f32 %v3835_v47, %v517_v11  ;;  %v2255_v21 = vld [vmem:[#allocation2 + $0x32] sm:$0xff] }
 0x12a   : > { %7120 = sst [smem:[#allocation15_spill]] %s4572_s10  ;;  %v999_v50 = vadd.f32 %v997_v0, %v3992_v46  ;;  %v478_v55 = vsel %vm297_vm3, %v475_v19, %v469_v18  ;;  %v4597_v56 = vld [vmem:[#allocation3 + $0x50] sm:$0xff]  ;;  %v480_v6 = vsel %vm325_vm4, %v477_v25, 0.0  ;;  %v4601_v46 = vld [vmem:[#allocation3 + $0x78] sm:$0xff]  ;;  %v7127_v11 = vstv %s7108_s4 }
 0x12b   : > { %7123 = sst [smem:[#allocation34_spill]] %s4587_s8  ;;  %v630_v8 = vadd.f32 %v628_v28, %v616_v45  ;;  %v600_v9 = vadd.f32 %v598_v58, %v586_v7  ;;  %v481_v47 = vsel %vm325_vm4, %v478_v55, 0.0  ;;  %v569_v0 = vmul.f32 %v7127_v11, %v4584_v49  ;;  %484 = vst.msk [vmem:[#allocation3 + $0xb0] sm:$0xff] %vm260_vm1, %v480_v6 }
 0x12c   : > { %v7128_v57 = vstv %s4475_s15  ;;  %485 = vst.msk [vmem:[#allocation3 + $0xb8] sm:$0x3] %vm307_vm5, %v481_v47  ;;  %s7130_s27 = sld [smem:[#allocation37_spill]]  ;;  %v7131_v45 = vstv %s7124_s30  ;;  %v7132_v58 = vstv %s3817_s14  ;;  %v4622_v19 = vmul.f32 %v6815_v39, %v2255_v21 }
 0x12d   : > { %v4609_v18 = vmul.f32 %v7128_v57, %v4425_v53  ;;  %v664_v28 = vadd.f32 %v3840_v48, %v630_v8  ;;  %v682_v7 = vmul.f32 %v7131_v45, %v4591_v59  ;;  %v1479_v15 = vmul.f32 %v7132_v58, %v4498_v34  ;;  %s7137_s4 = sld [smem:[#allocation23_spill]]  ;;  %v4634_v34 = vld [vmem:[#allocation3 + $0x4a] sm:$0xff] }
 0x12e   : > { %7133 = vst [vmem:[#allocation153_spill] sm:$0xff] %v4622_v19  ;;  %v7134_v53 = vstv %s7125_s5  ;;  %v652_v55 = vadd.f32 %v3866_v60, %v600_v9  ;;  %v571_v6 = vadd.f32 %v569_v0, %v551_v41  ;;  %v7135_v48 = vstv %s7111_s18  ;;  %s7140_s18 = sld [smem:[#allocation39_spill]] }
 0x12f   : > { %7129 = vst [vmem:[#allocation152_spill] sm:$0xff] %v4609_v18  ;;  %v676_v25 = vmul.f32 %v7134_v53, %v4591_v59  ;;  %v629_v8 = vmul.f32 %v7135_v48, %v4597_v56  ;;  %v684_v47 = vadd.f32 %v682_v7, %v664_v28  ;;  %v7136_v11 = vstv %s7126_s19  ;;  %v4645_v7 = vld [vmem:[#allocation3 + $0x51] sm:$0xff]  ;;  %s7142_s1 = sld [smem:[#allocation21_spill]] }
 0x130   : > { %v742_v57 = vmul.f32 %v7136_v11, %v4601_v46  ;;  %v1033_v21 = vadd.f32 %v3995_v44, %v999_v50  ;;  %v7138_v45 = vstv %s4203_s9  ;;  %v617_v60 = vadd.f32 %v3883_v2, %v571_v6  ;;  %v4652_v50 = vld [vmem:[#allocation3 + $0x79] sm:$0xff]  ;;  %s7143_s15 = sld [smem:[#allocation22_spill]] }
 0x131   : > { %v1961_v58 = vmul.f32 %v7138_v45, %v1957_v31  ;;  %v678_v53 = vadd.f32 %v676_v25, %v652_v55  ;;  %v730_v28 = vadd.f32 %v3853_v54, %v684_v47  ;;  %v4648_v48 = vadd.f32 %v1479_v15, %v4196_v63  ;;  %v4658_v55 = vld [vmem:[#allocation3 + $0x7a] sm:$0xff]  ;;  %s7144_s21 = sld [smem:[#allocation28_spill]] }
 0x132   : > { %v7139_v41 = vstv %s7130_s27  ;;  %v631_v54 = vadd.f32 %v629_v8, %v617_v60  ;;  %v7145_v63 = vstv %s7107_s29  ;;  %v4663_v45 = vld [vmem:[#allocation3 + $0x80] sm:$0xff]  ;;  %s7147_s8 = sld [smem:[#allocation24_spill]]  ;;  %v4700_v44 = vld [vmem:[#allocation3 + $0xa9] sm:$0xff]  ;;  %s6821_s29 = smov 32  }
 0x133   : > { %v1051_v9 = vmul.f32 %v7139_v41, %v4533_v10  ;;  %v700_v31 = vadd.f32 %v3876_v62, %v678_v53  ;;  %v7141_v2 = vstv %s7137_s4  ;;  %v744_v47 = vadd.f32 %v742_v57, %v730_v28  ;;  %s7148_s10 = sld [smem:[#allocation36_spill]]  ;;  %v4732_v40 = vld [vmem:[#allocation3 + $0xb0] sm:$0xff] }
 0x134   : > { %v712_v25 = vmul.f32 %v7141_v2, %v4634_v34  ;;  %v563_v15 = vmul.f32 %v7145_v63, %v4584_v49  ;;  %v7146_v41 = vstv %s7140_s18  ;;  %v4669_v53 = vadd.f32 %v1961_v58, %v4382_v29  ;;  %v4671_v2 = vld [vmem:[#allocation3 + $0xa8] sm:$0xff]  ;;  %s7158_s19 = sld [smem:[#allocation44_spill]] }
 0x135   : > { %v1053_v6 = vadd.f32 %v1051_v9, %v1033_v21  ;;  %v1111_v62 = vmul.f32 %v7146_v41, %v4535_v35  ;;  %v665_v8 = vadd.f32 %v3906_v17, %v631_v54  ;;  %v7149_v57 = vstv %s7124_s30  ;;  %s7157_s30 = sld [smem:[#allocation27_spill]] }
 0x136   : > { %v714_v39 = vadd.f32 %v712_v25, %v700_v31  ;;  %v683_v21 = vmul.f32 %v7149_v57, %v4645_v7  ;;  %v778_v9 = vadd.f32 %v3890_v4, %v744_v47  ;;  %v7150_v28 = vstv %s7142_s1  ;;  %v4688_v25 = vld [vmem:[#allocation3 + $0x81] sm:$0xff]  ;;  %s7161_s9 = sld [smem:[#allocation26_spill]] }
 0x137   : > { %v1099_v60 = vadd.f32 %v4018_v32, %v1053_v6  ;;  %v790_v63 = vmul.f32 %v7150_v28, %v4652_v50  ;;  %v7151_v29 = vstv %s7143_s15  ;;  %v7152_v41 = vstv %s7144_s21  ;;  %s7165_s12 = sld [smem:[#allocation53_spill]] }
 0x138   : > { %v796_v58 = vmul.f32 %v7151_v29, %v4652_v50  ;;  %v826_v31 = vmul.f32 %v7152_v41, %v4658_v55  ;;  %v766_v17 = vadd.f32 %v3915_v22, %v714_v39  ;;  %v7153_v54 = vstv %s7125_s5  ;;  %v2436_v22 = vld [vmem:[%s7087_s26 + $0x28] sm:$0xff]  ;;  %v2435_v39 = vld [vmem:[%s7087_s26 + $0x20] sm:$0xff]  ;;  %s7189_s5 = sld [smem:[#allocation46_spill]] }
 0x139   : > { %v677_v32 = vmul.f32 %v7153_v54, %v4645_v7  ;;  %v685_v6 = vadd.f32 %v683_v21, %v665_v8  ;;  %v7154_v4 = vmov %v7136_v11  ;;  %v7155_v28 = vstv %s7147_s8  ;;  %3238 = vmatprep.subr.mxu0 %v2436_v22  ;;  %s7202_s6 = sld [smem:[#allocation52_spill]] }
 0x13a   : > { %v743_v47 = vmul.f32 %v7154_v4, %v4663_v45  ;;  %v798_v57 = vadd.f32 %v796_v58, %v778_v9  ;;  %v856_v29 = vmul.f32 %v7155_v28, %v4671_v2  ;;  %v7156_v41 = vstv %s7148_s10  ;;  %3239 = vmatpush3.msra.mxu0 %v2436_v22  ;;  %s7212_s2 = sld [smem:[#allocation55_spill]] }
 0x13b   : > { %v1045_v11 = vmul.f32 %v7156_v41, %v4533_v10  ;;  %v1113_v0 = vadd.f32 %v1111_v62, %v1099_v60  ;;  %v792_v8 = vadd.f32 %v790_v63, %v766_v17  ;;  %v731_v21 = vadd.f32 %v3935_v43, %v685_v6  ;;  %v4720_v62 = vld [vmem:[#allocation3 + $0x22] sm:$0xff]  ;;  %3240 = vmatprep.subr.mxu0 %v2435_v39  ;;  %s7215_s17 = sld [smem:[#allocation25_spill]] }
 0x13c   : > { %v7159_v9 = vstv %s7142_s1  ;;  %v7160_v54 = vstv %s7143_s15  ;;  %v844_v60 = vadd.f32 %v3902_v13, %v798_v57  ;;  %v7162_v63 = vstv %s6983_s25  ;;  %s7167_s15 = sld [smem:[#allocation41_spill]]  ;;  %3241 = vmatpush3.msra.mxu0 %v2435_v39  ;;  %v7174_v39 = vld [vmem:[#allocation62_spill] sm:$0xff] }
 0x13d   : > { %v4715_v58 = vmul.f32 %v7159_v9, %v4688_v25  ;;  %v797_v4 = vmul.f32 %v7160_v54, %v4688_v25  ;;  %v1147_v28 = vadd.f32 %v4030_v38, %v1113_v0  ;;  %v1165_v17 = vmul.f32 %v7162_v63, %v4591_v59  ;;  %s7170_s1 = sld [smem:[#allocation31_spill]] }
 0x13e   : > { %v565_v43 = vadd.f32 %v563_v15, %v3869_v61  ;;  %v7163_v6 = vstv %s7157_s30  ;;  %v814_v9 = vadd.f32 %v3920_v24, %v792_v8  ;;  %v745_v54 = vadd.f32 %v743_v47, %v731_v21  ;;  %v7169_v21 = vld [vmem:[#allocation85_spill] sm:$0xff]  ;;  %s7218_s23 = sld [smem:[#allocation57_spill]] }
 0x13f   : > { %v910_v41 = vmul.f32 %v7163_v6, %v4700_v44  ;;  %v7164_v13 = vstv %s7158_s19  ;;  %v858_v38 = vadd.f32 %v856_v29, %v844_v60  ;;  %v1167_v0 = vadd.f32 %v1165_v17, %v1147_v28  ;;  %v4747_v60 = vld [vmem:[#allocation3 + $0xaa] sm:$0xff] }
 0x140   : > { %v1225_v57 = vmul.f32 %v7164_v13, %v4601_v46  ;;  %v587_v63 = vadd.f32 %v3923_v26, %v565_v43  ;;  %v7166_v61 = vstv %s7118_s3  ;;  %v7168_v24 = vstv %s7161_s9  ;;  %v7171_v13 = vld [vmem:[#allocation60_spill] sm:$0xff]  ;;  %v7173_v17 = vld [vmem:[#allocation74_spill] sm:$0xff]  ;;  %s7176_s3 = sld [smem:[#allocation47_spill]] }
 0x141   : > { %v599_v15 = vmul.f32 %v7166_v61, %v4720_v62  ;;  %v904_v22 = vmul.f32 %v7168_v24, %v4700_v44  ;;  %v828_v47 = vadd.f32 %v826_v31, %v814_v9  ;;  %v779_v8 = vadd.f32 %v3950_v16, %v745_v54  ;;  %v7175_v24 = vld [vmem:[#allocation83_spill] sm:$0xff] }
 0x142   : > { %v1047_v6 = vadd.f32 %v1045_v11, %v7169_v21  ;;  %v892_v29 = vadd.f32 %v7171_v13, %v858_v38  ;;  %v7172_v26 = vstv %s7147_s8  ;;  %v1213_v43 = vadd.f32 %v7173_v17, %v1167_v0  ;;  %v7179_v13 = vld [vmem:[#allocation64_spill] sm:$0xff]  ;;  %s7180_s8 = sld [smem:[#allocation49_spill]] }
 0x143   : > { %v857_v28 = vmul.f32 %v7172_v26, %v4732_v40  ;;  %v601_v61 = vadd.f32 %v599_v15, %v587_v63  ;;  %v880_v19 = vadd.f32 %v7174_v39, %v828_v47  ;;  %v799_v18 = vadd.f32 %v797_v4, %v779_v8  ;;  %v7182_v4 = vld [vmem:[#allocation65_spill] sm:$0xff] }
 0x144   : > { %v1069_v31 = vadd.f32 %v7175_v24, %v1047_v6  ;;  %v7177_v16 = vstv %s7165_s12  ;;  %v912_v11 = vadd.f32 %v910_v41, %v892_v29  ;;  %v7178_v54 = vstv %s7167_s15  ;;  %v4766_v8 = vld [vmem:[#allocation3 + $0x52] sm:$0xff] }
 0x145   : > { %v1081_v9 = vmul.f32 %v7177_v16, %v4559_v1  ;;  %v1159_v38 = vmul.f32 %v7178_v54, %v4591_v59  ;;  %v1227_v21 = vadd.f32 %v1225_v57, %v1213_v43  ;;  %v653_v26 = vadd.f32 %v7179_v13, %v601_v61  ;;  %v4769_v41 = vld [vmem:[#allocation3 + $0xb1] sm:$0xff]  ;;  %v7183_v57 = vld [vmem:[#allocation76_spill] sm:$0xff] }
 0x146   : > { %v906_v0 = vadd.f32 %v904_v22, %v880_v19  ;;  %v7181_v63 = vstv %s7170_s1  ;;  %v845_v47 = vadd.f32 %v7182_v4, %v799_v18  ;;  %948 = vrot.lane.b32.xlu0 %v912_v11, %s6821_s29  ;;  %v7184_v17 = vstv %s7176_s3  ;;  %v7186_v18 = vld [vmem:[#allocation63_spill] sm:$0xff]  ;;  %v7190_v13 = vld [vmem:[#allocation66_spill] sm:$0xff]  ;;  %s7191_s29 = sld [smem:[#allocation54_spill]] }
 0x147   : > { %v940_v15 = vmul.f32 %v7181_v63, %v4747_v60  ;;  %v1083_v6 = vadd.f32 %v1081_v9, %v1069_v31  ;;  %v1261_v29 = vadd.f32 %v7183_v57, %v1227_v21  ;;  %v1279_v19 = vmul.f32 %v7184_v17, %v4652_v50  ;;  %v7188_v9 = vld [vmem:[#allocation87_spill] sm:$0xff]  ;;  %v7194_v17 = vld [vmem:[#allocation68_spill] sm:$0xff] }
 0x148   : > { %v679_v22 = vadd.f32 %v677_v32, %v653_v26  ;;  %v7185_v43 = vstv %s7109_s0  ;;  %v928_v39 = vadd.f32 %v7186_v18, %v906_v0  ;;  %v859_v24 = vadd.f32 %v857_v28, %v845_v47  ;;  %v7193_v26 = vld [vmem:[#allocation69_spill] sm:$0xff]  ;;  %v7196_v18 = vld [vmem:[#allocation78_spill] sm:$0xff]  ;;  %s7199_s0 = smov 32  }
 0x149   : > { %v998_v61 = vmul.f32 %v7185_v43, %v4549_v20  ;;  %v7187_v31 = vstv %s7180_s8  ;;  %v1135_v11 = vadd.f32 %v7188_v9, %v1083_v6  ;;  %v1281_v54 = vadd.f32 %v1279_v19, %v1261_v29  ;;  %v7197_v29 = vld [vmem:[#allocation70_spill] sm:$0xff] }
 0x14a   : > { %v1339_v16 = vmul.f32 %v7187_v31, %v4671_v2  ;;  %v701_v21 = vadd.f32 %v7190_v13, %v679_v22  ;;  %v7192_v63 = vstv %s7137_s4  ;;  %v942_v57 = vadd.f32 %v940_v15, %v928_v39  ;;  %s7200_s4 = sld [smem:[#allocation51_spill]]  ;;  %v2434_v13 = vld [vmem:[%s7087_s26 + $0x18] sm:$0xff] }
 0x14b   : > { %v713_v32 = vmul.f32 %v7192_v63, %v4766_v8  ;;  %v1000_v4 = vadd.f32 %v998_v61, %v7193_v26  ;;  %v893_v43 = vadd.f32 %v7194_v17, %v859_v24  ;;  %v7195_v28 = vstv %s7157_s30  ;;  %v7203_v24 = vld [vmem:[#allocation90_spill] sm:$0xff]  ;;  %v7205_v63 = vld [vmem:[#allocation71_spill] sm:$0xff]  ;;  %v4809_v26 = vld [vmem:[#allocation3 + $0x82] sm:$0xff]  ;;  %3242 = vmatprep.subr.mxu0 %v2434_v13  ;;  %s7333_s30 = sld [smem:[#allocation129_spill]] }
 0x14c   : > { %v911_v0 = vmul.f32 %v7195_v28, %v4769_v41  ;;  %v1161_v47 = vadd.f32 %v1159_v38, %v1135_v11  ;;  %v1327_v31 = vadd.f32 %v7196_v18, %v1281_v54  ;;  %v7198_v22 = vstv %s7130_s27  ;;  %961 = vrot.lane.b32.xlu0 %v942_v57, %s7199_s0  ;;  %s7207_s27 = sld [smem:[#allocation59_spill]]  ;;  %v2433_v28 = vld [vmem:[%s7087_s26 + $0x10] sm:$0xff]  ;;  %3243 = vmatpush3.msra.mxu0 %v2434_v13 }
 0x14d   : > { %v715_v6 = vadd.f32 %v713_v32, %v701_v21  ;;  %v1034_v19 = vadd.f32 %v7197_v29, %v1000_v4  ;;  %v1052_v9 = vmul.f32 %v7198_v22, %v4584_v49  ;;  %v7201_v61 = vstv %s7189_s5  ;;  %v4811_v4 = vld [vmem:[#allocation3 + $0xb2] sm:$0xff]  ;;  %3244 = vmatprep.subr.mxu0 %v2433_v28 }
 0x14e   : > { %v913_v15 = vadd.f32 %v911_v0, %v893_v43  ;;  %v1273_v39 = vmul.f32 %v7201_v61, %v4652_v50  ;;  %v1183_v38 = vadd.f32 %v7203_v24, %v1161_v47  ;;  %v7204_v11 = vstv %s7191_s29  ;;  %v7213_v61 = vld [vmem:[#allocation72_spill] sm:$0xff]  ;;  %3245 = vmatpush3.msra.mxu0 %v2433_v28 }
 0x14f   : > { %v1195_v54 = vmul.f32 %v7204_v11, %v4634_v34  ;;  %v1341_v21 = vadd.f32 %v1339_v16, %v1327_v31  ;;  %v767_v32 = vadd.f32 %v7205_v63, %v715_v6  ;;  %v1054_v57 = vadd.f32 %v1052_v9, %v1034_v19  ;;  %v7211_v19 = vld [vmem:[#allocation80_spill] sm:$0xff] }
 0x150   : > { %v7206_v17 = vstv %s7140_s18  ;;  %v7208_v16 = vstv %s7161_s9  ;;  %950 = vrot.lane.b32.xlu1 %v913_v15, %s7199_s0  ;;  %v7209_v47 = vstv %s7200_s4  ;;  %v7214_v11 = vld [vmem:[#allocation100_spill] sm:$0xff]  ;;  %s7222_s18 = sld [smem:[#allocation58_spill]] }
 0x151   : > { %v1112_v43 = vmul.f32 %v7206_v17, %v4597_v56  ;;  %v905_v0 = vmul.f32 %v7208_v16, %v4769_v41  ;;  %v1387_v18 = vmul.f32 %v7209_v47, %v4700_v44  ;;  %v7210_v31 = vstv %s7202_s6  ;;  %s5195_s9 = sld [smem:[#allocation5 + $0xb]] }
 0x152   : > { %v1393_v6 = vmul.f32 %v7210_v31, %v4700_v44  ;;  %v1197_v29 = vadd.f32 %v1195_v54, %v1183_v38  ;;  %v1375_v22 = vadd.f32 %v7211_v19, %v1341_v21  ;;  %v793_v9 = vadd.f32 %v4715_v58, %v767_v32  ;;  %v7219_v38 = vld [vmem:[#allocation91_spill] sm:$0xff] }
 0x153   : > { %v1100_v24 = vadd.f32 %v7213_v61, %v1054_v57  ;;  %v1515_v63 = vadd.f32 %v7214_v11, %v4648_v48  ;;  %v7216_v15 = vstv %s7144_s21  ;;  %v7217_v16 = vstv %s7170_s1  ;;  %v7221_v57 = vld [vmem:[#allocation73_spill] sm:$0xff]  ;;  %s7281_s1 = sld [smem:[#allocation50_spill]] }
 0x154   : > { %v827_v17 = vmul.f32 %v7216_v15, %v4809_v26  ;;  %v941_v47 = vmul.f32 %v7217_v16, %v4811_v4  ;;  %v1249_v54 = vadd.f32 %v7219_v38, %v1197_v29  ;;  %v7220_v21 = vstv %s7207_s27  ;;  %s5182_s21 = sld [smem:[#allocation5 + $0x2f]] }
 0x155   : > { %v1533_v58 = vmul.f32 %v7220_v21, %v4533_v10  ;;  %v1395_v32 = vadd.f32 %v1393_v6, %v1375_v22  ;;  %v815_v48 = vadd.f32 %v7221_v57, %v793_v9  ;;  %v7223_v13 = vstv %s7148_s10  ;;  %v7227_v21 = vld [vmem:[#allocation75_spill] sm:$0xff]  ;;  %s5175_s10 = sld [smem:[#allocation5 + $0x1f]] }
 0x156   : > { %v1046_v31 = vmul.f32 %v7223_v13, %v4584_v49  ;;  %v1114_v19 = vadd.f32 %v1112_v43, %v1100_v24  ;;  %v1275_v61 = vadd.f32 %v1273_v39, %v1249_v54  ;;  %v7224_v11 = vstv %s7212_s2  ;;  %v7229_v24 = vld [vmem:[#allocation94_spill] sm:$0xff]  ;;  %v7232_v13 = vld [vmem:[#allocation104_spill] sm:$0xff] }
 0x157   : > { %v1309_v29 = vmul.f32 %v7224_v11, %v4658_v55  ;;  %v1535_v15 = vadd.f32 %v1533_v58, %v1515_v63  ;;  %v7225_v16 = vstv %s7215_s17  ;;  %1431 = vrot.lane.b32.xlu0 %v1395_v32, %s7199_s0  ;;  %v829_v6 = vadd.f32 %v827_v17, %v815_v48  ;;  %v7233_v32 = vld [vmem:[#allocation77_spill] sm:$0xff] }
 0x158   : > { %v1593_v38 = vmul.f32 %v7225_v16, %v4535_v35  ;;  %v7226_v22 = vstv %s7218_s23  ;;  %v1148_v43 = vadd.f32 %v7227_v21, %v1114_v19  ;;  %v7228_v28 = vstv %s6983_s25  ;;  %s7249_s25 = sld [smem:[#allocation29_spill]] }
 0x159   : > { %v1423_v9 = vmul.f32 %v7226_v22, %v4747_v60  ;;  %v1166_v39 = vmul.f32 %v7228_v28, %v4645_v7  ;;  %v1297_v54 = vadd.f32 %v7229_v24, %v1275_v61  ;;  %v7230_v63 = vstv %s7167_s15  ;;  %v7235_v22 = vld [vmem:[#allocation88_spill] sm:$0xff]  ;;  %s7278_s15 = sld [smem:[#allocation48_spill]] }
 0x15a   : > { %v1160_v58 = vmul.f32 %v7230_v63, %v4645_v7  ;;  %v7231_v35 = vstv %s7222_s18  ;;  %v1581_v17 = vadd.f32 %v7232_v13, %v1535_v15  ;;  %v881_v48 = vadd.f32 %v7233_v32, %v829_v6  ;;  %v7238_v13 = vld [vmem:[#allocation79_spill] sm:$0xff] }
 0x15b   : > { %v1527_v57 = vmul.f32 %v7231_v35, %v4533_v10  ;;  %v1168_v11 = vadd.f32 %v1166_v39, %v1148_v43  ;;  %v7234_v19 = vstv %s7158_s19  ;;  %v1048_v21 = vadd.f32 %v1046_v31, %v7235_v22  ;;  %v7239_v43 = vld [vmem:[#allocation86_spill] sm:$0xff]  ;;  %v7241_v31 = vld [vmem:[#allocation96_spill] sm:$0xff]  ;;  %s5188_s19 = sld [smem:[#allocation5 + $0x3f]] }
 0x15c   : > { %v1226_v16 = vmul.f32 %v7234_v19, %v4663_v45  ;;  %v1311_v28 = vadd.f32 %v1309_v29, %v1297_v54  ;;  %v7236_v61 = vstv %s7189_s5  ;;  %v7237_v63 = vstv %s7176_s3  ;;  %v7242_v54 = vld [vmem:[#allocation106_spill] sm:$0xff]  ;;  %s7285_s3 = sld [smem:[#allocation32_spill]] }
 0x15d   : > { %v4878_v24 = vmul.f32 %v7236_v61, %v4688_v25  ;;  %v1280_v10 = vmul.f32 %v7237_v63, %v4688_v25  ;;  %v1595_v35 = vadd.f32 %v1593_v38, %v1581_v17  ;;  %v907_v15 = vadd.f32 %v905_v0, %v881_v48  ;;  %v7244_v17 = vld [vmem:[#allocation81_spill] sm:$0xff]  ;;  %s5071_s5 = sld [smem:[#allocation5 + $0xf0]] }
 0x15e   : > { %v1214_v6 = vadd.f32 %v7238_v13, %v1168_v11  ;;  %v1070_v39 = vadd.f32 %v7239_v43, %v1048_v21  ;;  %v7240_v32 = vstv %s7165_s12  ;;  %v1363_v29 = vadd.f32 %v7241_v31, %v1311_v28  ;;  %s7277_s12 = sld [smem:[#allocation67_spill]] }
 0x15f   : > { %v1082_v19 = vmul.f32 %v7240_v32, %v4720_v62  ;;  %v1629_v22 = vadd.f32 %v7242_v54, %v1595_v35  ;;  %v7243_v61 = vstv %s7040_s22  ;;  %v1529_v38 = vadd.f32 %v1527_v57, %v4306_v27  ;;  %v7247_v54 = vld [vmem:[#allocation82_spill] sm:$0xff] }
 0x160   : > { %v1647_v5 = vmul.f32 %v7243_v61, %v4591_v59  ;;  %v929_v0 = vadd.f32 %v7244_v17, %v907_v15  ;;  %v1228_v48 = vadd.f32 %v1226_v16, %v1214_v6  ;;  %v7245_v11 = vstv %s7046_s11  ;;  %v7250_v16 = vld [vmem:[#allocation89_spill] sm:$0xff] }
 0x161   : > { %v1707_v21 = vmul.f32 %v7245_v11, %v4601_v46  ;;  %v1084_v63 = vadd.f32 %v1082_v19, %v1070_v39  ;;  %v1389_v13 = vadd.f32 %v1387_v18, %v1363_v29  ;;  %v1551_v28 = vadd.f32 %v4296_v30, %v1529_v38  ;;  %v7251_v46 = vld [vmem:[#allocation97_spill] sm:$0xff]  ;;  %v2431_v19 = vld [vmem:[%s7087_s26] sm:$0xff] }
 0x162   : > { %v1649_v43 = vadd.f32 %v1647_v5, %v1629_v22  ;;  %v7246_v35 = vstv %s4073_s16  ;;  %v943_v31 = vadd.f32 %v941_v47, %v929_v0  ;;  %v1262_v61 = vadd.f32 %v7247_v54, %v1228_v48  ;;  %v2432_v5 = vld [vmem:[%s7087_s26 + $0x8] sm:$0xff] }
 0x163   : > { %v1563_v32 = vmul.f32 %v7246_v35, %v4559_v1  ;;  %v7248_v27 = vstv %s7180_s8  ;;  %v1136_v15 = vadd.f32 %v7250_v16, %v1084_v63  ;;  %v1411_v18 = vadd.f32 %v7251_v46, %v1389_v13  ;;  %v7253_v1 = vld [vmem:[#allocation109_spill] sm:$0xff]  ;;  %3246 = vmatprep.subr.mxu0 %v2432_v5  ;;  %v7257_v35 = vld [vmem:[#allocation84_spill] sm:$0xff]  ;;  %s7291_s8 = sld [smem:[#allocation45_spill]] }
 0x164   : > { %v1340_v57 = vmul.f32 %v7248_v27, %v4732_v40  ;;  %v7252_v30 = vstv %s7200_s4  ;;  %v1695_v47 = vadd.f32 %v7253_v1, %v1649_v43  ;;  %963 = vrot.lane.b32.xlu1 %v943_v31, %s7199_s0  ;;  %v1282_v29 = vadd.f32 %v1280_v10, %v1262_v61  ;;  %3247 = vmatpush3.msra.mxu0 %v2432_v5  ;;  %v7260_v61 = vld [vmem:[#allocation103_spill] sm:$0xff]  ;;  %s7332_s4 = sld [smem:[#allocation127_spill]] }
 0x165   : > { %v4914_v6 = vmul.f32 %v7252_v30, %v4769_v41  ;;  %v1565_v39 = vadd.f32 %v1563_v32, %v1551_v28  ;;  %v7254_v22 = vstv %s7202_s6  ;;  %v1162_v17 = vadd.f32 %v1160_v58, %v1136_v15  ;;  %v7258_v32 = vld [vmem:[#allocation93_spill] sm:$0xff]  ;;  %3248 = vmatprep.subr.mxu0 %v2431_v19  ;;  %s7271_s6 = sld [smem:[#allocation30_spill]] }
 0x166   : > { %v1394_v38 = vmul.f32 %v7254_v22, %v4769_v41  ;;  %v7255_v0 = vstv %s3817_s14  ;;  %v1425_v11 = vadd.f32 %v1423_v9, %v1411_v18  ;;  %v7256_v63 = vstv %s7249_s25  ;;  %s7264_s14 = sld [smem:[#allocation42_spill]]  ;;  %v7265_v18 = vld [vmem:[#allocation105_spill] sm:$0xff]  ;;  %3249 = vmatpush3.msra.mxu0 %v2431_v19  ;;  %v2005_v19 = vld [vmem:[#allocation3 + $0x19] sm:$0xff] }
 0x167   : > { %v1480_v48 = vmul.f32 %v7255_v0, %v4549_v20  ;;  %v1641_v13 = vmul.f32 %v7256_v63, %v4591_v59  ;;  %v1709_v43 = vadd.f32 %v1707_v21, %v1695_v47  ;;  %v1617_v28 = vadd.f32 %v4316_v12, %v1565_v39  ;;  %v7261_v59 = vld [vmem:[#allocation111_spill] sm:$0xff] }
 0x168   : > { %v1328_v10 = vadd.f32 %v7257_v35, %v1282_v29  ;;  %v1184_v31 = vadd.f32 %v7258_v32, %v1162_v17  ;;  %v7259_v54 = vstv %s7191_s29  ;;  %1443 = vrot.lane.b32.xlu0 %v1425_v11, %s7199_s0  ;;  %v7262_v21 = vstv %s7051_s7  ;;  %v7270_v11 = vld [vmem:[#allocation98_spill] sm:$0xff]  ;;  %v7273_v35 = vld [vmem:[#allocation113_spill] sm:$0xff]  ;;  %s7321_s29 = sld [smem:[#allocation121_spill]] }
 0x169   : > { %v1196_v58 = vmul.f32 %v7259_v54, %v4766_v8  ;;  %v1482_v20 = vadd.f32 %v1480_v48, %v7260_v61  ;;  %v1743_v9 = vadd.f32 %v7261_v59, %v1709_v43  ;;  %v1755_v12 = vmul.f32 %v7262_v21, %v4652_v50  ;;  %v7269_v48 = vld [vmem:[#allocation92_spill] sm:$0xff]  ;;  %v7276_v61 = vld [vmem:[#allocation107_spill] sm:$0xff]  ;;  %v2071_v59 = vld [vmem:[#allocation3 + $0x48] sm:$0xff] }
 0x16a   : > { %v7263_v27 = vstv %s7052_s24  ;;  %v1643_v15 = vadd.f32 %v1641_v13, %v1617_v28  ;;  %v1342_v5 = vadd.f32 %v1340_v57, %v1328_v10  ;;  %v7266_v1 = vstv %s7207_s27  ;;  %s7347_s27 = sld [smem:[#allocation15_spill]] }
 0x16b   : > { %v1761_v16 = vmul.f32 %v7263_v27, %v4652_v50  ;;  %v1198_v46 = vadd.f32 %v1196_v58, %v1184_v31  ;;  %v1516_v30 = vadd.f32 %v7265_v18, %v1482_v20  ;;  %v1534_v47 = vmul.f32 %v7266_v1, %v4584_v49 }
 0x16c   : > { %v7267_v29 = vstv %s7056_s13  ;;  %v1665_v17 = vadd.f32 %v4319_v3, %v1643_v15  ;;  %v7268_v0 = vstv %s4105_s20  ;;  %v1376_v57 = vadd.f32 %v7269_v48, %v1342_v5 }
 0x16d   : > { %v1763_v39 = vadd.f32 %v1761_v16, %v1743_v9  ;;  %v1821_v22 = vmul.f32 %v7267_v29, %v4671_v2  ;;  %v1677_v50 = vmul.f32 %v7268_v0, %v4634_v34  ;;  %v1250_v63 = vadd.f32 %v7270_v11, %v1198_v46  ;;  %v7288_v0 = vld [vmem:[#allocation108_spill] sm:$0xff] }
 0x16e   : > { %v1536_v13 = vadd.f32 %v1534_v47, %v1516_v30  ;;  %v7272_v43 = vstv %s7215_s17  ;;  %v7274_v2 = vstv %s7264_s14  ;;  %v7275_v34 = vstv %s4037_s28  ;;  %s7363_s17 = sld [smem:[#allocation135_spill]] }
 0x16f   : > { %v1594_v28 = vmul.f32 %v7272_v43, %v4597_v56  ;;  %v1809_v10 = vadd.f32 %v7273_v35, %v1763_v39  ;;  %v1869_v3 = vmul.f32 %v7274_v2, %v4700_v44  ;;  %v1875_v32 = vmul.f32 %v7275_v34, %v4700_v44  ;;  %v7292_v43 = vld [vmem:[#allocation101_spill] sm:$0xff] }
 0x170   : > { %v1679_v31 = vadd.f32 %v1677_v50, %v1665_v17  ;;  %v1396_v54 = vadd.f32 %v1394_v38, %v1376_v57  ;;  %v1276_v58 = vadd.f32 %v4878_v24, %v1250_v63  ;;  %v1582_v20 = vadd.f32 %v7276_v61, %v1536_v13  ;;  %v7282_v24 = vld [vmem:[#allocation99_spill] sm:$0xff]  ;;  %v2119_v13 = vld [vmem:[#allocation3 + $0x49] sm:$0xff] }
 0x171   : > { %v1997_v56 = vadd.f32 %v4385_v23, %v4669_v53  ;;  %v1823_v9 = vadd.f32 %v1821_v22, %v1809_v10  ;;  %v7279_v21 = vstv %s7212_s2  ;;  %v7280_v44 = vstv %s7271_s6  ;;  %s7355_s2 = sld [smem:[#allocation34_spill]] }
 0x172   : > { %v1310_v27 = vmul.f32 %v7279_v21, %v4809_v26  ;;  %v1731_v16 = vadd.f32 %v4328_v36, %v1679_v31  ;;  %v2015_v15 = vmul.f32 %v7280_v44, %v2005_v19  ;;  %1433 = vrot.lane.b32.xlu1 %v1396_v54, %s7199_s0  ;;  %v1298_v38 = vadd.f32 %v7282_v24, %v1276_v58  ;;  %v7296_v58 = vld [vmem:[#allocation110_spill] sm:$0xff] }
 0x173   : > { %v7283_v5 = vstv %s7218_s23  ;;  %v7284_v23 = vstv %s7222_s18  ;;  %v1596_v18 = vadd.f32 %v1594_v28, %v1582_v20  ;;  %v1857_v30 = vadd.f32 %v4279_v14, %v1823_v9  ;;  %v7300_v9 = vld [vmem:[#allocation123_spill] sm:$0xff]  ;;  %s7375_s23 = sld [smem:[#allocation143_spill]] }
 0x174   : > { %v1424_v46 = vmul.f32 %v7283_v5, %v4811_v4  ;;  %v1528_v53 = vmul.f32 %v7284_v23, %v4584_v49  ;;  %v1757_v1 = vadd.f32 %v1755_v12, %v1731_v16  ;;  %v2017_v36 = vadd.f32 %v2015_v15, %v1997_v56  ;;  %v7303_v16 = vld [vmem:[#allocation116_spill] sm:$0xff]  ;;  %v7305_v24 = vld [vmem:[#allocation102_spill] sm:$0xff]  ;;  %s5162_s18 = sld [smem:[#allocation5 + $0xf]] }
 0x175   : > { %v7286_v47 = vstv %s7277_s12  ;;  %v1312_v29 = vadd.f32 %v1310_v27, %v1298_v38  ;;  %v7287_v22 = vstv %s7278_s15  ;;  %v1630_v50 = vadd.f32 %v7288_v0, %v1596_v18  ;;  %v7301_v27 = vld [vmem:[#allocation131_spill] sm:$0xff] }
 0x176   : > { %v2075_v39 = vmul.f32 %v7286_v47, %v2071_v59  ;;  %v1791_v17 = vmul.f32 %v7287_v22, %v4658_v55  ;;  %v7289_v48 = vstv %s7040_s22  ;;  %v1877_v49 = vadd.f32 %v1875_v32, %v1857_v30  ;;  %s7297_s22 = sld [smem:[#allocation38_spill]]  ;;  %v2185_v59 = vld [vmem:[#allocation3 + $0x78] sm:$0xff]  ;;  %v7308_v22 = vld [vmem:[#allocation112_spill] sm:$0xff] }
 0x177   : > { %v1648_v57 = vmul.f32 %v7289_v48, %v4645_v7  ;;  %v1779_v11 = vadd.f32 %v4338_v51, %v1757_v1  ;;  %v7290_v14 = vstv %s7281_s1  ;;  %v2063_v63 = vadd.f32 %v4397_v52, %v2017_v36  ;;  %v2041_v15 = vld [vmem:[#allocation3 + $0x1a] sm:$0xff] }
 0x178   : > { %v1905_v12 = vmul.f32 %v7290_v14, %v4747_v60  ;;  %v1364_v28 = vadd.f32 %v7292_v43, %v1312_v29  ;;  %v7293_v55 = vstv %s7046_s11  ;;  %v7294_v2 = vstv %s7285_s3  ;;  %1913 = vrot.lane.b32.xlu0 %v1877_v49, %s7199_s0  ;;  %s7302_s11 = sld [smem:[#allocation137_spill]]  ;;  %v7311_v48 = vld [vmem:[#allocation124_spill] sm:$0xff]  ;;  %v7315_v14 = vld [vmem:[#allocation117_spill] sm:$0xff] }
 0x179   : > { %v1650_v35 = vadd.f32 %v1648_v57, %v1630_v50  ;;  %v1708_v10 = vmul.f32 %v7293_v55, %v4663_v45  ;;  %v2009_v34 = vmul.f32 %v7294_v2, %v2005_v19  ;;  %v1793_v32 = vadd.f32 %v1791_v17, %v1779_v11  ;;  %v2233_v11 = vld [vmem:[#allocation3 + $0x79] sm:$0xff] }
 0x17a   : > { %v7295_v51 = vstv %s7249_s25  ;;  %v2077_v60 = vadd.f32 %v2075_v39, %v2063_v63  ;;  %v1530_v52 = vadd.f32 %v1528_v53, %v4313_v37  ;;  %v1390_v54 = vadd.f32 %v4914_v6, %v1364_v28  ;;  %s7376_s25 = sld [smem:[#allocation13_spill]] }
 0x17b   : > { %v1642_v31 = vmul.f32 %v7295_v51, %v4645_v7  ;;  %v1696_v61 = vadd.f32 %v7296_v58, %v1650_v35  ;;  %v7298_v20 = vstv %s7051_s7  ;;  %v7299_v19 = vstv %s7291_s8  ;;  %s7316_s7 = sld [smem:[#allocation33_spill]]  ;;  %v2299_v51 = vld [vmem:[#allocation3 + $0xa8] sm:$0xff] }
 0x17c   : > { %v5017_v45 = vmul.f32 %v7298_v20, %v4688_v25  ;;  %v2129_v56 = vmul.f32 %v7299_v19, %v2119_v13  ;;  %v1845_v21 = vadd.f32 %v7300_v9, %v1793_v32  ;;  %v2111_v7 = vadd.f32 %v7301_v27, %v2077_v60  ;;  %v7324_v20 = vld [vmem:[#allocation147_spill] sm:$0xff] }
 0x17d   : > { %v1552_v44 = vadd.f32 %v7303_v16, %v1530_v52  ;;  %v7304_v37 = vstv %s4073_s16  ;;  %v1412_v38 = vadd.f32 %v7305_v24, %v1390_v54  ;;  %v1710_v5 = vadd.f32 %v1708_v10, %v1696_v61  ;;  %s7309_s16 = sld [smem:[#allocation35_spill]]  ;;  %v7322_v52 = vld [vmem:[#allocation114_spill] sm:$0xff] }
 0x17e   : > { %v1564_v6 = vmul.f32 %v7304_v37, %v4720_v62  ;;  %v7306_v23 = vstv %s7052_s24  ;;  %v2011_v18 = vadd.f32 %v2009_v34, %v4510_v42  ;;  %v1871_v30 = vadd.f32 %v1869_v3, %v1845_v21  ;;  %v7313_v3 = vld [vmem:[#allocation134_spill] sm:$0xff]  ;;  %s7314_s24 = sld [smem:[#allocation40_spill]] }
 0x17f   : > { %v1762_v53 = vmul.f32 %v7306_v23, %v4688_v25  ;;  %v2131_v1 = vadd.f32 %v2129_v56, %v2111_v7  ;;  %v7307_v36 = vstv %s7297_s22  ;;  %v1426_v29 = vadd.f32 %v1424_v46, %v1412_v38  ;;  %v1958_v46 = vld [vmem:[#allocation3 + $0x20] sm:$0xff]  ;;  %v2155_v56 = vld [vmem:[#allocation3 + $0x4a] sm:$0xff] }
 0x180   : > { %v2189_v47 = vmul.f32 %v7307_v36, %v2185_v59  ;;  %v1566_v39 = vadd.f32 %v1564_v6, %v1552_v44  ;;  %v1744_v62 = vadd.f32 %v7308_v22, %v1710_v5  ;;  %v2033_v17 = vadd.f32 %v4500_v33, %v2011_v18  ;;  %v7329_v7 = vld [vmem:[#allocation118_spill] sm:$0xff]  ;;  %v7337_v22 = vld [vmem:[#allocation115_spill] sm:$0xff] }
 0x181   : > { %v7310_v0 = vstv %s7302_s11  ;;  %v1893_v57 = vadd.f32 %v7311_v48, %v1871_v30  ;;  %v7312_v25 = vstv %s7056_s13  ;;  %v2177_v49 = vadd.f32 %v7313_v3, %v2131_v1  ;;  %1445 = vrot.lane.b32.xlu1 %v1426_v29, %s7199_s0  ;;  %s7319_s13 = sld [smem:[#allocation43_spill]]  ;;  %v2347_v38 = vld [vmem:[#allocation3 + $0xa9] sm:$0xff]  ;;  %v5080_v29 = vpop.permute.xlu1 %286 }
 0x182   : > { %v2045_v50 = vmul.f32 %v7310_v0, %v2041_v15  ;;  %v1822_v42 = vmul.f32 %v7312_v25, %v4732_v40  ;;  %v1618_v63 = vadd.f32 %v7315_v14, %v1566_v39  ;;  %v1764_v43 = vadd.f32 %v1762_v53, %v1744_v62  ;;  %v7334_v23 = vld [vmem:[#allocation128_spill] sm:$0xff] }
 0x183   : > { %v7317_v33 = vstv %s7264_s14  ;;  %v7318_v35 = vstv %s4037_s28  ;;  %v1907_v10 = vadd.f32 %v1905_v12, %v1893_v57  ;;  %v7320_v2 = vstv %s7309_s16  ;;  %s7326_s28 = sld [smem:[#allocation141_spill]]  ;;  %v5061_v12 = vpop.permute.xlu0 %284 }
 0x184   : > { %v5048_v28 = vmul.f32 %v7317_v33, %v4769_v41  ;;  %v1876_v55 = vmul.f32 %v7318_v35, %v4769_v41  ;;  %v2047_v40 = vadd.f32 %v2045_v50, %v2033_v17  ;;  %v2123_v34 = vmul.f32 %v7320_v2, %v2119_v13  ;;  %v2006_v41 = vld [vmem:[#allocation3 + $0x21] sm:$0xff]  ;;  %v7339_v50 = vld [vmem:[#allocation130_spill] sm:$0xff]  ;;  %s5199_s14 = sld [smem:[#allocation5 + $0x1b]] }
 0x185   : > { %v2191_v32 = vadd.f32 %v2189_v47, %v2177_v49  ;;  %v1644_v60 = vadd.f32 %v1642_v31, %v1618_v63  ;;  %v1810_v54 = vadd.f32 %v7322_v52, %v1764_v43  ;;  %v7323_v58 = vstv %s7314_s24  ;;  %1925 = vrot.lane.b32.xlu0 %v1907_v10, %s7199_s0  ;;  %v7327_v13 = vld [vmem:[#allocation136_spill] sm:$0xff]  ;;  %v7338_v17 = vld [vmem:[#allocation148_spill] sm:$0xff] }
 0x186   : > { %v2237_v61 = vmul.f32 %v7323_v58, %v2233_v11  ;;  %v2099_v19 = vadd.f32 %v7324_v20, %v2047_v40  ;;  %v7325_v59 = vstv %s7316_s7  ;;  %v7330_v44 = vstv %s4105_s20  ;;  %s7345_s20 = sld [smem:[#allocation14_spill]]  ;;  %v2269_v33 = vld [vmem:[#allocation3 + $0x7a] sm:$0xff] }
 0x187   : > { %v1962_v9 = vmul.f32 %v7325_v59, %v1958_v46  ;;  %v2225_v21 = vadd.f32 %v7327_v13, %v2191_v32  ;;  %v7328_v27 = vstv %s7319_s13  ;;  %v1666_v16 = vadd.f32 %v7329_v7, %v1644_v60  ;;  %v7344_v46 = vld [vmem:[#allocation119_spill] sm:$0xff]  ;;  %v5097_v32 = vpop.permute.xlu0 %288  ;;  %v7352_v13 = vld [vmem:[#allocation132_spill] sm:$0xff]  ;;  %v7354_v7 = vld [vmem:[#allocation145_spill] sm:$0xff]  ;;  %s5288_s7 = sld [smem:[#allocation5 + $0x8f]] }
 0x188   : > { %v2243_v31 = vmul.f32 %v7328_v27, %v2233_v11  ;;  %v1678_v37 = vmul.f32 %v7330_v44, %v4766_v8  ;;  %v1824_v6 = vadd.f32 %v1822_v42, %v1810_v54  ;;  %v7331_v15 = vstv %s7321_s29  ;;  %v2072_v8 = vld [vmem:[#allocation3 + $0x50] sm:$0xff]  ;;  %v7341_v42 = vld [vmem:[#allocation142_spill] sm:$0xff]  ;;  %v7357_v44 = vld [vmem:[#allocation140_spill] sm:$0xff] }
 0x189   : > { %v2303_v24 = vmul.f32 %v7331_v15, %v2299_v51  ;;  %v2125_v5 = vadd.f32 %v2123_v34, %v2099_v19  ;;  %v1964_v53 = vadd.f32 %v1962_v9, %v7334_v23  ;;  %v7335_v1 = vstv %s7326_s28  ;;  %v7350_v19 = vld [vmem:[#allocation152_spill] sm:$0xff]  ;;  %v2120_v27 = vld [vmem:[#allocation3 + $0x51] sm:$0xff] }
 0x18a   : > { %v2245_v18 = vadd.f32 %v2243_v31, %v2225_v21  ;;  %v1680_v30 = vadd.f32 %v1678_v37, %v1666_v16  ;;  %v2159_v36 = vmul.f32 %v7335_v1, %v2155_v56  ;;  %v7336_v47 = vstv %s7285_s3  ;;  %v7356_v16 = vld [vmem:[#allocation122_spill] sm:$0xff]  ;;  %s5252_s3 = sld [smem:[#allocation5 + $0x5]] }
 0x18b   : > { %v2010_v39 = vmul.f32 %v7336_v47, %v2006_v41  ;;  %v1858_v62 = vadd.f32 %v7337_v22, %v1824_v6  ;;  %v2147_v0 = vadd.f32 %v7338_v17, %v2125_v5  ;;  %v1998_v48 = vadd.f32 %v7339_v50, %v1964_v53  ;;  %v2383_v5 = vld [vmem:[#allocation3 + $0xaa] sm:$0xff]  ;;  %v2186_v53 = vld [vmem:[#allocation3 + $0x80] sm:$0xff] }
 0x18c   : > { %v7340_v57 = vstv %s7271_s6  ;;  %v2291_v3 = vadd.f32 %v7341_v42, %v2245_v18  ;;  %v7342_v49 = vstv %s7332_s4  ;;  %v7343_v14 = vstv %s7333_s30  ;;  %v2234_v18 = vld [vmem:[#allocation3 + $0x81] sm:$0xff]  ;;  %s5208_s6 = sld [smem:[#allocation5 + $0x2b]] }
 0x18d   : > { %v2016_v25 = vmul.f32 %v7340_v57, %v2006_v41  ;;  %v5090_v11 = vmul.f32 %v7342_v49, %v2347_v38  ;;  %v2357_v63 = vmul.f32 %v7343_v14, %v2347_v38  ;;  %v1732_v43 = vadd.f32 %v7344_v46, %v1680_v30  ;;  %v2369_v41 = vld [vmem:[#allocation2 + $0x4a] sm:$0xff]  ;;  %v7359_v30 = vld [vmem:[#allocation150_spill] sm:$0xff] }
 0x18e   : > { %v1878_v35 = vadd.f32 %v1876_v55, %v1858_v62  ;;  %v2161_v40 = vadd.f32 %v2159_v36, %v2147_v0  ;;  %v7346_v2 = vstv %s7277_s12  ;;  %v2305_v51 = vadd.f32 %v2303_v24, %v2291_v3  ;;  %v2042_v55 = vld [vmem:[#allocation3 + $0x22] sm:$0xff]  ;;  %v5120_v24 = vpop.permute.xlu1 %340  ;;  %v2300_v14 = vld [vmem:[#allocation3 + $0xb0] sm:$0xff]  ;;  %s5223_s12 = sld [smem:[#allocation5 + $0x3b]] }
 0x18f   : > { %v2018_v10 = vadd.f32 %v2016_v25, %v1998_v48  ;;  %v2076_v34 = vmul.f32 %v7346_v2, %v2072_v8  ;;  %v1758_v60 = vadd.f32 %v5017_v45, %v1732_v43  ;;  %v7348_v52 = vstv %s7278_s15  ;;  %v7353_v45 = vld [vmem:[#allocation149_spill] sm:$0xff]  ;;  %s5235_s15 = sld [smem:[#allocation5 + $0xd]] }
 0x190   : > { %v1792_v54 = vmul.f32 %v7348_v52, %v4809_v26  ;;  %v7349_v58 = vstv %s7281_s1  ;;  %1915 = vrot.lane.b32.xlu1 %v1878_v35, %s7199_s0  ;;  %v2213_v56 = vadd.f32 %v7350_v19, %v2161_v40  ;;  %v7351_v59 = vstv %s7345_s20  ;;  %v7364_v48 = vld [vmem:[#allocation153_spill] sm:$0xff]  ;;  %v7370_v52 = vld [vmem:[#allocation151_spill] sm:$0xff]  ;;  %s5242_s1 = sld [smem:[#allocation5 + $0x7]] }
 0x191   : > { %v5106_v20 = vmul.f32 %v7349_v58, %v4811_v4  ;;  %v2273_v9 = vmul.f32 %v7351_v59, %v2269_v33  ;;  %v2064_v21 = vadd.f32 %v7352_v13, %v2018_v10  ;;  %v2012_v31 = vadd.f32 %v2010_v39, %v7353_v45  ;;  %v5125_v39 = vpop.permute.xlu0 %342  ;;  %v7365_v25 = vld [vmem:[#allocation133_spill] sm:$0xff] }
 0x192   : > { %v2339_v26 = vadd.f32 %v7354_v7, %v2305_v51  ;;  %v1780_v4 = vadd.f32 %v7356_v16, %v1758_v60  ;;  %v7358_v37 = vstv %s7347_s27  ;;  %v2386_v15 = vstv %s5071_s5  ;;  %v5145_v60 = vld [vmem:[#allocation3 + $0xb1] sm:$0xff]  ;;  %v2256_v16 = vld [vmem:[#allocation2 + $0x3a] sm:$0xff]  ;;  %s5323_s5 = sld [smem:[#allocation5 + $0x85]] }
 0x193   : > { %v2325_v6 = vmul.f32 %v7358_v37, %v7357_v44  ;;  %v2239_v38 = vadd.f32 %v2237_v61, %v2213_v56  ;;  %v2078_v23 = vadd.f32 %v2076_v34, %v2064_v21  ;;  %v2034_v1 = vadd.f32 %v7359_v30, %v2012_v31  ;;  %v2142_v61 = vld [vmem:[#allocation2 + $0x22] sm:$0xff]  ;;  %v2156_v19 = vld [vmem:[#allocation3 + $0x52] sm:$0xff] }
 0x194   : > { %v7360_v36 = vstv %s7302_s11  ;;  %v2359_v8 = vadd.f32 %v2357_v63, %v2339_v26  ;;  %v1794_v22 = vadd.f32 %v1792_v54, %v1780_v4  ;;  %v7361_v62 = vstv %s7355_s2  ;;  %v7367_v63 = vld [vmem:[#allocation125_spill] sm:$0xff]  ;;  %v7374_v31 = vld [vmem:[#allocation138_spill] sm:$0xff]  ;;  %s5272_s11 = sld [smem:[#allocation5 + $0x4b]] }
 0x195   : > { %v2046_v47 = vmul.f32 %v7360_v36, %v2042_v55  ;;  %v2373_v17 = vmul.f32 %v7361_v62, %v2369_v41  ;;  %v7362_v0 = vstv %s7309_s16  ;;  %v2261_v57 = vadd.f32 %v7364_v48, %v2239_v38  ;;  %v5165_v4 = vpop.permute.xlu0 %391  ;;  %v7377_v44 = vld [vmem:[#allocation126_spill] sm:$0xff]  ;;  %v3395_v36 = vld [vmem:[#allocation2 + $0x39] sm:$0xff]  ;;  %v7382_v48 = vld [vmem:[#allocation139_spill] sm:$0xff]  ;;  %s5278_s16 = sld [smem:[#allocation5 + $0x47]] }
 0x196   : > { %v2124_v50 = vmul.f32 %v7362_v0, %v2120_v27  ;;  %v2112_v42 = vadd.f32 %v7365_v25, %v2078_v23  ;;  %v7366_v3 = vstv %s7291_s8  ;;  %2395 = vrot.lane.b32.xlu0 %v2359_v8, %s7199_s0  ;;  %v1846_v43 = vadd.f32 %v7367_v63, %v1794_v22  ;;  %s5261_s8 = sld [smem:[#allocation5 + $0x4f]] }
 0x197   : > { %v2130_v49 = vmul.f32 %v7366_v3, %v2120_v27  ;;  %v2048_v46 = vadd.f32 %v2046_v47, %v2034_v1  ;;  %v2387_v33 = vmul.f32 %v2386_v15, %v2383_v5  ;;  %v7368_v35 = vstv %s7297_s22  ;;  %v5159_v27 = vpop.permute.xlu1 %344  ;;  %s5265_s22 = sld [smem:[#allocation5 + $0x4d]] }
 0x198   : > { %v2190_v40 = vmul.f32 %v7368_v35, %v2186_v53  ;;  %v7369_v10 = vstv %s7314_s24  ;;  %v2275_v34 = vadd.f32 %v2273_v9, %v2261_v57  ;;  %v7371_v58 = vstv %s7363_s17  ;;  %s5282_s24 = sld [smem:[#allocation5 + $0x45]] }
 0x199   : > { %v5143_v2 = vmul.f32 %v7369_v10, %v2234_v18  ;;  %v2132_v51 = vadd.f32 %v2130_v49, %v2112_v42  ;;  %v2100_v54 = vadd.f32 %v7370_v52, %v2048_v46  ;;  %v2146_v55 = vmul.f32 %v7371_v58, %v2142_v61  ;;  %v396_v35 = vpop.permute.xlu0 %395  ;;  %s5399_s17 = sld [smem:[#allocation5 + $0x3]] }
 0x19a   : > { %v1872_v56 = vadd.f32 %v5048_v28, %v1846_v43  ;;  %v7372_v59 = vstv %s7319_s13  ;;  %v7373_v13 = vstv %s7321_s29  ;;  %v294_v9 = vsel %vm293_vm6, 0.0, %v5061_v12  ;;  %s5293_s13 = sld [smem:[#allocation5 + $0x8d]] }
 0x19b   : > { %v2244_v41 = vmul.f32 %v7372_v59, %v2234_v18  ;;  %v5155_v21 = vmul.f32 %v7373_v13, %v2300_v14  ;;  %v2327_v45 = vadd.f32 %v2325_v6, %v2275_v34  ;;  %v2178_v7 = vadd.f32 %v7374_v31, %v2132_v51  ;;  %v7383_v51 = vld [vmem:[#allocation144_spill] sm:$0xff]  ;;  %s5300_s29 = sld [smem:[#allocation5 + $0x8b]] }
 0x19c   : > { %v2126_v26 = vadd.f32 %v2124_v50, %v2100_v54  ;;  %v298_v28 = vsel %vm297_vm3, %v294_v9, 0.0  ;;  %v1894_v37 = vadd.f32 %v7377_v44, %v1872_v56  ;;  %v7378_v38 = vstv %s7332_s4  ;;  %v394_v50 = vpop.permute.xlu1 %393  ;;  %v3396_v9 = vld [vmem:[#allocation2 + $0x51] sm:$0xff]  ;;  %s5333_s4 = sld [smem:[#allocation5 + $0xcf]] }
 0x19d   : > { %v5171_v5 = vmul.f32 %v7378_v38, %v5145_v60  ;;  %v7379_v23 = vstv %s7326_s28  ;;  %v302_v53 = vsel %vm301_vm7, %v298_v28, %v5061_v12  ;;  %v2353_v18 = vadd.f32 %v5090_v11, %v2327_v45  ;;  %s5312_s28 = sld [smem:[#allocation5 + $0x87]] }
 0x19e   : > { %v2160_v6 = vmul.f32 %v7379_v23, %v2156_v19  ;;  %v2192_v30 = vadd.f32 %v2190_v40, %v2178_v7  ;;  %v2148_v1 = vadd.f32 %v2146_v55, %v2126_v26  ;;  %v7380_v47 = vstv %s7375_s23  ;;  %305 = vst.msk [vmem:[#allocation3] sm:$0xff] %vm260_vm1, %v302_v53  ;;  %v445_v53 = vpop.permute.xlu0 %444  ;;  %s5411_s23 = sld [smem:[#allocation5 + $0x1]] }
 0x19f   : > { %v2212_v8 = vmul.f32 %v3395_v36, %v7380_v47  ;;  %v1908_v22 = vadd.f32 %v5106_v20, %v1894_v37  ;;  %v7381_v62 = vstv %s7376_s25  ;;  %v295_v12 = vsel %vm293_vm6, 0.0, %v5080_v29  ;;  %s5478_s25 = sld [smem:[#allocation5 + $0x43]] }
 0x1a0   : > { %v2260_v0 = vmul.f32 %v7381_v62, %v2256_v16  ;;  %v296_v11 = vsel %vm293_vm6, 0.0, %v5097_v32  ;;  %v2375_v61 = vadd.f32 %v2373_v17, %v2353_v18  ;;  %v2226_v57 = vadd.f32 %v7382_v48, %v2192_v30  ;;  %v443_v59 = vpop.permute.xlu1 %442  ;;  %v2370_v16 = vld [vmem:[#allocation2 + $0x52] sm:$0xff] }
 0x1a1   : > { %v2162_v25 = vadd.f32 %v2160_v6, %v2148_v1  ;;  %v299_v42 = vsel %vm297_vm3, %v295_v12, 0.0  ;;  %1927 = vrot.lane.b32.xlu1 %v1908_v22, %s7199_s0  ;;  %v300_v3 = vsel %vm297_vm3, %v296_v11, 0.0  ;;  %v349_v49 = vsel %vm293_vm6, 0.0, %v5120_v24 }
 0x1a2   : > { %v303_v20 = vsel %vm301_vm7, %v299_v42, %v5080_v29  ;;  %v350_v17 = vsel %vm293_vm6, 0.0, %v5125_v39  ;;  %v2389_v14 = vadd.f32 %v2387_v33, %v2375_v61  ;;  %v2246_v46 = vadd.f32 %v2244_v41, %v2226_v57  ;;  %v2270_v29 = vld [vmem:[#allocation3 + $0x82] sm:$0xff] }
 0x1a3   : > { %v2214_v63 = vadd.f32 %v2212_v8, %v2162_v25  ;;  %306 = vst.msk [vmem:[#allocation3 + $0x8] sm:$0xff] %vm260_vm1, %v303_v20  ;;  %v304_v43 = vsel %vm301_vm7, %v300_v3, %v5097_v32  ;;  %v352_v40 = vsel %vm297_vm3, %v349_v49, 0.0  ;;  %v353_v10 = vsel %vm297_vm3, %v350_v17, 0.0  ;;  %v2384_v8 = vld [vmem:[#allocation3 + $0xb2] sm:$0xff]  ;;  %v7389_v3 = vld [vmem:[#allocation56_spill] sm:$0xff] }
 0x1a4   : > { %308 = vst.msk [vmem:[#allocation3 + $0x10] sm:$0x3] %vm307_vm5, %v304_v43  ;;  %v351_v33 = vsel %vm293_vm6, 0.0, %v5159_v27  ;;  %v400_v34 = vsel %vm293_vm6, 0.0, %v5165_v4  ;;  %2407 = vrot.lane.b32.xlu0 %v2389_v14, %s7199_s0  ;;  %v2292_v52 = vadd.f32 %v7383_v51, %v2246_v46  ;;  %v355_v54 = vsel %vm301_vm7, %v352_v40, %v5120_v24  ;;  %v447_v12 = vpop.permute.xlu1 %446  ;;  %v5306_v43 = vld [vmem:[#allocation2] sm:$0xff] }
 0x1a5   : > { %v2240_v32 = vadd.f32 %v5143_v2, %v2214_v63  ;;  %v356_v58 = vsel %vm301_vm7, %v353_v10, %v5125_v39  ;;  %359 = vst.msk [vmem:[#allocation3 + $0x30] sm:$0xff] %vm260_vm1, %v355_v54  ;;  %v354_v55 = vsel %vm297_vm3, %v351_v33, 0.0  ;;  %v403_v19 = vsel %vm297_vm3, %v400_v34, 0.0  ;;  %v5255_v6 = vld [vmem:[#allocation3] sm:$0xff] }
 0x1a6   : > { %360 = vst.msk [vmem:[#allocation3 + $0x38] sm:$0xff] %vm260_vm1, %v356_v58  ;;  %v401_v2 = vsel %vm293_vm6, 0.0, %v394_v50  ;;  %v402_v56 = vsel %vm293_vm6, 0.0, %v396_v35  ;;  %v2306_v24 = vadd.f32 %v5155_v21, %v2292_v52  ;;  %v7384_v39 = vstv %s7345_s20  ;;  %v7387_v21 = vld [vmem:[#allocation146_spill] sm:$0xff]  ;;  %s5365_s20 = sld [smem:[#allocation5 + $0xc7]] }
 0x1a7   : > { %v2262_v41 = vadd.f32 %v2260_v0, %v2240_v32  ;;  %v2274_v13 = vmul.f32 %v7384_v39, %v2270_v29  ;;  %v7385_v45 = vstv %s7347_s27  ;;  %v7386_v7 = vstv %s7333_s30  ;;  %s5352_s30 = sld [smem:[#allocation5 + $0xcb]] }
 0x1a8   : > { %v2326_v31 = vmul.f32 %v3396_v9, %v7385_v45  ;;  %v2358_v26 = vmul.f32 %v7386_v7, %v5145_v60  ;;  %v491_v28 = vstv %s5162_s18  ;;  %v357_v44 = vsel %vm301_vm7, %v354_v55, %v5159_v27  ;;  %v5328_v55 = vld [vmem:[#allocation2 + $0x1] sm:$0xff]  ;;  %s5377_s27 = sld [smem:[#allocation5 + $0xc5]] }
 0x1a9   : > { %v406_v37 = vsel %vm301_vm7, %v403_v19, %v5165_v4  ;;  %v2340_v38 = vadd.f32 %v7387_v21, %v2306_v24  ;;  %v2276_v23 = vadd.f32 %v2274_v13, %v2262_v41  ;;  %361 = vst.msk [vmem:[#allocation3 + $0x40] sm:$0x3] %vm307_vm5, %v357_v44  ;;  %v404_v60 = vsel %vm297_vm3, %v401_v2, 0.0  ;;  %s5460_s18 = sld [smem:[#allocation5 + $0x49]] }
 0x1aa   : > { %410 = vst.msk [vmem:[#allocation3 + $0x60] sm:$0xff] %vm260_vm1, %v406_v37  ;;  %v405_v27 = vsel %vm297_vm3, %v402_v56, 0.0  ;;  %v407_v4 = vsel %vm301_vm7, %v404_v60, %v394_v50  ;;  %v7388_v36 = vstv %s7355_s2  ;;  %v451_v22 = vsel %vm293_vm6, 0.0, %v443_v59  ;;  %v5302_v46 = vld [vmem:[#allocation3 + $0x1] sm:$0xff]  ;;  %s5390_s2 = sld [smem:[#allocation5 + $0x9]] }
 0x1ab   : > { %v408_v18 = vsel %vm301_vm7, %v405_v27, %v396_v35  ;;  %v2360_v30 = vadd.f32 %v2358_v26, %v2340_v38  ;;  %v2328_v1 = vadd.f32 %v2326_v31, %v2276_v23  ;;  %v2374_v47 = vmul.f32 %v7388_v36, %v2370_v16  ;;  %411 = vst.msk [vmem:[#allocation3 + $0x68] sm:$0xff] %vm260_vm1, %v407_v4  ;;  %v489_v54 = vld [vmem:[#allocation3 + $0x8] sm:$0xff]  ;;  %v5372_v38 = vld [vmem:[#allocation2 + $0x18] sm:$0xff] }
 0x1ac   : > { %412 = vst.msk [vmem:[#allocation3 + $0x70] sm:$0x3] %vm307_vm5, %v408_v18  ;;  %v492_v62 = vmul.f32 %v491_v28, %v5255_v6  ;;  %v452_v0 = vsel %vm293_vm6, 0.0, %v445_v53  ;;  %v2388_v50 = vmul.f32 %v2386_v15, %v2384_v8  ;;  %v974_v61 = vstv %s5175_s10  ;;  %v5320_v34 = vld [vmem:[#allocation3 + $0x30] sm:$0xff]  ;;  %s5490_s10 = sld [smem:[#allocation5 + $0x41]] }
 0x1ad   : > { %2397 = vrot.lane.b32.xlu1 %v2360_v30, %s7199_s0  ;;  %v2354_v11 = vadd.f32 %v5171_v5, %v2328_v1  ;;  %v454_v48 = vsel %vm297_vm3, %v451_v22, 0.0  ;;  %v455_v42 = vsel %vm297_vm3, %v452_v0, 0.0  ;;  %v453_v20 = vsel %vm293_vm6, 0.0, %v447_v12  ;;  %v5347_v13 = vld [vmem:[#allocation3 + $0x9] sm:$0xff]  ;;  %v5387_v27 = vld [vmem:[#allocation3 + $0x31] sm:$0xff] }
 0x1ae   : > { %v457_v25 = vsel %vm301_vm7, %v454_v48, %v443_v59  ;;  %v458_v15 = vsel %vm301_vm7, %v455_v42, %v445_v53  ;;  %v456_v5 = vsel %vm297_vm3, %v453_v20, 0.0  ;;  %v494_v49 = vadd.f32 %v492_v62, %v7389_v3  ;;  %v5429_v20 = vld [vmem:[#allocation2 + $0x8] sm:$0xff] }
 0x1af   : > { %v2376_v57 = vadd.f32 %v2374_v47, %v2354_v11  ;;  %461 = vst.msk [vmem:[#allocation3 + $0x90] sm:$0xff] %vm260_vm1, %v457_v25  ;;  %v505_v17 = vstv %s5235_s15  ;;  %462 = vst.msk [vmem:[#allocation3 + $0x98] sm:$0xff] %vm260_vm1, %v458_v15  ;;  %v459_v63 = vsel %vm301_vm7, %v456_v5, %v447_v12  ;;  %v527_v29 = vstv %s5242_s1  ;;  %v5413_v11 = vld [vmem:[#allocation2 + $0x19] sm:$0xff]  ;;  %s5562_s15 = sld [smem:[#allocation5 + $0x17]] }
 0x1b0   : > { %v506_v35 = vmul.f32 %v5306_v43, %v505_v17  ;;  %v1456_v40 = vstv %s5182_s21  ;;  %463 = vst.msk [vmem:[#allocation3 + $0xa0] sm:$0x3] %vm307_vm5, %v459_v63  ;;  %v528_v10 = vmul.f32 %v527_v29, %v5302_v46  ;;  %v553_v33 = vstv %s5252_s3  ;;  %s5505_s21 = sld [smem:[#allocation5 + $0x89]] }
 0x1b1   : > { %v2390_v14 = vadd.f32 %v2388_v50, %v2376_v57  ;;  %v605_v51 = vstv %s5261_s8  ;;  %v6831_v52 = vstv %s5188_s19  ;;  %v521_v32 = vstv %s5195_s9  ;;  %v5396_v1 = vld [vmem:[#allocation3 + $0x60] sm:$0xff]  ;;  %s5518_s9 = sld [smem:[#allocation5 + $0x83]] }
 0x1b2   : > { %v508_v58 = vadd.f32 %v506_v35, %v494_v49  ;;  %v554_v19 = vmul.f32 %v5328_v55, %v553_v33  ;;  %v1004_v2 = vstv %s5199_s14  ;;  %v1486_v56 = vstv %s5208_s6  ;;  %v5408_v62 = vld [vmem:[#allocation3 + $0x61] sm:$0xff]  ;;  %v5434_v49 = vld [vmem:[#allocation2 + $0x30] sm:$0xff]  ;;  %s5537_s14 = sld [smem:[#allocation5 + $0x81]] }
 0x1b3   : > { %2409 = vrot.lane.b32.xlu1 %v2390_v14, %s7199_s0  ;;  %v619_v24 = vstv %s5265_s22  ;;  %s5339_s0 = sld [smem:[#allocation5 + $0xcd]]  ;;  %v5342_v41 = vmul.f32 %v974_v61, %v5255_v6  ;;  %v5345_v39 = vmul.f32 %v1456_v40, %v5255_v6  ;;  %v606_v45 = vmul.f32 %v605_v51, %v5320_v34 }
 0x1b4   : > { %v530_v9 = vadd.f32 %v528_v10, %v508_v58  ;;  %v5357_v31 = vmul.f32 %v6831_v52, %v5255_v6  ;;  %v493_v7 = vmul.f32 %v491_v28, %v489_v54  ;;  %v5362_v26 = vmul.f32 %v521_v32, %v5302_v46  ;;  %v5447_v10 = vld [vmem:[#allocation3 + $0x38] sm:$0xff]  ;;  %s5550_s6 = sld [smem:[#allocation5 + $0x1d]] }
 0x1b5   : > { %7390 = vst [vmem:[#allocation85_spill] sm:$0xff] %v5345_v39  ;;  %v641_v16 = vstv %s5278_s16  ;;  %v5367_v44 = vmul.f32 %v974_v61, %v489_v54  ;;  %v5370_v37 = vmul.f32 %v1004_v2, %v5302_v46  ;;  %v620_v28 = vmul.f32 %v5372_v38, %v619_v24  ;;  %s5574_s1 = sld [smem:[#allocation5 + $0x15]]  ;;  %v5601_v39 = vld [vmem:[#allocation3 + $0x62] sm:$0xff] }
 0x1b6   : > { %7391 = vst [vmem:[#allocation60_spill] sm:$0xff] %v5357_v31  ;;  %v556_v21 = vadd.f32 %v554_v19, %v530_v9  ;;  %v5379_v23 = vmul.f32 %v1456_v40, %v489_v54  ;;  %v5382_v6 = vmul.f32 %v1486_v56, %v5302_v46  ;;  %v5385_v60 = vmul.f32 %v521_v32, %v5347_v13  ;;  %v5444_v35 = vld [vmem:[#allocation3 + $0x90] sm:$0xff]  ;;  %s5585_s3 = sld [smem:[#allocation5 + $0xc9]] }
 0x1b7   : > { %v667_v53 = vstv %s5282_s24  ;;  %v6837_v18 = vstv %s5272_s11  ;;  %v642_v30 = vmul.f32 %v641_v16, %v5387_v27  ;;  %v719_v36 = vstv %s5288_s7  ;;  %v5452_v54 = vld [vmem:[#allocation2 + $0x9] sm:$0xff]  ;;  %s5594_s8 = sld [smem:[#allocation5 + $0x5f]] }
 0x1b8   : > { %7392 = vst [vmem:[#allocation74_spill] sm:$0xff] %v5379_v23  ;;  %7393 = vst [vmem:[#allocation62_spill] sm:$0xff] %v5382_v6  ;;  %v608_v4 = vadd.f32 %v606_v45, %v556_v21  ;;  %v5402_v47 = vmul.f32 %v1004_v2, %v5347_v13  ;;  %v5405_v8 = vmul.f32 %v1486_v56, %v5347_v13  ;;  %v733_v22 = vstv %s5293_s13  ;;  %v5462_v56 = vld [vmem:[#allocation2 + $0x31] sm:$0xff]  ;;  %v5469_v21 = vld [vmem:[#allocation3 + $0x2] sm:$0xff]  ;;  %s5615_s22 = sld [smem:[#allocation5 + $0x5d]] }
 0x1b9   : > { %v6836_v0 = vstv %s5300_s29  ;;  %v668_v50 = vmul.f32 %v5413_v11, %v667_v53  ;;  %v6834_v61 = vstv %s5312_s28  ;;  %v495_v48 = vadd.f32 %v493_v7, %v7389_v3  ;;  %v5599_v23 = vld [vmem:[#allocation3 + $0x99] sm:$0xff]  ;;  %s5631_s16 = sld [smem:[#allocation5 + $0x57]] }
 0x1ba   : > { %7394 = vst [vmem:[#allocation83_spill] sm:$0xff] %v5402_v47  ;;  %7395 = vst [vmem:[#allocation64_spill] sm:$0xff] %v5405_v8  ;;  %v622_v12 = vadd.f32 %v620_v28, %v608_v4  ;;  %v5423_v57 = vmul.f32 %v6837_v18, %v5387_v27  ;;  %v720_v25 = vmul.f32 %v719_v36, %v5396_v1  ;;  %v781_v42 = vstv %s5323_s5  ;;  %v5523_v18 = vld [vmem:[#allocation2 + $0x2] sm:$0xff]  ;;  %s5633_s24 = sld [smem:[#allocation5 + $0xc1]] }
 0x1bb   : > { %v507_v15 = vmul.f32 %v5429_v20, %v505_v17  ;;  %v734_v14 = vmul.f32 %v5434_v49, %v733_v22  ;;  %v5442_v63 = vmul.f32 %v6836_v0, %v5408_v62  ;;  %v6832_v40 = vstv %s5333_s4  ;;  %s5646_s7 = sld [smem:[#allocation5 + $0x55]] }
 0x1bc   : > { %v644_v5 = vadd.f32 %v642_v30, %v622_v12  ;;  %v756_v17 = vmul.f32 %v6834_v61, %v5408_v62  ;;  %v555_v58 = vmul.f32 %v5452_v54, %v553_v33  ;;  %v529_v19 = vmul.f32 %v527_v29, %v5347_v13  ;;  %v5480_v12 = vld [vmem:[#allocation3 + $0x91] sm:$0xff]  ;;  %v5520_v61 = vld [vmem:[#allocation2 + $0x49] sm:$0xff]  ;;  %s5664_s13 = sld [smem:[#allocation5 + $0x9f]] }
 0x1bd   : > { %v509_v32 = vadd.f32 %v507_v15, %v495_v48  ;;  %v782_v9 = vmul.f32 %v5462_v56, %v781_v42  ;;  %v847_v45 = vstv %s5339_s0  ;;  %v6838_v7 = vstv %s5352_s30  ;;  %v3405_v48 = vld [vmem:[#allocation2 + $0x20] sm:$0xff]  ;;  %s5699_s5 = sld [smem:[#allocation5 + $0x95]] }
 0x1be   : > { %v670_v2 = vadd.f32 %v668_v50, %v644_v5  ;;  %v834_v33 = vmul.f32 %v6832_v40, %v5444_v35  ;;  %v6839_v29 = vstv %s5365_s20  ;;  %v607_v4 = vmul.f32 %v605_v51, %v5447_v10  ;;  %v5495_v40 = vld [vmem:[#allocation3 + $0x68] sm:$0xff]  ;;  %s5712_s0 = sld [smem:[#allocation5 + $0xdf]] }
 0x1bf   : > { %v531_v28 = vadd.f32 %v529_v19, %v509_v32  ;;  %v895_v50 = vstv %s5377_s27  ;;  %v621_v15 = vmul.f32 %v3405_v48, %v619_v24  ;;  %v524_v5 = vadd.f32 %v5362_v26, %v7389_v3  ;;  %7396 = vst [vmem:[#allocation65_spill] sm:$0xff] %v5495_v40  ;;  %v5497_v24 = vld [vmem:[#allocation3 + $0x39] sm:$0xff]  ;;  %s5747_s27 = sld [smem:[#allocation5 + $0x9b]] }
 0x1c0   : > { %v722_v30 = vadd.f32 %v720_v25, %v670_v2  ;;  %v6833_v19 = vstv %s5390_s2  ;;  %v6835_v51 = vstv %s5399_s17  ;;  %v6840_v59 = vstv %s5411_s23  ;;  %v5492_v2 = vld [vmem:[#allocation2 + $0x48] sm:$0xff] }
 0x1c1   : > { %v557_v32 = vadd.f32 %v555_v58, %v531_v28  ;;  %v848_v52 = vmul.f32 %v5492_v2, %v847_v45  ;;  %v542_v26 = vmul.f32 %v5328_v55, %v6833_v19  ;;  %v576_v58 = vmul.f32 %v6835_v51, %v5469_v21 }
 0x1c2   : > { %v736_v25 = vadd.f32 %v734_v14, %v722_v30  ;;  %v5510_v14 = vmul.f32 %v6838_v7, %v5480_v12  ;;  %v870_v28 = vmul.f32 %v6839_v29, %v5480_v12  ;;  %v643_v48 = vmul.f32 %v641_v16, %v5497_v24  ;;  %v5528_v29 = vld [vmem:[#allocation2 + $0x21] sm:$0xff] }
 0x1c3   : > { %v609_v30 = vadd.f32 %v607_v4, %v557_v32  ;;  %v896_v51 = vmul.f32 %v5520_v61, %v895_v50  ;;  %v544_v0 = vadd.f32 %v542_v26, %v524_v5  ;;  %v590_v7 = vmul.f32 %v5523_v18, %v6840_v59  ;;  %v3410_v5 = vld [vmem:[#allocation2 + $0x38] sm:$0xff] }
 0x1c4   : > { %v758_v19 = vadd.f32 %v756_v17, %v736_v25  ;;  %v669_v16 = vmul.f32 %v5528_v29, %v667_v53  ;;  %v721_v4 = vmul.f32 %v719_v36, %v5495_v40  ;;  %v735_v26 = vmul.f32 %v3410_v5, %v733_v22  ;;  %v5541_v59 = vld [vmem:[#allocation2 + $0x39] sm:$0xff]  ;;  %v5548_v53 = vld [vmem:[#allocation3 + $0x69] sm:$0xff] }
 0x1c5   : > { %v623_v17 = vadd.f32 %v621_v15, %v609_v30  ;;  %v5546_v31 = vmul.f32 %v5541_v59, %v781_v42  ;;  %7397 = vst [vmem:[#allocation76_spill] sm:$0xff] %v5548_v53  ;;  %v578_v36 = vadd.f32 %v576_v58, %v544_v0  ;;  %v3412_v15 = vld [vmem:[#allocation2 + $0x50] sm:$0xff]  ;;  %v7399_v58 = vstv %s5272_s11  ;;  %s5620_s11 = sld [smem:[#allocation5 + $0xc3]] }
 0x1c6   : > { %v784_v25 = vadd.f32 %v782_v9, %v758_v19  ;;  %v5552_v9 = vmul.f32 %v3412_v15, %v847_v45  ;;  %v5554_v19 = vld [vmem:[#allocation2 + $0x51] sm:$0xff]  ;;  %v5567_v32 = vmul.f32 %v7399_v58, %v5497_v24  ;;  %v7401_v8 = vstv %s5460_s18 }
 0x1c7   : > { %v5557_v22 = vmul.f32 %v5554_v19, %v895_v50  ;;  %v645_v30 = vadd.f32 %v643_v48, %v623_v17  ;;  %v5559_v42 = vld [vmem:[#allocation3 + $0x32] sm:$0xff]  ;;  %v592_v15 = vadd.f32 %v590_v7, %v578_v36  ;;  %v656_v50 = vmul.f32 %v5413_v11, %v7401_v8  ;;  %v5587_v7 = vld [vmem:[#allocation3 + $0xa] sm:$0xff] }
 0x1c8   : > { %7398 = vst [vmem:[#allocation63_spill] sm:$0xff] %v5559_v42  ;;  %v836_v0 = vadd.f32 %v834_v33, %v784_v25  ;;  %v5569_v45 = vld [vmem:[#allocation3 + $0x98] sm:$0xff]  ;;  %v7402_v17 = vstv %s5300_s29  ;;  %v7403_v33 = vstv %s5312_s28  ;;  %7404 = vst [vmem:[#allocation66_spill] sm:$0xff] %v5587_v7  ;;  %s5678_s29 = sld [smem:[#allocation5 + $0x9d]] }
 0x1c9   : > { %7400 = vst [vmem:[#allocation87_spill] sm:$0xff] %v5569_v45  ;;  %v671_v48 = vadd.f32 %v669_v16, %v645_v30  ;;  %v5579_v5 = vmul.f32 %v7402_v17, %v5548_v53  ;;  %v757_v25 = vmul.f32 %v7403_v33, %v5548_v53  ;;  %v638_v36 = vadd.f32 %v5423_v57, %v592_v15  ;;  %s5692_s28 = sld [smem:[#allocation5 + $0x97]] }
 0x1ca   : > { %v850_v8 = vadd.f32 %v848_v52, %v836_v0  ;;  %v7405_v16 = vstv %s5478_s25  ;;  %v7406_v33 = vstv %s5333_s4  ;;  %v7407_v0 = vstv %s5390_s2  ;;  %s5705_s4 = sld [smem:[#allocation5 + $0x5b]] }
 0x1cb   : > { %v690_v30 = vmul.f32 %v7405_v16, %v5559_v42  ;;  %v723_v17 = vadd.f32 %v721_v4, %v671_v48  ;;  %v835_v58 = vmul.f32 %v7406_v33, %v5569_v45  ;;  %v543_v57 = vmul.f32 %v5452_v54, %v7407_v0  ;;  %v5610_v4 = vld [vmem:[#allocation2 + $0x1a] sm:$0xff]  ;;  %s5756_s2 = sld [smem:[#allocation5 + $0xd5]] }
 0x1cc   : > { %v872_v15 = vadd.f32 %v870_v28, %v850_v8  ;;  %v7408_v16 = vstv %s5365_s20  ;;  %v658_v47 = vadd.f32 %v656_v50, %v638_v36  ;;  %v7409_v48 = vstv %s5490_s10  ;;  %s5726_s20 = sld [smem:[#allocation5 + $0xdd]] }
 0x1cd   : > { %v871_v6 = vmul.f32 %v7408_v16, %v5599_v23  ;;  %v704_v33 = vmul.f32 %v5610_v4, %v7409_v48  ;;  %v737_v45 = vadd.f32 %v735_v26, %v723_v17  ;;  %v7410_v42 = vstv %s5505_s21  ;;  %v5635_v17 = vld [vmem:[#allocation2 + $0xa] sm:$0xff] }
 0x1ce   : > { %v770_v52 = vmul.f32 %v5462_v56, %v7410_v42  ;;  %v525_v28 = vadd.f32 %v5385_v60, %v7389_v3  ;;  %v7411_v8 = vstv %s5399_s17  ;;  %v898_v36 = vadd.f32 %v896_v51, %v872_v15  ;;  %v7414_v51 = vld [vmem:[#allocation61_spill] sm:$0xff]  ;;  %s5767_s17 = sld [smem:[#allocation5 + $0x19]] }
 0x1cf   : > { %v577_v50 = vmul.f32 %v7411_v8, %v5587_v7  ;;  %v692_v0 = vadd.f32 %v690_v30, %v658_v47  ;;  %v7412_v16 = vstv %s5518_s9  ;;  %v759_v42 = vadd.f32 %v757_v25, %v737_v45  ;;  %v949_v30 = vpop.permute.xlu0 %948 }
 0x1d0   : > { %v804_v48 = vmul.f32 %v7412_v16, %v5601_v39  ;;  %v7413_v3 = vstv %s5411_s23  ;;  %v545_v8 = vadd.f32 %v543_v57, %v525_v28  ;;  %v977_v47 = vadd.f32 %v5342_v41, %v7414_v51  ;;  %944 = vst.msk [vmem:[#allocation4] sm:$0xff] %vm260_vm1, %v898_v36  ;;  %v5650_v41 = vld [vmem:[#allocation3 + $0x3a] sm:$0xff]  ;;  %s5775_s23 = sld [smem:[#allocation5 + $0x13]] }
 0x1d1   : > { %v591_v60 = vmul.f32 %v5635_v17, %v7413_v3  ;;  %v706_v45 = vadd.f32 %v704_v33, %v692_v0  ;;  %v6846_v25 = vstv %s5550_s6  ;;  %v6845_v15 = vstv %s5562_s15  ;;  %955 = vst.msk [vmem:[#allocation4] sm:$0xff] %vm954_vm8, %v949_v30 }
 0x1d2   : > { %v6847_v16 = vstv %s5574_s1  ;;  %v785_v57 = vadd.f32 %v5546_v31, %v759_v42  ;;  %v579_v28 = vadd.f32 %v577_v50, %v545_v8  ;;  %v989_v36 = vmul.f32 %v5306_v43, %v6846_v25  ;;  %v5669_v25 = vld [vmem:[#allocation2 + $0x32] sm:$0xff] }
 0x1d3   : > { %v1011_v33 = vmul.f32 %v6845_v15, %v5302_v46  ;;  %v752_v0 = vadd.f32 %v5442_v63, %v706_v45  ;;  %v7415_v26 = vstv %s5460_s18  ;;  %v1037_v43 = vmul.f32 %v5328_v55, %v6847_v16  ;;  %s5782_s18 = sld [smem:[#allocation5 + $0x11]] }
 0x1d4   : > { %v657_v30 = vmul.f32 %v5528_v29, %v7415_v26  ;;  %v837_v50 = vadd.f32 %v835_v58, %v785_v57  ;;  %v593_v42 = vadd.f32 %v591_v60, %v579_v28  ;;  %v991_v8 = vadd.f32 %v989_v36, %v977_v47 }
 0x1d5   : > { %v772_v15 = vadd.f32 %v770_v52, %v752_v0  ;;  %v7416_v63 = vstv %s5537_s14  ;;  %v7417_v26 = vstv %s5478_s25  ;;  %v6850_v31 = vstv %s5615_s22  ;;  %v5686_v0 = vld [vmem:[#allocation2 + $0x22] sm:$0xff]  ;;  %s5795_s25 = sld [smem:[#allocation5 + $0xdb]] }
 0x1d6   : > { %v818_v45 = vmul.f32 %v5669_v25, %v7416_v63  ;;  %v691_v3 = vmul.f32 %v7417_v26, %v5650_v41  ;;  %v851_v58 = vadd.f32 %v5552_v9, %v837_v50  ;;  %v639_v60 = vadd.f32 %v5567_v32, %v593_v42  ;;  %v5694_v32 = vld [vmem:[#allocation3 + $0x92] sm:$0xff] }
 0x1d7   : > { %v1013_v47 = vadd.f32 %v1011_v33, %v991_v8  ;;  %v7418_v52 = vstv %s5594_s8  ;;  %v806_v28 = vadd.f32 %v804_v48, %v772_v15  ;;  %v6851_v36 = vstv %s5620_s11 }
 0x1d8   : > { %v1089_v57 = vmul.f32 %v7418_v52, %v5320_v34  ;;  %v7419_v63 = vstv %s5490_s10  ;;  %v6849_v16 = vstv %s5631_s16  ;;  %v873_v9 = vadd.f32 %v871_v6, %v851_v58  ;;  %v951_v58 = vpop.permute.xlu1 %950  ;;  %s5814_s10 = sld [smem:[#allocation5 + $0x59]] }
 0x1d9   : > { %v705_v26 = vmul.f32 %v5686_v0, %v7419_v63  ;;  %v659_v33 = vadd.f32 %v657_v30, %v639_v60  ;;  %v1039_v50 = vadd.f32 %v1037_v43, %v1013_v47  ;;  %v1103_v48 = vmul.f32 %v5372_v38, %v6850_v31  ;;  %v5761_v31 = vld [vmem:[#allocation2 + $0x52] sm:$0xff] }
 0x1da   : > { %v820_v15 = vadd.f32 %v818_v45, %v806_v28  ;;  %v7420_v42 = vstv %s5585_s3  ;;  %v931_v52 = vstv %s5633_s24  ;;  %v6848_v6 = vstv %s5646_s7  ;;  %s5956_s24 = sld [smem:[#allocation5 + $0x67]] }
 0x1db   : > { %v884_v8 = vmul.f32 %v5520_v61, %v7420_v42  ;;  %v899_v30 = vadd.f32 %v5557_v22, %v873_v9  ;;  %v693_v43 = vadd.f32 %v691_v3, %v659_v33  ;;  %v1091_v60 = vadd.f32 %v1089_v57, %v1039_v50  ;;  %v5723_v42 = vld [vmem:[#allocation3 + $0x6a] sm:$0xff] }
 0x1dc   : > { %v1125_v38 = vmul.f32 %v6849_v16, %v5387_v27  ;;  %v7421_v45 = vstv %s5352_s30  ;;  %v866_v28 = vadd.f32 %v5510_v14, %v820_v15  ;;  %v918_v63 = vmul.f32 %v6851_v36, %v5694_v32  ;;  %s5735_s30 = sld [smem:[#allocation5 + $0xd7]]  ;;  %v5738_v15 = vld [vmem:[#allocation2 + $0x4a] sm:$0xff] }
 0x1dd   : > { %v5717_v47 = vmul.f32 %v7421_v45, %v5599_v23  ;;  %v6852_v22 = vstv %s5664_s13  ;;  %945 = vst.msk [vmem:[#allocation4 + $0x8] sm:$0xff] %vm260_vm1, %v899_v30  ;;  %v7422_v3 = vstv %s5505_s21  ;;  %v707_v9 = vadd.f32 %v705_v26, %v693_v43  ;;  %v5741_v45 = vld [vmem:[#allocation2 + $0x3a] sm:$0xff]  ;;  %s5831_s21 = sld [smem:[#allocation5 + $0x53]] }
 0x1de   : > { %v771_v57 = vmul.f32 %v5541_v59, %v7422_v3  ;;  %v1105_v33 = vadd.f32 %v1103_v48, %v1091_v60  ;;  %v1151_v14 = vmul.f32 %v5413_v11, %v6848_v6  ;;  %956 = vst.msk [vmem:[#allocation4 + $0x8] sm:$0xff] %vm954_vm8, %v951_v58  ;;  %v886_v50 = vadd.f32 %v884_v8, %v866_v28 }
 0x1df   : > { %v932_v30 = vmul.f32 %v5738_v15, %v931_v52  ;;  %v7423_v3 = vstv %s5537_s14  ;;  %v6853_v48 = vstv %s5678_s29  ;;  %v753_v43 = vadd.f32 %v5579_v5, %v707_v9  ;;  %v2415_v9 = vld [vmem:[#allocation4] sm:$0xff]  ;;  %s5845_s14 = sld [smem:[#allocation5 + $0x99]] }
 0x1e0   : > { %v819_v26 = vmul.f32 %v5741_v45, %v7423_v3  ;;  %v7424_v60 = vstv %s5518_s9  ;;  %v1127_v58 = vadd.f32 %v1125_v38, %v1105_v33  ;;  %v1203_v28 = vmul.f32 %v6852_v22, %v5396_v1  ;;  %v5769_v33 = vld [vmem:[#allocation3 + $0x9a] sm:$0xff]  ;;  %3250 = vmatprep.mubr.msk.f32.mxu0 %vm2439_vm9, %v2415_v9  ;;  %s5840_s9 = sld [smem:[#allocation5 + $0x51]] }
 0x1e1   : > { %v805_v8 = vmul.f32 %v7424_v60, %v5723_v42  ;;  %v920_v6 = vadd.f32 %v918_v63, %v886_v50  ;;  %v7425_v16 = vstv %s5585_s3  ;;  %v5764_v36 = vmul.f32 %v5761_v31, %v931_v52  ;;  %v962_v50 = vpop.permute.xlu0 %961  ;;  %s5885_s3 = sld [smem:[#allocation5 + $0x2d]] }
 0x1e2   : > { %v885_v3 = vmul.f32 %v5554_v19, %v7425_v16  ;;  %v773_v38 = vadd.f32 %v771_v57, %v753_v43  ;;  %v1153_v60 = vadd.f32 %v1151_v14, %v1127_v58  ;;  %v1217_v16 = vmul.f32 %v5434_v49, %v6853_v48 }
 0x1e3   : > { %v6855_v63 = vstv %s5699_s5  ;;  %v934_v52 = vadd.f32 %v932_v30, %v920_v6  ;;  %v978_v22 = vadd.f32 %v5367_v44, %v7414_v51  ;;  %v7426_v5 = vstv %s5550_s6  ;;  %s5856_s6 = sld [smem:[#allocation5 + $0x93]] }
 0x1e4   : > { %v990_v57 = vmul.f32 %v5429_v20, %v7426_v5  ;;  %v807_v14 = vadd.f32 %v805_v8, %v773_v38  ;;  %v6854_v49 = vstv %s5705_s4  ;;  %v1205_v43 = vadd.f32 %v1203_v28, %v1153_v60 }
 0x1e5   : > { %v7427_v58 = vstv %s5692_s28  ;;  %957 = vst.msk [vmem:[#allocation4 + $0x10] sm:$0xff] %vm260_vm1, %v934_v52  ;;  %v7428_v44 = vstv %s5620_s11  ;;  %v6857_v30 = vstv %s5712_s0  ;;  %v6858_v5 = vstv %s5726_s20  ;;  %v2416_v52 = vld [vmem:[#allocation4 + $0x8] sm:$0xff]  ;;  %s5929_s11 = sld [smem:[#allocation5 + $0x6f]] }
 0x1e6   : > { %v1239_v6 = vmul.f32 %v7427_v58, %v5408_v62  ;;  %v919_v20 = vmul.f32 %v7428_v44, %v5769_v33  ;;  %v992_v8 = vadd.f32 %v990_v57, %v978_v22  ;;  %967 = vst.msk [vmem:[#allocation4 + $0x10] sm:$0xff] %vm954_vm8, %v962_v50  ;;  %v821_v28 = vadd.f32 %v819_v26, %v807_v14 }
 0x1e7   : > { %v1219_v38 = vadd.f32 %v1217_v16, %v1205_v43  ;;  %v1265_v9 = vmul.f32 %v5462_v56, %v6855_v63  ;;  %v6856_v60 = vstv %s5735_s30  ;;  %v5805_v58 = vmul.f32 %v6854_v49, %v5387_v27  ;;  %3251 = vmatmul.mubr.msk.f32.vlgmr.msra.gmra.mxu0 %vm2439_vm9, %v2416_v52 }
 0x1e8   : > { %v7429_v48 = vstv %s5574_s1  ;;  %v7430_v50 = vstv %s5562_s15  ;;  %v867_v16 = vadd.f32 %v5717_v47, %v821_v28  ;;  %v1317_v14 = vmul.f32 %v6857_v30, %v5444_v35  ;;  %v5833_v28 = vld [vmem:[#allocation2 + $0x20] sm:$0xff]  ;;  %s5862_s15 = sld [smem:[#allocation5 + $0x91]] }
 0x1e9   : > { %v1038_v22 = vmul.f32 %v5452_v54, %v7429_v48  ;;  %v1012_v26 = vmul.f32 %v7430_v50, %v5347_v13  ;;  %v1241_v57 = vadd.f32 %v1239_v6, %v1219_v38  ;;  %v1331_v48 = vmul.f32 %v5492_v2, %v6858_v5  ;;  %s5874_s1 = sld [smem:[#allocation5 + $0xd9]] }
 0x1ea   : > { %v1353_v43 = vmul.f32 %v6856_v60, %v5480_v12  ;;  %v1378_v50 = vstv %s5756_s2  ;;  %v7431_v63 = vstv %s5594_s8  ;;  %v887_v47 = vadd.f32 %v885_v3, %v867_v16  ;;  %s5897_s8 = sld [smem:[#allocation5 + $0x27]] }
 0x1eb   : > { %v1014_v49 = vadd.f32 %v1012_v26, %v992_v8  ;;  %v1090_v52 = vmul.f32 %v7431_v63, %v5447_v10  ;;  %v1267_v6 = vadd.f32 %v1265_v9, %v1241_v57  ;;  %v7432_v38 = vstv %s5615_s22  ;;  %s5909_s22 = sld [smem:[#allocation5 + $0x25]] }
 0x1ec   : > { %v1104_v2 = vmul.f32 %v5833_v28, %v7432_v38  ;;  %v1007_v60 = vadd.f32 %v5370_v37, %v7414_v51  ;;  %v1024_v26 = vstv %s5767_s17  ;;  %v6859_v63 = vstv %s5775_s23  ;;  %s6047_s2 = sld [smem:[#allocation5 + $0xab]] }
 0x1ed   : > { %v1040_v8 = vadd.f32 %v1038_v22, %v1014_v49  ;;  %v6860_v30 = vstv %s5782_s18  ;;  %v921_v3 = vadd.f32 %v919_v20, %v887_v47  ;;  %v1319_v9 = vadd.f32 %v1317_v14, %v1267_v6  ;;  %v2417_v20 = vld [vmem:[#allocation4 + $0x10] sm:$0xff]  ;;  %v964_v14 = vpop.permute.xlu1 %963  ;;  %s6057_s17 = sld [smem:[#allocation5 + $0xe7]] }
 0x1ee   : > { %v1025_v16 = vmul.f32 %v5328_v55, %v1024_v26  ;;  %v1059_v57 = vmul.f32 %v6859_v63, %v5469_v21  ;;  %v1379_v37 = vmul.f32 %v5520_v61, %v1378_v50  ;;  %v7433_v22 = vstv %s5631_s16  ;;  %3253 = vmatprep.mubr.msk.f32.mxu0 %vm2439_vm9, %v2417_v20  ;;  %s5939_s16 = sld [smem:[#allocation5 + $0x6d]] }
 0x1ef   : > { %v1092_v49 = vadd.f32 %v1090_v52, %v1040_v8  ;;  %v1126_v5 = vmul.f32 %v7433_v22, %v5497_v24  ;;  %v935_v47 = vadd.f32 %v5764_v36, %v921_v3  ;;  %v1333_v6 = vadd.f32 %v1331_v48, %v1319_v9 }
 0x1f0   : > { %v1027_v44 = vadd.f32 %v1025_v16, %v1007_v60  ;;  %v1073_v63 = vmul.f32 %v5523_v18, %v6860_v30  ;;  %v7434_v52 = vstv %s5747_s27  ;;  %v7435_v22 = vstv %s5646_s7  ;;  %s5960_s7 = sld [smem:[#allocation5 + $0xd3]] }
 0x1f1   : > { %v5868_v8 = vmul.f32 %v7434_v52, %v5408_v62  ;;  %v1152_v38 = vmul.f32 %v5528_v29, %v7435_v22  ;;  %v1106_v36 = vadd.f32 %v1104_v2, %v1092_v49  ;;  %v6861_v48 = vstv %s5814_s10  ;;  %958 = vst.msk [vmem:[#allocation4 + $0x18] sm:$0xff] %vm260_vm1, %v935_v47  ;;  %v5888_v2 = vld [vmem:[#allocation2 + $0x38] sm:$0xff] }
 0x1f2   : > { %v7436_v60 = vstv %s5795_s25  ;;  %v1355_v9 = vadd.f32 %v1353_v43, %v1333_v6  ;;  %v7437_v16 = vstv %s5664_s13  ;;  %v1061_v52 = vadd.f32 %v1059_v57, %v1027_v44  ;;  %968 = vst.msk [vmem:[#allocation4 + $0x18] sm:$0xff] %vm954_vm8, %v964_v14  ;;  %7438 = vst [vmem:[#allocation69_spill] sm:$0xff] %v5888_v2  ;;  %v1432_v57 = vpop.permute.xlu0 %1431  ;;  %v5899_v14 = vld [vmem:[#allocation2 + $0x50] sm:$0xff]  ;;  %s5968_s13 = sld [smem:[#allocation5 + $0x65]] }
 0x1f3   : > { %v5880_v3 = vmul.f32 %v7436_v60, %v5480_v12  ;;  %v1204_v20 = vmul.f32 %v7437_v16, %v5495_v40  ;;  %v7439_v49 = vstv %s5678_s29  ;;  %v7440_v22 = vstv %s5699_s5  ;;  %7441 = vst [vmem:[#allocation68_spill] sm:$0xff] %v5899_v14  ;;  %s5971_s29 = sld [smem:[#allocation5 + $0xd1]] }
 0x1f4   : > { %v1218_v47 = vmul.f32 %v5888_v2, %v7439_v49  ;;  %v1266_v60 = vmul.f32 %v5541_v59, %v7440_v22  ;;  %v1128_v43 = vadd.f32 %v1126_v5, %v1106_v36  ;;  %v1381_v44 = vadd.f32 %v1379_v37, %v1355_v9  ;;  %v7448_v9 = vld [vmem:[#allocation87_spill] sm:$0xff]  ;;  %s5997_s5 = sld [smem:[#allocation5 + $0xad]] }
 0x1f5   : > { %v7442_v16 = vstv %s5726_s20  ;;  %v1075_v49 = vadd.f32 %v1073_v63, %v1061_v52  ;;  %v1139_v22 = vmul.f32 %v5413_v11, %v6861_v48  ;;  %v5912_v5 = vmul.f32 %v5554_v19, %v1378_v50  ;;  %v7445_v50 = vld [vmem:[#allocation63_spill] sm:$0xff]  ;;  %s6025_s20 = sld [smem:[#allocation5 + $0xa5]] }
 0x1f6   : > { %v5904_v30 = vmul.f32 %v5899_v14, %v7442_v16  ;;  %v1154_v37 = vadd.f32 %v1152_v38, %v1128_v43  ;;  %1427 = vst.msk [vmem:[#allocation4 + $0x20] sm:$0xff] %vm260_vm1, %v1381_v44  ;;  %v7443_v16 = vstv %s5705_s4  ;;  %v7444_v52 = vstv %s5747_s27  ;;  %s6011_s4 = sld [smem:[#allocation5 + $0xa7]] }
 0x1f7   : > { %v1120_v63 = vmul.f32 %v7443_v16, %v5497_v24  ;;  %v5923_v48 = vmul.f32 %v7444_v52, %v5548_v53  ;;  %v1121_v6 = vadd.f32 %v5805_v58, %v1075_v49  ;;  %v7446_v14 = vstv %s5831_s21  ;;  %1437 = vst.msk [vmem:[#allocation4 + $0x20] sm:$0xff] %vm954_vm8, %v1432_v57  ;;  %s6038_s27 = sld [smem:[#allocation5 + $0xed]] }
 0x1f8   : > { %v1173_v38 = vmul.f32 %v7446_v14, %v7445_v50  ;;  %v1206_v43 = vadd.f32 %v1204_v20, %v1154_v37  ;;  %v7447_v44 = vstv %s5692_s28  ;;  %v7449_v36 = vstv %s5712_s0  ;;  %s5986_s28 = sld [smem:[#allocation5 + $0xaf]] }
 0x1f9   : > { %v1240_v16 = vmul.f32 %v7447_v44, %v5548_v53  ;;  %v1318_v52 = vmul.f32 %v7449_v36, %v7448_v9  ;;  %v1026_v58 = vmul.f32 %v5452_v54, %v1024_v26  ;;  %v7450_v14 = vstv %s5735_s30  ;;  %v7453_v36 = vld [vmem:[#allocation83_spill] sm:$0xff]  ;;  %s6019_s0 = sld [smem:[#allocation5 + $0x6b]] }
 0x1fa   : > { %v1354_v49 = vmul.f32 %v7450_v14, %v5599_v23  ;;  %v1141_v50 = vadd.f32 %v1139_v22, %v1121_v6  ;;  %v7451_v2 = vstv %s5840_s9  ;;  %v7452_v20 = vstv %s5845_s14  ;;  %s6033_s30 = sld [smem:[#allocation5 + $0xef]] }
 0x1fb   : > { %v1187_v57 = vmul.f32 %v5610_v4, %v7451_v2  ;;  %v1253_v37 = vmul.f32 %v5462_v56, %v7452_v20  ;;  %v1220_v44 = vadd.f32 %v1218_v47, %v1206_v43  ;;  %v1008_v9 = vadd.f32 %v7453_v36, %v7414_v51  ;;  %v2418_v43 = vld [vmem:[#allocation4 + $0x18] sm:$0xff] }
 0x1fc   : > { %v7454_v26 = vstv %s5775_s23  ;;  %v1175_v14 = vadd.f32 %v1173_v38, %v1141_v50  ;;  %v7455_v22 = vstv %s5782_s18  ;;  %v7456_v36 = vld [vmem:[#allocation95_spill] sm:$0xff]  ;;  %3254 = vmatmul.mubr.msk.f32.gmra.mxu0 %vm2439_vm9, %v2418_v43  ;;  %v5973_v38 = vld [vmem:[#allocation2] sm:$0xff]  ;;  %s6064_s23 = sld [smem:[#allocation5 + $0xeb]] }
 0x1fd   : > { %v1060_v40 = vmul.f32 %v7454_v26, %v5587_v7  ;;  %v1074_v47 = vmul.f32 %v5635_v17, %v7455_v22  ;;  %v1242_v51 = vadd.f32 %v1240_v16, %v1220_v44  ;;  %v1028_v20 = vadd.f32 %v1026_v58, %v1008_v9  ;;  %v7457_v26 = vld [vmem:[#allocation85_spill] sm:$0xff]  ;;  %s6074_s18 = sld [smem:[#allocation5 + $0xe5]] }
 0x1fe   : > { %v1459_v53 = vadd.f32 %v7457_v26, %v7456_v36  ;;  %v6869_v7 = vstv %s5885_s3  ;;  %v1189_v50 = vadd.f32 %v1187_v57, %v1175_v14  ;;  %v6870_v9 = vstv %s5897_s8 }
 0x1ff   : > { %v1471_v16 = vmul.f32 %v5973_v38, %v6869_v7  ;;  %v1518_v58 = vstv %s5909_s22  ;;  %v1268_v44 = vadd.f32 %v1266_v60, %v1242_v51  ;;  %v7458_v22 = vstv %s5856_s6  ;;  %v2419_v51 = vld [vmem:[#allocation4 + $0x20] sm:$0xff]  ;;  %s6194_s22 = sld [smem:[#allocation5 + $0x3d]] }
 0x200   : > { %v1287_v26 = vmul.f32 %v7458_v22, %v5601_v39  ;;  %v1062_v2 = vadd.f32 %v1060_v40, %v1028_v20  ;;  %v1493_v57 = vmul.f32 %v6870_v9, %v5302_v46  ;;  %v1235_v14 = vadd.f32 %v5868_v8, %v1189_v50  ;;  %3256 = vmatprep.mubr.msk.f32.mxu0 %vm2439_vm9, %v2419_v51 }
 0x201   : > { %v1473_v43 = vadd.f32 %v1471_v16, %v1459_v53  ;;  %v1519_v7 = vmul.f32 %v5328_v55, %v1518_v58  ;;  %v1570_v60 = vstv %s5929_s11  ;;  %v1320_v6 = vadd.f32 %v1318_v52, %v1268_v44  ;;  %s6203_s11 = sld [smem:[#allocation5 + $0x37]] }
 0x202   : > { %v7459_v22 = vstv %s5814_s10  ;;  %v1076_v20 = vadd.f32 %v1074_v47, %v1062_v2  ;;  %v1584_v46 = vstv %s5939_s16  ;;  %v1255_v53 = vadd.f32 %v1253_v37, %v1235_v14  ;;  %s6094_s10 = sld [smem:[#allocation5 + $0x23]] }
 0x203   : > { %v1140_v40 = vmul.f32 %v5528_v29, %v7459_v22  ;;  %v7460_v8 = vstv %s5862_s15  ;;  %v1495_v16 = vadd.f32 %v1493_v57, %v1473_v43  ;;  %v1571_v52 = vmul.f32 %v1570_v60, %v5320_v34  ;;  %v6014_v57 = vld [vmem:[#allocation2 + $0x18] sm:$0xff]  ;;  %s6214_s16 = sld [smem:[#allocation5 + $0x35]] }
 0x204   : > { %v1301_v50 = vmul.f32 %v5669_v25, %v7460_v8  ;;  %v1334_v44 = vadd.f32 %v5904_v30, %v1320_v6  ;;  %v1122_v22 = vadd.f32 %v1120_v63, %v1076_v20  ;;  %v7461_v2 = vstv %s5831_s21  ;;  %s6100_s21 = sld [smem:[#allocation5 + $0x21]] }
 0x205   : > { %v1174_v47 = vmul.f32 %v7461_v2, %v5650_v41  ;;  %v6874_v9 = vstv %s5956_s24  ;;  %v1289_v37 = vadd.f32 %v1287_v26, %v1255_v53  ;;  %v1400_v14 = vstv %s5960_s7  ;;  %s6234_s7 = sld [smem:[#allocation5 + $0xe3]] }
 0x206   : > { %v1521_v51 = vadd.f32 %v1519_v7, %v1495_v16  ;;  %v1585_v34 = vmul.f32 %v6014_v57, %v1584_v46  ;;  %v1356_v30 = vadd.f32 %v1354_v49, %v1334_v44  ;;  %v7462_v63 = vstv %s5840_s9  ;;  %v1434_v49 = vpop.permute.xlu1 %1433  ;;  %s6120_s9 = sld [smem:[#allocation5 + $0x69]] }
 0x207   : > { %v1188_v6 = vmul.f32 %v5686_v0, %v7462_v63  ;;  %v1142_v43 = vadd.f32 %v1140_v40, %v1122_v22  ;;  %v6873_v20 = vstv %s5968_s13  ;;  %v1303_v7 = vadd.f32 %v1301_v50, %v1289_v37 }
 0x208   : > { %v7463_v26 = vstv %s5874_s1  ;;  %v1573_v8 = vadd.f32 %v1571_v52, %v1521_v51  ;;  %v1607_v16 = vmul.f32 %v6874_v9, %v5387_v27  ;;  %v1382_v40 = vadd.f32 %v5912_v5, %v1356_v30 }
 0x209   : > { %v1367_v53 = vmul.f32 %v5520_v61, %v7463_v26  ;;  %v1414_v44 = vstv %s5971_s29  ;;  %v1176_v22 = vadd.f32 %v1174_v47, %v1142_v43  ;;  %v6872_v2 = vstv %s5986_s28  ;;  %s6260_s29 = sld [smem:[#allocation5 + $0x77]] }
 0x20a   : > { %v1349_v50 = vadd.f32 %v5880_v3, %v1303_v7  ;;  %v1401_v52 = vmul.f32 %v1400_v14, %v5694_v32  ;;  %v1587_v37 = vadd.f32 %v1585_v34, %v1573_v8  ;;  %v1633_v51 = vmul.f32 %v5413_v11, %v6873_v20  ;;  %1428 = vst.msk [vmem:[#allocation4 + $0x28] sm:$0xff] %vm260_vm1, %v1382_v40 }
 0x20b   : > { %v7464_v5 = vstv %s5795_s25  ;;  %v7465_v30 = vstv %s5845_s14  ;;  %v1190_v63 = vadd.f32 %v1188_v6, %v1176_v22  ;;  %v6871_v43 = vstv %s5997_s5  ;;  %1438 = vst.msk [vmem:[#allocation4 + $0x28] sm:$0xff] %vm954_vm8, %v1434_v49  ;;  %s6084_s25 = sld [smem:[#allocation5 + $0x29]] }
 0x20c   : > { %v1348_v47 = vmul.f32 %v7464_v5, %v5599_v23  ;;  %v1254_v3 = vmul.f32 %v5541_v59, %v7465_v30  ;;  %v1369_v34 = vadd.f32 %v1367_v53, %v1349_v50  ;;  %v1415_v7 = vmul.f32 %v5738_v15, %v1414_v44  ;;  %s6136_s14 = sld [smem:[#allocation5 + $0x63]] }
 0x20d   : > { %v1609_v26 = vadd.f32 %v1607_v16, %v1587_v37  ;;  %v1685_v8 = vmul.f32 %v6872_v2, %v5396_v1  ;;  %v7466_v40 = vstv %s5862_s15  ;;  %v1236_v22 = vadd.f32 %v5923_v48, %v1190_v63  ;;  %v6079_v37 = vld [vmem:[#allocation2 + $0x30] sm:$0xff]  ;;  %s6153_s15 = sld [smem:[#allocation5 + $0xa9]] }
 0x20e   : > { %v1302_v6 = vmul.f32 %v5741_v45, %v7466_v40  ;;  %v7467_v5 = vstv %s5856_s6  ;;  %v1720_v49 = vstv %s6011_s4  ;;  %v1403_v53 = vadd.f32 %v1401_v52, %v1369_v34  ;;  %v6089_v34 = vld [vmem:[#allocation2 + $0x8] sm:$0xff]  ;;  %s6148_s6 = sld [smem:[#allocation5 + $0x61]] }
 0x20f   : > { %v1288_v30 = vmul.f32 %v7467_v5, %v5723_v42  ;;  %v7468_v50 = vstv %s5874_s1  ;;  %v1635_v1 = vadd.f32 %v1633_v51, %v1609_v26  ;;  %v1699_v40 = vmul.f32 %v6079_v37, %v6871_v43  ;;  %v7469_v5 = vld [vmem:[#allocation74_spill] sm:$0xff]  ;;  %v1444_v43 = vpop.permute.xlu0 %1443  ;;  %s6161_s1 = sld [smem:[#allocation5 + $0xa3]] }
 0x210   : > { %v1368_v16 = vmul.f32 %v5554_v19, %v7468_v50  ;;  %v1256_v48 = vadd.f32 %v1254_v3, %v1236_v22  ;;  %v1746_v63 = vstv %s6025_s20  ;;  %v1460_v52 = vadd.f32 %v7469_v5, %v7456_v36  ;;  %s6289_s4 = sld [smem:[#allocation5 + $0xbf]] }
 0x211   : > { %v7470_v50 = vstv %s5885_s3  ;;  %v1417_v26 = vadd.f32 %v1415_v7, %v1403_v53  ;;  %v1416_v2 = vmul.f32 %v5761_v31, %v1414_v44  ;;  %v1687_v3 = vadd.f32 %v1685_v8, %v1635_v1  ;;  %s6167_s3 = sld [smem:[#allocation5 + $0xa1]] }
 0x212   : > { %v1472_v51 = vmul.f32 %v6089_v34, %v7470_v50  ;;  %v1721_v22 = vmul.f32 %v1720_v49, %v5408_v62  ;;  %v1290_v5 = vadd.f32 %v1288_v30, %v1256_v48  ;;  %v6875_v20 = vstv %s6033_s30  ;;  %s6314_s20 = sld [smem:[#allocation5 + $0xb7]] }
 0x213   : > { %v1812_v50 = vstv %s6038_s27  ;;  %1439 = vst.msk [vmem:[#allocation4 + $0x30] sm:$0xff] %vm260_vm1, %v1417_v26  ;;  %v1402_v44 = vmul.f32 %v1400_v14, %v5769_v33  ;;  %v1600_v7 = vstv %s6019_s0  ;;  %v1701_v8 = vadd.f32 %v1699_v40, %v1687_v3  ;;  %v2420_v14 = vld [vmem:[#allocation4 + $0x28] sm:$0xff]  ;;  %s6302_s0 = sld [smem:[#allocation5 + $0xbd]] }
 0x214   : > { %v1474_v9 = vadd.f32 %v1472_v51, %v1460_v52  ;;  %v1747_v53 = vmul.f32 %v5462_v56, %v1746_v63  ;;  %1449 = vst.msk [vmem:[#allocation4 + $0x30] sm:$0xff] %vm954_vm8, %v1444_v43  ;;  %v1304_v30 = vadd.f32 %v1302_v6, %v1290_v5  ;;  %v6876_v1 = vstv %s6057_s17  ;;  %v6126_v6 = vld [vmem:[#allocation2 + $0x48] sm:$0xff]  ;;  %3257 = vmatmul.mubr.msk.f32.gmra.mxu0 %vm2439_vm9, %v2420_v14  ;;  %s6328_s27 = sld [smem:[#allocation5 + $0xff]] }
 0x215   : > { %v1520_v48 = vmul.f32 %v5452_v54, %v1518_v58  ;;  %v7471_v52 = vstv %s5897_s8  ;;  %v1714_v40 = vstv %s6047_s2  ;;  %v1723_v26 = vadd.f32 %v1721_v22, %v1701_v8  ;;  %s6182_s8 = sld [smem:[#allocation5 + $0xe9]] }
 0x216   : > { %v1494_v51 = vmul.f32 %v7471_v52, %v5347_v13  ;;  %v1799_v43 = vmul.f32 %v6875_v20, %v5444_v35  ;;  %v1813_v58 = vmul.f32 %v6126_v6, %v1812_v50  ;;  %v1350_v3 = vadd.f32 %v1348_v47, %v1304_v30  ;;  %v7472_v20 = vld [vmem:[#allocation62_spill] sm:$0xff]  ;;  %s6343_s2 = sld [smem:[#allocation5 + $0xf7]] }
 0x217   : > { %v1828_v13 = vstv %s6064_s23  ;;  %v1572_v52 = vmul.f32 %v1570_v60, %v5447_v10  ;;  %v1749_v22 = vadd.f32 %v1747_v53, %v1723_v26  ;;  %v1835_v35 = vmul.f32 %v6876_v1, %v5480_v12  ;;  %s6385_s23 = sld [smem:[#allocation5 + $0x39]] }
 0x218   : > { %v1496_v5 = vadd.f32 %v1494_v51, %v1474_v9  ;;  %v1860_v8 = vstv %s6074_s18  ;;  %v1586_v14 = vmul.f32 %v5833_v28, %v1584_v46  ;;  %v1370_v47 = vadd.f32 %v1368_v16, %v1350_v3  ;;  %s6376_s18 = sld [smem:[#allocation5 + $0xf5]] }
 0x219   : > { %v1489_v9 = vadd.f32 %v7472_v20, %v7456_v36  ;;  %v1506_v51 = vstv %s6084_s25  ;;  %v1801_v10 = vadd.f32 %v1799_v43, %v1749_v22  ;;  %v1540_v53 = vstv %s6094_s10  ;;  %s6393_s25 = sld [smem:[#allocation5 + $0x33]] }
 0x21a   : > { %v1522_v30 = vadd.f32 %v1520_v48, %v1496_v5  ;;  %v1507_v60 = vmul.f32 %v5328_v55, %v1506_v51  ;;  %v1554_v26 = vstv %s6100_s21  ;;  %v1404_v1 = vadd.f32 %v1402_v44, %v1370_v47  ;;  %s6401_s10 = sld [smem:[#allocation5 + $0x31]] }
 0x21b   : > { %v7473_v16 = vstv %s5956_s24  ;;  %v1541_v20 = vmul.f32 %v1540_v53, %v5469_v21  ;;  %v1815_v43 = vadd.f32 %v1813_v58, %v1801_v10  ;;  %v1861_v55 = vmul.f32 %v5520_v61, %v1860_v8  ;;  %v2421_v44 = vld [vmem:[#allocation4 + $0x30] sm:$0xff]  ;;  %s6224_s24 = sld [smem:[#allocation5 + $0x7f]] }
 0x21c   : > { %v1574_v46 = vadd.f32 %v1572_v52, %v1522_v30  ;;  %v1608_v48 = vmul.f32 %v7473_v16, %v5497_v24  ;;  %v1509_v3 = vadd.f32 %v1507_v60, %v1489_v9  ;;  %v1555_v5 = vmul.f32 %v5523_v18, %v1554_v26  ;;  %v1446_v52 = vpop.permute.xlu1 %1445  ;;  %3259 = vmatprep.mubr.msk.f32.mxu0 %vm2439_vm9, %v2421_v44  ;;  %s6418_s21 = sld [smem:[#allocation5 + $0x79]] }
 0x21d   : > { %v1418_v22 = vadd.f32 %v1416_v2, %v1404_v1  ;;  %v7474_v47 = vstv %s5968_s13  ;;  %v1620_v16 = vstv %s6120_s9  ;;  %v1601_v58 = vmul.f32 %v1600_v7, %v5387_v27  ;;  %v7475_v1 = vld [vmem:[#allocation65_spill] sm:$0xff]  ;;  %s6241_s13 = sld [smem:[#allocation5 + $0x7d]] }
 0x21e   : > { %v1634_v21 = vmul.f32 %v5528_v29, %v7474_v47  ;;  %v1588_v30 = vadd.f32 %v1586_v14, %v1574_v46  ;;  %v6180_v18 = vmul.f32 %v1714_v40, %v5408_v62  ;;  %v1837_v9 = vadd.f32 %v1835_v35, %v1815_v43  ;;  %v1914_v35 = vpop.permute.xlu0 %1913  ;;  %v7478_v43 = vld [vmem:[#allocation69_spill] sm:$0xff]  ;;  %s6439_s9 = sld [smem:[#allocation5 + $0x73]] }
 0x21f   : > { %v1543_v10 = vadd.f32 %v1541_v20, %v1509_v3  ;;  %1440 = vst.msk [vmem:[#allocation4 + $0x38] sm:$0xff] %vm260_vm1, %v1418_v22  ;;  %v6188_v2 = vmul.f32 %v1828_v13, %v5480_v12  ;;  %v7476_v27 = vstv %s5986_s28  ;;  %v1654_v46 = vstv %s6136_s14  ;;  %s6265_s28 = sld [smem:[#allocation5 + $0xe1]] }
 0x220   : > { %v1686_v14 = vmul.f32 %v7476_v27, %v7475_v1  ;;  %v1610_v60 = vadd.f32 %v1608_v48, %v1588_v30  ;;  %1450 = vst.msk [vmem:[#allocation4 + $0x38] sm:$0xff] %vm954_vm8, %v1446_v52  ;;  %v1863_v62 = vadd.f32 %v1861_v55, %v1837_v9  ;;  %v7477_v20 = vstv %s5997_s5  ;;  %v7479_v52 = vld [vmem:[#allocation68_spill] sm:$0xff]  ;;  %s6274_s5 = sld [smem:[#allocation5 + $0x75]] }
 0x221   : > { %v1700_v3 = vmul.f32 %v7478_v43, %v7477_v20  ;;  %v1557_v44 = vadd.f32 %v1555_v5, %v1543_v10  ;;  %v1621_v12 = vmul.f32 %v5413_v11, %v1620_v16  ;;  %v1748_v48 = vmul.f32 %v5541_v59, %v1746_v63  ;;  %v7480_v30 = vld [vmem:[#allocation63_spill] sm:$0xff]  ;;  %s6444_s14 = sld [smem:[#allocation5 + $0x71]] }
 0x222   : > { %v6211_v22 = vmul.f32 %v7479_v52, %v1812_v50  ;;  %v1636_v55 = vadd.f32 %v1634_v21, %v1610_v60  ;;  %v1668_v47 = vstv %s6148_s6  ;;  %1909 = vst.msk [vmem:[#allocation4 + $0x40] sm:$0xff] %vm260_vm1, %v1863_v62  ;;  %v6218_v11 = vmul.f32 %v5554_v19, %v1860_v8  ;;  %v7481_v9 = vld [vmem:[#allocation76_spill] sm:$0xff]  ;;  %s6446_s6 = sld [smem:[#allocation5 + $0xbb]] }
 0x223   : > { %v1603_v5 = vadd.f32 %v1601_v58, %v1557_v44  ;;  %v1655_v59 = vmul.f32 %v1654_v46, %v7480_v30  ;;  %v1734_v63 = vstv %s6153_s15  ;;  %1919 = vst.msk [vmem:[#allocation4 + $0x40] sm:$0xff] %vm954_vm8, %v1914_v35  ;;  %v1602_v50 = vmul.f32 %v1600_v7, %v5497_v24  ;;  %v7482_v7 = vld [vmem:[#allocation87_spill] sm:$0xff]  ;;  %s6468_s15 = sld [smem:[#allocation5 + $0xb9]] }
 0x224   : > { %v1688_v21 = vadd.f32 %v1686_v14, %v1636_v55  ;;  %v1722_v19 = vmul.f32 %v1720_v49, %v7481_v9  ;;  %v1768_v8 = vstv %s6161_s1  ;;  %v1669_v10 = vmul.f32 %v5610_v4, %v1668_v47  ;;  %v7486_v44 = vld [vmem:[#allocation66_spill] sm:$0xff]  ;;  %s6485_s1 = sld [smem:[#allocation5 + $0xb3]] }
 0x225   : > { %v1623_v58 = vadd.f32 %v1621_v12, %v1603_v5  ;;  %v1782_v1 = vstv %s6167_s3  ;;  %v1508_v27 = vmul.f32 %v5452_v54, %v1506_v51  ;;  %v7483_v14 = vstv %s6033_s30  ;;  %v7485_v54 = vld [vmem:[#allocation64_spill] sm:$0xff]  ;;  %s6320_s30 = sld [smem:[#allocation5 + $0xb5]] }
 0x226   : > { %v1702_v24 = vadd.f32 %v1700_v3, %v1688_v21  ;;  %v1800_v60 = vmul.f32 %v7483_v14, %v7482_v7  ;;  %v7484_v49 = vstv %s6057_s17  ;;  %v1735_v35 = vmul.f32 %v5462_v56, %v1734_v63  ;;  %v7487_v56 = vld [vmem:[#allocation120_spill] sm:$0xff]  ;;  %v2049_v7 = vld [vmem:[#allocation3 + $0x30] sm:$0xff]  ;;  %s6336_s17 = sld [smem:[#allocation5 + $0xfd]] }
 0x227   : > { %v1836_v62 = vmul.f32 %v7484_v49, %v5599_v23  ;;  %v1657_v20 = vadd.f32 %v1655_v59, %v1623_v58  ;;  %v1769_v4 = vmul.f32 %v1768_v8, %v5601_v39  ;;  %v1490_v51 = vadd.f32 %v7485_v54, %v7456_v36  ;;  %v7488_v36 = vld [vmem:[#allocation60_spill] sm:$0xff]  ;;  %v2422_v30 = vld [vmem:[#allocation4 + $0x38] sm:$0xff]  ;;  %s6490_s3 = sld [smem:[#allocation5 + $0xb1]] }
 0x228   : > { %v1542_v3 = vmul.f32 %v1540_v53, %v7486_v44  ;;  %v1724_v12 = vadd.f32 %v1722_v19, %v1702_v24  ;;  %v1783_v55 = vmul.f32 %v5669_v25, %v1782_v1  ;;  %v1556_v39 = vmul.f32 %v5635_v17, %v1554_v26  ;;  %3260 = vmatmul.mubr.msk.f32.gmra.mxu0 %vm2439_vm9, %v2422_v30  ;;  %v6280_v17 = vld [vmem:[#allocation3 + $0x1] sm:$0xff] }
 0x229   : > { %v1941_v5 = vadd.f32 %v7488_v36, %v7487_v56  ;;  %v1671_v53 = vadd.f32 %v1669_v10, %v1657_v20  ;;  %v1510_v59 = vadd.f32 %v1508_v27, %v1490_v51  ;;  %v1952_v21 = vstv %s6194_s22  ;;  %v6292_v54 = vld [vmem:[#allocation2 + $0x1] sm:$0xff]  ;;  %s6539_s22 = sld [smem:[#allocation5 + $0xf3]] }
 0x22a   : > { %v1974_v9 = vstv %s6203_s11  ;;  %v1750_v25 = vadd.f32 %v1748_v48, %v1724_v12  ;;  %v1953_v19 = vmul.f32 %v5973_v38, %v1952_v21  ;;  %v2000_v58 = vstv %s6214_s16  ;;  %v2423_v48 = vld [vmem:[#allocation4 + $0x40] sm:$0xff]  ;;  %s6552_s11 = sld [smem:[#allocation5 + $0xf1]] }
 0x22b   : > { %v1975_v26 = vmul.f32 %v6280_v17, %v1974_v9  ;;  %v1717_v10 = vadd.f32 %v6180_v18, %v1671_v53  ;;  %v1848_v27 = vstv %s6182_s8  ;;  %v1544_v24 = vadd.f32 %v1542_v3, %v1510_v59  ;;  %3262 = vmatprep.mubr.msk.f32.mxu0 %vm2439_vm9, %v2423_v48  ;;  %s6501_s8 = sld [smem:[#allocation5 + $0xfb]] }
 0x22c   : > { %v2052_v14 = vstv %s6224_s24  ;;  %v1802_v38 = vadd.f32 %v1800_v60, %v1750_v25  ;;  %v1882_v49 = vstv %s6234_s7  ;;  %v1955_v20 = vadd.f32 %v1953_v19, %v1941_v5  ;;  %v3431_v19 = vld [vmem:[#allocation3 + $0x69] sm:$0xff]  ;;  %s7492_s7 = sld [smem:[#allocation158_spill]] }
 0x22d   : > { %v2001_v18 = vmul.f32 %v6292_v54, %v2000_v58  ;;  %v1737_v51 = vadd.f32 %v1735_v35, %v1717_v10  ;;  %v1622_v44 = vmul.f32 %v5528_v29, %v1620_v16  ;;  %v1558_v3 = vadd.f32 %v1556_v39, %v1544_v24 }
 0x22e   : > { %v2066_v12 = vstv %s6241_s13  ;;  %v1816_v60 = vadd.f32 %v6211_v22, %v1802_v38  ;;  %v1849_v36 = vmul.f32 %v5520_v61, %v1848_v27  ;;  %v1977_v5 = vadd.f32 %v1975_v26, %v1955_v20 }
 0x22f   : > { %v2053_v30 = vmul.f32 %v2052_v14, %v2049_v7  ;;  %v1771_v53 = vadd.f32 %v1769_v4, %v1737_v51  ;;  %v1604_v35 = vadd.f32 %v1602_v50, %v1558_v3  ;;  %v1656_v29 = vmul.f32 %v1654_v46, %v5650_v41  ;;  %v6325_v46 = vld [vmem:[#allocation3 + $0x31] sm:$0xff]  ;;  %v2163_v7 = vld [vmem:[#allocation3 + $0x60] sm:$0xff] }
 0x230   : > { %v2088_v16 = vstv %s6260_s29  ;;  %v1838_v39 = vadd.f32 %v1836_v62, %v1816_v60  ;;  %v1896_v59 = vstv %s6265_s28  ;;  %v2003_v22 = vadd.f32 %v2001_v18, %v1977_v5  ;;  %v1916_v62 = vpop.permute.xlu1 %1915 }
 0x231   : > { %v2067_v61 = vmul.f32 %v6014_v57, %v2066_v12  ;;  %v1785_v25 = vadd.f32 %v1783_v55, %v1771_v53  ;;  %v1670_v50 = vmul.f32 %v5686_v0, %v1668_v47  ;;  %v1624_v41 = vadd.f32 %v1622_v44, %v1604_v35  ;;  %v3434_v44 = vld [vmem:[#allocation2 + $0x39] sm:$0xff] }
 0x232   : > { %v2114_v4 = vstv %s6274_s5  ;;  %v1716_v57 = vmul.f32 %v3431_v19, %v1714_v40  ;;  %v1864_v26 = vadd.f32 %v6218_v11, %v1838_v39  ;;  %v2055_v55 = vadd.f32 %v2053_v30, %v2003_v22  ;;  %v3432_v40 = vld [vmem:[#allocation3 + $0x8] sm:$0xff] }
 0x233   : > { %v2089_v0 = vmul.f32 %v2088_v16, %v6325_v46  ;;  %v1831_v47 = vadd.f32 %v6188_v2, %v1785_v25  ;;  %v1883_v10 = vmul.f32 %v1882_v49, %v5694_v32  ;;  %v1658_v24 = vadd.f32 %v1656_v29, %v1624_v41  ;;  %v6351_v32 = vld [vmem:[#allocation2 + $0x19] sm:$0xff] }
 0x234   : > { %v2166_v48 = vstv %s6289_s4  ;;  %v7489_v11 = vstv %s5188_s19  ;;  %1910 = vst.msk [vmem:[#allocation4 + $0x48] sm:$0xff] %vm260_vm1, %v1864_v26  ;;  %v1897_v2 = vmul.f32 %v5738_v15, %v1896_v59  ;;  %v2069_v20 = vadd.f32 %v2067_v61, %v2055_v55  ;;  %s6359_s19 = sld [smem:[#allocation5 + $0x7b]]  ;;  %v2277_v55 = vld [vmem:[#allocation3 + $0x90] sm:$0xff] }
 0x235   : > { %v1940_v38 = vmul.f32 %v3432_v40, %v7489_v11  ;;  %v2115_v18 = vmul.f32 %v6351_v32, %v2114_v4  ;;  %1920 = vst.msk [vmem:[#allocation4 + $0x48] sm:$0xff] %vm954_vm8, %v1916_v62  ;;  %v1851_v51 = vadd.f32 %v1849_v36, %v1831_v47  ;;  %v1736_v3 = vmul.f32 %v3434_v44, %v1734_v63  ;;  %v2050_v40 = vld [vmem:[#allocation3 + $0x38] sm:$0xff] }
 0x236   : > { %v1672_v60 = vadd.f32 %v1670_v50, %v1658_v24  ;;  %v2180_v15 = vstv %s6302_s0  ;;  %v7490_v5 = vstv %s5223_s12  ;;  %v1830_v53 = vmul.f32 %v1828_v13, %v5599_v23  ;;  %v6387_v50 = vld [vmem:[#allocation3 + $0x61] sm:$0xff]  ;;  %v6413_v24 = vld [vmem:[#allocation2 + $0x31] sm:$0xff]  ;;  %s7494_s0 = sld [smem:[#allocation159_spill]] }
 0x237   : > { %v6365_v30 = vmul.f32 %v6280_v17, %v7490_v5  ;;  %v2091_v35 = vadd.f32 %v2089_v0, %v2069_v20  ;;  %v2167_v29 = vmul.f32 %v2166_v48, %v2163_v7  ;;  %v1885_v36 = vadd.f32 %v1883_v10, %v1851_v51 }
 0x238   : > { %v1718_v39 = vadd.f32 %v1716_v57, %v1672_v60  ;;  %v1770_v63 = vmul.f32 %v1768_v8, %v5723_v42  ;;  %v2202_v22 = vstv %s6314_s20  ;;  %v1784_v17 = vmul.f32 %v5741_v45, %v1782_v1  ;;  %v1926_v42 = vpop.permute.xlu0 %1925 }
 0x239   : > { %v2117_v23 = vadd.f32 %v2115_v18, %v2091_v35  ;;  %v2181_v13 = vmul.f32 %v6079_v37, %v2180_v15  ;;  %v1942_v61 = vadd.f32 %v1940_v38, %v7487_v56  ;;  %v1899_v25 = vadd.f32 %v1897_v2, %v1885_v36  ;;  %v3435_v37 = vld [vmem:[#allocation2 + $0x51] sm:$0xff]  ;;  %v3438_v2 = vld [vmem:[#allocation3 + $0x9] sm:$0xff] }
 0x23a   : > { %v1738_v8 = vadd.f32 %v1736_v3, %v1718_v39  ;;  %v2228_v41 = vstv %s6320_s30  ;;  %v1954_v45 = vmul.f32 %v6089_v34, %v1952_v21  ;;  %v1850_v1 = vmul.f32 %v3435_v37, %v1848_v27 }
 0x23b   : > { %v2169_v62 = vadd.f32 %v2167_v29, %v2117_v23  ;;  %v2203_v19 = vmul.f32 %v2202_v22, %v6387_v50  ;;  %v2280_v57 = vstv %s6328_s27  ;;  %1921 = vst.msk [vmem:[#allocation4 + $0x50] sm:$0xff] %vm260_vm1, %v1899_v25  ;;  %v2294_v34 = vstv %s6336_s17  ;;  %v2164_v25 = vld [vmem:[#allocation3 + $0x68] sm:$0xff] }
 0x23c   : > { %v1772_v26 = vadd.f32 %v1770_v63, %v1738_v8  ;;  %v2316_v21 = vstv %s6343_s2  ;;  %v1956_v0 = vadd.f32 %v1954_v45, %v1942_v61  ;;  %1931 = vst.msk [vmem:[#allocation4 + $0x50] sm:$0xff] %vm954_vm8, %v1926_v42  ;;  %v1898_v27 = vmul.f32 %v5761_v31, %v1896_v59  ;;  %v2424_v11 = vld [vmem:[#allocation4 + $0x48] sm:$0xff]  ;;  %v6421_v59 = vld [vmem:[#allocation3 + $0x91] sm:$0xff]  ;;  %v6454_v63 = vld [vmem:[#allocation3 + $0x39] sm:$0xff] }
 0x23d   : > { %v1884_v47 = vmul.f32 %v1882_v49, %v5769_v33  ;;  %v2183_v10 = vadd.f32 %v2181_v13, %v2169_v62  ;;  %v2229_v7 = vmul.f32 %v6413_v24, %v2228_v41  ;;  %v2082_v31 = vstv %s6359_s19  ;;  %v6423_v33 = vld [vmem:[#allocation2 + $0x9] sm:$0xff]  ;;  %3263 = vmatmul.mubr.msk.f32.gmra.mxu0 %vm2439_vm9, %v2424_v11 }
 0x23e   : > { %v1786_v38 = vadd.f32 %v1784_v17, %v1772_v26  ;;  %v2002_v49 = vmul.f32 %v6423_v33, %v2000_v58  ;;  %v1976_v20 = vmul.f32 %v3438_v2, %v1974_v9  ;;  %v2281_v51 = vmul.f32 %v2280_v57, %v2277_v55  ;;  %v3440_v45 = vld [vmem:[#allocation2 + $0x2] sm:$0xff]  ;;  %v1928_v55 = vpop.permute.xlu1 %1927 }
 0x23f   : > { %v2205_v18 = vadd.f32 %v2203_v19, %v2183_v10  ;;  %v2295_v44 = vmul.f32 %v6126_v6, %v2294_v34  ;;  %v2317_v3 = vmul.f32 %v2316_v21, %v6421_v59  ;;  %v2342_v60 = vstv %s6376_s18  ;;  %v6473_v62 = vld [vmem:[#allocation2 + $0x49] sm:$0xff] }
 0x240   : > { %v1832_v58 = vadd.f32 %v1830_v53, %v1786_v38  ;;  %v1978_v9 = vadd.f32 %v1976_v20, %v1956_v0  ;;  %v2054_v5 = vmul.f32 %v2052_v14, %v2050_v40  ;;  %v2068_v35 = vmul.f32 %v5833_v28, %v2066_v12  ;;  %v3439_v28 = vld [vmem:[#allocation3 + $0x2] sm:$0xff]  ;;  %v2133_v38 = vld [vmem:[#allocation3 + $0x32] sm:$0xff] }
 0x241   : > { %v2231_v6 = vadd.f32 %v2229_v7, %v2205_v18  ;;  %v1971_v29 = vadd.f32 %v6365_v30, %v7487_v56  ;;  %v1988_v36 = vstv %s6385_s23  ;;  %v2022_v17 = vstv %s6393_s25 }
 0x242   : > { %v1852_v53 = vadd.f32 %v1850_v1, %v1832_v58  ;;  %v2004_v39 = vadd.f32 %v2002_v49, %v1978_v9  ;;  %v1989_v14 = vmul.f32 %v6292_v54, %v1988_v36  ;;  %v2090_v13 = vmul.f32 %v2088_v16, %v6454_v63  ;;  %v2396_v58 = vpop.permute.xlu0 %2395 }
 0x243   : > { %v2283_v23 = vadd.f32 %v2281_v51, %v2231_v6  ;;  %v2023_v12 = vmul.f32 %v3439_v28, %v2022_v17  ;;  %v2036_v30 = vstv %s6401_s10  ;;  %v2425_v54 = vld [vmem:[#allocation4 + $0x50] sm:$0xff]  ;;  %v2083_v16 = vmul.f32 %v2082_v31, %v6325_v46 }
 0x244   : > { %v1886_v61 = vadd.f32 %v1884_v47, %v1852_v53  ;;  %v2056_v42 = vadd.f32 %v2054_v5, %v2004_v39  ;;  %v1991_v8 = vadd.f32 %v1989_v14, %v1971_v29  ;;  %v2037_v37 = vmul.f32 %v3440_v45, %v2036_v30  ;;  %3265 = vmatprep.mubr.msk.f32.mxu0 %vm2439_vm9, %v2425_v54  ;;  %v6480_v47 = vld [vmem:[#allocation2 + $0x21] sm:$0xff]  ;;  %v6506_v6 = vld [vmem:[#allocation3 + $0x69] sm:$0xff]  ;;  %v2278_v29 = vld [vmem:[#allocation3 + $0x98] sm:$0xff] }
 0x245   : > { %v2297_v1 = vadd.f32 %v2295_v44, %v2283_v23  ;;  %v2343_v19 = vmul.f32 %v6473_v62, %v2342_v60  ;;  %v2102_v26 = vstv %s6418_s21  ;;  %v2116_v46 = vmul.f32 %v6480_v47, %v2114_v4  ;;  %v3443_v53 = vld [vmem:[#allocation2 + $0x1a] sm:$0xff]  ;;  %v3445_v45 = vld [vmem:[#allocation3 + $0xa] sm:$0xff]  ;;  %s7493_s21 = sld [smem:[#allocation12_spill]] }
 0x246   : > { %v1900_v0 = vadd.f32 %v1898_v27, %v1886_v61  ;;  %v2070_v10 = vadd.f32 %v2068_v35, %v2056_v42  ;;  %v2025_v7 = vadd.f32 %v2023_v12, %v1991_v8  ;;  %v2168_v11 = vmul.f32 %v2166_v48, %v2164_v25  ;;  %v3446_v54 = vld [vmem:[#allocation2 + $0xa] sm:$0xff] }
 0x247   : > { %v2319_v40 = vadd.f32 %v2317_v3, %v2297_v1  ;;  %v2136_v49 = vstv %s6439_s9  ;;  %v2103_v4 = vmul.f32 %v6351_v32, %v2102_v26  ;;  %v2150_v18 = vstv %s6444_s14 }
 0x248   : > { %1922 = vst.msk [vmem:[#allocation4 + $0x58] sm:$0xff] %vm260_vm1, %v1900_v0  ;;  %v2092_v27 = vadd.f32 %v2090_v13, %v2070_v10  ;;  %v2039_v20 = vadd.f32 %v2037_v37, %v2025_v7  ;;  %v7491_v51 = vstv %s5223_s12  ;;  %v2196_v48 = vstv %s6446_s6  ;;  %s6516_s12 = sld [smem:[#allocation5 + $0xf9]]  ;;  %v6526_v13 = vld [vmem:[#allocation2 + $0x39] sm:$0xff] }
 0x249   : > { %v1970_v44 = vmul.f32 %v3438_v2, %v7491_v51  ;;  %1932 = vst.msk [vmem:[#allocation4 + $0x58] sm:$0xff] %vm954_vm8, %v1928_v55  ;;  %v2345_v3 = vadd.f32 %v2343_v19, %v2319_v40  ;;  %v2182_v9 = vmul.f32 %v7478_v43, %v2180_v15  ;;  %v2137_v2 = vmul.f32 %v2136_v49, %v2133_v38  ;;  %v2308_v0 = vld [vmem:[#allocation3 + $0x99] sm:$0xff] }
 0x24a   : > { %v2118_v5 = vadd.f32 %v2116_v46, %v2092_v27  ;;  %v2085_v32 = vadd.f32 %v2083_v16, %v2039_v20  ;;  %v2204_v35 = vmul.f32 %v2202_v22, %v6506_v6  ;;  %v2151_v39 = vmul.f32 %v3443_v53, %v2150_v18  ;;  %v3447_v40 = vld [vmem:[#allocation2 + $0x32] sm:$0xff] }
 0x24b   : > { %2391 = vst.msk [vmem:[#allocation4 + $0x60] sm:$0xff] %vm260_vm1, %v2345_v3  ;;  %v2216_v14 = vstv %s6468_s15  ;;  %v1990_v23 = vmul.f32 %v6423_v33, %v1988_v36  ;;  %v2197_v22 = vmul.f32 %v2196_v48, %v6387_v50  ;;  %v2230_v28 = vmul.f32 %v6526_v13, %v2228_v41  ;;  %v2247_v36 = vld [vmem:[#allocation3 + $0x62] sm:$0xff]  ;;  %s3177_s28 = sshll.u32 %s7493_s21, 7 }
 0x24c   : > { %2401 = vst.msk [vmem:[#allocation4 + $0x60] sm:$0xff] %vm954_vm8, %v2396_v58  ;;  %v2170_v43 = vadd.f32 %v2168_v11, %v2118_v5  ;;  %v2105_v15 = vadd.f32 %v2103_v4, %v2085_v32  ;;  %v2282_v61 = vmul.f32 %v2280_v57, %v2278_v29  ;;  %v1972_v42 = vadd.f32 %v1970_v44, %v7487_v56  ;;  %v3448_v4 = vld [vmem:[#allocation2 + $0x51] sm:$0xff]  ;;  %s6671_s20 = scalar_lea.vmem %s7494_s0, %s3177_s28 }
 0x24d   : > { %v2217_v33 = vmul.f32 %v6413_v24, %v2216_v14  ;;  %v2250_v50 = vstv %s6485_s1  ;;  %v2264_v8 = vstv %s6490_s3  ;;  %v2024_v41 = vmul.f32 %v3445_v45, %v2022_v17  ;;  %v2361_v32 = vld [vmem:[#allocation3 + $0x92] sm:$0xff] }
 0x24e   : > { %v2184_v12 = vadd.f32 %v2182_v9, %v2170_v43  ;;  %v2139_v25 = vadd.f32 %v2137_v2, %v2105_v15  ;;  %v2038_v56 = vmul.f32 %v3446_v54, %v2036_v30  ;;  %v1992_v16 = vadd.f32 %v1990_v23, %v1972_v42  ;;  %v2248_v23 = vld [vmem:[#allocation3 + $0x6a] sm:$0xff] }
 0x24f   : > { %v2310_v24 = vstv %s6501_s8  ;;  %v2296_v19 = vmul.f32 %v7479_v52, %v2294_v34  ;;  %v2084_v55 = vmul.f32 %v2082_v31, %v6454_v63  ;;  %v2251_v30 = vmul.f32 %v2250_v50, %v2247_v36  ;;  %v2134_v31 = vld [vmem:[#allocation3 + $0x3a] sm:$0xff] }
 0x250   : > { %v2206_v37 = vadd.f32 %v2204_v35, %v2184_v12  ;;  %v2153_v57 = vadd.f32 %v2151_v39, %v2139_v25  ;;  %v2426_v1 = vld [vmem:[#allocation4 + $0x58] sm:$0xff]  ;;  %v2026_v10 = vadd.f32 %v2024_v41, %v1992_v16  ;;  %v2318_v7 = vmul.f32 %v2316_v21, %v2308_v0  ;;  %v3449_v35 = vld [vmem:[#allocation2 + $0x22] sm:$0xff]  ;;  %v2398_v39 = vpop.permute.xlu1 %2397 }
 0x251   : > { %3266 = vmatmul.mubr.msk.f32.gmra.mxu0 %vm2439_vm9, %v2426_v1  ;;  %v2265_v52 = vmul.f32 %v3447_v40, %v2264_v8  ;;  %v2330_v34 = vstv %s6516_s12  ;;  %v2104_v27 = vmul.f32 %v6480_v47, %v2102_v26  ;;  %v2311_v21 = vmul.f32 %v2310_v24, %v6421_v59  ;;  %v3451_v36 = vld [vmem:[#allocation2 + $0x3a] sm:$0xff]  ;;  %v3452_v1 = vld [vmem:[#allocation2 + $0x52] sm:$0xff] }
 0x252   : > { %v2232_v17 = vadd.f32 %v2230_v28, %v2206_v37  ;;  %v2199_v46 = vadd.f32 %v2197_v22, %v2153_v57  ;;  %v2040_v20 = vadd.f32 %v2038_v56, %v2026_v10  ;;  %v2344_v51 = vmul.f32 %v3448_v4, %v2342_v60  ;;  %v3450_v28 = vld [vmem:[#allocation2 + $0x4a] sm:$0xff]  ;;  %v2633_v10 = vld [vmem:[%s7492_s7] sm:$0xff] }
 0x253   : > { %v2427_v63 = vld [vmem:[#allocation4 + $0x60] sm:$0xff]  ;;  %v2138_v9 = vmul.f32 %v2136_v49, %v2134_v31  ;;  %v2331_v5 = vmul.f32 %v6473_v62, %v2330_v34  ;;  %v2364_v26 = vstv %s6539_s22  ;;  %v2152_v29 = vmul.f32 %v3449_v35, %v2150_v18 }
 0x254   : > { %v2284_v11 = vadd.f32 %v2282_v61, %v2232_v17  ;;  %v2219_v38 = vadd.f32 %v2217_v33, %v2199_v46  ;;  %3268 = vmatprep.mubr.msk.f32.mxu0 %vm2439_vm9, %v2427_v63  ;;  %v2086_v58 = vadd.f32 %v2084_v55, %v2040_v20  ;;  %v2198_v53 = vmul.f32 %v2196_v48, %v6506_v6  ;;  %v2408_v33 = vpop.permute.xlu0 %2407  ;;  %v2641_v35 = vld [vmem:[%s7492_s7 + $0x40] sm:$0xff] }
 0x255   : > { %v2378_v60 = vstv %s6552_s11  ;;  %v2365_v49 = vmul.f32 %v2364_v26, %v2361_v32  ;;  %v2218_v18 = vmul.f32 %v6526_v13, %v2216_v14  ;;  %v2252_v25 = vmul.f32 %v2250_v50, %v2248_v23  ;;  %v2362_v14 = vld [vmem:[#allocation3 + $0x9a] sm:$0xff]  ;;  %v2639_v32 = vld [vmem:[%s7492_s7 + $0x30] sm:$0xff] }
 0x256   : > { %v2298_v44 = vadd.f32 %v2296_v19, %v2284_v11  ;;  %v2253_v3 = vadd.f32 %v2251_v30, %v2219_v38  ;;  %v2106_v59 = vadd.f32 %v2104_v27, %v2086_v58  ;;  %v2379_v12 = vmul.f32 %v3450_v28, %v2378_v60  ;;  %v2637_v30 = vld [vmem:[%s7492_s7 + $0x20] sm:$0xff] }
 0x257   : > { %v2266_v45 = vmul.f32 %v3451_v36, %v2264_v8  ;;  %v2312_v37 = vmul.f32 %v2310_v24, %v2308_v0  ;;  %v2332_v13 = vmul.f32 %v3448_v4, %v2330_v34  ;;  %v2366_v50 = vmul.f32 %v2364_v26, %v2362_v14  ;;  %v2410_v24 = vpop.permute.xlu1 %2409  ;;  %3312 = vmatprep.mubr.f32.mxu1 %v2637_v30  ;;  %v2635_v26 = vld [vmem:[%s7492_s7 + $0x10] sm:$0xff] }
 0x258   : > { %v2320_v47 = vadd.f32 %v2318_v7, %v2298_v44  ;;  %v2267_v2 = vadd.f32 %v2265_v52, %v2253_v3  ;;  %v2140_v62 = vadd.f32 %v2138_v9, %v2106_v59  ;;  %v2380_v19 = vmul.f32 %v3452_v1, %v2378_v60  ;;  %v2638_v9 = vld [vmem:[%s7492_s7 + $0x28] sm:$0xff]  ;;  %v2643_v59 = vld [vmem:[%s7492_s7 + $0x50] sm:$0xff]  ;;  %v2645_v60 = vld [vmem:[%s7492_s7 + $0x60] sm:$0xff] }
 0x25a   : > { %v2346_v43 = vadd.f32 %v2344_v51, %v2320_v47  ;;  %v2313_v15 = vadd.f32 %v2311_v21, %v2267_v2  ;;  %v2154_v61 = vadd.f32 %v2152_v29, %v2140_v62  ;;  %v2640_v47 = vld [vmem:[%s7492_s7 + $0x38] sm:$0xff]  ;;  %v2642_v29 = vld [vmem:[%s7492_s7 + $0x48] sm:$0xff] }
 0x25b   : > { %v2636_v2 = vld [vmem:[%s7492_s7 + $0x18] sm:$0xff] }
 0x25c   : > { %2392 = vst.msk [vmem:[#allocation4 + $0x68] sm:$0xff] %vm260_vm1, %v2346_v43  ;;  %v2333_v22 = vadd.f32 %v2331_v5, %v2313_v15  ;;  %v2200_v6 = vadd.f32 %v2198_v53, %v2154_v61  ;;  %v2634_v5 = vld [vmem:[%s7492_s7 + $0x8] sm:$0xff]  ;;  %v2644_v53 = vld [vmem:[%s7492_s7 + $0x58] sm:$0xff]  ;;  %v2647_v43 = vld [vmem:[%s7492_s7 + $0x70] sm:$0xff] }
 0x25d   : > { %2402 = vst.msk [vmem:[#allocation4 + $0x68] sm:$0xff] %vm954_vm8, %v2398_v39  ;;  %v2646_v39 = vld [vmem:[%s7492_s7 + $0x68] sm:$0xff]  ;;  %v2648_v15 = vld [vmem:[%s7492_s7 + $0x78] sm:$0xff] }
 0x25e   : > { %v2367_v48 = vadd.f32 %v2365_v49, %v2333_v22  ;;  %v2220_v41 = vadd.f32 %v2218_v18, %v2200_v6 }
 0x260   : > { %v2381_v42 = vadd.f32 %v2379_v12, %v2367_v48  ;;  %v2254_v57 = vadd.f32 %v2252_v25, %v2220_v41 }
 0x262   : > { %2403 = vst.msk [vmem:[#allocation4 + $0x70] sm:$0xff] %vm260_vm1, %v2381_v42  ;;  %v2268_v54 = vadd.f32 %v2266_v45, %v2254_v57 }
 0x263   : > { %2413 = vst.msk [vmem:[#allocation4 + $0x70] sm:$0xff] %vm954_vm8, %v2408_v33 }
 0x264   : > { %v2428_v56 = vld [vmem:[#allocation4 + $0x68] sm:$0xff]  ;;  %v2314_v16 = vadd.f32 %v2312_v37, %v2268_v54 }
 0x265   : > { %3269 = vmatmul.mubr.msk.f32.gmra.mxu0 %vm2439_vm9, %v2428_v56 }
 0x266   : > { %v2334_v55 = vadd.f32 %v2332_v13, %v2314_v16 }
 0x268   : > { %v2368_v17 = vadd.f32 %v2366_v50, %v2334_v55 }
 0x26a   : > { %v2429_v8 = vld [vmem:[#allocation4 + $0x70] sm:$0xff]  ;;  %v2382_v0 = vadd.f32 %v2380_v19, %v2368_v17 }
 0x26b   : > { %3271 = vmatprep.mubr.msk.f32.mxu0 %vm2439_vm9, %v2429_v8 }
 0x26c   : > { %2404 = vst.msk [vmem:[#allocation4 + $0x78] sm:$0xff] %vm260_vm1, %v2382_v0 }
 0x26d   : > { %2414 = vst.msk [vmem:[#allocation4 + $0x78] sm:$0xff] %vm954_vm8, %v2410_v24 }
 0x274   : > { %v2430_v46 = vld [vmem:[#allocation4 + $0x78] sm:$0xff] }
 0x275   : > { %3272 = vmatmul.mubr.msk.f32.gmra.mxu0 %vm2439_vm9, %v2430_v46 }
 0x276   : > { %3306 = vmatprep.mubr.f32.mxu0 %v2633_v10 }
 0x2a7   : > { %v6601_v7 = vpop.f32.mrf.mxu0 }
 0x2a9   : > { %v6603_v40 = vpop.f32.mrf.mxu0 }
 0x2bc   : > { %v6605_v52 = vpop.f32.mrf.mxu0 }
 0x2be   : > { %v6607_v34 = vpop.f32.mrf.mxu0 }
 0x2d4   : > { %v3258_v31 = vpop.f32.mrf.mxu0 }
 0x2d6   : > { %v2574_v63 = vpop.f32.mrf.mxu0 }
 0x2e8   : > { %v3261_v11 = vpop.f32.mrf.mxu0 }
 0x2ea   : > { %v2584_v38 = vpop.f32.mrf.mxu0 }
 0x2fd   : > { %v3264_v27 = vpop.f32.mrf.mxu0 }
 0x2ff   : > { %v2594_v20 = vpop.f32.mrf.mxu0 }
 0x311   : > { %v3267_v21 = vpop.f32.mrf.mxu0 }
 0x313   : > { %v2604_v4 = vpop.f32.mrf.mxu0 }
 0x325   : > { %v3270_v51 = vpop.f32.mrf.mxu0 }
 0x327   : > { %v2614_v44 = vpop.f32.mrf.mxu0 }
 0x335   : > { %v3273_v3 = vpop.f32.mrf.mxu0 }
 0x336   : > { %3274 = vmatprep.subr.mxu0 %v3273_v3  ;;  %3330 = vmatprep.subr.mxu1 %v3273_v3 }
 0x337   : > { %v2624_v58 = vpop.f32.mrf.mxu0  ;;  %3275 = vmatpush3.msra.mxu0 %v3273_v3  ;;  %3346 = vmatpush3.msra.mxu1 %v3273_v3 }
 0x338   : > { %3276 = vmatprep.subr.mxu0 %v2624_v58  ;;  %3331 = vmatprep.subr.mxu1 %v2624_v58 }
 0x339   : > { %3277 = vmatpush3.msra.mxu0 %v2624_v58  ;;  %3347 = vmatpush3.msra.mxu1 %v2624_v58 }
 0x33a   : > { %3278 = vmatprep.subr.mxu0 %v3270_v51  ;;  %3332 = vmatprep.subr.mxu1 %v3270_v51 }
 0x33b   : > { %3279 = vmatpush3.msra.mxu0 %v3270_v51  ;;  %3348 = vmatpush3.msra.mxu1 %v3270_v51 }
 0x33c   : > { %3280 = vmatprep.subr.mxu0 %v2614_v44  ;;  %3333 = vmatprep.subr.mxu1 %v2614_v44 }
 0x33d   : > { %3281 = vmatpush3.msra.mxu0 %v2614_v44  ;;  %3349 = vmatpush3.msra.mxu1 %v2614_v44 }
 0x33e   : > { %3282 = vmatprep.subr.mxu0 %v3267_v21  ;;  %3334 = vmatprep.subr.mxu1 %v3267_v21 }
 0x33f   : > { %3283 = vmatpush3.msra.mxu0 %v3267_v21  ;;  %3350 = vmatpush3.msra.mxu1 %v3267_v21 }
 0x340   : > { %3284 = vmatprep.subr.mxu0 %v2604_v4  ;;  %3335 = vmatprep.subr.mxu1 %v2604_v4 }
 0x341   : > { %3285 = vmatpush3.msra.mxu0 %v2604_v4  ;;  %3351 = vmatpush3.msra.mxu1 %v2604_v4 }
 0x342   : > { %3286 = vmatprep.subr.mxu0 %v3264_v27  ;;  %3336 = vmatprep.subr.mxu1 %v3264_v27 }
 0x343   : > { %3287 = vmatpush3.msra.mxu0 %v3264_v27  ;;  %3352 = vmatpush3.msra.mxu1 %v3264_v27 }
 0x344   : > { %3288 = vmatprep.subr.mxu0 %v2594_v20  ;;  %3337 = vmatprep.subr.mxu1 %v2594_v20 }
 0x345   : > { %3289 = vmatpush3.msra.mxu0 %v2594_v20  ;;  %3353 = vmatpush3.msra.mxu1 %v2594_v20 }
 0x346   : > { %3290 = vmatprep.subr.mxu0 %v3261_v11  ;;  %3338 = vmatprep.subr.mxu1 %v3261_v11 }
 0x347   : > { %3291 = vmatpush3.msra.mxu0 %v3261_v11  ;;  %3354 = vmatpush3.msra.mxu1 %v3261_v11 }
 0x348   : > { %3292 = vmatprep.subr.mxu0 %v2584_v38  ;;  %3339 = vmatprep.subr.mxu1 %v2584_v38 }
 0x349   : > { %3293 = vmatpush3.msra.mxu0 %v2584_v38  ;;  %3355 = vmatpush3.msra.mxu1 %v2584_v38 }
 0x34a   : > { %3294 = vmatprep.subr.mxu0 %v3258_v31  ;;  %3340 = vmatprep.subr.mxu1 %v3258_v31 }
 0x34b   : > { %3295 = vmatpush3.msra.mxu0 %v3258_v31  ;;  %3356 = vmatpush3.msra.mxu1 %v3258_v31 }
 0x34c   : > { %3296 = vmatprep.subr.mxu0 %v2574_v63  ;;  %3341 = vmatprep.subr.mxu1 %v2574_v63 }
 0x34d   : > { %3297 = vmatpush3.msra.mxu0 %v2574_v63  ;;  %3357 = vmatpush3.msra.mxu1 %v2574_v63 }
 0x34e   : > { %3298 = vmatprep.subr.mxu0 %v6605_v52  ;;  %3342 = vmatprep.subr.mxu1 %v6605_v52 }
 0x34f   : > { %3299 = vmatpush3.msra.mxu0 %v6605_v52  ;;  %3358 = vmatpush3.msra.mxu1 %v6605_v52 }
 0x350   : > { %3300 = vmatprep.subr.mxu0 %v6607_v34  ;;  %3343 = vmatprep.subr.mxu1 %v6607_v34 }
 0x351   : > { %3301 = vmatpush3.msra.mxu0 %v6607_v34  ;;  %3359 = vmatpush3.msra.mxu1 %v6607_v34 }
 0x352   : > { %3302 = vmatprep.subr.mxu0 %v6601_v7  ;;  %3344 = vmatprep.subr.mxu1 %v6601_v7 }
 0x353   : > { %3303 = vmatpush3.msra.mxu0 %v6601_v7  ;;  %3360 = vmatpush3.msra.mxu1 %v6601_v7 }
 0x354   : > { %3304 = vmatprep.subr.mxu0 %v6603_v40  ;;  %3345 = vmatprep.subr.mxu1 %v6603_v40 }
 0x355   : > { %3305 = vmatpush3.msra.mxu0 %v6603_v40  ;;  %3361 = vmatpush3.msra.mxu1 %v6603_v40 }
 0x356   : > { %3313 = vmatmul.mubr.f32.vlgmr.msra.gmra.mxu1 %v2638_v9  ;;  %3307 = vmatmul.mubr.f32.vlgmr.msra.gmra.mxu0 %v2634_v5 }
 0x357   : > { %3315 = vmatprep.mubr.f32.mxu1 %v2639_v32  ;;  %3309 = vmatprep.mubr.f32.mxu0 %v2635_v26 }
 0x35a   : > { %3316 = vmatmul.mubr.f32.gmra.mxu1 %v2640_v47  ;;  %3310 = vmatmul.mubr.f32.gmra.mxu0 %v2636_v2 }
 0x35b   : > { %3318 = vmatprep.mubr.f32.mxu1 %v2641_v35 }
 0x35e   : > { %3319 = vmatmul.mubr.f32.gmra.mxu1 %v2642_v29 }
 0x35f   : > { %3321 = vmatprep.mubr.f32.mxu1 %v2643_v59 }
 0x362   : > { %3322 = vmatmul.mubr.f32.gmra.mxu1 %v2644_v53 }
 0x363   : > { %3324 = vmatprep.mubr.f32.mxu1 %v2645_v60 }
 0x366   : > { %3325 = vmatmul.mubr.f32.gmra.mxu1 %v2646_v39 }
 0x367   : > { %3327 = vmatprep.mubr.f32.mxu1 %v2647_v43 }
 0x36a   : > { %3328 = vmatmul.mubr.f32.gmra.mxu1 %v2648_v15 }
 0x416   : > { %v3314_v49 = vpop.f32.mrf.mxu1  ;;  %v3308_v62 = vpop.f32.mrf.mxu0 }
 0x417   : > { %2799 = vst.msk [vmem:[%s6671_s20 + $0x28] sm:$0xff] %vm2439_vm9, %v3314_v49  ;;  %2795 = vst.msk [vmem:[%s6671_s20 + $0x8] sm:$0xff] %vm2439_vm9, %v3308_v62 }
 0x418   : > { %v2735_v23 = vpop.f32.mrf.mxu1  ;;  %v2715_v22 = vpop.f32.mrf.mxu0 }
 0x419   : > { %2798 = vst.msk [vmem:[%s6671_s20 + $0x20] sm:$0xff] %vm2439_vm9, %v2735_v23  ;;  %2794 = vst.msk [vmem:[%s6671_s20] sm:$0xff] %vm2439_vm9, %v2715_v22 }
 0x41a   : > { %v3317_v28 = vpop.f32.mrf.mxu1  ;;  %v3311_v12 = vpop.f32.mrf.mxu0 }
 0x41b   : > { %2801 = vst.msk [vmem:[%s6671_s20 + $0x38] sm:$0xff] %vm2439_vm9, %v3317_v28  ;;  %2797 = vst.msk [vmem:[%s6671_s20 + $0x18] sm:$0xff] %vm2439_vm9, %v3311_v12 }
 0x41c   : > { %v2745_v18 = vpop.f32.mrf.mxu1  ;;  %v2725_v61 = vpop.f32.mrf.mxu0 }
 0x41d   : > { %2800 = vst.msk [vmem:[%s6671_s20 + $0x30] sm:$0xff] %vm2439_vm9, %v2745_v18  ;;  %2796 = vst.msk [vmem:[%s6671_s20 + $0x10] sm:$0xff] %vm2439_vm9, %v2725_v61 }
 0x41e   : > { %v3320_v48 = vpop.f32.mrf.mxu1 }
 0x41f   : > { %2803 = vst.msk [vmem:[%s6671_s20 + $0x48] sm:$0xff] %vm2439_vm9, %v3320_v48 }
 0x420   : > { %v2755_v6 = vpop.f32.mrf.mxu1 }
 0x421   : > { %2802 = vst.msk [vmem:[%s6671_s20 + $0x40] sm:$0xff] %vm2439_vm9, %v2755_v6 }
 0x422   : > { %v3323_v25 = vpop.f32.mrf.mxu1 }
 0x423   : > { %2805 = vst.msk [vmem:[%s6671_s20 + $0x58] sm:$0xff] %vm2439_vm9, %v3323_v25 }
 0x424   : > { %v2765_v42 = vpop.f32.mrf.mxu1 }
 0x425   : > { %2804 = vst.msk [vmem:[%s6671_s20 + $0x50] sm:$0xff] %vm2439_vm9, %v2765_v42 }
 0x426   : > { %v3326_v33 = vpop.f32.mrf.mxu1 }
 0x427   : > { %2807 = vst.msk [vmem:[%s6671_s20 + $0x68] sm:$0xff] %vm2439_vm9, %v3326_v33 }
 0x428   : > { %v2775_v36 = vpop.f32.mrf.mxu1 }
 0x429   : > { %2806 = vst.msk [vmem:[%s6671_s20 + $0x60] sm:$0xff] %vm2439_vm9, %v2775_v36 }
 0x42a   : > { %v3329_v45 = vpop.f32.mrf.mxu1 }
 0x42b   : > { %2809 = vst.msk [vmem:[%s6671_s20 + $0x78] sm:$0xff] %vm2439_vm9, %v3329_v45 }
 0x42c   : > { %v2785_v41 = vpop.f32.mrf.mxu1 }
 0x42d   : > { %2808 = vst.msk [vmem:[%s6671_s20 + $0x70] sm:$0xff] %vm2439_vm9, %v2785_v41 }
 0x42e PF: > { %s7495_s30 = sld [smem:[#allocation11_spill]] }
 0x434   : > { %s17_s18 = sadd.s32 1, %s7495_s30  }
 0x435   : > { %p14_p5 = scmp.ge.s32.totalorder %s17_s18, 4  }
 0x437   :  { %16 = sbr.rel (!%p14_p5) target bundleno = 9 (0x9), region = 89 }
 0x43c   :  { %2831 = vsyncpa [#allocation6], 1 }
 0x43d   :  { %2833 = vsyncpa [#allocation6 + $0x1], 1 }
 0x43e   :  { %2834 = vsyncpa [#allocation8], 1 }

</bundles_post_ra>
